<compile_context>
chip_gen: v5e
topology: v5e:2x2
jax: 0.10.0
libtpu: 0.0.40
codegen_flags: <defaults>
</compile_context>

<pallas_src>
import functools

import jax
import jax.numpy as jnp
from jax.experimental import pallas as pl
from jax.experimental.pallas import tpu as pltpu

NUM_CLASSES = 256      # channel / sublane axis, multiple of 8
TCOLS_TARGET = 1024    # 256 x 1024 f32 tile = 1 MiB (2 MiB double-buffered)


def _round_up(v, m):
    return (v + m - 1) // m * m


def _ce_kernel(logits_ref, x_ref, out_ref, acc_ref, *, total_cols):
    """Cross-entropy partial sums over (1, 256, TCOLS) logit tiles.

    logits_ref : (1, 256, TCOLS) VMEM  logits, channel axis on sublanes
    x_ref      : (1, 1, TCOLS)   VMEM  raw x values in [0, 1)
    out_ref    : (1, 1, 1)       VMEM  per-batch CE partial sum
    acc_ref    : (1, TCOLS)      VMEM  per-lane f32 accumulator (scratch)
    """
    t = pl.program_id(1)
    nt = pl.num_programs(1)
    tcols = acc_ref.shape[1]

    @pl.when(t == 0)
    def _():
        acc_ref[...] = jnp.zeros_like(acc_ref)

    logits = logits_ref[0].astype(jnp.float32)            # (256, TCOLS)
    labels = (x_ref[0] * 255.0).astype(jnp.int32)         # (1, TCOLS), trunc like .int()

    # log-sum-exp over the channel (sublane) axis
    m = jnp.max(logits, axis=0, keepdims=True)            # (1, TCOLS)
    lse = m + jnp.log(jnp.sum(jnp.exp(logits - m), axis=0, keepdims=True))

    # target logit via one-hot select along the channel axis (no dynamic gather)
    cls = jax.lax.broadcasted_iota(jnp.int32, logits.shape, 0)
    tgt = jnp.sum(jnp.where(cls == labels, logits, 0.0), axis=0, keepdims=True)

    # mask columns past the true spatial extent (last tile may overhang)
    col = t * tcols + jax.lax.broadcasted_iota(jnp.int32, (1, tcols), 1)
    loss = jnp.where(col < total_cols, lse - tgt, 0.0)     # (1, TCOLS)

    acc_ref[...] += loss                                   # per-lane accumulation

    @pl.when(t == nt - 1)
    def _():
        # single cross-lane reduce per batch, only at the last column tile
        out_ref[0] = jnp.sum(acc_ref[...], axis=1, keepdims=True)


def ce_sum_per_batch(recon_x, x):
    """recon_x: [B, 256, D, H, W], x: [B, D, H, W] in [0,1) -> [B] f32 CE sums."""
    b = recon_x.shape[0]
    n = 1
    for d in recon_x.shape[2:]:
        n *= d

    logits = recon_x.reshape(b, NUM_CLASSES, n)   # free reshape (trailing dims only)
    xcols = x.reshape(b, 1, n)

    tcols = min(TCOLS_TARGET, _round_up(n, 128))
    n_tiles = pl.cdiv(n, tcols)

    out = pl.pallas_call(
        functools.partial(_ce_kernel, total_cols=n),
        out_shape=jax.ShapeDtypeStruct((b, 1, 1), jnp.float32),
        grid_spec=pltpu.PrefetchScalarGridSpec(
            num_scalar_prefetch=0,
            grid=(b, n_tiles),
            in_specs=[
                pl.BlockSpec((1, NUM_CLASSES, tcols), lambda bi, ti: (bi, 0, ti)),
                pl.BlockSpec((1, 1, tcols), lambda bi, ti: (bi, 0, ti)),
            ],
            out_specs=pl.BlockSpec((1, 1, 1), lambda bi, ti: (bi, 0, 0)),
            scratch_shapes=[pltpu.VMEM((1, tcols), jnp.float32)],
        ),
        compiler_params=pltpu.CompilerParams(
            # batch axis parallel -> sharded across the 2 TCs on v7x;
            # column-tile (reduction) axis stays arbitrary.
            dimension_semantics=("parallel", "arbitrary")),
    )(logits, xcols)
    return out.reshape(b)


def loss_forward(recon_x, x, mu, logvar):
    """Pallas implementation of Loss.forward.

    recon_x : [B, 256, D, H, W] float  (logits over 256 pixel intensities)
    x       : [B, D, H, W] float in [0, 1)
    mu      : [B, Z] float
    logvar  : [B, Z] float
    returns scalar f32 = sum-CE(recon_x, int(x*255)) + KLD(mu, logvar)
    """
    ce = jnp.sum(ce_sum_per_batch(recon_x, x))
    # KLD operates on a few KB -> cheaper as fused XLA ops than a second launch.
    mu32 = mu.astype(jnp.float32)
    lv32 = logvar.astype(jnp.float32)
    kld = -0.5 * jnp.sum(1.0 + lv32 - mu32 * mu32 - jnp.exp(lv32))
    return ce + kld


def _reference(recon_x, x, mu, logvar):
    logits = jnp.transpose(recon_x, (0, 2, 3, 4, 1)).reshape(-1, 256).astype(jnp.float32)
    labels = (x * 255.0).astype(jnp.int32).reshape(-1)
    lse = jax.scipy.special.logsumexp(logits, axis=-1)
    tgt = jnp.take_along_axis(logits, labels[:, None], axis=-1)[:, 0]
    ce = jnp.sum(lse - tgt)
    kld = -0.5 * jnp.sum(1.0 + logvar - mu ** 2 - jnp.exp(logvar))
    return ce + kld


if __name__ == "__main__":
    key = jax.random.PRNGKey(0)
    k1, k2, k3, k4 = jax.random.split(key, 4)

    # N = D*H*W = 1280 -> two 1024-column tiles (one ragged) per batch element.
    B, D, H, W, Z = 2, 5, 16, 16, 32
    recon_x = jax.random.normal(k1, (B, NUM_CLASSES, D, H, W), dtype=jnp.float32)
    x = jax.random.uniform(k2, (B, D, H, W), dtype=jnp.float32)
    mu = jax.random.normal(k3, (B, Z), dtype=jnp.float32)
    logvar = jax.random.normal(k4, (B, Z), dtype=jnp.float32) * 0.1

    out = jax.block_until_ready(loss_forward(recon_x, x, mu, logvar))
    ref = _reference(recon_x, x, mu, logvar)
    assert jnp.allclose(out, ref, rtol=1e-4, atol=1e-3), (out, ref)
    print("KERNEL_OK")
</pallas_src>

<mosaic_0001>
module attributes {stable_mosaic.version = 11 : i64} {
  func.func @_ce_kernel(%arg0: i32, %arg1: i32, %arg2: memref<1x256x1024xf32, #tpu.memory_space<vmem>>, %arg3: memref<1x1x1024xf32, #tpu.memory_space<vmem>>, %arg4: memref<1x1x1xf32, #tpu.memory_space<vmem>>, %arg5: memref<1x1024xf32, #tpu.memory_space<vmem>>) attributes {dimension_semantics = [#tpu.dimension_semantics<parallel>, #tpu.dimension_semantics<arbitrary>], iteration_bounds = array<i64: 2, 2>, scalar_prefetch = 0 : i64, scratch_operands = 1 : i64, tpu.core_type = #tpu.core_type<tc>, window_params = [{transform_indices = @transform_0, window_bounds = array<i64: 1, 256, 1024>}, {transform_indices = @transform_1, window_bounds = array<i64: 1, 1, 1024>}, {transform_indices = @transform_2, window_bounds = array<i64: 1, 1, 1>}]} {
    %c0_i32 = arith.constant 0 : i32
    %0 = arith.cmpi eq, %arg1, %c0_i32 : i32
    %1 = arith.extui %0 : i1 to i32
    %c0_i32_0 = arith.constant 0 : i32
    %2 = arith.cmpi ne, %1, %c0_i32_0 : i32
    scf.if %2 {
      %cst_16 = arith.constant 0.000000e+00 : f32
      %41 = vector.broadcast %cst_16 : f32 to vector<1x1024xf32>
      %c0_17 = arith.constant 0 : index
      %c0_18 = arith.constant 0 : index
      %42 = vector.load %arg5[%c0_17, %c0_18] : memref<1x1024xf32, #tpu.memory_space<vmem>>, vector<1x1024xf32>
      tpu.vector_store %arg5[%c0_17, %c0_18], %41 {strides = array<i32>} : memref<1x1024xf32, #tpu.memory_space<vmem>>, vector<1x1024xf32>,
    } else {
    }
    %c0 = arith.constant 0 : index
    %c0_1 = arith.constant 0 : index
    %c0_2 = arith.constant 0 : index
    %3 = vector.load %arg2[%c0, %c0_1, %c0_2] : memref<1x256x1024xf32, #tpu.memory_space<vmem>>, vector<1x256x1024xf32>
    %4 = vector.shape_cast %3 : vector<1x256x1024xf32> to vector<256x1024xf32>
    %c0_3 = arith.constant 0 : index
    %c0_4 = arith.constant 0 : index
    %c0_5 = arith.constant 0 : index
    %5 = vector.load %arg3[%c0_3, %c0_4, %c0_5] : memref<1x1x1024xf32, #tpu.memory_space<vmem>>, vector<1x1x1024xf32>
    %6 = vector.shape_cast %5 : vector<1x1x1024xf32> to vector<1x1024xf32>
    %cst = arith.constant 2.550000e+02 : f32
    %7 = vector.broadcast %cst : f32 to vector<1x1024xf32>
    %8 = arith.mulf %6, %7 : vector<1x1024xf32>
    %9 = arith.fptosi %8 : vector<1x1024xf32> to vector<1x1024xi32>
    %cst_6 = arith.constant dense<0xFF800000> : vector<1024xf32>
    %10 = vector.multi_reduction <maximumf>, %4, %cst_6 [0] : vector<256x1024xf32> to vector<1024xf32>
    %11 = vector.shape_cast %10 : vector<1024xf32> to vector<1x1024xf32>
    %12 = vector.broadcast %11 : vector<1x1024xf32> to vector<256x1024xf32>
    %13 = arith.subf %4, %12 : vector<256x1024xf32>
    %14 = math.exp %13 : vector<256x1024xf32>
    %cst_7 = arith.constant dense<0.000000e+00> : vector<1024xf32>
    %15 = vector.multi_reduction <add>, %14, %cst_7 [0] : vector<256x1024xf32> to vector<1024xf32>
    %16 = vector.shape_cast %15 : vector<1024xf32> to vector<1x1024xf32>
    %17 = math.log %16 : vector<1x1024xf32>
    %18 = arith.addf %11, %17 : vector<1x1024xf32>
    %19 = tpu.iota {dimensions = array<i32: 0>} : vector<256x1024xi32>
    %20 = vector.broadcast %9 : vector<1x1024xi32> to vector<256x1024xi32>
    %21 = arith.cmpi eq, %19, %20 : vector<256x1024xi32>
    %cst_8 = arith.constant 0.000000e+00 : f32
    %22 = vector.broadcast %cst_8 : f32 to vector<256x1024xf32>
    %23 = arith.select %21, %4, %22 : vector<256x1024xi1>, vector<256x1024xf32>
    %cst_9 = arith.constant dense<0.000000e+00> : vector<1024xf32>
    %24 = vector.multi_reduction <add>, %23, %cst_9 [0] : vector<256x1024xf32> to vector<1024xf32>
    %25 = vector.shape_cast %24 : vector<1024xf32> to vector<1x1024xf32>
    %c1024_i32 = arith.constant 1024 : i32
    %26 = arith.muli %arg1, %c1024_i32 : i32
    %27 = tpu.iota {dimensions = array<i32: 1>} : vector<1x1024xi32>
    %28 = vector.broadcast %26 : i32 to vector<1x1024xi32>
    %29 = arith.addi %28, %27 : vector<1x1024xi32>
    %c1280_i32 = arith.constant 1280 : i32
    %30 = vector.broadcast %c1280_i32 : i32 to vector<1x1024xi32>
    %31 = arith.cmpi slt, %29, %30 : vector<1x1024xi32>
    %32 = arith.subf %18, %25 : vector<1x1024xf32>
    %cst_10 = arith.constant 0.000000e+00 : f32
    %33 = vector.broadcast %cst_10 : f32 to vector<1x1024xf32>
    %34 = arith.select %31, %32, %33 : vector<1x1024xi1>, vector<1x1024xf32>
    %c0_11 = arith.constant 0 : index
    %c0_12 = arith.constant 0 : index
    %35 = vector.load %arg5[%c0_11, %c0_12] : memref<1x1024xf32, #tpu.memory_space<vmem>>, vector<1x1024xf32>
    %36 = arith.addf %35, %34 : vector<1x1024xf32>
    %c0_13 = arith.constant 0 : index
    %c0_14 = arith.constant 0 : index
    %37 = vector.load %arg5[%c0_13, %c0_14] : memref<1x1024xf32, #tpu.memory_space<vmem>>, vector<1x1024xf32>
    tpu.vector_store %arg5[%c0_13, %c0_14], %36 {strides = array<i32>} : memref<1x1024xf32, #tpu.memory_space<vmem>>, vector<1x1024xf32>,
    %c1_i32 = arith.constant 1 : i32
    %38 = arith.cmpi eq, %arg1, %c1_i32 : i32
    %39 = arith.extui %38 : i1 to i32
    %c0_i32_15 = arith.constant 0 : i32
    %40 = arith.cmpi ne, %39, %c0_i32_15 : i32
    scf.if %40 {
      %c0_16 = arith.constant 0 : index
      %c0_17 = arith.constant 0 : index
      %41 = vector.load %arg5[%c0_16, %c0_17] : memref<1x1024xf32, #tpu.memory_space<vmem>>, vector<1x1024xf32>
      %cst_18 = arith.constant dense<0.000000e+00> : vector<1xf32>
      %42 = vector.multi_reduction <add>, %41, %cst_18 [1] : vector<1x1024xf32> to vector<1xf32>
      %43 = vector.shape_cast %42 : vector<1xf32> to vector<1x1xf32>
      %c0_19 = arith.constant 0 : index
      %c0_20 = arith.constant 0 : index
      %c0_21 = arith.constant 0 : index
      %44 = vector.load %arg4[%c0_19, %c0_20, %c0_21] : memref<1x1x1xf32, #tpu.memory_space<vmem>>, vector<1x1x1xf32>
      %45 = vector.shape_cast %44 : vector<1x1x1xf32> to vector<1x1xf32>
      %46 = vector.shape_cast %43 : vector<1x1xf32> to vector<1x1x1xf32>
      tpu.vector_store %arg4[%c0_19, %c0_20, %c0_21], %46 {strides = array<i32>} : memref<1x1x1xf32, #tpu.memory_space<vmem>>, vector<1x1x1xf32>,
    } else {
    }
    return
  }
  func.func @transform_0(%arg0: i32, %arg1: i32) -> (i32, i32, i32) {
    %c0_i32 = arith.constant 0 : i32
    %c0_i32_0 = arith.constant 0 : i32
    return %arg0, %c0_i32, %arg1 : i32, i32, i32
  }
  func.func @transform_1(%arg0: i32, %arg1: i32) -> (i32, i32, i32) {
    %c0_i32 = arith.constant 0 : i32
    %c0_i32_0 = arith.constant 0 : i32
    return %arg0, %c0_i32, %arg1 : i32, i32, i32
  }
  func.func @transform_2(%arg0: i32, %arg1: i32) -> (i32, i32, i32) {
    %c0_i32 = arith.constant 0 : i32
    %c0_i32_0 = arith.constant 0 : i32
    %c0_i32_1 = arith.constant 0 : i32
    return %arg0, %c0_i32, %c0_i32_0 : i32, i32, i32
  }
}

</mosaic_0001>

<bundles_post_ra>
// kernel: tpu_custom_call.1
= control target key start
LH: loop header
LB: loop body
LE: loop exit
PB: predicated region body
PF: predicated region fallthrough
CT: control target
= control target key end

     0   :  { %7 = vsyncpa [#allocation4], 0  ;;  %s9542_s0 = inlined_call_operand.hbm [shape: f32[2,256,1280], index: 0, kind: input, shape index: {}]   ;;  %s9543_s1 = inlined_call_operand.hbm [shape: f32[2,1,1280], index: 1, kind: input, shape index: {}]   ;;  %s9544_s2 = inlined_call_operand.vmem [shape: f32[2,1,1], index: 2, kind: output, shape index: {}]  }
   0x1   :  { %9 = vsyncpa [#allocation4 + $0x1], 0 }
   0x2   :  { %10 = vsyncpa [#allocation6], 0 }
   0x3   :  { %12 = vsyncpa [#allocation6 + $0x1], 0  ;;  %s4250_s9 = smov 0   ;;  %s4252_s10 = smov 0  }
   0x4   :  { %s4254_s11 = smov 0   ;;  %s4256_s12 = smov 0  }
   0x5   :  { %s4258_s13 = smov 0   ;;  %s4260_s14 = smov 0  }
   0x6   :  { %s4262_s15 = smov 0   ;;  %s4264_s16 = smov 0  }
   0x7 LB: > { %s27_s17 = sadd.s32 1, %s4220_s14  ;;  %s30_s18 = sadd.s32 1, %s4224_s15  ;;  %s4228_s16 = sphi %s4264_s16, %s18_s16   ;;  %s4224_s15 = sphi %s4262_s15, %s10959_s15   ;;  %s4220_s14 = sphi %s4260_s14, %s10958_s14   ;;  %s4216_s13 = sphi %s4258_s13, %s10957_s13   ;;  %s4212_s12 = sphi %s4256_s12, %s10956_s12   ;;  %s4208_s11 = sphi %s4254_s11, %s10955_s11   ;;  %s4204_s10 = sphi %s4252_s10, %s10954_s10   ;;  %s4200_s9 = sphi %s4250_s9, %s10953_s9  }
   0x8   : > { %p28_p0 = scmp.ge.s32.totalorder %s27_s17, 2  ;;  %s2955_s19 = sadd.s32 4294967295, %s4228_s16  }
   0x9   : > { %p46_p1 = scmp.ne.s32.totalorder %s4208_s11, %s4204_s10  ;;  %p47_p2 = scmp.eq.s32.totalorder %s4228_s16, 0 }
   0xa   : > { %s10961_s17 = smov (%p28_p0, %s27_s17), 0  ;;  %s10963_s18 = smov (!%p28_p0, %s30_s18), %s4224_s15 }
   0xb   : > { %9639 = sst [smem:[#allocation9_spill]] %s10961_s17  ;;  %s35_s20 = ssub.s32 %s4220_s14, %s10961_s17 }
   0xc   : > { %p32_p3 = scmp.ge.s32.totalorder %s10963_s18, 2  ;;  %p52_p4 = scmp.ne.s32.totalorder %s4204_s10, %s4200_s9 }
   0xd   : > { %p4300_p5 = por %p47_p2, %p46_p1  ;;  %p53_p6 = scmp.eq.s32.totalorder %s2955_s19, 0 }
   0xe   : > { %s10965_s18 = smov (%p32_p3, %s10963_s18), 0  ;;  %s39_s25 = sadd.s32 1, %s4208_s11 }
   0xf   : > { %9641 = sst [smem:[#allocation10_spill]] %s10965_s18  ;;  %p4306_p7 = por %p53_p6, %p52_p4 }
  0x10   : > { %s34_s23 = ssub.s32 %s4224_s15, %s10965_s18  ;;  %p2958_p9 = scmp.ge.s32.totalorder %s4228_s16, 4 }
  0x11   : > { %s36_s24 = sor.u32 %s35_s20, %s34_s23 }
  0x12   : > { %p37_p8 = scmp.eq.s32.totalorder %s36_s24, 0  ;;  %126 = sbr.rel (%p2958_p9) target bundleno = 85 (0x55), region = 16 }
  0x14   : > { %s4314_s26 = scalar_select %p37_p8, %s4208_s11, %s39_s25  }
  0x16   : > { %9643 = sst [smem:[#allocation11_spill]] %s4314_s26 }
  0x17   : > { %129 = sbr.rel (!%p4300_p5) target bundleno = 49 (0x31), region = 20  ;;  %s130_s27 = sand.u32 (%p4300_p5), 1, %s4208_s11  }
  0x18   : > { %s2960_s28 = sshll.u32 (%p4300_p5), %s4220_s14, 3  ;;  %s2959_s29 = sshll.u32 (%p4300_p5), %s130_s27, 11 }
  0x19   : > { %s136_s30 = ssub.s32 (%p4300_p5), 10, %s2960_s28  ;;  %s4324_s6 = scalar_lea.sflag (%p4300_p5), [#allocation4], %s130_s27 }
  0x1a   : > { %p137_p10 = scmp.lt.s32.totalorder (%p4300_p5), %s136_s30, 8  ;;  %s134_s7 = scalar_lea.vmem (%p4300_p5), [#allocation3], %s2959_s29 }
  0x1c   : > { %s10967_s30 = smov (!%p137_p10, %s136_s30), 8 }
  0x1d   : > { %s2961_s3 = sshll.u32 %s10967_s30, 8 }
  0x1e   : > { %s140_s4 = ssub.s32 2048, %s2961_s3 }
  0x1f   : > { %s141_s5 = sshll.u32 %s140_s4, 4 }
  0x20   : > { %142 = vsyncadd %s4324_s6, %s141_s5  ;;  %p4327_p11 = scmp.ne.s32.totalorder %s2961_s3, 0  ;;  %s2980_s9 = smul.u32 320, %s4224_s15 }
  0x21   : > { %s2964_s19 = sshll.u32 %s10967_s30, 3  ;;  %s152_s20 = sshll.u32 %s134_s7, 4  ;;  %s153_s20 = int_to_ptr.vmem [resolvable:$true] %s152_s20 }
  0x22   : > { %s145_s23 = sadd.s32 %s2980_s9, %s2960_s28  ;;  %s2979_s25 = sshll.u32 %s10967_s30, 12 }
  0x23   : > { %s2963_s24 = sshll.u32 %s145_s23, 3  ;;  %s4082_s18 = sshrl.u32 %s2979_s25, 4 }
  0x24   : > { %s147_s29 = scalar_lea.hbm %s9542_s0, %s2963_s24  ;;  %s4099_s17 = sshra.s32 %s153_s20, 4  ;;  %s4100_s17 = int_to_ptr.vmem [resolvable:$true] %s4099_s17 }
  0x25   : > { %s150_s5 = sshll.u32 %s147_s29, 4  ;;  %s4106_s3 = scalar_lea.vmem %s4100_s17, %s4082_s18  ;;  %s151_s5 = int_to_ptr.hbm [resolvable:$true] %s150_s5 }
  0x26   : > { %p4107_p12 = scmp.ne.s32.totalorder %s4100_s17, %s4106_s3  ;;  %s4230_s26 = smov [#allocation3]  }
  0x27   : > { %s4110_s7 = scalar_lea.vmem %s4230_s26, 4096 }
  0x28   : > { %p4108_p13 = pnand %p4107_p12, %p4327_p11  ;;  %p4112_p1 = scmp.lt.s32.totalorder %s4110_s7, %s4106_s3 }
  0x2a   : > { %p4109_p0 = pneg %p4108_p13 }
  0x2c   : > { %p4114_p2 = pnand %p4112_p1, %p4109_p0 }
  0x2e   : > { %4117 = shalt.err (!%p4114_p2)
}
  0x2f   : > { %s4231_s28 = smov 1280   ;;  %s4232_s30 = smov 1024  }
  0x30   : > { %158 = dma.hbm_to_vmem [thread:$0]  (%p4327_p11), %s151_s5, %s2979_s25, %s153_s20, %s4324_s6, %s4231_s28, %s4232_s30, %s2964_s19  }
  0x31 PF: > { %161 = sbr.rel (!%p4300_p5) target bundleno = 85 (0x55), region = 24  ;;  %s162_s17 = sand.u32 (%p4300_p5), 1, %s4208_s11  }
  0x32   : > { %s2968_s18 = sshll.u32 (%p4300_p5), %s4220_s14, 3  ;;  %s2967_s9 = sshll.u32 (%p4300_p5), %s162_s17, 3 }
  0x33   : > { %s168_s23 = ssub.s32 (%p4300_p5), 10, %s2968_s18  ;;  %s4349_s27 = scalar_lea.sflag (%p4300_p5), [#allocation6], %s162_s17 }
  0x34   : > { %p169_p3 = scmp.lt.s32.totalorder (%p4300_p5), %s168_s23, 8  ;;  %s166_s6 = scalar_lea.vmem (%p4300_p5), [#allocation5], %s2967_s9 }
  0x36   : > { %s10969_s23 = smov (!%p169_p3, %s168_s23), 8 }
  0x37   : > { %s171_s26 = ssub.s32 8, %s10969_s23 }
  0x38   : > { %s172_s24 = sshll.u32 %s171_s26, 4 }
  0x39   : > { %173 = vsyncadd %s4349_s27, %s172_s24  ;;  %s2981_s21 = smul.u32 10, %s4224_s15  ;;  %p2969_p4 = scmp.ne.s32.totalorder %s10969_s23, 0 }
  0x3a   : > { %s4354_s8 = sshll.u32 %s166_s6, 4  ;;  %s178_s20 = sshll.u32 %s10969_s23, 4  ;;  %s182_s8 = int_to_ptr.vmem [resolvable:$true] %s4354_s8 }
  0x3b   : > { %s176_s19 = sadd.s32 %s2981_s21, %s2968_s18  ;;  %s4121_s7 = sshrl.u32 %s178_s20, 4 }
  0x3c   : > { %s177_s29 = scalar_lea.hbm %s9543_s1, %s176_s19  ;;  %s4130_s18 = scalar_lea.hbm %s9543_s1, 20 }
  0x3d   : > { %s179_s5 = sshll.u32 %s177_s29, 4  ;;  %s180_s5 = int_to_ptr.hbm [resolvable:$true] %s179_s5 }
  0x3e   : > { %s4119_s3 = sshra.s32 %s180_s5, 4  ;;  %s4120_s3 = int_to_ptr.hbm [resolvable:$true] %s4119_s3 }
  0x3f   : > { %s4126_s28 = scalar_lea.hbm %s4120_s3, %s4121_s7 }
  0x40   : > { %p4127_p5 = scmp.ne.s32.totalorder %s4120_s3, %s4126_s28  ;;  %p4132_p9 = scmp.lt.s32.totalorder %s4130_s18, %s4126_s28 }
  0x42   : > { %p4128_p6 = pnand %p4127_p5, %p2969_p4 }
  0x44   : > { %p4129_p8 = pneg %p4128_p6 }
  0x46   : > { %p4134_p10 = pnand %p4132_p9, %p4129_p8 }
  0x48   : > { %4137 = shalt.err (!%p4134_p10)
}
  0x49   : > { %s4138_s9 = sshra.s32 %s182_s8, 4  ;;  %s4233_s24 = smov [#allocation5]   ;;  %s4139_s9 = int_to_ptr.vmem [resolvable:$true] %s4138_s9 }
  0x4a   : > { %s4145_s26 = scalar_lea.vmem %s4139_s9, %s4121_s7  ;;  %s4149_s6 = scalar_lea.vmem %s4233_s24, 16 }
  0x4b   : > { %p4146_p11 = scmp.ne.s32.totalorder %s4139_s9, %s4145_s26  ;;  %p4151_p0 = scmp.lt.s32.totalorder %s4149_s6, %s4145_s26 }
  0x4d   : > { %p4147_p12 = pnand %p4146_p11, %p2969_p4 }
  0x4f   : > { %p4148_p13 = pneg %p4147_p12 }
  0x51   : > { %p4153_p1 = pnand %p4151_p0, %p4148_p13 }
  0x53   : > { %4156 = shalt.err (!%p4153_p1)
}
  0x54   : > { %184 = dma.hbm_to_vmem [thread:$0]  (%p2969_p4), %s180_s5, %s178_s20, %s182_s8, %s4349_s27  }
  0x55 PF: > { %p2970_p2 = scmp.ge.s32.totalorder %s4228_s16, 1  ;;  %p186_p3 = scmp.lt.s32.totalorder %s4228_s16, 5 }
  0x57   : > { %p187_p5 = pnand %p2970_p2, %p186_p3 }
  0x59   : > { %190 = sbr.rel (%p187_p5) target bundleno = 1051 (0x41b), region = 28 }
  0x5e   : > { %s192_s21 = sand.u32 1, %s4204_s10  }
  0x5f   : > { %s2971_s19 = sshll.u32 %s192_s21, 11  ;;  %s193_s25 = scalar_lea.sflag [#allocation4], %s192_s21 }
  0x60   : > { %s4378_s4 = scalar_lea.vmem [#allocation3], %s2971_s19 }
  0x61   : > { %4191 = dma.done.wait (%p4306_p7), %s193_s25, 32768  }
  0x62   : > { %4193 = vsyncadd (%p4306_p7), %s193_s25, 4294934528  ;;  %s2972_s23 = sshll.u32 %s192_s21, 3  ;;  %s203_s27 = scalar_lea.sflag [#allocation6], %s192_s21 }
  0x63   : > { %s4384_s8 = scalar_lea.vmem [#allocation5], %s2972_s23 }
  0x64   : > { %4195 = dma.done.wait (%p4306_p7), %s203_s27, 128  }
  0x65   : > { %4197 = vsyncadd (%p4306_p7), %s203_s27, 4294967168  ;;  %p240_p4 = scmp.lt.s32.totalorder %s4216_s13, 1  ;;  %p2973_p6 = scmp.ne.s32.totalorder %s4212_s12, 0 }
  0x67   : > { %s10971_s13 = smov (!%p240_p4, %s4216_s13), 1  ;;  %246 = sbr.rel (%p2973_p6) target bundleno = 110 (0x6e), region = 40 }
  0x68   : > { %s242_s5 = scalar_lea.vmem %s9544_s2, %s10971_s13 }
  0x6c   : > { %v4234_v0 = vmov 0.0  }
  0x6d   : > { %247 = vst [vmem:[#allocation2] sm:$0xff] %v4234_v0 }
  0x6e PF: > { %v264_v1 = vld [vmem:[%s4378_s4 + $0x80] sm:$0xff]  ;;  %v265_v3 = vld [vmem:[%s4378_s4 + $0x88] sm:$0xff]  ;;  %v266_v5 = vld [vmem:[%s4378_s4 + $0x90] sm:$0xff]  ;;  %s2974_s22 = sshll.u32 %s4212_s12, 10  ;;  %p2975_p7 = scmp.ne.s32.totalorder %s4212_s12, 1 }
  0x6f   : > { %v272_v2 = vld [vmem:[%s4378_s4 + $0xc0] sm:$0xff]  ;;  %v273_v4 = vld [vmem:[%s4378_s4 + $0xc8] sm:$0xff]  ;;  %v274_v6 = vld [vmem:[%s4378_s4 + $0xd0] sm:$0xff] }
  0x70   : > { %v267_v7 = vld [vmem:[%s4378_s4 + $0x98] sm:$0xff]  ;;  %v508_v8 = vmax.f32 %v272_v2, %v264_v1  ;;  %v268_v10 = vld [vmem:[%s4378_s4 + $0xa0] sm:$0xff]  ;;  %v545_v11 = vmax.f32 %v273_v4, %v265_v3  ;;  %v269_v14 = vld [vmem:[%s4378_s4 + $0xa8] sm:$0xff]  ;;  %v582_v15 = vmax.f32 %v274_v6, %v266_v5 }
  0x71   : > { %v275_v9 = vld [vmem:[%s4378_s4 + $0xd8] sm:$0xff]  ;;  %v276_v12 = vld [vmem:[%s4378_s4 + $0xe0] sm:$0xff]  ;;  %v277_v16 = vld [vmem:[%s4378_s4 + $0xe8] sm:$0xff] }
  0x72   : > { %v280_v13 = vld [vmem:[%s4378_s4 + $0x100] sm:$0xff]  ;;  %v281_v17 = vld [vmem:[%s4378_s4 + $0x108] sm:$0xff]  ;;  %v270_v18 = vld [vmem:[%s4378_s4 + $0xb0] sm:$0xff]  ;;  %v619_v19 = vmax.f32 %v275_v9, %v267_v7  ;;  %v656_v23 = vmax.f32 %v276_v12, %v268_v10  ;;  %v693_v27 = vmax.f32 %v277_v16, %v269_v14 }
  0x73   : > { %v278_v20 = vld [vmem:[%s4378_s4 + $0xf0] sm:$0xff]  ;;  %v271_v22 = vld [vmem:[%s4378_s4 + $0xb8] sm:$0xff]  ;;  %v509_v25 = vmax.f32 %v508_v8, %v280_v13  ;;  %v546_v28 = vmax.f32 %v545_v11, %v281_v17  ;;  %v284_v29 = vld [vmem:[%s4378_s4 + $0x120] sm:$0xff] }
  0x74   : > { %v282_v21 = vld [vmem:[%s4378_s4 + $0x110] sm:$0xff]  ;;  %v279_v24 = vld [vmem:[%s4378_s4 + $0xf8] sm:$0xff]  ;;  %v288_v30 = vld [vmem:[%s4378_s4 + $0x140] sm:$0xff]  ;;  %v730_v31 = vmax.f32 %v278_v20, %v270_v18  ;;  %v657_v39 = vmax.f32 %v656_v23, %v284_v29 }
  0x75   : > { %v283_v26 = vld [vmem:[%s4378_s4 + $0x118] sm:$0xff]  ;;  %v583_v32 = vmax.f32 %v582_v15, %v282_v21  ;;  %v285_v33 = vld [vmem:[%s4378_s4 + $0x128] sm:$0xff]  ;;  %v767_v35 = vmax.f32 %v279_v24, %v271_v22  ;;  %v286_v37 = vld [vmem:[%s4378_s4 + $0x130] sm:$0xff]  ;;  %v510_v41 = vmax.f32 %v509_v25, %v288_v30 }
  0x76   : > { %v289_v34 = vld [vmem:[%s4378_s4 + $0x148] sm:$0xff]  ;;  %v620_v36 = vmax.f32 %v619_v19, %v283_v26  ;;  %v290_v38 = vld [vmem:[%s4378_s4 + $0x150] sm:$0xff]  ;;  %v287_v40 = vld [vmem:[%s4378_s4 + $0x138] sm:$0xff]  ;;  %v694_v43 = vmax.f32 %v693_v27, %v285_v33  ;;  %v731_v47 = vmax.f32 %v730_v31, %v286_v37 }
  0x77   : > { %v291_v42 = vld [vmem:[%s4378_s4 + $0x158] sm:$0xff]  ;;  %v547_v44 = vmax.f32 %v546_v28, %v289_v34  ;;  %v292_v45 = vld [vmem:[%s4378_s4 + $0x160] sm:$0xff]  ;;  %v584_v48 = vmax.f32 %v583_v32, %v290_v38  ;;  %v293_v49 = vld [vmem:[%s4378_s4 + $0x168] sm:$0xff]  ;;  %v768_v51 = vmax.f32 %v767_v35, %v287_v40 }
  0x78   : > { %v296_v46 = vld [vmem:[%s4378_s4 + $0x180] sm:$0xff]  ;;  %v297_v50 = vld [vmem:[%s4378_s4 + $0x188] sm:$0xff]  ;;  %v621_v52 = vmax.f32 %v620_v36, %v291_v42  ;;  %v294_v53 = vld [vmem:[%s4378_s4 + $0x170] sm:$0xff]  ;;  %v658_v55 = vmax.f32 %v657_v39, %v292_v45  ;;  %v695_v59 = vmax.f32 %v694_v43, %v293_v49 }
  0x79   : > { %v298_v54 = vld [vmem:[%s4378_s4 + $0x190] sm:$0xff]  ;;  %v295_v56 = vld [vmem:[%s4378_s4 + $0x178] sm:$0xff]  ;;  %v511_v57 = vmax.f32 %v510_v41, %v296_v46  ;;  %v548_v60 = vmax.f32 %v547_v44, %v297_v50  ;;  %v300_v61 = vld [vmem:[%s4378_s4 + $0x1a0] sm:$0xff]  ;;  %v732_v63 = vmax.f32 %v731_v47, %v294_v53 }
  0x7a   : > { %v299_v58 = vld [vmem:[%s4378_s4 + $0x198] sm:$0xff]  ;;  %v304_v62 = vld [vmem:[%s4378_s4 + $0x1c0] sm:$0xff]  ;;  %v585_v0 = vmax.f32 %v584_v48, %v298_v54  ;;  %v301_v1 = vld [vmem:[%s4378_s4 + $0x1a8] sm:$0xff]  ;;  %v769_v3 = vmax.f32 %v768_v51, %v295_v56  ;;  %v659_v7 = vmax.f32 %v658_v55, %v300_v61 }
  0x7b   : > { %v305_v2 = vld [vmem:[%s4378_s4 + $0x1c8] sm:$0xff]  ;;  %v622_v4 = vmax.f32 %v621_v52, %v299_v58  ;;  %v302_v5 = vld [vmem:[%s4378_s4 + $0x1b0] sm:$0xff]  ;;  %v303_v8 = vld [vmem:[%s4378_s4 + $0x1b8] sm:$0xff]  ;;  %v512_v9 = vmax.f32 %v511_v57, %v304_v62  ;;  %v696_v11 = vmax.f32 %v695_v59, %v301_v1 }
  0x7c   : > { %v306_v6 = vld [vmem:[%s4378_s4 + $0x1d0] sm:$0xff]  ;;  %v307_v10 = vld [vmem:[%s4378_s4 + $0x1d8] sm:$0xff]  ;;  %v549_v12 = vmax.f32 %v548_v60, %v305_v2  ;;  %v308_v13 = vld [vmem:[%s4378_s4 + $0x1e0] sm:$0xff]  ;;  %v733_v15 = vmax.f32 %v732_v63, %v302_v5  ;;  %v770_v19 = vmax.f32 %v769_v3, %v303_v8 }
  0x7d   : > { %v312_v14 = vld [vmem:[%s4378_s4 + $0x200] sm:$0xff]  ;;  %v586_v16 = vmax.f32 %v585_v0, %v306_v6  ;;  %v309_v17 = vld [vmem:[%s4378_s4 + $0x1e8] sm:$0xff]  ;;  %v623_v20 = vmax.f32 %v622_v4, %v307_v10  ;;  %v310_v21 = vld [vmem:[%s4378_s4 + $0x1f0] sm:$0xff]  ;;  %v660_v23 = vmax.f32 %v659_v7, %v308_v13 }
  0x7e   : > { %v313_v18 = vld [vmem:[%s4378_s4 + $0x208] sm:$0xff]  ;;  %v314_v22 = vld [vmem:[%s4378_s4 + $0x210] sm:$0xff]  ;;  %v311_v24 = vld [vmem:[%s4378_s4 + $0x1f8] sm:$0xff]  ;;  %v513_v25 = vmax.f32 %v512_v9, %v312_v14  ;;  %v697_v27 = vmax.f32 %v696_v11, %v309_v17  ;;  %v734_v31 = vmax.f32 %v733_v15, %v310_v21 }
  0x7f   : > { %v315_v26 = vld [vmem:[%s4378_s4 + $0x218] sm:$0xff]  ;;  %v550_v28 = vmax.f32 %v549_v12, %v313_v18  ;;  %v316_v29 = vld [vmem:[%s4378_s4 + $0x220] sm:$0xff]  ;;  %v587_v32 = vmax.f32 %v586_v16, %v314_v22  ;;  %v317_v33 = vld [vmem:[%s4378_s4 + $0x228] sm:$0xff]  ;;  %v771_v35 = vmax.f32 %v770_v19, %v311_v24 }
  0x80   : > { %v320_v30 = vld [vmem:[%s4378_s4 + $0x240] sm:$0xff]  ;;  %v321_v34 = vld [vmem:[%s4378_s4 + $0x248] sm:$0xff]  ;;  %v624_v36 = vmax.f32 %v623_v20, %v315_v26  ;;  %v318_v37 = vld [vmem:[%s4378_s4 + $0x230] sm:$0xff]  ;;  %v661_v39 = vmax.f32 %v660_v23, %v316_v29  ;;  %v698_v43 = vmax.f32 %v697_v27, %v317_v33 }
  0x81   : > { %v322_v38 = vld [vmem:[%s4378_s4 + $0x250] sm:$0xff]  ;;  %v319_v40 = vld [vmem:[%s4378_s4 + $0x238] sm:$0xff]  ;;  %v514_v41 = vmax.f32 %v513_v25, %v320_v30  ;;  %v551_v44 = vmax.f32 %v550_v28, %v321_v34  ;;  %v324_v45 = vld [vmem:[%s4378_s4 + $0x260] sm:$0xff]  ;;  %v735_v47 = vmax.f32 %v734_v31, %v318_v37 }
  0x82   : > { %v323_v42 = vld [vmem:[%s4378_s4 + $0x258] sm:$0xff]  ;;  %v328_v46 = vld [vmem:[%s4378_s4 + $0x280] sm:$0xff]  ;;  %v588_v48 = vmax.f32 %v587_v32, %v322_v38  ;;  %v325_v49 = vld [vmem:[%s4378_s4 + $0x268] sm:$0xff]  ;;  %v772_v51 = vmax.f32 %v771_v35, %v319_v40  ;;  %v662_v55 = vmax.f32 %v661_v39, %v324_v45 }
  0x83   : > { %v329_v50 = vld [vmem:[%s4378_s4 + $0x288] sm:$0xff]  ;;  %v625_v52 = vmax.f32 %v624_v36, %v323_v42  ;;  %v326_v53 = vld [vmem:[%s4378_s4 + $0x270] sm:$0xff]  ;;  %v327_v56 = vld [vmem:[%s4378_s4 + $0x278] sm:$0xff]  ;;  %v515_v57 = vmax.f32 %v514_v41, %v328_v46  ;;  %v699_v59 = vmax.f32 %v698_v43, %v325_v49 }
  0x84   : > { %v330_v54 = vld [vmem:[%s4378_s4 + $0x290] sm:$0xff]  ;;  %v331_v58 = vld [vmem:[%s4378_s4 + $0x298] sm:$0xff]  ;;  %v552_v60 = vmax.f32 %v551_v44, %v329_v50  ;;  %v332_v61 = vld [vmem:[%s4378_s4 + $0x2a0] sm:$0xff]  ;;  %v736_v63 = vmax.f32 %v735_v47, %v326_v53  ;;  %v773_v3 = vmax.f32 %v772_v51, %v327_v56 }
  0x85   : > { %v336_v62 = vld [vmem:[%s4378_s4 + $0x2c0] sm:$0xff]  ;;  %v589_v0 = vmax.f32 %v588_v48, %v330_v54  ;;  %v333_v1 = vld [vmem:[%s4378_s4 + $0x2a8] sm:$0xff]  ;;  %v626_v4 = vmax.f32 %v625_v52, %v331_v58  ;;  %v334_v5 = vld [vmem:[%s4378_s4 + $0x2b0] sm:$0xff]  ;;  %v663_v7 = vmax.f32 %v662_v55, %v332_v61 }
  0x86   : > { %v337_v2 = vld [vmem:[%s4378_s4 + $0x2c8] sm:$0xff]  ;;  %v338_v6 = vld [vmem:[%s4378_s4 + $0x2d0] sm:$0xff]  ;;  %v335_v8 = vld [vmem:[%s4378_s4 + $0x2b8] sm:$0xff]  ;;  %v516_v9 = vmax.f32 %v515_v57, %v336_v62  ;;  %v700_v11 = vmax.f32 %v699_v59, %v333_v1  ;;  %v737_v15 = vmax.f32 %v736_v63, %v334_v5 }
  0x87   : > { %v339_v10 = vld [vmem:[%s4378_s4 + $0x2d8] sm:$0xff]  ;;  %v553_v12 = vmax.f32 %v552_v60, %v337_v2  ;;  %v340_v13 = vld [vmem:[%s4378_s4 + $0x2e0] sm:$0xff]  ;;  %v590_v16 = vmax.f32 %v589_v0, %v338_v6  ;;  %v341_v17 = vld [vmem:[%s4378_s4 + $0x2e8] sm:$0xff]  ;;  %v774_v19 = vmax.f32 %v773_v3, %v335_v8 }
  0x88   : > { %v344_v14 = vld [vmem:[%s4378_s4 + $0x300] sm:$0xff]  ;;  %v345_v18 = vld [vmem:[%s4378_s4 + $0x308] sm:$0xff]  ;;  %v627_v20 = vmax.f32 %v626_v4, %v339_v10  ;;  %v342_v21 = vld [vmem:[%s4378_s4 + $0x2f0] sm:$0xff]  ;;  %v664_v23 = vmax.f32 %v663_v7, %v340_v13  ;;  %v701_v27 = vmax.f32 %v700_v11, %v341_v17 }
  0x89   : > { %v346_v22 = vld [vmem:[%s4378_s4 + $0x310] sm:$0xff]  ;;  %v343_v24 = vld [vmem:[%s4378_s4 + $0x2f8] sm:$0xff]  ;;  %v517_v25 = vmax.f32 %v516_v9, %v344_v14  ;;  %v554_v28 = vmax.f32 %v553_v12, %v345_v18  ;;  %v348_v29 = vld [vmem:[%s4378_s4 + $0x320] sm:$0xff]  ;;  %v738_v31 = vmax.f32 %v737_v15, %v342_v21 }
  0x8a   : > { %v347_v26 = vld [vmem:[%s4378_s4 + $0x318] sm:$0xff]  ;;  %v352_v30 = vld [vmem:[%s4378_s4 + $0x340] sm:$0xff]  ;;  %v591_v32 = vmax.f32 %v590_v16, %v346_v22  ;;  %v349_v33 = vld [vmem:[%s4378_s4 + $0x328] sm:$0xff]  ;;  %v775_v35 = vmax.f32 %v774_v19, %v343_v24  ;;  %v665_v39 = vmax.f32 %v664_v23, %v348_v29 }
  0x8b   : > { %v353_v34 = vld [vmem:[%s4378_s4 + $0x348] sm:$0xff]  ;;  %v628_v36 = vmax.f32 %v627_v20, %v347_v26  ;;  %v350_v37 = vld [vmem:[%s4378_s4 + $0x330] sm:$0xff]  ;;  %v351_v40 = vld [vmem:[%s4378_s4 + $0x338] sm:$0xff]  ;;  %v518_v41 = vmax.f32 %v517_v25, %v352_v30  ;;  %v702_v43 = vmax.f32 %v701_v27, %v349_v33 }
  0x8c   : > { %v354_v38 = vld [vmem:[%s4378_s4 + $0x350] sm:$0xff]  ;;  %v355_v42 = vld [vmem:[%s4378_s4 + $0x358] sm:$0xff]  ;;  %v555_v44 = vmax.f32 %v554_v28, %v353_v34  ;;  %v356_v45 = vld [vmem:[%s4378_s4 + $0x360] sm:$0xff]  ;;  %v739_v47 = vmax.f32 %v738_v31, %v350_v37  ;;  %v776_v51 = vmax.f32 %v775_v35, %v351_v40 }
  0x8d   : > { %v360_v46 = vld [vmem:[%s4378_s4 + $0x380] sm:$0xff]  ;;  %v592_v48 = vmax.f32 %v591_v32, %v354_v38  ;;  %v357_v49 = vld [vmem:[%s4378_s4 + $0x368] sm:$0xff]  ;;  %v629_v52 = vmax.f32 %v628_v36, %v355_v42  ;;  %v358_v53 = vld [vmem:[%s4378_s4 + $0x370] sm:$0xff]  ;;  %v666_v55 = vmax.f32 %v665_v39, %v356_v45 }
  0x8e   : > { %v361_v50 = vld [vmem:[%s4378_s4 + $0x388] sm:$0xff]  ;;  %v362_v54 = vld [vmem:[%s4378_s4 + $0x390] sm:$0xff]  ;;  %v359_v56 = vld [vmem:[%s4378_s4 + $0x378] sm:$0xff]  ;;  %v519_v57 = vmax.f32 %v518_v41, %v360_v46  ;;  %v703_v59 = vmax.f32 %v702_v43, %v357_v49  ;;  %v740_v63 = vmax.f32 %v739_v47, %v358_v53 }
  0x8f   : > { %v363_v58 = vld [vmem:[%s4378_s4 + $0x398] sm:$0xff]  ;;  %v556_v60 = vmax.f32 %v555_v44, %v361_v50  ;;  %v364_v61 = vld [vmem:[%s4378_s4 + $0x3a0] sm:$0xff]  ;;  %v593_v0 = vmax.f32 %v592_v48, %v362_v54  ;;  %v365_v1 = vld [vmem:[%s4378_s4 + $0x3a8] sm:$0xff]  ;;  %v777_v3 = vmax.f32 %v776_v51, %v359_v56 }
  0x90   : > { %v368_v62 = vld [vmem:[%s4378_s4 + $0x3c0] sm:$0xff]  ;;  %v369_v2 = vld [vmem:[%s4378_s4 + $0x3c8] sm:$0xff]  ;;  %v630_v4 = vmax.f32 %v629_v52, %v363_v58  ;;  %v366_v5 = vld [vmem:[%s4378_s4 + $0x3b0] sm:$0xff]  ;;  %v667_v7 = vmax.f32 %v666_v55, %v364_v61  ;;  %v704_v11 = vmax.f32 %v703_v59, %v365_v1 }
  0x91   : > { %v370_v6 = vld [vmem:[%s4378_s4 + $0x3d0] sm:$0xff]  ;;  %v367_v8 = vld [vmem:[%s4378_s4 + $0x3b8] sm:$0xff]  ;;  %v520_v9 = vmax.f32 %v519_v57, %v368_v62  ;;  %v557_v12 = vmax.f32 %v556_v60, %v369_v2  ;;  %v372_v13 = vld [vmem:[%s4378_s4 + $0x3e0] sm:$0xff]  ;;  %v741_v15 = vmax.f32 %v740_v63, %v366_v5 }
  0x92   : > { %v371_v10 = vld [vmem:[%s4378_s4 + $0x3d8] sm:$0xff]  ;;  %v376_v14 = vld [vmem:[%s4378_s4 + $0x400] sm:$0xff]  ;;  %v594_v16 = vmax.f32 %v593_v0, %v370_v6  ;;  %v373_v17 = vld [vmem:[%s4378_s4 + $0x3e8] sm:$0xff]  ;;  %v778_v19 = vmax.f32 %v777_v3, %v367_v8  ;;  %v668_v23 = vmax.f32 %v667_v7, %v372_v13 }
  0x93   : > { %v377_v18 = vld [vmem:[%s4378_s4 + $0x408] sm:$0xff]  ;;  %v631_v20 = vmax.f32 %v630_v4, %v371_v10  ;;  %v374_v21 = vld [vmem:[%s4378_s4 + $0x3f0] sm:$0xff]  ;;  %v375_v24 = vld [vmem:[%s4378_s4 + $0x3f8] sm:$0xff]  ;;  %v521_v25 = vmax.f32 %v520_v9, %v376_v14  ;;  %v705_v27 = vmax.f32 %v704_v11, %v373_v17 }
  0x94   : > { %v378_v22 = vld [vmem:[%s4378_s4 + $0x410] sm:$0xff]  ;;  %v379_v26 = vld [vmem:[%s4378_s4 + $0x418] sm:$0xff]  ;;  %v558_v28 = vmax.f32 %v557_v12, %v377_v18  ;;  %v380_v29 = vld [vmem:[%s4378_s4 + $0x420] sm:$0xff]  ;;  %v742_v31 = vmax.f32 %v741_v15, %v374_v21  ;;  %v779_v35 = vmax.f32 %v778_v19, %v375_v24 }
  0x95   : > { %v384_v30 = vld [vmem:[%s4378_s4 + $0x440] sm:$0xff]  ;;  %v595_v32 = vmax.f32 %v594_v16, %v378_v22  ;;  %v381_v33 = vld [vmem:[%s4378_s4 + $0x428] sm:$0xff]  ;;  %v632_v36 = vmax.f32 %v631_v20, %v379_v26  ;;  %v382_v37 = vld [vmem:[%s4378_s4 + $0x430] sm:$0xff]  ;;  %v669_v39 = vmax.f32 %v668_v23, %v380_v29 }
  0x96   : > { %v385_v34 = vld [vmem:[%s4378_s4 + $0x448] sm:$0xff]  ;;  %v386_v38 = vld [vmem:[%s4378_s4 + $0x450] sm:$0xff]  ;;  %v383_v40 = vld [vmem:[%s4378_s4 + $0x438] sm:$0xff]  ;;  %v522_v41 = vmax.f32 %v521_v25, %v384_v30  ;;  %v706_v43 = vmax.f32 %v705_v27, %v381_v33  ;;  %v743_v47 = vmax.f32 %v742_v31, %v382_v37 }
  0x97   : > { %v387_v42 = vld [vmem:[%s4378_s4 + $0x458] sm:$0xff]  ;;  %v559_v44 = vmax.f32 %v558_v28, %v385_v34  ;;  %v388_v45 = vld [vmem:[%s4378_s4 + $0x460] sm:$0xff]  ;;  %v596_v48 = vmax.f32 %v595_v32, %v386_v38  ;;  %v389_v49 = vld [vmem:[%s4378_s4 + $0x468] sm:$0xff]  ;;  %v780_v51 = vmax.f32 %v779_v35, %v383_v40 }
  0x98   : > { %v392_v46 = vld [vmem:[%s4378_s4 + $0x480] sm:$0xff]  ;;  %v393_v50 = vld [vmem:[%s4378_s4 + $0x488] sm:$0xff]  ;;  %v633_v52 = vmax.f32 %v632_v36, %v387_v42  ;;  %v390_v53 = vld [vmem:[%s4378_s4 + $0x470] sm:$0xff]  ;;  %v670_v55 = vmax.f32 %v669_v39, %v388_v45  ;;  %v707_v59 = vmax.f32 %v706_v43, %v389_v49 }
  0x99   : > { %v394_v54 = vld [vmem:[%s4378_s4 + $0x490] sm:$0xff]  ;;  %v391_v56 = vld [vmem:[%s4378_s4 + $0x478] sm:$0xff]  ;;  %v523_v57 = vmax.f32 %v522_v41, %v392_v46  ;;  %v560_v60 = vmax.f32 %v559_v44, %v393_v50  ;;  %v396_v61 = vld [vmem:[%s4378_s4 + $0x4a0] sm:$0xff]  ;;  %v744_v63 = vmax.f32 %v743_v47, %v390_v53 }
  0x9a   : > { %v395_v58 = vld [vmem:[%s4378_s4 + $0x498] sm:$0xff]  ;;  %v400_v62 = vld [vmem:[%s4378_s4 + $0x4c0] sm:$0xff]  ;;  %v597_v0 = vmax.f32 %v596_v48, %v394_v54  ;;  %v397_v1 = vld [vmem:[%s4378_s4 + $0x4a8] sm:$0xff]  ;;  %v781_v3 = vmax.f32 %v780_v51, %v391_v56  ;;  %v671_v7 = vmax.f32 %v670_v55, %v396_v61 }
  0x9b   : > { %v401_v2 = vld [vmem:[%s4378_s4 + $0x4c8] sm:$0xff]  ;;  %v634_v4 = vmax.f32 %v633_v52, %v395_v58  ;;  %v398_v5 = vld [vmem:[%s4378_s4 + $0x4b0] sm:$0xff]  ;;  %v399_v8 = vld [vmem:[%s4378_s4 + $0x4b8] sm:$0xff]  ;;  %v524_v9 = vmax.f32 %v523_v57, %v400_v62  ;;  %v708_v11 = vmax.f32 %v707_v59, %v397_v1 }
  0x9c   : > { %v402_v6 = vld [vmem:[%s4378_s4 + $0x4d0] sm:$0xff]  ;;  %v403_v10 = vld [vmem:[%s4378_s4 + $0x4d8] sm:$0xff]  ;;  %v561_v12 = vmax.f32 %v560_v60, %v401_v2  ;;  %v404_v13 = vld [vmem:[%s4378_s4 + $0x4e0] sm:$0xff]  ;;  %v745_v15 = vmax.f32 %v744_v63, %v398_v5  ;;  %v782_v19 = vmax.f32 %v781_v3, %v399_v8 }
  0x9d   : > { %v408_v14 = vld [vmem:[%s4378_s4 + $0x500] sm:$0xff]  ;;  %v598_v16 = vmax.f32 %v597_v0, %v402_v6  ;;  %v405_v17 = vld [vmem:[%s4378_s4 + $0x4e8] sm:$0xff]  ;;  %v635_v20 = vmax.f32 %v634_v4, %v403_v10  ;;  %v406_v21 = vld [vmem:[%s4378_s4 + $0x4f0] sm:$0xff]  ;;  %v672_v23 = vmax.f32 %v671_v7, %v404_v13 }
  0x9e   : > { %v409_v18 = vld [vmem:[%s4378_s4 + $0x508] sm:$0xff]  ;;  %v410_v22 = vld [vmem:[%s4378_s4 + $0x510] sm:$0xff]  ;;  %v407_v24 = vld [vmem:[%s4378_s4 + $0x4f8] sm:$0xff]  ;;  %v525_v25 = vmax.f32 %v524_v9, %v408_v14  ;;  %v709_v27 = vmax.f32 %v708_v11, %v405_v17  ;;  %v746_v31 = vmax.f32 %v745_v15, %v406_v21 }
  0x9f   : > { %v411_v26 = vld [vmem:[%s4378_s4 + $0x518] sm:$0xff]  ;;  %v562_v28 = vmax.f32 %v561_v12, %v409_v18  ;;  %v412_v29 = vld [vmem:[%s4378_s4 + $0x520] sm:$0xff]  ;;  %v599_v32 = vmax.f32 %v598_v16, %v410_v22  ;;  %v413_v33 = vld [vmem:[%s4378_s4 + $0x528] sm:$0xff]  ;;  %v783_v35 = vmax.f32 %v782_v19, %v407_v24 }
  0xa0   : > { %v416_v30 = vld [vmem:[%s4378_s4 + $0x540] sm:$0xff]  ;;  %v417_v34 = vld [vmem:[%s4378_s4 + $0x548] sm:$0xff]  ;;  %v636_v36 = vmax.f32 %v635_v20, %v411_v26  ;;  %v414_v37 = vld [vmem:[%s4378_s4 + $0x530] sm:$0xff]  ;;  %v673_v39 = vmax.f32 %v672_v23, %v412_v29  ;;  %v710_v43 = vmax.f32 %v709_v27, %v413_v33 }
  0xa1   : > { %v418_v38 = vld [vmem:[%s4378_s4 + $0x550] sm:$0xff]  ;;  %v415_v40 = vld [vmem:[%s4378_s4 + $0x538] sm:$0xff]  ;;  %v526_v41 = vmax.f32 %v525_v25, %v416_v30  ;;  %v563_v44 = vmax.f32 %v562_v28, %v417_v34  ;;  %v420_v45 = vld [vmem:[%s4378_s4 + $0x560] sm:$0xff]  ;;  %v747_v47 = vmax.f32 %v746_v31, %v414_v37 }
  0xa2   : > { %v419_v42 = vld [vmem:[%s4378_s4 + $0x558] sm:$0xff]  ;;  %v424_v46 = vld [vmem:[%s4378_s4 + $0x580] sm:$0xff]  ;;  %v600_v48 = vmax.f32 %v599_v32, %v418_v38  ;;  %v421_v49 = vld [vmem:[%s4378_s4 + $0x568] sm:$0xff]  ;;  %v784_v51 = vmax.f32 %v783_v35, %v415_v40  ;;  %v674_v55 = vmax.f32 %v673_v39, %v420_v45 }
  0xa3   : > { %v425_v50 = vld [vmem:[%s4378_s4 + $0x588] sm:$0xff]  ;;  %v637_v52 = vmax.f32 %v636_v36, %v419_v42  ;;  %v422_v53 = vld [vmem:[%s4378_s4 + $0x570] sm:$0xff]  ;;  %v423_v56 = vld [vmem:[%s4378_s4 + $0x578] sm:$0xff]  ;;  %v527_v57 = vmax.f32 %v526_v41, %v424_v46  ;;  %v711_v59 = vmax.f32 %v710_v43, %v421_v49 }
  0xa4   : > { %v426_v54 = vld [vmem:[%s4378_s4 + $0x590] sm:$0xff]  ;;  %v427_v58 = vld [vmem:[%s4378_s4 + $0x598] sm:$0xff]  ;;  %v564_v60 = vmax.f32 %v563_v44, %v425_v50  ;;  %v428_v61 = vld [vmem:[%s4378_s4 + $0x5a0] sm:$0xff]  ;;  %v748_v63 = vmax.f32 %v747_v47, %v422_v53  ;;  %v785_v3 = vmax.f32 %v784_v51, %v423_v56 }
  0xa5   : > { %v432_v62 = vld [vmem:[%s4378_s4 + $0x5c0] sm:$0xff]  ;;  %v601_v0 = vmax.f32 %v600_v48, %v426_v54  ;;  %v429_v1 = vld [vmem:[%s4378_s4 + $0x5a8] sm:$0xff]  ;;  %v638_v4 = vmax.f32 %v637_v52, %v427_v58  ;;  %v430_v5 = vld [vmem:[%s4378_s4 + $0x5b0] sm:$0xff]  ;;  %v675_v7 = vmax.f32 %v674_v55, %v428_v61 }
  0xa6   : > { %v433_v2 = vld [vmem:[%s4378_s4 + $0x5c8] sm:$0xff]  ;;  %v434_v6 = vld [vmem:[%s4378_s4 + $0x5d0] sm:$0xff]  ;;  %v431_v8 = vld [vmem:[%s4378_s4 + $0x5b8] sm:$0xff]  ;;  %v528_v9 = vmax.f32 %v527_v57, %v432_v62  ;;  %v712_v11 = vmax.f32 %v711_v59, %v429_v1  ;;  %v749_v15 = vmax.f32 %v748_v63, %v430_v5 }
  0xa7   : > { %v435_v10 = vld [vmem:[%s4378_s4 + $0x5d8] sm:$0xff]  ;;  %v565_v12 = vmax.f32 %v564_v60, %v433_v2  ;;  %v436_v13 = vld [vmem:[%s4378_s4 + $0x5e0] sm:$0xff]  ;;  %v602_v16 = vmax.f32 %v601_v0, %v434_v6  ;;  %v437_v17 = vld [vmem:[%s4378_s4 + $0x5e8] sm:$0xff]  ;;  %v786_v19 = vmax.f32 %v785_v3, %v431_v8 }
  0xa8   : > { %v440_v14 = vld [vmem:[%s4378_s4 + $0x600] sm:$0xff]  ;;  %v441_v18 = vld [vmem:[%s4378_s4 + $0x608] sm:$0xff]  ;;  %v639_v20 = vmax.f32 %v638_v4, %v435_v10  ;;  %v438_v21 = vld [vmem:[%s4378_s4 + $0x5f0] sm:$0xff]  ;;  %v676_v23 = vmax.f32 %v675_v7, %v436_v13  ;;  %v713_v27 = vmax.f32 %v712_v11, %v437_v17 }
  0xa9   : > { %v442_v22 = vld [vmem:[%s4378_s4 + $0x610] sm:$0xff]  ;;  %v439_v24 = vld [vmem:[%s4378_s4 + $0x5f8] sm:$0xff]  ;;  %v529_v25 = vmax.f32 %v528_v9, %v440_v14  ;;  %v566_v28 = vmax.f32 %v565_v12, %v441_v18  ;;  %v444_v29 = vld [vmem:[%s4378_s4 + $0x620] sm:$0xff]  ;;  %v750_v31 = vmax.f32 %v749_v15, %v438_v21 }
  0xaa   : > { %v443_v26 = vld [vmem:[%s4378_s4 + $0x618] sm:$0xff]  ;;  %v448_v30 = vld [vmem:[%s4378_s4 + $0x640] sm:$0xff]  ;;  %v603_v32 = vmax.f32 %v602_v16, %v442_v22  ;;  %v445_v33 = vld [vmem:[%s4378_s4 + $0x628] sm:$0xff]  ;;  %v787_v35 = vmax.f32 %v786_v19, %v439_v24  ;;  %v677_v39 = vmax.f32 %v676_v23, %v444_v29 }
  0xab   : > { %v449_v34 = vld [vmem:[%s4378_s4 + $0x648] sm:$0xff]  ;;  %v640_v36 = vmax.f32 %v639_v20, %v443_v26  ;;  %v446_v37 = vld [vmem:[%s4378_s4 + $0x630] sm:$0xff]  ;;  %v447_v40 = vld [vmem:[%s4378_s4 + $0x638] sm:$0xff]  ;;  %v530_v41 = vmax.f32 %v529_v25, %v448_v30  ;;  %v714_v43 = vmax.f32 %v713_v27, %v445_v33 }
  0xac   : > { %v450_v38 = vld [vmem:[%s4378_s4 + $0x650] sm:$0xff]  ;;  %v451_v42 = vld [vmem:[%s4378_s4 + $0x658] sm:$0xff]  ;;  %v567_v44 = vmax.f32 %v566_v28, %v449_v34  ;;  %v452_v45 = vld [vmem:[%s4378_s4 + $0x660] sm:$0xff]  ;;  %v751_v47 = vmax.f32 %v750_v31, %v446_v37  ;;  %v788_v51 = vmax.f32 %v787_v35, %v447_v40 }
  0xad   : > { %v456_v46 = vld [vmem:[%s4378_s4 + $0x680] sm:$0xff]  ;;  %v604_v48 = vmax.f32 %v603_v32, %v450_v38  ;;  %v453_v49 = vld [vmem:[%s4378_s4 + $0x668] sm:$0xff]  ;;  %v641_v52 = vmax.f32 %v640_v36, %v451_v42  ;;  %v454_v53 = vld [vmem:[%s4378_s4 + $0x670] sm:$0xff]  ;;  %v678_v55 = vmax.f32 %v677_v39, %v452_v45 }
  0xae   : > { %v457_v50 = vld [vmem:[%s4378_s4 + $0x688] sm:$0xff]  ;;  %v458_v54 = vld [vmem:[%s4378_s4 + $0x690] sm:$0xff]  ;;  %v455_v56 = vld [vmem:[%s4378_s4 + $0x678] sm:$0xff]  ;;  %v531_v57 = vmax.f32 %v530_v41, %v456_v46  ;;  %v715_v59 = vmax.f32 %v714_v43, %v453_v49  ;;  %v752_v63 = vmax.f32 %v751_v47, %v454_v53 }
  0xaf   : > { %v459_v58 = vld [vmem:[%s4378_s4 + $0x698] sm:$0xff]  ;;  %v568_v60 = vmax.f32 %v567_v44, %v457_v50  ;;  %v460_v61 = vld [vmem:[%s4378_s4 + $0x6a0] sm:$0xff]  ;;  %v605_v0 = vmax.f32 %v604_v48, %v458_v54  ;;  %v461_v1 = vld [vmem:[%s4378_s4 + $0x6a8] sm:$0xff]  ;;  %v789_v3 = vmax.f32 %v788_v51, %v455_v56 }
  0xb0   : > { %v464_v62 = vld [vmem:[%s4378_s4 + $0x6c0] sm:$0xff]  ;;  %v465_v2 = vld [vmem:[%s4378_s4 + $0x6c8] sm:$0xff]  ;;  %v642_v4 = vmax.f32 %v641_v52, %v459_v58  ;;  %v462_v5 = vld [vmem:[%s4378_s4 + $0x6b0] sm:$0xff]  ;;  %v679_v7 = vmax.f32 %v678_v55, %v460_v61  ;;  %v716_v11 = vmax.f32 %v715_v59, %v461_v1 }
  0xb1   : > { %v466_v6 = vld [vmem:[%s4378_s4 + $0x6d0] sm:$0xff]  ;;  %v463_v8 = vld [vmem:[%s4378_s4 + $0x6b8] sm:$0xff]  ;;  %v532_v9 = vmax.f32 %v531_v57, %v464_v62  ;;  %v569_v12 = vmax.f32 %v568_v60, %v465_v2  ;;  %v468_v13 = vld [vmem:[%s4378_s4 + $0x6e0] sm:$0xff]  ;;  %v753_v15 = vmax.f32 %v752_v63, %v462_v5 }
  0xb2   : > { %v467_v10 = vld [vmem:[%s4378_s4 + $0x6d8] sm:$0xff]  ;;  %v472_v14 = vld [vmem:[%s4378_s4 + $0x700] sm:$0xff]  ;;  %v606_v16 = vmax.f32 %v605_v0, %v466_v6  ;;  %v469_v17 = vld [vmem:[%s4378_s4 + $0x6e8] sm:$0xff]  ;;  %v790_v19 = vmax.f32 %v789_v3, %v463_v8  ;;  %v680_v23 = vmax.f32 %v679_v7, %v468_v13 }
  0xb3   : > { %v473_v18 = vld [vmem:[%s4378_s4 + $0x708] sm:$0xff]  ;;  %v643_v20 = vmax.f32 %v642_v4, %v467_v10  ;;  %v470_v21 = vld [vmem:[%s4378_s4 + $0x6f0] sm:$0xff]  ;;  %v471_v24 = vld [vmem:[%s4378_s4 + $0x6f8] sm:$0xff]  ;;  %v533_v25 = vmax.f32 %v532_v9, %v472_v14  ;;  %v717_v27 = vmax.f32 %v716_v11, %v469_v17 }
  0xb4   : > { %v474_v22 = vld [vmem:[%s4378_s4 + $0x710] sm:$0xff]  ;;  %v475_v26 = vld [vmem:[%s4378_s4 + $0x718] sm:$0xff]  ;;  %v570_v28 = vmax.f32 %v569_v12, %v473_v18  ;;  %v476_v29 = vld [vmem:[%s4378_s4 + $0x720] sm:$0xff]  ;;  %v754_v31 = vmax.f32 %v753_v15, %v470_v21  ;;  %v791_v35 = vmax.f32 %v790_v19, %v471_v24 }
  0xb5   : > { %v480_v30 = vld [vmem:[%s4378_s4 + $0x740] sm:$0xff]  ;;  %v607_v32 = vmax.f32 %v606_v16, %v474_v22  ;;  %v477_v33 = vld [vmem:[%s4378_s4 + $0x728] sm:$0xff]  ;;  %v644_v36 = vmax.f32 %v643_v20, %v475_v26  ;;  %v478_v37 = vld [vmem:[%s4378_s4 + $0x730] sm:$0xff]  ;;  %v681_v39 = vmax.f32 %v680_v23, %v476_v29 }
  0xb6   : > { %v481_v34 = vld [vmem:[%s4378_s4 + $0x748] sm:$0xff]  ;;  %v482_v38 = vld [vmem:[%s4378_s4 + $0x750] sm:$0xff]  ;;  %v479_v40 = vld [vmem:[%s4378_s4 + $0x738] sm:$0xff]  ;;  %v534_v41 = vmax.f32 %v533_v25, %v480_v30  ;;  %v718_v43 = vmax.f32 %v717_v27, %v477_v33  ;;  %v755_v47 = vmax.f32 %v754_v31, %v478_v37 }
  0xb7   : > { %v483_v42 = vld [vmem:[%s4378_s4 + $0x758] sm:$0xff]  ;;  %v571_v44 = vmax.f32 %v570_v28, %v481_v34  ;;  %v484_v45 = vld [vmem:[%s4378_s4 + $0x760] sm:$0xff]  ;;  %v608_v48 = vmax.f32 %v607_v32, %v482_v38  ;;  %v485_v49 = vld [vmem:[%s4378_s4 + $0x768] sm:$0xff]  ;;  %v792_v52 = vmax.f32 %v791_v35, %v479_v40 }
  0xb8   : > { %v488_v46 = vld [vmem:[%s4378_s4 + $0x780] sm:$0xff]  ;;  %v489_v50 = vld [vmem:[%s4378_s4 + $0x788] sm:$0xff]  ;;  %v645_v53 = vmax.f32 %v644_v36, %v483_v42  ;;  %v486_v54 = vld [vmem:[%s4378_s4 + $0x770] sm:$0xff]  ;;  %v682_v57 = vmax.f32 %v681_v39, %v484_v45  ;;  %v719_v63 = vmax.f32 %v718_v43, %v485_v49 }
  0xb9   : > { %v4624_v51 = vld [vmem:[%s4378_s4] sm:$0xff]  ;;  %v490_v55 = vld [vmem:[%s4378_s4 + $0x790] sm:$0xff]  ;;  %v4629_v56 = vld [vmem:[%s4378_s4 + $0x8] sm:$0xff]  ;;  %v535_v59 = vmax.f32 %v534_v41, %v488_v46  ;;  %v572_v0 = vmax.f32 %v571_v44, %v489_v50  ;;  %v756_v5 = vmax.f32 %v755_v47, %v486_v54 }
  0xba   : > { %v487_v58 = vld [vmem:[%s4378_s4 + $0x778] sm:$0xff]  ;;  %v4634_v61 = vld [vmem:[%s4378_s4 + $0x10] sm:$0xff]  ;;  %v4637_v62 = vld [vmem:[%s4378_s4 + $0x40] sm:$0xff]  ;;  %v609_v6 = vmax.f32 %v608_v48, %v490_v55 }
  0xbb   : > { %v491_v60 = vld [vmem:[%s4378_s4 + $0x798] sm:$0xff]  ;;  %v492_v1 = vld [vmem:[%s4378_s4 + $0x7a0] sm:$0xff]  ;;  %v4645_v4 = vld [vmem:[%s4378_s4 + $0x48] sm:$0xff]  ;;  %v793_v10 = vmax.f32 %v792_v52, %v487_v58  ;;  %v507_v19 = vmax.f32 %v4624_v51, %v4637_v62 }
  0xbc   : > { %v496_v2 = vld [vmem:[%s4378_s4 + $0x7c0] sm:$0xff]  ;;  %v4642_v3 = vld [vmem:[%s4378_s4 + $0x18] sm:$0xff]  ;;  %v493_v7 = vld [vmem:[%s4378_s4 + $0x7a8] sm:$0xff]  ;;  %v646_v11 = vmax.f32 %v645_v53, %v491_v60  ;;  %v683_v15 = vmax.f32 %v682_v57, %v492_v1  ;;  %v544_v25 = vmax.f32 %v4629_v56, %v4645_v4 }
  0xbd   : > { %v497_v8 = vld [vmem:[%s4378_s4 + $0x7c8] sm:$0xff]  ;;  %v4650_v9 = vld [vmem:[%s4378_s4 + $0x50] sm:$0xff]  ;;  %v4655_v14 = vld [vmem:[%s4378_s4 + $0x58] sm:$0xff]  ;;  %v536_v17 = vmax.f32 %v535_v59, %v496_v2  ;;  %v720_v22 = vmax.f32 %v719_v63, %v493_v7 }
  0xbe   : > { %v494_v12 = vld [vmem:[%s4378_s4 + $0x7b0] sm:$0xff]  ;;  %v495_v16 = vld [vmem:[%s4378_s4 + $0x7b8] sm:$0xff]  ;;  %v4662_v20 = vld [vmem:[%s4378_s4 + $0x20] sm:$0xff]  ;;  %v573_v23 = vmax.f32 %v572_v0, %v497_v8  ;;  %v581_v31 = vmax.f32 %v4634_v61, %v4650_v9  ;;  %v618_v37 = vmax.f32 %v4642_v3, %v4655_v14 }
  0xbf   : > { %v498_v13 = vld [vmem:[%s4378_s4 + $0x7d0] sm:$0xff]  ;;  %v499_v18 = vld [vmem:[%s4378_s4 + $0x7d8] sm:$0xff]  ;;  %v4665_v21 = vld [vmem:[%s4378_s4 + $0x60] sm:$0xff]  ;;  %v757_v28 = vmax.f32 %v756_v5, %v494_v12  ;;  %v794_v34 = vmax.f32 %v793_v10, %v495_v16  ;;  %v537_v42 = vmax.f32 %v536_v17, %v507_v19 }
  0xc0   : > { %v500_v24 = vld [vmem:[%s4378_s4 + $0x7e0] sm:$0xff]  ;;  %v4671_v26 = vld [vmem:[%s4378_s4 + $0x28] sm:$0xff]  ;;  %v610_v29 = vmax.f32 %v609_v6, %v498_v13  ;;  %v4680_v32 = vld [vmem:[%s4378_s4 + $0x30] sm:$0xff]  ;;  %v647_v35 = vmax.f32 %v646_v11, %v499_v18  ;;  %v655_v43 = vmax.f32 %v4662_v20, %v4665_v21  ;;  %v574_v45 = vmax.f32 %v573_v23, %v544_v25 }
  0xc1   : > { %v4674_v27 = vld [vmem:[%s4378_s4 + $0x68] sm:$0xff]  ;;  %v4683_v33 = vld [vmem:[%s4378_s4 + $0x70] sm:$0xff]  ;;  %v4689_v38 = vld [vmem:[%s4378_s4 + $0x38] sm:$0xff]  ;;  %v684_v40 = vmax.f32 %v683_v15, %v500_v24  ;;  %v538_v54 = vrot.slane %v537_v42, 4 }
  0xc2   : > { %v501_v30 = vld [vmem:[%s4378_s4 + $0x7e8] sm:$0xff]  ;;  %v502_v36 = vld [vmem:[%s4378_s4 + $0x7f0] sm:$0xff]  ;;  %v4692_v39 = vld [vmem:[%s4378_s4 + $0x78] sm:$0xff]  ;;  %v692_v46 = vmax.f32 %v4671_v26, %v4674_v27  ;;  %v611_v48 = vmax.f32 %v610_v29, %v581_v31  ;;  %v729_v49 = vmax.f32 %v4680_v32, %v4683_v33  ;;  %v648_v52 = vmax.f32 %v647_v35, %v618_v37 }
  0xc3   : > { %v503_v41 = vld [vmem:[%s4378_s4 + $0x7f8] sm:$0xff]  ;;  %v721_v44 = vmax.f32 %v720_v22, %v501_v30  ;;  %v758_v47 = vmax.f32 %v757_v28, %v502_v36  ;;  %v766_v53 = vmax.f32 %v4689_v38, %v4692_v39  ;;  %v685_v55 = vmax.f32 %v684_v40, %v655_v43 }
  0xc4   : > { %v795_v50 = vmax.f32 %v794_v34, %v503_v41  ;;  %v575_v57 = vrot.slane %v574_v45, 4  ;;  %v612_v59 = vrot.slane %v611_v48, 4  ;;  %v649_v63 = vrot.slane %v648_v52, 4 }
  0xc5   : > { %v722_v58 = vmax.f32 %v721_v44, %v692_v46  ;;  %v759_v60 = vmax.f32 %v758_v47, %v729_v49  ;;  %v539_v1 = vmax.f32 %v537_v42, %v538_v54  ;;  %v686_v2 = vrot.slane %v685_v55, 4 }
  0xc6   : > { %v796_v0 = vmax.f32 %v795_v50, %v766_v53  ;;  %v576_v5 = vmax.f32 %v574_v45, %v575_v57  ;;  %v613_v7 = vmax.f32 %v611_v48, %v612_v59  ;;  %v650_v10 = vmax.f32 %v648_v52, %v649_v63 }
  0xc7   : > { %v723_v6 = vrot.slane %v722_v58, 4  ;;  %v760_v8 = vrot.slane %v759_v60, 4  ;;  %v540_v12 = vrot.slane %v539_v1, 2  ;;  %v687_v13 = vmax.f32 %v685_v55, %v686_v2 }
  0xc8   : > { %v797_v11 = vrot.slane %v796_v0, 4  ;;  %v577_v15 = vrot.slane %v576_v5, 2  ;;  %v614_v17 = vrot.slane %v613_v7, 2  ;;  %v651_v19 = vrot.slane %v650_v10, 2 }
  0xc9   : > { %v724_v16 = vmax.f32 %v722_v58, %v723_v6  ;;  %v761_v18 = vmax.f32 %v759_v60, %v760_v8  ;;  %v541_v23 = vmax.f32 %v539_v1, %v540_v12  ;;  %v688_v24 = vrot.slane %v687_v13, 2 }
  0xca   : > { %v798_v22 = vmax.f32 %v796_v0, %v797_v11  ;;  %v578_v25 = vmax.f32 %v576_v5, %v577_v15  ;;  %v615_v29 = vmax.f32 %v613_v7, %v614_v17  ;;  %v652_v31 = vmax.f32 %v650_v10, %v651_v19 }
  0xcb   : > { %v725_v28 = vrot.slane %v724_v16, 2  ;;  %v762_v30 = vrot.slane %v761_v18, 2  ;;  %v542_v35 = vrot.slane %v541_v23, 1  ;;  %v689_v36 = vmax.f32 %v687_v13, %v688_v24 }
  0xcc   : > { %v799_v34 = vrot.slane %v798_v22, 2  ;;  %v579_v37 = vrot.slane %v578_v25, 1  ;;  %v616_v41 = vrot.slane %v615_v29, 1  ;;  %v653_v43 = vrot.slane %v652_v31, 1 }
  0xcd   : > { %v726_v40 = vmax.f32 %v724_v16, %v725_v28  ;;  %v763_v42 = vmax.f32 %v761_v18, %v762_v30  ;;  %v4703_v45 = vmax.f32 %v541_v23, %v542_v35  ;;  %v690_v46 = vrot.slane %v689_v36, 1 }
  0xce   : > { %v800_v44 = vmax.f32 %v798_v22, %v799_v34  ;;  %v4705_v47 = vmax.f32 %v578_v25, %v579_v37  ;;  %v4707_v49 = vmax.f32 %v615_v29, %v616_v41  ;;  %v4709_v52 = vmax.f32 %v652_v31, %v653_v43  ;;  %v3587_v34 = vld [vmem:[%s4378_s4 + $0x98] sm:$0xff] }
  0xcf   : > { %v727_v48 = vrot.slane %v726_v40, 1  ;;  %v764_v50 = vrot.slane %v763_v42, 1  ;;  %v4711_v54 = vmax.f32 %v689_v36, %v690_v46  ;;  %v803_v55 = vsub.f32 %v4624_v51, %v4703_v45 }
  0xd0   : > { %v801_v53 = vrot.slane %v800_v44, 1  ;;  %v804_v58 = vsub.f32 %v4629_v56, %v4705_v47  ;;  %v805_v60 = vsub.f32 %v4634_v61, %v4707_v49  ;;  %v806_v0 = vsub.f32 %v4642_v3, %v4709_v52 }
  0xd1   : > { %v4715_v57 = vmax.f32 %v726_v40, %v727_v48  ;;  %v4719_v59 = vmax.f32 %v763_v42, %v764_v50  ;;  %v807_v1 = vsub.f32 %v4662_v20, %v4711_v54  ;;  %v1059_v2 = vmul.f32 1.442695, %v803_v55  ;;  %v3588_v40 = vld [vmem:[%s4378_s4 + $0xa0] sm:$0xff] }
  0xd2   : > { %v4723_v63 = vmax.f32 %v800_v44, %v801_v53  ;;  %v1061_v5 = vmul.f32 1.442695, %v804_v58  ;;  %v1063_v6 = vmul.f32 1.442695, %v805_v60  ;;  %v1065_v7 = vmul.f32 1.442695, %v806_v0 }
  0xd3   : > { %v808_v51 = vsub.f32 %v4671_v26, %v4715_v57  ;;  %v809_v56 = vsub.f32 %v4680_v32, %v4719_v59  ;;  %v811_v8 = vsub.f32 %v4637_v62, %v4703_v45  ;;  %3056 = vpow2.f32 %v1059_v2  ;;  %v3589_v44 = vld [vmem:[%s4378_s4 + $0xa8] sm:$0xff]  ;;  %v3590_v53 = vld [vmem:[%s4378_s4 + $0xb0] sm:$0xff]  ;;  %v3591_v0 = vld [vmem:[%s4378_s4 + $0xb8] sm:$0xff] }
  0xd4   : > { %v810_v61 = vsub.f32 %v4689_v38, %v4723_v63  ;;  %v1067_v3 = vmul.f32 1.442695, %v807_v1  ;;  %v812_v20 = vsub.f32 %v4645_v4, %v4705_v47  ;;  %3058 = vpow2.f32 %v1061_v5  ;;  %v3592_v5 = vld [vmem:[%s4378_s4 + $0xc0] sm:$0xff] }
  0xd5   : > { %v1069_v10 = vmul.f32 1.442695, %v808_v51  ;;  %v813_v26 = vsub.f32 %v4650_v9, %v4707_v49  ;;  %3060 = vpow2.f32 %v1063_v6  ;;  %v1071_v32 = vmul.f32 1.442695, %v809_v56 }
  0xd6   : > { %v814_v11 = vsub.f32 %v4655_v14, %v4709_v52  ;;  %3062 = vpow2.f32 %v1065_v7  ;;  %v1073_v38 = vmul.f32 1.442695, %v810_v61  ;;  %v815_v62 = vsub.f32 %v4665_v21, %v4711_v54  ;;  %v3593_v7 = vld [vmem:[%s4378_s4 + $0xc8] sm:$0xff] }
  0xd7   : > { %3064 = vpow2.f32 %v1067_v3  ;;  %v1075_v12 = vmul.f32 1.442695, %v811_v8  ;;  %v816_v4 = vsub.f32 %v4674_v27, %v4715_v57  ;;  %v1077_v13 = vmul.f32 1.442695, %v812_v20  ;;  %v3584_v27 = vld [vmem:[%s4378_s4 + $0x80] sm:$0xff] }
  0xd8   : > { %3066 = vpow2.f32 %v1069_v10  ;;  %v817_v15 = vsub.f32 %v4683_v33, %v4719_v59  ;;  %v1079_v14 = vmul.f32 1.442695, %v813_v26  ;;  %v818_v21 = vsub.f32 %v4692_v39, %v4723_v63  ;;  %v3585_v33 = vld [vmem:[%s4378_s4 + $0x88] sm:$0xff]  ;;  %v3586_v39 = vld [vmem:[%s4378_s4 + $0x90] sm:$0xff] }
  0xd9   : > { %v4747_v9 = vpop.eup %3056  ;;  %3068 = vpow2.f32 %v1071_v32  ;;  %v1081_v17 = vmul.f32 1.442695, %v814_v11  ;;  %v819_v19 = vsub.f32 %v3584_v27, %v4703_v45  ;;  %v1083_v22 = vmul.f32 1.442695, %v815_v62  ;;  %v3594_v10 = vld [vmem:[%s4378_s4 + $0xd0] sm:$0xff] }
  0xda   : > { %9645 = vst [vmem:[#allocation12_spill] sm:$0xff] %v4747_v9  ;;  %v4751_v16 = vpop.eup %3058  ;;  %3070 = vpow2.f32 %v1073_v38  ;;  %v820_v24 = vsub.f32 %v3585_v33, %v4705_v47  ;;  %v1085_v25 = vmul.f32 1.442695, %v816_v4  ;;  %v821_v29 = vsub.f32 %v3586_v39, %v4707_v49  ;;  %v3595_v38 = vld [vmem:[%s4378_s4 + $0xd8] sm:$0xff]  ;;  %v3598_v33 = vld [vmem:[%s4378_s4 + $0xf0] sm:$0xff] }
  0xdb   : > { %9646 = vst [vmem:[#allocation13_spill] sm:$0xff] %v4751_v16  ;;  %v4755_v18 = vpop.eup %3060  ;;  %3072 = vpow2.f32 %v1075_v12  ;;  %v1087_v30 = vmul.f32 1.442695, %v817_v15  ;;  %v822_v35 = vsub.f32 %v3587_v34, %v4709_v52  ;;  %v1089_v36 = vmul.f32 1.442695, %v818_v21  ;;  %v5425_v16 = vld [vmem:[%s4378_s4 + $0x418] sm:$0xff] }
  0xdc   : > { %9647 = vst [vmem:[#allocation14_spill] sm:$0xff] %v4755_v18  ;;  %v4759_v23 = vpop.eup %3062  ;;  %3074 = vpow2.f32 %v1077_v13  ;;  %v823_v41 = vsub.f32 %v3588_v40, %v4711_v54  ;;  %v1091_v42 = vmul.f32 1.442695, %v819_v19  ;;  %v824_v46 = vsub.f32 %v3589_v44, %v4715_v57  ;;  %v3596_v13 = vld [vmem:[%s4378_s4 + $0xe0] sm:$0xff]  ;;  %v3601_v44 = vld [vmem:[%s4378_s4 + $0x108] sm:$0xff]  ;;  %v5395_v18 = vld [vmem:[%s4378_s4 + $0x3f8] sm:$0xff] }
  0xdd   : > { %9648 = vst [vmem:[#allocation15_spill] sm:$0xff] %v4759_v23  ;;  %v4763_v28 = vpop.eup %3064  ;;  %3076 = vpow2.f32 %v1079_v14  ;;  %v1093_v48 = vmul.f32 1.442695, %v820_v24  ;;  %v825_v55 = vsub.f32 %v3590_v53, %v4719_v59  ;;  %v1095_v58 = vmul.f32 1.442695, %v821_v29  ;;  %v3599_v29 = vld [vmem:[%s4378_s4 + $0xf8] sm:$0xff] }
  0xde   : > { %9649 = vst [vmem:[#allocation16_spill] sm:$0xff] %v4763_v28  ;;  %v4767_v31 = vpop.eup %3066  ;;  %3078 = vpow2.f32 %v1081_v17  ;;  %v826_v1 = vsub.f32 %v3591_v0, %v4723_v63  ;;  %v1097_v2 = vmul.f32 1.442695, %v822_v35  ;;  %v827_v56 = vsub.f32 %v3592_v5, %v4703_v45  ;;  %v3597_v17 = vld [vmem:[%s4378_s4 + $0xe8] sm:$0xff]  ;;  %v5365_v23 = vld [vmem:[%s4378_s4 + $0x3d8] sm:$0xff] }
  0xdf   : > { %9650 = vst [vmem:[#allocation17_spill] sm:$0xff] %v4767_v31  ;;  %v4771_v37 = vpop.eup %3068  ;;  %3080 = vpow2.f32 %v1083_v22  ;;  %v1099_v6 = vmul.f32 1.442695, %v823_v41  ;;  %v828_v8 = vsub.f32 %v3593_v7, %v4705_v47  ;;  %v1101_v3 = vmul.f32 1.442695, %v824_v46  ;;  %v3604_v7 = vld [vmem:[%s4378_s4 + $0x120] sm:$0xff] }
  0xe0   : > { %9651 = vst [vmem:[#allocation18_spill] sm:$0xff] %v4771_v37  ;;  %v4775_v43 = vpop.eup %3070  ;;  %3082 = vpow2.f32 %v1085_v25  ;;  %v829_v26 = vsub.f32 %v3594_v10, %v4707_v49  ;;  %v1103_v32 = vmul.f32 1.442695, %v825_v55  ;;  %v830_v62 = vsub.f32 %v3595_v38, %v4709_v52  ;;  %v3602_v55 = vld [vmem:[%s4378_s4 + $0x110] sm:$0xff]  ;;  %v5140_v28 = vld [vmem:[%s4378_s4 + $0x2e8] sm:$0xff]  ;;  %v5455_v9 = vld [vmem:[%s4378_s4 + $0x438] sm:$0xff] }
  0xe1   : > { %9652 = vst [vmem:[#allocation19_spill] sm:$0xff] %v4775_v43  ;;  %v4779_v50 = vpop.eup %3072  ;;  %3084 = vpow2.f32 %v1087_v30  ;;  %v1105_v12 = vmul.f32 1.442695, %v826_v1  ;;  %v831_v15 = vsub.f32 %v3596_v13, %v4711_v54  ;;  %v1107_v14 = vmul.f32 1.442695, %v827_v56 }
  0xe2   : > { %9653 = vst [vmem:[#allocation20_spill] sm:$0xff] %v4779_v50  ;;  %v4783_v60 = vpop.eup %3074  ;;  %3086 = vpow2.f32 %v1089_v36  ;;  %v832_v27 = vsub.f32 %v3597_v17, %v4715_v57  ;;  %v1109_v19 = vmul.f32 1.442695, %v828_v8  ;;  %v833_v24 = vsub.f32 %v3598_v33, %v4719_v59  ;;  %v3600_v36 = vld [vmem:[%s4378_s4 + $0x100] sm:$0xff]  ;;  %v3607_v17 = vld [vmem:[%s4378_s4 + $0x138] sm:$0xff]  ;;  %v5440_v50 = vld [vmem:[%s4378_s4 + $0x428] sm:$0xff] }
  0xe3   : > { %9654 = vst [vmem:[#allocation21_spill] sm:$0xff] %v4783_v60  ;;  %v4787_v51 = vpop.eup %3076  ;;  %3088 = vpow2.f32 %v1091_v42  ;;  %v1111_v25 = vmul.f32 1.442695, %v829_v26  ;;  %v834_v30 = vsub.f32 %v3599_v29, %v4723_v63  ;;  %v1113_v34 = vmul.f32 1.442695, %v830_v62  ;;  %v3605_v26 = vld [vmem:[%s4378_s4 + $0x128] sm:$0xff] }
  0xe4   : > { %9655 = vst [vmem:[#allocation22_spill] sm:$0xff] %v4787_v51  ;;  %v4791_v61 = vpop.eup %3078  ;;  %3090 = vpow2.f32 %v1093_v48  ;;  %v835_v40 = vsub.f32 %v3600_v36, %v4703_v45  ;;  %v1115_v41 = vmul.f32 1.442695, %v831_v15  ;;  %v836_v46 = vsub.f32 %v3601_v44, %v4705_v47  ;;  %v3610_v44 = vld [vmem:[%s4378_s4 + $0x150] sm:$0xff]  ;;  %v5380_v51 = vld [vmem:[%s4378_s4 + $0x3e8] sm:$0xff] }
  0xe5   : > { %9656 = vst [vmem:[#allocation23_spill] sm:$0xff] %v4791_v61  ;;  %v4795_v20 = vpop.eup %3080  ;;  %3092 = vpow2.f32 %v1095_v58  ;;  %v1117_v48 = vmul.f32 1.442695, %v832_v27  ;;  %v837_v58 = vsub.f32 %v3602_v55, %v4707_v49  ;;  %v1119_v0 = vmul.f32 1.442695, %v833_v24  ;;  %v3608_v24 = vld [vmem:[%s4378_s4 + $0x140] sm:$0xff] }
  0xe6   : > { %9657 = vst [vmem:[#allocation24_spill] sm:$0xff] %v4795_v20  ;;  %v4799_v11 = vpop.eup %3082  ;;  %3094 = vpow2.f32 %v1097_v2  ;;  %v3603_v2 = vld [vmem:[%s4378_s4 + $0x118] sm:$0xff]  ;;  %v1121_v56 = vmul.f32 1.442695, %v834_v30  ;;  %v839_v8 = vsub.f32 %v3604_v7, %v4711_v54  ;;  %v1125_v38 = vmul.f32 1.442695, %v836_v46 }
  0xe7   : > { %9658 = vst [vmem:[#allocation25_spill] sm:$0xff] %v4799_v11  ;;  %v4803_v4 = vpop.eup %3084  ;;  %3096 = vpow2.f32 %v1099_v6  ;;  %v838_v5 = vsub.f32 %v3603_v2, %v4709_v52  ;;  %v1127_v15 = vmul.f32 1.442695, %v837_v58  ;;  %v842_v27 = vsub.f32 %v3607_v17, %v4723_v63  ;;  %v3611_v58 = vld [vmem:[%s4378_s4 + $0x158] sm:$0xff]  ;;  %v5004_v11 = vld [vmem:[%s4378_s4 + $0x250] sm:$0xff]  ;;  %v5350_v61 = vld [vmem:[%s4378_s4 + $0x3c8] sm:$0xff] }
  0xe8   : > { %9659 = vst [vmem:[#allocation26_spill] sm:$0xff] %v4803_v4  ;;  %v4807_v21 = vpop.eup %3086  ;;  %3098 = vpow2.f32 %v1101_v3  ;;  %v1123_v3 = vmul.f32 1.442695, %v835_v40  ;;  %v1131_v29 = vmul.f32 1.442695, %v839_v8  ;;  %v845_v46 = vsub.f32 %v3610_v44, %v4707_v49  ;;  %v5125_v20 = vld [vmem:[%s4378_s4 + $0x2d8] sm:$0xff] }
  0xe9   : > { %9660 = vst [vmem:[#allocation27_spill] sm:$0xff] %v4807_v21  ;;  %v4811_v22 = vpop.eup %3088  ;;  %3100 = vpow2.f32 %v1103_v32  ;;  %v840_v32 = vsub.f32 %v3605_v26, %v4715_v57  ;;  %v1137_v2 = vmul.f32 1.442695, %v842_v27  ;;  %v3613_v26 = vld [vmem:[%s4378_s4 + $0x168] sm:$0xff] }
  0xea   : > { %9661 = vst [vmem:[#allocation28_spill] sm:$0xff] %v4811_v22  ;;  %v4815_v39 = vpop.eup %3090  ;;  %3102 = vpow2.f32 %v1105_v12  ;;  %v3606_v12 = vld [vmem:[%s4378_s4 + $0x130] sm:$0xff]  ;;  %v1143_v17 = vmul.f32 1.442695, %v845_v46  ;;  %v3617_v46 = vld [vmem:[%s4378_s4 + $0x188] sm:$0xff]  ;;  %v5335_v22 = vld [vmem:[%s4378_s4 + $0x3b8] sm:$0xff] }
  0xeb   : > { %9662 = vst [vmem:[#allocation29_spill] sm:$0xff] %v4815_v39  ;;  %v4819_v35 = vpop.eup %3092  ;;  %3104 = vpow2.f32 %v1107_v14  ;;  %v841_v13 = vsub.f32 %v3606_v12, %v4719_v59  ;;  %v1133_v40 = vmul.f32 1.442695, %v840_v32  ;;  %v848_v32 = vsub.f32 %v3613_v26, %v4715_v57  ;;  %v5320_v39 = vld [vmem:[%s4378_s4 + $0x3a8] sm:$0xff] }
  0xec   : > { %9663 = vst [vmem:[#allocation30_spill] sm:$0xff] %v4819_v35  ;;  %v4823_v42 = vpop.eup %3094  ;;  %3106 = vpow2.f32 %v1109_v19  ;;  %v1129_v19 = vmul.f32 1.442695, %v838_v5  ;;  %v5305_v35 = vld [vmem:[%s4378_s4 + $0x398] sm:$0xff]  ;;  %v5410_v60 = vld [vmem:[%s4378_s4 + $0x408] sm:$0xff] }
  0xed   : > { %9664 = vst [vmem:[#allocation31_spill] sm:$0xff] %v4823_v42  ;;  %v4827_v53 = vpop.eup %3096  ;;  %3108 = vpow2.f32 %v1111_v25  ;;  %v843_v25 = vsub.f32 %v3608_v24, %v4703_v45  ;;  %v5290_v42 = vld [vmem:[%s4378_s4 + $0x388] sm:$0xff] }
  0xee   : > { %9665 = vst [vmem:[#allocation32_spill] sm:$0xff] %v4827_v53  ;;  %v4831_v1 = vpop.eup %3098  ;;  %3110 = vpow2.f32 %v1113_v34  ;;  %v3609_v34 = vld [vmem:[%s4378_s4 + $0x148] sm:$0xff] }
  0xef   : > { %9666 = vst [vmem:[#allocation33_spill] sm:$0xff] %v4831_v1  ;;  %v4835_v6 = vpop.eup %3100  ;;  %3112 = vpow2.f32 %v1115_v41  ;;  %v844_v36 = vsub.f32 %v3609_v34, %v4705_v47  ;;  %v1139_v8 = vmul.f32 1.442695, %v843_v25  ;;  %v3616_v34 = vld [vmem:[%s4378_s4 + $0x180] sm:$0xff] }
  0xf0   : > { %9667 = vst [vmem:[#allocation34_spill] sm:$0xff] %v4835_v6  ;;  %v4839_v10 = vpop.eup %3102  ;;  %3114 = vpow2.f32 %v1117_v48  ;;  %v1135_v48 = vmul.f32 1.442695, %v841_v13  ;;  %v3614_v13 = vld [vmem:[%s4378_s4 + $0x170] sm:$0xff] }
  0xf1   : > { %9668 = vst [vmem:[#allocation35_spill] sm:$0xff] %v4839_v10  ;;  %v4843_v62 = vpop.eup %3104  ;;  %3116 = vpow2.f32 %v1119_v0  ;;  %v846_v0 = vsub.f32 %v3611_v58, %v4709_v52  ;;  %v1149_v58 = vmul.f32 1.442695, %v848_v32  ;;  %v3620_v32 = vld [vmem:[%s4378_s4 + $0x1a0] sm:$0xff] }
  0xf2   : > { %9669 = vst [vmem:[#allocation36_spill] sm:$0xff] %v4843_v62  ;;  %v4847_v14 = vpop.eup %3106  ;;  %3118 = vpow2.f32 %v1121_v56  ;;  %v3612_v56 = vld [vmem:[%s4378_s4 + $0x160] sm:$0xff]  ;;  %v5275_v62 = vld [vmem:[%s4378_s4 + $0x378] sm:$0xff] }
  0xf3   : > { %9670 = vst [vmem:[#allocation37_spill] sm:$0xff] %v4847_v14  ;;  %v4851_v33 = vpop.eup %3108  ;;  %3120 = vpow2.f32 %v1123_v3  ;;  %v847_v7 = vsub.f32 %v3612_v56, %v4711_v54  ;;  %v1145_v25 = vmul.f32 1.442695, %v846_v0  ;;  %v3618_v0 = vld [vmem:[%s4378_s4 + $0x190] sm:$0xff]  ;;  %v5260_v14 = vld [vmem:[%s4378_s4 + $0x368] sm:$0xff] }
  0xf4   : > { %9671 = vst [vmem:[#allocation38_spill] sm:$0xff] %v4851_v33  ;;  %v4855_v30 = vpop.eup %3110  ;;  %3122 = vpow2.f32 %v1125_v38  ;;  %v1141_v38 = vmul.f32 1.442695, %v844_v36  ;;  %v851_v36 = vsub.f32 %v3616_v34, %v4703_v45  ;;  %v855_v34 = vsub.f32 %v3620_v32, %v4711_v54  ;;  %v5245_v33 = vld [vmem:[%s4378_s4 + $0x358] sm:$0xff] }
  0xf5   : > { %9672 = vst [vmem:[#allocation39_spill] sm:$0xff] %v4855_v30  ;;  %v4859_v41 = vpop.eup %3112  ;;  %3124 = vpow2.f32 %v1127_v15  ;;  %v849_v15 = vsub.f32 %v3614_v13, %v4719_v59  ;;  %v5230_v30 = vld [vmem:[%s4378_s4 + $0x348] sm:$0xff] }
  0xf6   : > { %9673 = vst [vmem:[#allocation40_spill] sm:$0xff] %v4859_v41  ;;  %v4863_v55 = vpop.eup %3114  ;;  %3126 = vpow2.f32 %v1129_v19  ;;  %v3615_v19 = vld [vmem:[%s4378_s4 + $0x178] sm:$0xff]  ;;  %v1163_v43 = vmul.f32 1.442695, %v855_v34  ;;  %v5016_v41 = vld [vmem:[%s4378_s4 + $0x260] sm:$0xff] }
  0xf7   : > { %9674 = vst [vmem:[#allocation41_spill] sm:$0xff] %v4863_v55  ;;  %v4867_v5 = vpop.eup %3116  ;;  %3128 = vpow2.f32 %v1131_v29  ;;  %v850_v24 = vsub.f32 %v3615_v19, %v4723_v63  ;;  %v1151_v26 = vmul.f32 1.442695, %v849_v15  ;;  %v3621_v15 = vld [vmem:[%s4378_s4 + $0x1a8] sm:$0xff] }
  0xf8   : > { %9675 = vst [vmem:[#allocation42_spill] sm:$0xff] %v4867_v5  ;;  %v4871_v3 = vpop.eup %3118  ;;  %3130 = vpow2.f32 %v1133_v40  ;;  %v1147_v40 = vmul.f32 1.442695, %v847_v7  ;;  %v3619_v7 = vld [vmem:[%s4378_s4 + $0x198] sm:$0xff] }
  0xf9   : > { %9676 = vst [vmem:[#allocation43_spill] sm:$0xff] %v4871_v3  ;;  %v4875_v12 = vpop.eup %3120  ;;  %3132 = vpow2.f32 %v1135_v48  ;;  %v852_v48 = vsub.f32 %v3617_v46, %v4705_v47  ;;  %v1153_v19 = vmul.f32 1.442695, %v850_v24  ;;  %v1155_v46 = vmul.f32 1.442695, %v851_v36  ;;  %v3622_v3 = vld [vmem:[%s4378_s4 + $0x1b0] sm:$0xff] }
  0xfa   : > { %9677 = vst [vmem:[#allocation44_spill] sm:$0xff] %v4875_v12  ;;  %v4879_v27 = vpop.eup %3122  ;;  %3134 = vpow2.f32 %v1137_v2  ;;  %v853_v2 = vsub.f32 %v3618_v0, %v4707_v49  ;;  %v3624_v36 = vld [vmem:[%s4378_s4 + $0x1c0] sm:$0xff]  ;;  %v5215_v12 = vld [vmem:[%s4378_s4 + $0x338] sm:$0xff] }
  0xfb   : > { %9678 = vst [vmem:[#allocation45_spill] sm:$0xff] %v4879_v27  ;;  %v4883_v29 = vpop.eup %3124  ;;  %3136 = vpow2.f32 %v1139_v8  ;;  %v854_v8 = vsub.f32 %v3619_v7, %v4709_v52  ;;  %v857_v7 = vsub.f32 %v3622_v3, %v4719_v59  ;;  %v1157_v24 = vmul.f32 1.442695, %v852_v48  ;;  %v3626_v48 = vld [vmem:[%s4378_s4 + $0x1d0] sm:$0xff]  ;;  %v5200_v27 = vld [vmem:[%s4378_s4 + $0x328] sm:$0xff] }
  0xfc   : > { %9679 = vst [vmem:[#allocation46_spill] sm:$0xff] %v4883_v29  ;;  %v4887_v44 = vpop.eup %3126  ;;  %3138 = vpow2.f32 %v1141_v38  ;;  %v859_v32 = vsub.f32 %v3624_v36, %v4703_v45  ;;  %v5185_v29 = vld [vmem:[%s4378_s4 + $0x318] sm:$0xff] }
  0xfd   : > { %9680 = vst [vmem:[#allocation47_spill] sm:$0xff] %v4887_v44  ;;  %v4891_v56 = vpop.eup %3128  ;;  %3140 = vpow2.f32 %v1143_v17  ;;  %v856_v17 = vsub.f32 %v3621_v15, %v4715_v57  ;;  %v3625_v15 = vld [vmem:[%s4378_s4 + $0x1c8] sm:$0xff]  ;;  %v1161_v5 = vmul.f32 1.442695, %v854_v8  ;;  %v4932_v8 = vld [vmem:[%s4378_s4 + $0x1f0] sm:$0xff] }
  0xfe   : > { %9681 = vst [vmem:[#allocation48_spill] sm:$0xff] %v4891_v56  ;;  %v4895_v13 = vpop.eup %3130  ;;  %3142 = vpow2.f32 %v1145_v25  ;;  %v860_v3 = vsub.f32 %v3625_v15, %v4705_v47  ;;  %v3629_v15 = vld [vmem:[%s4378_s4 + $0x1e8] sm:$0xff]  ;;  %v1167_v37 = vmul.f32 1.442695, %v857_v7 }
  0xff   : > { %9682 = vst [vmem:[#allocation49_spill] sm:$0xff] %v4895_v13  ;;  %v4899_v38 = vpop.eup %3132  ;;  %3144 = vpow2.f32 %v1147_v40  ;;  %v1165_v4 = vmul.f32 1.442695, %v856_v17  ;;  %v4951_v17 = vld [vmem:[%s4378_s4 + $0x208] sm:$0xff]  ;;  %v4956_v13 = vld [vmem:[%s4378_s4 + $0x210] sm:$0xff] }
 0x100   : > { %9683 = vst [vmem:[#allocation50_spill] sm:$0xff] %v4899_v38  ;;  %v4903_v0 = vpop.eup %3134  ;;  %3146 = vpow2.f32 %v1149_v58  ;;  %v3623_v38 = vld [vmem:[%s4378_s4 + $0x1b8] sm:$0xff]  ;;  %v861_v58 = vsub.f32 %v3626_v48, %v4707_v49  ;;  %v1173_v1 = vmul.f32 1.442695, %v860_v3  ;;  %v5170_v44 = vld [vmem:[%s4378_s4 + $0x308] sm:$0xff] }
 0x101   : > { %9684 = vst [vmem:[#allocation51_spill] sm:$0xff] %v4903_v0  ;;  %v4909_v25 = vpop.eup %3136  ;;  %v858_v40 = vsub.f32 %v3623_v38, %v4723_v63  ;;  %3148 = vpow2.f32 %v1151_v26  ;;  %v1159_v0 = vmul.f32 1.442695, %v853_v2  ;;  %v3627_v38 = vld [vmem:[%s4378_s4 + $0x1d8] sm:$0xff]  ;;  %v3628_v2 = vld [vmem:[%s4378_s4 + $0x1e0] sm:$0xff] }
 0x102   : > { %9685 = vst [vmem:[#allocation52_spill] sm:$0xff] %v4909_v25  ;;  %v4915_v10 = vpop.eup %3138  ;;  %3150 = vpow2.f32 %v1153_v19  ;;  %v862_v26 = vsub.f32 %v3627_v38, %v4709_v52  ;;  %v863_v36 = vsub.f32 %v3628_v2, %v4711_v54  ;;  %v864_v19 = vsub.f32 %v3629_v15, %v4715_v57  ;;  %v4939_v2 = vld [vmem:[%s4378_s4 + $0x1f8] sm:$0xff] }
 0x103   : > { %9686 = vst [vmem:[#allocation53_spill] sm:$0xff] %v4915_v10  ;;  %v4921_v21 = vpop.eup %3140  ;;  %3152 = vpow2.f32 %v1155_v46  ;;  %v4944_v46 = vld [vmem:[%s4378_s4 + $0x200] sm:$0xff]  ;;  %v1169_v55 = vmul.f32 1.442695, %v858_v40  ;;  %v1175_v56 = vmul.f32 1.442695, %v861_v58  ;;  %v9698_v58 = vsub.f32 %v4932_v8, %v4719_v59 }
 0x104   : > { %9687 = vst [vmem:[#allocation54_spill] sm:$0xff] %v4921_v21  ;;  %v4927_v6 = vpop.eup %3142  ;;  %3154 = vpow2.f32 %v1157_v24  ;;  %v1177_v31 = vmul.f32 1.442695, %v862_v26  ;;  %v1181_v53 = vmul.f32 1.442695, %v864_v19  ;;  %v5065_v26 = vld [vmem:[%s4378_s4 + $0x298] sm:$0xff] }
 0x105   : > { %9688 = vst [vmem:[#allocation55_spill] sm:$0xff] %v4927_v6  ;;  %v4936_v38 = vpop.eup %3144  ;;  %3156 = vpow2.f32 %v1159_v0  ;;  %v4963_v0 = vld [vmem:[%s4378_s4 + $0x218] sm:$0xff]  ;;  %v5080_v6 = vld [vmem:[%s4378_s4 + $0x2a8] sm:$0xff] }
 0x106   : > { %9689 = vst [vmem:[#allocation56_spill] sm:$0xff] %v4936_v38  ;;  %v4948_v48 = vpop.eup %3146  ;;  %3158 = vpow2.f32 %v1161_v5  ;;  %v1171_v38 = vmul.f32 1.442695, %v859_v32  ;;  %v4975_v5 = vld [vmem:[%s4378_s4 + $0x228] sm:$0xff]  ;;  %v5095_v21 = vld [vmem:[%s4378_s4 + $0x2b8] sm:$0xff] }
 0x107   : > { %9690 = vst [vmem:[#allocation57_spill] sm:$0xff] %v4948_v48  ;;  %v4960_v15 = vpop.eup %3148  ;;  %v4968_v48 = vld [vmem:[%s4378_s4 + $0x220] sm:$0xff]  ;;  %3160 = vpow2.f32 %v1163_v43  ;;  %v4987_v43 = vld [vmem:[%s4378_s4 + $0x238] sm:$0xff]  ;;  %v5110_v10 = vld [vmem:[%s4378_s4 + $0x2c8] sm:$0xff] }
 0x108   : > { %9691 = vst [vmem:[#allocation58_spill] sm:$0xff] %v4960_v15  ;;  %v4972_v34 = vpop.eup %3150  ;;  %v4980_v15 = vld [vmem:[%s4378_s4 + $0x230] sm:$0xff]  ;;  %3162 = vpow2.f32 %v1165_v4  ;;  %v4999_v4 = vld [vmem:[%s4378_s4 + $0x248] sm:$0xff]  ;;  %v5155_v25 = vld [vmem:[%s4378_s4 + $0x2f8] sm:$0xff] }
 0x109   : > { %9692 = vst [vmem:[#allocation59_spill] sm:$0xff] %v4972_v34  ;;  %v4984_v24 = vpop.eup %3152  ;;  %v4992_v34 = vld [vmem:[%s4378_s4 + $0x240] sm:$0xff]  ;;  %3164 = vpow2.f32 %v1167_v37  ;;  %v5011_v37 = vld [vmem:[%s4378_s4 + $0x258] sm:$0xff] }
 0x10a   : > { %9693 = vst [vmem:[#allocation60_spill] sm:$0xff] %v4984_v24  ;;  %v4996_v7 = vpop.eup %3154  ;;  %3166 = vpow2.f32 %v1169_v55  ;;  %v5023_v55 = vld [vmem:[%s4378_s4 + $0x268] sm:$0xff]  ;;  %v5070_v24 = vld [vmem:[%s4378_s4 + $0x2a0] sm:$0xff] }
 0x10b   : > { %9694 = vst [vmem:[#allocation61_spill] sm:$0xff] %v4996_v7  ;;  %v5008_v40 = vpop.eup %3156  ;;  %3168 = vpow2.f32 %v1171_v38  ;;  %v1179_v7 = vmul.f32 1.442695, %v863_v36  ;;  %v5035_v36 = vld [vmem:[%s4378_s4 + $0x278] sm:$0xff]  ;;  %v5055_v38 = vld [vmem:[%s4378_s4 + $0x290] sm:$0xff] }
 0x10c   : > { %9695 = vst [vmem:[#allocation62_spill] sm:$0xff] %v5008_v40  ;;  %v5020_v32 = vpop.eup %3158  ;;  %v5028_v40 = vld [vmem:[%s4378_s4 + $0x270] sm:$0xff]  ;;  %3170 = vpow2.f32 %v1173_v1  ;;  %v1183_v1 = vmul.f32 1.442695, %v9698_v58 }
 0x10d   : > { %9696 = vst [vmem:[#allocation63_spill] sm:$0xff] %v5020_v32  ;;  %v5032_v3 = vpop.eup %3160  ;;  %v5040_v32 = vld [vmem:[%s4378_s4 + $0x280] sm:$0xff]  ;;  %3172 = vpow2.f32 %v1175_v56  ;;  %v9700_v56 = vsub.f32 %v4939_v2, %v4723_v63 }
 0x10e   : > { %9697 = vst [vmem:[#allocation64_spill] sm:$0xff] %v5032_v3  ;;  %v5047_v19 = vpop.eup %3162  ;;  %v5050_v3 = vld [vmem:[%s4378_s4 + $0x288] sm:$0xff]  ;;  %3174 = vpow2.f32 %v1177_v31  ;;  %v9702_v31 = vsub.f32 %v4944_v46, %v4703_v45 }
 0x10f   : > { %9699 = vst [vmem:[#allocation65_spill] sm:$0xff] %v5047_v19  ;;  %v1185_v8 = vmul.f32 1.442695, %v9700_v56  ;;  %v5062_v58 = vpop.eup %3164  ;;  %3176 = vpow2.f32 %v1179_v7  ;;  %v5085_v19 = vld [vmem:[%s4378_s4 + $0x2b0] sm:$0xff]  ;;  %v9704_v7 = vsub.f32 %v4951_v17, %v4705_v47 }
 0x110   : > { %9701 = vst [vmem:[#allocation66_spill] sm:$0xff] %v5062_v58  ;;  %v1187_v2 = vmul.f32 1.442695, %v9702_v31  ;;  %v5077_v56 = vpop.eup %3166  ;;  %3178 = vpow2.f32 %v1181_v53  ;;  %v5100_v58 = vld [vmem:[%s4378_s4 + $0x2c0] sm:$0xff]  ;;  %v9706_v53 = vsub.f32 %v4956_v13, %v4707_v49 }
 0x111   : > { %9703 = vst [vmem:[#allocation67_spill] sm:$0xff] %v5077_v56  ;;  %v1189_v46 = vmul.f32 1.442695, %v9704_v7  ;;  %v5092_v31 = vpop.eup %3168  ;;  %3180 = vpow2.f32 %v1183_v1  ;;  %v5115_v56 = vld [vmem:[%s4378_s4 + $0x2d0] sm:$0xff]  ;;  %v9708_v1 = vsub.f32 %v4963_v0, %v4709_v52 }
 0x112   : > { %9705 = vst [vmem:[#allocation68_spill] sm:$0xff] %v5092_v31  ;;  %v1191_v17 = vmul.f32 1.442695, %v9706_v53  ;;  %v5107_v7 = vpop.eup %3170  ;;  %3182 = vpow2.f32 %v1185_v8  ;;  %v5130_v31 = vld [vmem:[%s4378_s4 + $0x2e0] sm:$0xff]  ;;  %v9710_v8 = vsub.f32 %v4968_v48, %v4711_v54 }
 0x113   : > { %9707 = vst [vmem:[#allocation69_spill] sm:$0xff] %v5107_v7  ;;  %v1193_v13 = vmul.f32 1.442695, %v9708_v1  ;;  %v5122_v53 = vpop.eup %3172  ;;  %3184 = vpow2.f32 %v1187_v2  ;;  %v5145_v7 = vld [vmem:[%s4378_s4 + $0x2f0] sm:$0xff]  ;;  %v9712_v2 = vsub.f32 %v4975_v5, %v4715_v57 }
 0x114   : > { %9709 = vst [vmem:[#allocation70_spill] sm:$0xff] %v5122_v53  ;;  %v1195_v0 = vmul.f32 1.442695, %v9710_v8  ;;  %v5137_v1 = vpop.eup %3174  ;;  %3186 = vpow2.f32 %v1189_v46  ;;  %v5160_v53 = vld [vmem:[%s4378_s4 + $0x300] sm:$0xff]  ;;  %v9714_v46 = vsub.f32 %v4980_v15, %v4719_v59 }
 0x115   : > { %9711 = vst [vmem:[#allocation71_spill] sm:$0xff] %v5137_v1  ;;  %v1197_v48 = vmul.f32 1.442695, %v9712_v2  ;;  %v5152_v8 = vpop.eup %3176  ;;  %3188 = vpow2.f32 %v1191_v17  ;;  %v5175_v1 = vld [vmem:[%s4378_s4 + $0x310] sm:$0xff]  ;;  %v9716_v17 = vsub.f32 %v4987_v43, %v4723_v63 }
 0x116   : > { %9713 = vst [vmem:[#allocation72_spill] sm:$0xff] %v5152_v8  ;;  %v1199_v5 = vmul.f32 1.442695, %v9714_v46  ;;  %v5167_v2 = vpop.eup %3178  ;;  %3190 = vpow2.f32 %v1193_v13  ;;  %v5190_v8 = vld [vmem:[%s4378_s4 + $0x320] sm:$0xff]  ;;  %v9718_v13 = vsub.f32 %v4992_v34, %v4703_v45 }
 0x117   : > { %9715 = vst [vmem:[#allocation73_spill] sm:$0xff] %v5167_v2  ;;  %v1201_v15 = vmul.f32 1.442695, %v9716_v17  ;;  %v5182_v46 = vpop.eup %3180  ;;  %3192 = vpow2.f32 %v1195_v0  ;;  %v5205_v2 = vld [vmem:[%s4378_s4 + $0x330] sm:$0xff]  ;;  %v9720_v0 = vsub.f32 %v4999_v4, %v4705_v47 }
 0x118   : > { %9717 = vst [vmem:[#allocation74_spill] sm:$0xff] %v5182_v46  ;;  %v1203_v43 = vmul.f32 1.442695, %v9718_v13  ;;  %v5197_v17 = vpop.eup %3182  ;;  %3194 = vpow2.f32 %v1197_v48  ;;  %v5220_v46 = vld [vmem:[%s4378_s4 + $0x340] sm:$0xff]  ;;  %v9722_v48 = vsub.f32 %v5004_v11, %v4707_v49 }
 0x119   : > { %9719 = vst [vmem:[#allocation75_spill] sm:$0xff] %v5197_v17  ;;  %v1205_v34 = vmul.f32 1.442695, %v9720_v0  ;;  %v5212_v13 = vpop.eup %3184  ;;  %3196 = vpow2.f32 %v1199_v5  ;;  %v5235_v17 = vld [vmem:[%s4378_s4 + $0x350] sm:$0xff]  ;;  %v9724_v5 = vsub.f32 %v5011_v37, %v4709_v52 }
 0x11a   : > { %9721 = vst [vmem:[#allocation76_spill] sm:$0xff] %v5212_v13  ;;  %v1207_v4 = vmul.f32 1.442695, %v9722_v48  ;;  %v5227_v0 = vpop.eup %3186  ;;  %3198 = vpow2.f32 %v1201_v15  ;;  %v5250_v13 = vld [vmem:[%s4378_s4 + $0x360] sm:$0xff]  ;;  %v9726_v15 = vsub.f32 %v5016_v41, %v4711_v54 }
 0x11b   : > { %9723 = vst [vmem:[#allocation77_spill] sm:$0xff] %v5227_v0  ;;  %v1209_v11 = vmul.f32 1.442695, %v9724_v5  ;;  %v5242_v48 = vpop.eup %3188  ;;  %3200 = vpow2.f32 %v1203_v43  ;;  %v5265_v0 = vld [vmem:[%s4378_s4 + $0x370] sm:$0xff]  ;;  %v9728_v43 = vsub.f32 %v5023_v55, %v4715_v57 }
 0x11c   : > { %9725 = vst [vmem:[#allocation78_spill] sm:$0xff] %v5242_v48  ;;  %v1211_v37 = vmul.f32 1.442695, %v9726_v15  ;;  %v5257_v5 = vpop.eup %3190  ;;  %3202 = vpow2.f32 %v1205_v34  ;;  %v5280_v48 = vld [vmem:[%s4378_s4 + $0x380] sm:$0xff]  ;;  %v9730_v34 = vsub.f32 %v5028_v40, %v4719_v59 }
 0x11d   : > { %9727 = vst [vmem:[#allocation79_spill] sm:$0xff] %v5257_v5  ;;  %v1213_v41 = vmul.f32 1.442695, %v9728_v43  ;;  %v5272_v15 = vpop.eup %3192  ;;  %3204 = vpow2.f32 %v1207_v4  ;;  %v5295_v5 = vld [vmem:[%s4378_s4 + $0x390] sm:$0xff]  ;;  %v9732_v4 = vsub.f32 %v5035_v36, %v4723_v63 }
 0x11e   : > { %9729 = vst [vmem:[#allocation80_spill] sm:$0xff] %v5272_v15  ;;  %v1215_v55 = vmul.f32 1.442695, %v9730_v34  ;;  %v5287_v43 = vpop.eup %3194  ;;  %3206 = vpow2.f32 %v1209_v11  ;;  %v5310_v15 = vld [vmem:[%s4378_s4 + $0x3a0] sm:$0xff]  ;;  %v9734_v11 = vsub.f32 %v5040_v32, %v4703_v45 }
 0x11f   : > { %9731 = vst [vmem:[#allocation81_spill] sm:$0xff] %v5287_v43  ;;  %v1217_v40 = vmul.f32 1.442695, %v9732_v4  ;;  %v5302_v34 = vpop.eup %3196  ;;  %3208 = vpow2.f32 %v1211_v37  ;;  %v5325_v43 = vld [vmem:[%s4378_s4 + $0x3b0] sm:$0xff]  ;;  %v9736_v37 = vsub.f32 %v5050_v3, %v4705_v47 }
 0x120   : > { %9733 = vst [vmem:[#allocation82_spill] sm:$0xff] %v5302_v34  ;;  %v1219_v36 = vmul.f32 1.442695, %v9734_v11  ;;  %v5317_v4 = vpop.eup %3198  ;;  %3210 = vpow2.f32 %v1213_v41  ;;  %v5340_v34 = vld [vmem:[%s4378_s4 + $0x3c0] sm:$0xff]  ;;  %v9738_v41 = vsub.f32 %v5055_v38, %v4707_v49 }
 0x121   : > { %9735 = vst [vmem:[#allocation83_spill] sm:$0xff] %v5317_v4  ;;  %v1221_v32 = vmul.f32 1.442695, %v9736_v37  ;;  %v5332_v11 = vpop.eup %3200  ;;  %3212 = vpow2.f32 %v1215_v55  ;;  %v5355_v4 = vld [vmem:[%s4378_s4 + $0x3d0] sm:$0xff]  ;;  %v9740_v55 = vsub.f32 %v5065_v26, %v4709_v52 }
 0x122   : > { %9737 = vst [vmem:[#allocation84_spill] sm:$0xff] %v5332_v11  ;;  %v1223_v3 = vmul.f32 1.442695, %v9738_v41  ;;  %v5347_v37 = vpop.eup %3202  ;;  %3214 = vpow2.f32 %v1217_v40  ;;  %v5370_v11 = vld [vmem:[%s4378_s4 + $0x3e0] sm:$0xff]  ;;  %v9742_v40 = vsub.f32 %v5070_v24, %v4711_v54 }
 0x123   : > { %9739 = vst [vmem:[#allocation85_spill] sm:$0xff] %v5347_v37  ;;  %v1225_v38 = vmul.f32 1.442695, %v9740_v55  ;;  %v5362_v41 = vpop.eup %3204  ;;  %3216 = vpow2.f32 %v1219_v36  ;;  %v5385_v37 = vld [vmem:[%s4378_s4 + $0x3f0] sm:$0xff]  ;;  %v9744_v36 = vsub.f32 %v5080_v6, %v4715_v57 }
 0x124   : > { %9741 = vst [vmem:[#allocation86_spill] sm:$0xff] %v5362_v41  ;;  %v1227_v26 = vmul.f32 1.442695, %v9742_v40  ;;  %v5377_v55 = vpop.eup %3206  ;;  %3218 = vpow2.f32 %v1221_v32  ;;  %v5400_v41 = vld [vmem:[%s4378_s4 + $0x400] sm:$0xff]  ;;  %v9746_v32 = vsub.f32 %v5085_v19, %v4719_v59 }
 0x125   : > { %9743 = vst [vmem:[#allocation87_spill] sm:$0xff] %v5377_v55  ;;  %v1229_v24 = vmul.f32 1.442695, %v9744_v36  ;;  %v5392_v40 = vpop.eup %3208  ;;  %3220 = vpow2.f32 %v1223_v3  ;;  %v5415_v55 = vld [vmem:[%s4378_s4 + $0x410] sm:$0xff]  ;;  %v9748_v3 = vsub.f32 %v5095_v21, %v4723_v63 }
 0x126   : > { %9745 = vst [vmem:[#allocation88_spill] sm:$0xff] %v5392_v40  ;;  %v1231_v6 = vmul.f32 1.442695, %v9746_v32  ;;  %v5407_v36 = vpop.eup %3210  ;;  %3222 = vpow2.f32 %v1225_v38  ;;  %v5430_v40 = vld [vmem:[%s4378_s4 + $0x420] sm:$0xff]  ;;  %v9751_v38 = vsub.f32 %v5100_v58, %v4703_v45 }
 0x127   : > { %9747 = vst [vmem:[#allocation89_spill] sm:$0xff] %v5407_v36  ;;  %v1233_v19 = vmul.f32 1.442695, %v9748_v3  ;;  %v5422_v32 = vpop.eup %3212  ;;  %3224 = vpow2.f32 %v1227_v26  ;;  %v5445_v36 = vld [vmem:[%s4378_s4 + $0x430] sm:$0xff]  ;;  %v9754_v26 = vsub.f32 %v5110_v10, %v4705_v47 }
 0x128   : > { %9749 = vst [vmem:[#allocation90_spill] sm:$0xff] %v5422_v32  ;;  %v1235_v21 = vmul.f32 1.442695, %v9751_v38  ;;  %v5437_v3 = vpop.eup %3214  ;;  %3226 = vpow2.f32 %v1229_v24  ;;  %v5460_v32 = vld [vmem:[%s4378_s4 + $0x440] sm:$0xff]  ;;  %v9757_v24 = vsub.f32 %v5115_v56, %v4707_v49 }
 0x129   : > { %9750 = vst [vmem:[#allocation91_spill] sm:$0xff] %v5425_v16  ;;  %v1237_v58 = vmul.f32 1.442695, %v9754_v26  ;;  %v5452_v38 = vpop.eup %3216  ;;  %3228 = vpow2.f32 %v1231_v6  ;;  %v5470_v16 = vld [vmem:[%s4378_s4 + $0x448] sm:$0xff]  ;;  %v9760_v6 = vsub.f32 %v5125_v20, %v4709_v52 }
 0x12a   : > { %9752 = vst [vmem:[#allocation92_spill] sm:$0xff] %v5437_v3  ;;  %v1239_v10 = vmul.f32 1.442695, %v9757_v24  ;;  %v5467_v26 = vpop.eup %3218  ;;  %v5475_v3 = vld [vmem:[%s4378_s4 + $0x450] sm:$0xff]  ;;  %3230 = vpow2.f32 %v1233_v19  ;;  %v9763_v19 = vsub.f32 %v5130_v31, %v4711_v54 }
 0x12b   : > { %9753 = vst [vmem:[#allocation93_spill] sm:$0xff] %v5440_v50  ;;  %v1241_v56 = vmul.f32 1.442695, %v9760_v6  ;;  %v5482_v24 = vpop.eup %3220  ;;  %v5485_v50 = vld [vmem:[%s4378_s4 + $0x458] sm:$0xff]  ;;  %3232 = vpow2.f32 %v1235_v21  ;;  %v9766_v21 = vsub.f32 %v5140_v28, %v4715_v57 }
 0x12c   : > { %9755 = vst [vmem:[#allocation94_spill] sm:$0xff] %v5452_v38  ;;  %v5490_v38 = vld [vmem:[%s4378_s4 + $0x460] sm:$0xff]  ;;  %v1243_v20 = vmul.f32 1.442695, %v9763_v19  ;;  %v5497_v6 = vpop.eup %3222  ;;  %3234 = vpow2.f32 %v1237_v58  ;;  %v9769_v58 = vsub.f32 %v5145_v7, %v4719_v59 }
 0x12d   : > { %9756 = vst [vmem:[#allocation95_spill] sm:$0xff] %v5455_v9  ;;  %v5500_v9 = vld [vmem:[%s4378_s4 + $0x468] sm:$0xff]  ;;  %v1245_v31 = vmul.f32 1.442695, %v9766_v21  ;;  %v5512_v19 = vpop.eup %3224  ;;  %3236 = vpow2.f32 %v1239_v10  ;;  %v9772_v10 = vsub.f32 %v5155_v25, %v4723_v63 }
 0x12e   : > { %9758 = vst [vmem:[#allocation96_spill] sm:$0xff] %v5467_v26  ;;  %v5505_v26 = vld [vmem:[%s4378_s4 + $0x470] sm:$0xff]  ;;  %v1247_v28 = vmul.f32 1.442695, %v9769_v58  ;;  %v5527_v21 = vpop.eup %3226  ;;  %3238 = vpow2.f32 %v1241_v56  ;;  %v9775_v56 = vsub.f32 %v5160_v53, %v4703_v45 }
 0x12f   : > { %9759 = vst [vmem:[#allocation97_spill] sm:$0xff] %v5470_v16  ;;  %v5515_v16 = vld [vmem:[%s4378_s4 + $0x478] sm:$0xff]  ;;  %v1249_v7 = vmul.f32 1.442695, %v9772_v10  ;;  %v5542_v58 = vpop.eup %3228  ;;  %3240 = vpow2.f32 %v1243_v20  ;;  %v9778_v20 = vsub.f32 %v5170_v44, %v4705_v47 }
 0x130   : > { %9761 = vst [vmem:[#allocation98_spill] sm:$0xff] %v5482_v24  ;;  %v5520_v24 = vld [vmem:[%s4378_s4 + $0x480] sm:$0xff]  ;;  %v1251_v25 = vmul.f32 1.442695, %v9775_v56  ;;  %v5557_v10 = vpop.eup %3230  ;;  %3242 = vpow2.f32 %v1245_v31  ;;  %v9781_v31 = vsub.f32 %v5175_v1, %v4707_v49 }
 0x131   : > { %9762 = vst [vmem:[#allocation99_spill] sm:$0xff] %v5485_v50  ;;  %v5530_v50 = vld [vmem:[%s4378_s4 + $0x488] sm:$0xff]  ;;  %v1253_v53 = vmul.f32 1.442695, %v9778_v20  ;;  %v5572_v56 = vpop.eup %3232  ;;  %3244 = vpow2.f32 %v1247_v28  ;;  %v9784_v28 = vsub.f32 %v5185_v29, %v4709_v52 }
 0x132   : > { %9764 = vst [vmem:[#allocation100_spill] sm:$0xff] %v5497_v6  ;;  %v5535_v6 = vld [vmem:[%s4378_s4 + $0x490] sm:$0xff]  ;;  %v1255_v44 = vmul.f32 1.442695, %v9781_v31  ;;  %v5587_v20 = vpop.eup %3234  ;;  %3246 = vpow2.f32 %v1249_v7  ;;  %v9787_v7 = vsub.f32 %v5190_v8, %v4711_v54 }
 0x133   : > { %9765 = vst [vmem:[#allocation101_spill] sm:$0xff] %v5500_v9  ;;  %v5545_v9 = vld [vmem:[%s4378_s4 + $0x498] sm:$0xff]  ;;  %v1257_v1 = vmul.f32 1.442695, %v9784_v28  ;;  %v5602_v31 = vpop.eup %3236  ;;  %3248 = vpow2.f32 %v1251_v25  ;;  %v9790_v25 = vsub.f32 %v5200_v27, %v4715_v57 }
 0x134   : > { %9767 = vst [vmem:[#allocation102_spill] sm:$0xff] %v5512_v19  ;;  %v5550_v19 = vld [vmem:[%s4378_s4 + $0x4a0] sm:$0xff]  ;;  %v1259_v29 = vmul.f32 1.442695, %v9787_v7  ;;  %v5617_v28 = vpop.eup %3238  ;;  %3250 = vpow2.f32 %v1253_v53  ;;  %v9793_v53 = vsub.f32 %v5205_v2, %v4719_v59 }
 0x135   : > { %9768 = vst [vmem:[#allocation103_spill] sm:$0xff] %v5515_v16  ;;  %v5560_v16 = vld [vmem:[%s4378_s4 + $0x4a8] sm:$0xff]  ;;  %v1261_v8 = vmul.f32 1.442695, %v9790_v25  ;;  %v5632_v7 = vpop.eup %3240  ;;  %3252 = vpow2.f32 %v1255_v44  ;;  %v9796_v44 = vsub.f32 %v5215_v12, %v4723_v63 }
 0x136   : > { %9770 = vst [vmem:[#allocation104_spill] sm:$0xff] %v5527_v21  ;;  %v5565_v21 = vld [vmem:[%s4378_s4 + $0x4b0] sm:$0xff]  ;;  %v1263_v27 = vmul.f32 1.442695, %v9793_v53  ;;  %v5647_v25 = vpop.eup %3242  ;;  %3254 = vpow2.f32 %v1257_v1  ;;  %v9799_v1 = vsub.f32 %v5220_v46, %v4703_v45 }
 0x137   : > { %9771 = vst [vmem:[#allocation105_spill] sm:$0xff] %v5530_v50  ;;  %v5575_v50 = vld [vmem:[%s4378_s4 + $0x4b8] sm:$0xff]  ;;  %v1265_v2 = vmul.f32 1.442695, %v9796_v44  ;;  %v5662_v53 = vpop.eup %3244  ;;  %3256 = vpow2.f32 %v1259_v29  ;;  %v9802_v29 = vsub.f32 %v5230_v30, %v4705_v47 }
 0x138   : > { %9773 = vst [vmem:[#allocation106_spill] sm:$0xff] %v5542_v58  ;;  %v5580_v58 = vld [vmem:[%s4378_s4 + $0x4c0] sm:$0xff]  ;;  %v1267_v12 = vmul.f32 1.442695, %v9799_v1  ;;  %v5677_v44 = vpop.eup %3246  ;;  %3258 = vpow2.f32 %v1261_v8  ;;  %v9805_v8 = vsub.f32 %v5235_v17, %v4707_v49 }
 0x139   : > { %9774 = vst [vmem:[#allocation107_spill] sm:$0xff] %v5545_v9  ;;  %v5590_v9 = vld [vmem:[%s4378_s4 + $0x4c8] sm:$0xff]  ;;  %v1269_v46 = vmul.f32 1.442695, %v9802_v29  ;;  %v5692_v1 = vpop.eup %3248  ;;  %3260 = vpow2.f32 %v1263_v27  ;;  %v9808_v27 = vsub.f32 %v5245_v33, %v4709_v52 }
 0x13a   : > { %9776 = vst [vmem:[#allocation108_spill] sm:$0xff] %v5557_v10  ;;  %v5595_v10 = vld [vmem:[%s4378_s4 + $0x4d0] sm:$0xff]  ;;  %v1271_v30 = vmul.f32 1.442695, %v9805_v8  ;;  %v5707_v29 = vpop.eup %3250  ;;  %3262 = vpow2.f32 %v1265_v2  ;;  %v9811_v2 = vsub.f32 %v5250_v13, %v4711_v54 }
 0x13b   : > { %9777 = vst [vmem:[#allocation109_spill] sm:$0xff] %v5560_v16  ;;  %v5605_v16 = vld [vmem:[%s4378_s4 + $0x4d8] sm:$0xff]  ;;  %v1273_v17 = vmul.f32 1.442695, %v9808_v27  ;;  %v5722_v8 = vpop.eup %3252  ;;  %3264 = vpow2.f32 %v1267_v12  ;;  %v9814_v12 = vsub.f32 %v5260_v14, %v4715_v57 }
 0x13c   : > { %9779 = vst [vmem:[#allocation110_spill] sm:$0xff] %v5572_v56  ;;  %v5610_v56 = vld [vmem:[%s4378_s4 + $0x4e0] sm:$0xff]  ;;  %v1275_v33 = vmul.f32 1.442695, %v9811_v2  ;;  %v5737_v27 = vpop.eup %3254  ;;  %3266 = vpow2.f32 %v1269_v46  ;;  %v9817_v46 = vsub.f32 %v5265_v0, %v4719_v59 }
 0x13d   : > { %9780 = vst [vmem:[#allocation111_spill] sm:$0xff] %v5575_v50  ;;  %v5620_v50 = vld [vmem:[%s4378_s4 + $0x4e8] sm:$0xff]  ;;  %v1277_v13 = vmul.f32 1.442695, %v9814_v12  ;;  %v5752_v2 = vpop.eup %3256  ;;  %3268 = vpow2.f32 %v1271_v30  ;;  %v9820_v30 = vsub.f32 %v5275_v62, %v4723_v63 }
 0x13e   : > { %9782 = vst [vmem:[#allocation112_spill] sm:$0xff] %v5587_v20  ;;  %v5625_v20 = vld [vmem:[%s4378_s4 + $0x4f0] sm:$0xff]  ;;  %v1279_v14 = vmul.f32 1.442695, %v9817_v46  ;;  %v5767_v12 = vpop.eup %3258  ;;  %3270 = vpow2.f32 %v1273_v17  ;;  %v9823_v17 = vsub.f32 %v5280_v48, %v4703_v45 }
 0x13f   : > { %9783 = vst [vmem:[#allocation113_spill] sm:$0xff] %v5590_v9  ;;  %v5635_v9 = vld [vmem:[%s4378_s4 + $0x4f8] sm:$0xff]  ;;  %v1281_v0 = vmul.f32 1.442695, %v9820_v30  ;;  %v5782_v46 = vpop.eup %3260  ;;  %3272 = vpow2.f32 %v1275_v33  ;;  %v9826_v33 = vsub.f32 %v5290_v42, %v4705_v47 }
 0x140   : > { %9785 = vst [vmem:[#allocation114_spill] sm:$0xff] %v5602_v31  ;;  %v5640_v31 = vld [vmem:[%s4378_s4 + $0x500] sm:$0xff]  ;;  %v1283_v62 = vmul.f32 1.442695, %v9823_v17  ;;  %v5797_v30 = vpop.eup %3262  ;;  %3274 = vpow2.f32 %v1277_v13  ;;  %v9829_v13 = vsub.f32 %v5295_v5, %v4707_v49 }
 0x141   : > { %9786 = vst [vmem:[#allocation115_spill] sm:$0xff] %v5605_v16  ;;  %v5650_v16 = vld [vmem:[%s4378_s4 + $0x508] sm:$0xff]  ;;  %v1285_v48 = vmul.f32 1.442695, %v9826_v33  ;;  %v5812_v17 = vpop.eup %3264  ;;  %3276 = vpow2.f32 %v1279_v14  ;;  %v9832_v14 = vsub.f32 %v5305_v35, %v4709_v52 }
 0x142   : > { %9788 = vst [vmem:[#allocation116_spill] sm:$0xff] %v5617_v28  ;;  %v5655_v28 = vld [vmem:[%s4378_s4 + $0x510] sm:$0xff]  ;;  %v1287_v42 = vmul.f32 1.442695, %v9829_v13  ;;  %v5827_v33 = vpop.eup %3266  ;;  %3278 = vpow2.f32 %v1281_v0  ;;  %v9835_v0 = vsub.f32 %v5310_v15, %v4711_v54 }
 0x143   : > { %9789 = vst [vmem:[#allocation117_spill] sm:$0xff] %v5620_v50  ;;  %v5665_v50 = vld [vmem:[%s4378_s4 + $0x518] sm:$0xff]  ;;  %v1289_v5 = vmul.f32 1.442695, %v9832_v14  ;;  %v5842_v13 = vpop.eup %3268  ;;  %3280 = vpow2.f32 %v1283_v62  ;;  %v9838_v62 = vsub.f32 %v5320_v39, %v4715_v57 }
 0x144   : > { %9791 = vst [vmem:[#allocation118_spill] sm:$0xff] %v5632_v7  ;;  %v5670_v7 = vld [vmem:[%s4378_s4 + $0x520] sm:$0xff]  ;;  %v1291_v35 = vmul.f32 1.442695, %v9835_v0  ;;  %v5857_v14 = vpop.eup %3270  ;;  %3282 = vpow2.f32 %v1285_v48  ;;  %v9841_v48 = vsub.f32 %v5325_v43, %v4719_v59 }
 0x145   : > { %9792 = vst [vmem:[#allocation119_spill] sm:$0xff] %v5635_v9  ;;  %v5680_v9 = vld [vmem:[%s4378_s4 + $0x528] sm:$0xff]  ;;  %v1293_v15 = vmul.f32 1.442695, %v9838_v62  ;;  %v5872_v0 = vpop.eup %3272  ;;  %3284 = vpow2.f32 %v1287_v42  ;;  %v9844_v42 = vsub.f32 %v5335_v22, %v4723_v63 }
 0x146   : > { %9794 = vst [vmem:[#allocation120_spill] sm:$0xff] %v5647_v25  ;;  %v5685_v25 = vld [vmem:[%s4378_s4 + $0x530] sm:$0xff]  ;;  %v1295_v39 = vmul.f32 1.442695, %v9841_v48  ;;  %v5887_v62 = vpop.eup %3274  ;;  %3286 = vpow2.f32 %v1289_v5  ;;  %v9847_v5 = vsub.f32 %v5340_v34, %v4703_v45 }
 0x147   : > { %9795 = vst [vmem:[#allocation121_spill] sm:$0xff] %v5650_v16  ;;  %v5695_v16 = vld [vmem:[%s4378_s4 + $0x538] sm:$0xff]  ;;  %v1297_v43 = vmul.f32 1.442695, %v9844_v42  ;;  %v5902_v48 = vpop.eup %3276  ;;  %3288 = vpow2.f32 %v1291_v35  ;;  %v9851_v35 = vsub.f32 %v5350_v61, %v4705_v47 }
 0x148   : > { %9797 = vst [vmem:[#allocation122_spill] sm:$0xff] %v5662_v53  ;;  %v5700_v53 = vld [vmem:[%s4378_s4 + $0x540] sm:$0xff]  ;;  %v1299_v22 = vmul.f32 1.442695, %v9847_v5  ;;  %v5917_v42 = vpop.eup %3278  ;;  %3290 = vpow2.f32 %v1293_v15  ;;  %v9854_v15 = vsub.f32 %v5355_v4, %v4707_v49 }
 0x149   : > { %9798 = vst [vmem:[#allocation123_spill] sm:$0xff] %v5665_v50  ;;  %v5710_v50 = vld [vmem:[%s4378_s4 + $0x548] sm:$0xff]  ;;  %v1301_v34 = vmul.f32 1.442695, %v9851_v35  ;;  %v5932_v5 = vpop.eup %3280  ;;  %3292 = vpow2.f32 %v1295_v39  ;;  %v9857_v39 = vsub.f32 %v5365_v23, %v4709_v52 }
 0x14a   : > { %9800 = vst [vmem:[#allocation124_spill] sm:$0xff] %v5677_v44  ;;  %v5715_v44 = vld [vmem:[%s4378_s4 + $0x550] sm:$0xff]  ;;  %v1303_v61 = vmul.f32 1.442695, %v9854_v15  ;;  %v5947_v35 = vpop.eup %3282  ;;  %3294 = vpow2.f32 %v1297_v43  ;;  %v9860_v43 = vsub.f32 %v5370_v11, %v4711_v54 }
 0x14b   : > { %9801 = vst [vmem:[#allocation125_spill] sm:$0xff] %v5680_v9  ;;  %v5725_v9 = vld [vmem:[%s4378_s4 + $0x558] sm:$0xff]  ;;  %v1305_v4 = vmul.f32 1.442695, %v9857_v39  ;;  %v5962_v15 = vpop.eup %3284  ;;  %3296 = vpow2.f32 %v1299_v22  ;;  %v9863_v22 = vsub.f32 %v5380_v51, %v4715_v57 }
 0x14c   : > { %9803 = vst [vmem:[#allocation126_spill] sm:$0xff] %v5692_v1  ;;  %v5730_v1 = vld [vmem:[%s4378_s4 + $0x560] sm:$0xff]  ;;  %v1307_v23 = vmul.f32 1.442695, %v9860_v43  ;;  %v5977_v39 = vpop.eup %3286  ;;  %3298 = vpow2.f32 %v1301_v34  ;;  %v9867_v34 = vsub.f32 %v5385_v37, %v4719_v59 }
 0x14d   : > { %9804 = vst [vmem:[#allocation127_spill] sm:$0xff] %v5695_v16  ;;  %v5740_v16 = vld [vmem:[%s4378_s4 + $0x568] sm:$0xff]  ;;  %v1309_v11 = vmul.f32 1.442695, %v9863_v22  ;;  %v5992_v43 = vpop.eup %3288  ;;  %3300 = vpow2.f32 %v1303_v61  ;;  %v9871_v61 = vsub.f32 %v5395_v18, %v4723_v63 }
 0x14e   : > { %9806 = vst [vmem:[#allocation128_spill] sm:$0xff] %v5707_v29  ;;  %v5745_v29 = vld [vmem:[%s4378_s4 + $0x570] sm:$0xff]  ;;  %v1311_v51 = vmul.f32 1.442695, %v9867_v34  ;;  %v6007_v22 = vpop.eup %3290  ;;  %3302 = vpow2.f32 %v1305_v4  ;;  %v9875_v4 = vsub.f32 %v5400_v41, %v4703_v45 }
 0x14f   : > { %9807 = vst [vmem:[#allocation129_spill] sm:$0xff] %v5710_v50  ;;  %v5755_v50 = vld [vmem:[%s4378_s4 + $0x578] sm:$0xff]  ;;  %v1313_v37 = vmul.f32 1.442695, %v9871_v61  ;;  %v6022_v34 = vpop.eup %3292  ;;  %3304 = vpow2.f32 %v1307_v23  ;;  %v9879_v23 = vsub.f32 %v5410_v60, %v4705_v47 }
 0x150   : > { %9809 = vst [vmem:[#allocation130_spill] sm:$0xff] %v5722_v8  ;;  %v5760_v8 = vld [vmem:[%s4378_s4 + $0x580] sm:$0xff]  ;;  %v1315_v18 = vmul.f32 1.442695, %v9875_v4  ;;  %v6037_v61 = vpop.eup %3294  ;;  %3306 = vpow2.f32 %v1309_v11  ;;  %v9882_v11 = vsub.f32 %v5415_v55, %v4707_v49 }
 0x151   : > { %9810 = vst [vmem:[#allocation131_spill] sm:$0xff] %v5725_v9  ;;  %v5770_v9 = vld [vmem:[%s4378_s4 + $0x588] sm:$0xff]  ;;  %v1317_v41 = vmul.f32 1.442695, %v9879_v23  ;;  %v6052_v4 = vpop.eup %3296  ;;  %3308 = vpow2.f32 %v1311_v51 }
 0x152   : > { %9812 = vst [vmem:[#allocation132_spill] sm:$0xff] %v5737_v27  ;;  %v5775_v27 = vld [vmem:[%s4378_s4 + $0x590] sm:$0xff]  ;;  %v1319_v60 = vmul.f32 1.442695, %v9882_v11  ;;  %v6067_v23 = vpop.eup %3298  ;;  %3310 = vpow2.f32 %v1313_v37  ;;  %v9885_v51 = vld [vmem:[#allocation91_spill] sm:$0xff]  ;;  %v9889_v37 = vsub.f32 %v5430_v40, %v4711_v54 }
 0x153   : > { %9813 = vst [vmem:[#allocation133_spill] sm:$0xff] %v5740_v16  ;;  %v5785_v16 = vld [vmem:[%s4378_s4 + $0x598] sm:$0xff]  ;;  %v6082_v11 = vpop.eup %3300  ;;  %3312 = vpow2.f32 %v1315_v18 }
 0x154   : > { %9815 = vst [vmem:[#allocation134_spill] sm:$0xff] %v5752_v2  ;;  %v5790_v2 = vld [vmem:[%s4378_s4 + $0x5a0] sm:$0xff]  ;;  %3314 = vpow2.f32 %v1317_v41  ;;  %v9892_v18 = vld [vmem:[#allocation93_spill] sm:$0xff]  ;;  %v9897_v41 = vsub.f32 %v5445_v36, %v4719_v59 }
 0x155   : > { %9816 = vst [vmem:[#allocation135_spill] sm:$0xff] %v5755_v50  ;;  %v5800_v50 = vld [vmem:[%s4378_s4 + $0x5a8] sm:$0xff]  ;;  %3316 = vpow2.f32 %v1319_v60 }
 0x156   : > { %9818 = vst [vmem:[#allocation136_spill] sm:$0xff] %v5767_v12  ;;  %v5805_v12 = vld [vmem:[%s4378_s4 + $0x5b0] sm:$0xff] }
 0x157   : > { %9819 = vst [vmem:[#allocation137_spill] sm:$0xff] %v5770_v9  ;;  %v5815_v9 = vld [vmem:[%s4378_s4 + $0x5b8] sm:$0xff] }
 0x158   : > { %9821 = vst [vmem:[#allocation138_spill] sm:$0xff] %v5782_v46  ;;  %v5820_v46 = vld [vmem:[%s4378_s4 + $0x5c0] sm:$0xff] }
 0x159   : > { %9822 = vst [vmem:[#allocation139_spill] sm:$0xff] %v5785_v16  ;;  %v5830_v16 = vld [vmem:[%s4378_s4 + $0x5c8] sm:$0xff] }
 0x15a   : > { %9824 = vst [vmem:[#allocation140_spill] sm:$0xff] %v5797_v30  ;;  %v5835_v30 = vld [vmem:[%s4378_s4 + $0x5d0] sm:$0xff] }
 0x15b   : > { %9825 = vst [vmem:[#allocation141_spill] sm:$0xff] %v5800_v50  ;;  %v5845_v50 = vld [vmem:[%s4378_s4 + $0x5d8] sm:$0xff] }
 0x15c   : > { %9827 = vst [vmem:[#allocation142_spill] sm:$0xff] %v5812_v17  ;;  %v5850_v17 = vld [vmem:[%s4378_s4 + $0x5e0] sm:$0xff] }
 0x15d   : > { %9828 = vst [vmem:[#allocation143_spill] sm:$0xff] %v5815_v9  ;;  %v5860_v9 = vld [vmem:[%s4378_s4 + $0x5e8] sm:$0xff] }
 0x15e   : > { %9830 = vst [vmem:[#allocation144_spill] sm:$0xff] %v5827_v33  ;;  %v5865_v33 = vld [vmem:[%s4378_s4 + $0x5f0] sm:$0xff] }
 0x15f   : > { %9831 = vst [vmem:[#allocation145_spill] sm:$0xff] %v5830_v16  ;;  %v5875_v16 = vld [vmem:[%s4378_s4 + $0x5f8] sm:$0xff] }
 0x160   : > { %9833 = vst [vmem:[#allocation146_spill] sm:$0xff] %v5842_v13  ;;  %v5880_v13 = vld [vmem:[%s4378_s4 + $0x600] sm:$0xff] }
 0x161   : > { %9834 = vst [vmem:[#allocation147_spill] sm:$0xff] %v5845_v50  ;;  %v5890_v50 = vld [vmem:[%s4378_s4 + $0x608] sm:$0xff] }
 0x162   : > { %9836 = vst [vmem:[#allocation148_spill] sm:$0xff] %v5857_v14  ;;  %v5895_v14 = vld [vmem:[%s4378_s4 + $0x610] sm:$0xff] }
 0x163   : > { %9837 = vst [vmem:[#allocation149_spill] sm:$0xff] %v5860_v9  ;;  %v5905_v9 = vld [vmem:[%s4378_s4 + $0x618] sm:$0xff] }
 0x164   : > { %9839 = vst [vmem:[#allocation150_spill] sm:$0xff] %v5872_v0  ;;  %v5910_v0 = vld [vmem:[%s4378_s4 + $0x620] sm:$0xff] }
 0x165   : > { %9840 = vst [vmem:[#allocation151_spill] sm:$0xff] %v5875_v16  ;;  %v5920_v16 = vld [vmem:[%s4378_s4 + $0x628] sm:$0xff] }
 0x166   : > { %9842 = vst [vmem:[#allocation152_spill] sm:$0xff] %v5887_v62  ;;  %v5925_v62 = vld [vmem:[%s4378_s4 + $0x630] sm:$0xff] }
 0x167   : > { %9843 = vst [vmem:[#allocation153_spill] sm:$0xff] %v5890_v50  ;;  %v5935_v50 = vld [vmem:[%s4378_s4 + $0x638] sm:$0xff] }
 0x168   : > { %9845 = vst [vmem:[#allocation154_spill] sm:$0xff] %v5902_v48  ;;  %v5940_v48 = vld [vmem:[%s4378_s4 + $0x640] sm:$0xff] }
 0x169   : > { %9846 = vst [vmem:[#allocation155_spill] sm:$0xff] %v5905_v9  ;;  %v5950_v9 = vld [vmem:[%s4378_s4 + $0x648] sm:$0xff] }
 0x16a   : > { %9848 = vst [vmem:[#allocation156_spill] sm:$0xff] %v5917_v42  ;;  %v5955_v42 = vld [vmem:[%s4378_s4 + $0x650] sm:$0xff] }
 0x16b   : > { %9849 = vst [vmem:[#allocation157_spill] sm:$0xff] %v5920_v16  ;;  %v5965_v16 = vld [vmem:[%s4378_s4 + $0x658] sm:$0xff] }
 0x16c   : > { %9850 = vst [vmem:[#allocation158_spill] sm:$0xff] %v5925_v62  ;;  %v5970_v62 = vld [vmem:[%s4378_s4 + $0x660] sm:$0xff] }
 0x16d   : > { %9852 = vst [vmem:[#allocation159_spill] sm:$0xff] %v5935_v50  ;;  %v5980_v50 = vld [vmem:[%s4378_s4 + $0x668] sm:$0xff] }
 0x16e   : > { %9853 = vst [vmem:[#allocation160_spill] sm:$0xff] %v5940_v48  ;;  %v5985_v48 = vld [vmem:[%s4378_s4 + $0x670] sm:$0xff] }
 0x16f   : > { %9855 = vst [vmem:[#allocation161_spill] sm:$0xff] %v5950_v9  ;;  %v5995_v9 = vld [vmem:[%s4378_s4 + $0x678] sm:$0xff] }
 0x170   : > { %9856 = vst [vmem:[#allocation162_spill] sm:$0xff] %v5955_v42  ;;  %v6000_v42 = vld [vmem:[%s4378_s4 + $0x680] sm:$0xff] }
 0x171   : > { %9858 = vst [vmem:[#allocation163_spill] sm:$0xff] %v5965_v16  ;;  %v6010_v16 = vld [vmem:[%s4378_s4 + $0x688] sm:$0xff] }
 0x172   : > { %9859 = vst [vmem:[#allocation164_spill] sm:$0xff] %v5970_v62  ;;  %v6015_v62 = vld [vmem:[%s4378_s4 + $0x690] sm:$0xff] }
 0x173   : > { %9861 = vst [vmem:[#allocation165_spill] sm:$0xff] %v5980_v50  ;;  %v6025_v50 = vld [vmem:[%s4378_s4 + $0x698] sm:$0xff] }
 0x174   : > { %9862 = vst [vmem:[#allocation166_spill] sm:$0xff] %v5985_v48  ;;  %v6030_v48 = vld [vmem:[%s4378_s4 + $0x6a0] sm:$0xff] }
 0x175   : > { %9864 = vst [vmem:[#allocation167_spill] sm:$0xff] %v5992_v43 }
 0x176   : > { %9865 = vst [vmem:[#allocation168_spill] sm:$0xff] %v5995_v9  ;;  %v6040_v9 = vld [vmem:[%s4378_s4 + $0x6a8] sm:$0xff] }
 0x177   : > { %9866 = vst [vmem:[#allocation169_spill] sm:$0xff] %v6000_v42  ;;  %v6045_v42 = vld [vmem:[%s4378_s4 + $0x6b0] sm:$0xff] }
 0x178   : > { %9868 = vst [vmem:[#allocation170_spill] sm:$0xff] %v6007_v22  ;;  %v6184_v22 = vld [vmem:[%s4378_s4 + $0x738] sm:$0xff] }
 0x179   : > { %9869 = vst [vmem:[#allocation171_spill] sm:$0xff] %v6010_v16  ;;  %v6055_v16 = vld [vmem:[%s4378_s4 + $0x6b8] sm:$0xff] }
 0x17a   : > { %9870 = vst [vmem:[#allocation172_spill] sm:$0xff] %v6015_v62  ;;  %v6060_v62 = vld [vmem:[%s4378_s4 + $0x6c0] sm:$0xff] }
 0x17b   : > { %9872 = vst [vmem:[#allocation173_spill] sm:$0xff] %v6022_v34 }
 0x17c   : > { %9873 = vst [vmem:[#allocation174_spill] sm:$0xff] %v6025_v50  ;;  %v6070_v50 = vld [vmem:[%s4378_s4 + $0x6c8] sm:$0xff] }
 0x17d   : > { %9874 = vst [vmem:[#allocation175_spill] sm:$0xff] %v6030_v48  ;;  %v6075_v48 = vld [vmem:[%s4378_s4 + $0x6d0] sm:$0xff] }
 0x17e   : > { %9876 = vst [vmem:[#allocation176_spill] sm:$0xff] %v6037_v61  ;;  %v6105_v61 = vld [vmem:[%s4378_s4 + $0x6f0] sm:$0xff] }
 0x17f   : > { %9877 = vst [vmem:[#allocation177_spill] sm:$0xff] %v6040_v9  ;;  %v9886_v9 = vsub.f32 %v9885_v51, %v4709_v52  ;;  %v1323_v51 = vmul.f32 1.442695, %v9889_v37 }
 0x180   : > { %9878 = vst [vmem:[#allocation178_spill] sm:$0xff] %v6045_v42  ;;  %v6090_v42 = vld [vmem:[%s4378_s4 + $0x6e0] sm:$0xff] }
 0x181   : > { %9880 = vst [vmem:[#allocation179_spill] sm:$0xff] %v6055_v16  ;;  %v1321_v55 = vmul.f32 1.442695, %v9886_v9  ;;  %v6097_v9 = vpop.eup %3302  ;;  %v6100_v16 = vld [vmem:[%s4378_s4 + $0x6e8] sm:$0xff] }
 0x182   : > { %9881 = vst [vmem:[#allocation180_spill] sm:$0xff] %v6060_v62  ;;  %v6085_v62 = vld [vmem:[%s4378_s4 + $0x6d8] sm:$0xff]  ;;  %v6112_v37 = vpop.eup %3304 }
 0x183   : > { %9883 = vst [vmem:[#allocation181_spill] sm:$0xff] %v6070_v50  ;;  %v9893_v50 = vsub.f32 %v9892_v18, %v4715_v57  ;;  %v1327_v18 = vmul.f32 1.442695, %v9897_v41  ;;  %3318 = vpow2.f32 %v1321_v55  ;;  %v9906_v55 = vsub.f32 %v5460_v32, %v4703_v45  ;;  %v6172_v32 = vld [vmem:[%s4378_s4 + $0x730] sm:$0xff] }
 0x184   : > { %9884 = vst [vmem:[#allocation182_spill] sm:$0xff] %v6075_v48  ;;  %v6120_v48 = vld [vmem:[%s4378_s4 + $0x700] sm:$0xff]  ;;  %3320 = vpow2.f32 %v1323_v51 }
 0x185   : > { %9887 = vst [vmem:[#allocation91_spill] sm:$0xff] %v6085_v62  ;;  %v1325_v40 = vmul.f32 1.442695, %v9893_v50  ;;  %v6127_v50 = vpop.eup %3306  ;;  %v6130_v62 = vld [vmem:[%s4378_s4 + $0x708] sm:$0xff] }
 0x186   : > { %9888 = vst [vmem:[#allocation183_spill] sm:$0xff] %v6090_v42  ;;  %v6115_v42 = vld [vmem:[%s4378_s4 + $0x6f8] sm:$0xff]  ;;  %v6142_v41 = vpop.eup %3308 }
 0x187   : > { %9890 = vst [vmem:[#allocation184_spill] sm:$0xff] %v6100_v16  ;;  %v9901_v16 = vld [vmem:[#allocation95_spill] sm:$0xff]  ;;  %v6157_v34 = vpop.eup %3310  ;;  %3322 = vpow2.f32 %v1325_v40 }
 0x188   : > { %9891 = vst [vmem:[#allocation185_spill] sm:$0xff] %v6105_v61  ;;  %v9902_v60 = vsub.f32 %v9901_v16, %v4723_v63  ;;  %v1331_v16 = vmul.f32 1.442695, %v9906_v55  ;;  %v9911_v61 = vld [vmem:[#allocation12_spill] sm:$0xff]  ;;  %3324 = vpow2.f32 %v1327_v18 }
 0x189   : > { %9894 = vst [vmem:[#allocation93_spill] sm:$0xff] %v6112_v37  ;;  %v6135_v37 = vld [vmem:[%s4378_s4 + $0x710] sm:$0xff] }
 0x18a   : > { %9895 = vst [vmem:[#allocation186_spill] sm:$0xff] %v6115_v42  ;;  %v1329_v36 = vmul.f32 1.442695, %v9902_v60  ;;  %v6145_v42 = vld [vmem:[%s4378_s4 + $0x718] sm:$0xff]  ;;  %v6160_v60 = vld [vmem:[%s4378_s4 + $0x728] sm:$0xff] }
 0x18b   : > { %9896 = vst [vmem:[#allocation187_spill] sm:$0xff] %v6120_v48  ;;  %v9909_v48 = vld [vmem:[#allocation97_spill] sm:$0xff] }
 0x18c   : > { %9898 = vst [vmem:[#allocation188_spill] sm:$0xff] %v6127_v50  ;;  %v6150_v50 = vld [vmem:[%s4378_s4 + $0x720] sm:$0xff]  ;;  %3326 = vpow2.f32 %v1329_v36 }
 0x18d   : > { %9899 = vst [vmem:[#allocation189_spill] sm:$0xff] %v6130_v62  ;;  %3328 = vpow2.f32 %v1331_v16 }
 0x18e   : > { %9900 = vst [vmem:[#allocation190_spill] sm:$0xff] %v6135_v37  ;;  %v9915_v37 = vsub.f32 %v5475_v3, %v4707_v49  ;;  %v9923_v3 = vld [vmem:[#allocation22_spill] sm:$0xff] }
 0x18f   : > { %9903 = vst [vmem:[#allocation95_spill] sm:$0xff] %v6142_v41  ;;  %v6169_v41 = vpop.eup %3312 }
 0x190   : > { %9904 = vst [vmem:[#allocation191_spill] sm:$0xff] %v6145_v42  ;;  %v9910_v42 = vsub.f32 %v9909_v48, %v4705_v47  ;;  %v1335_v40 = vmul.f32 1.442695, %v9915_v37  ;;  %v9917_v48 = vld [vmem:[#allocation21_spill] sm:$0xff] }
 0x191   : > { %9905 = vst [vmem:[#allocation192_spill] sm:$0xff] %v6150_v50  ;;  %v9912_v50 = vld [vmem:[#allocation20_spill] sm:$0xff] }
 0x192   : > { %9907 = vst [vmem:[#allocation193_spill] sm:$0xff] %v6157_v34  ;;  %v1333_v62 = vmul.f32 1.442695, %v9910_v42  ;;  %v1571_v51 = vadd.f32 %v9912_v50, %v9911_v61  ;;  %v6181_v42 = vpop.eup %3314  ;;  %v9920_v50 = vld [vmem:[#allocation99_spill] sm:$0xff] }
 0x193   : > { %9908 = vst [vmem:[#allocation194_spill] sm:$0xff] %v6160_v60  ;;  %v9916_v60 = vld [vmem:[#allocation13_spill] sm:$0xff]  ;;  %v9921_v55 = vsub.f32 %v9920_v50, %v4709_v52  ;;  %v6193_v37 = vpop.eup %3316  ;;  %v9927_v61 = vld [vmem:[#allocation15_spill] sm:$0xff] }
 0x194   : > { %9913 = vst [vmem:[#allocation97_spill] sm:$0xff] %v6169_v41  ;;  %v1608_v34 = vadd.f32 %v9917_v48, %v9916_v60  ;;  %v6196_v41 = vld [vmem:[%s4378_s4 + $0x740] sm:$0xff]  ;;  %v9926_v48 = vsub.f32 %v5490_v38, %v4711_v54  ;;  %v9928_v50 = vld [vmem:[#allocation23_spill] sm:$0xff]  ;;  %3330 = vpow2.f32 %v1333_v62 }
 0x195   : > { %9914 = vst [vmem:[#allocation12_spill] sm:$0xff] %v6172_v32  ;;  %v1337_v18 = vmul.f32 1.442695, %v9921_v55  ;;  %v9922_v32 = vld [vmem:[#allocation14_spill] sm:$0xff]  ;;  %v6205_v55 = vpop.eup %3318  ;;  %3332 = vpow2.f32 %v1335_v40 }
 0x196   : > { %9918 = vst [vmem:[#allocation20_spill] sm:$0xff] %v6181_v42  ;;  %v1645_v43 = vadd.f32 %v9923_v3, %v9922_v32  ;;  %v1339_v36 = vmul.f32 1.442695, %v9926_v48  ;;  %v6208_v42 = vld [vmem:[%s4378_s4 + $0x748] sm:$0xff]  ;;  %v9930_v3 = vld [vmem:[#allocation101_spill] sm:$0xff]  ;;  %v6219_v48 = vld [vmem:[%s4378_s4 + $0x750] sm:$0xff] }
 0x197   : > { %9919 = vst [vmem:[#allocation13_spill] sm:$0xff] %v6184_v22  ;;  %v1682_v22 = vadd.f32 %v9928_v50, %v9927_v61  ;;  %v9931_v60 = vsub.f32 %v9930_v3, %v4715_v57  ;;  %v9935_v50 = vsub.f32 %v5505_v26, %v4719_v59  ;;  %v9936_v32 = vld [vmem:[#allocation29_spill] sm:$0xff]  ;;  %3334 = vpow2.f32 %v1337_v18  ;;  %v9941_v61 = vld [vmem:[#allocation30_spill] sm:$0xff] }
 0x198   : > { %9924 = vst [vmem:[#allocation21_spill] sm:$0xff] %v6193_v37  ;;  %v6216_v37 = vpop.eup %3320  ;;  %3336 = vpow2.f32 %v1339_v36 }
 0x199   : > { %9925 = vst [vmem:[#allocation99_spill] sm:$0xff] %v6196_v41  ;;  %v1341_v16 = vmul.f32 1.442695, %v9931_v60  ;;  %v9932_v41 = vld [vmem:[#allocation28_spill] sm:$0xff]  ;;  %v1343_v62 = vmul.f32 1.442695, %v9935_v50  ;;  %v6227_v3 = vpop.eup %3322 }
 0x19a   : > { %9929 = vst [vmem:[#allocation14_spill] sm:$0xff] %v6208_v42  ;;  %v1572_v38 = vadd.f32 %v9932_v41, %v1571_v51  ;;  %v1609_v42 = vadd.f32 %v9936_v32, %v1608_v34  ;;  %v6230_v60 = vld [vmem:[%s4378_s4 + $0x758] sm:$0xff]  ;;  %v9939_v51 = vld [vmem:[#allocation103_spill] sm:$0xff]  ;;  %v6238_v26 = vpop.eup %3324  ;;  %v6241_v50 = vld [vmem:[%s4378_s4 + $0x760] sm:$0xff]  ;;  %v9944_v32 = vsub.f32 %v5520_v24, %v4703_v45 }
 0x19b   : > { %9933 = vst [vmem:[#allocation22_spill] sm:$0xff] %v6216_v37  ;;  %v9940_v37 = vsub.f32 %v9939_v51, %v4723_v63  ;;  %v9945_v41 = vld [vmem:[#allocation31_spill] sm:$0xff]  ;;  %v6249_v51 = vpop.eup %3326  ;;  %3338 = vpow2.f32 %v1341_v16  ;;  %v9950_v34 = vld [vmem:[#allocation36_spill] sm:$0xff] }
 0x19c   : > { %9934 = vst [vmem:[#allocation15_spill] sm:$0xff] %v6219_v48  ;;  %v1646_v48 = vadd.f32 %v9941_v61, %v1645_v43  ;;  %v1347_v18 = vmul.f32 1.442695, %v9944_v32  ;;  %v9948_v61 = vld [vmem:[#allocation105_spill] sm:$0xff]  ;;  %v6260_v24 = vpop.eup %3328  ;;  %v6263_v32 = vld [vmem:[%s4378_s4 + $0x770] sm:$0xff]  ;;  %3340 = vpow2.f32 %v1343_v62 }
 0x19d   : > { %9937 = vst [vmem:[#allocation23_spill] sm:$0xff] %v6227_v3  ;;  %v1345_v40 = vmul.f32 1.442695, %v9940_v37  ;;  %v6252_v37 = vld [vmem:[%s4378_s4 + $0x768] sm:$0xff]  ;;  %v9953_v43 = vld [vmem:[#allocation37_spill] sm:$0xff] }
 0x19e   : > { %9938 = vst [vmem:[#allocation101_spill] sm:$0xff] %v6230_v60  ;;  %v1683_v60 = vadd.f32 %v9945_v41, %v1682_v22  ;;  %v9952_v41 = vsub.f32 %v5535_v6, %v4707_v49  ;;  %v9957_v22 = vld [vmem:[#allocation38_spill] sm:$0xff] }
 0x19f   : > { %9942 = vst [vmem:[#allocation28_spill] sm:$0xff] %v6238_v26  ;;  %v9949_v26 = vsub.f32 %v9948_v61, %v4705_v47  ;;  %v6271_v61 = vpop.eup %3330  ;;  %3342 = vpow2.f32 %v1345_v40 }
 0x1a0   : > { %9943 = vst [vmem:[#allocation29_spill] sm:$0xff] %v6241_v50  ;;  %v1573_v50 = vadd.f32 %v9950_v34, %v1572_v38  ;;  %v1351_v16 = vmul.f32 1.442695, %v9952_v41  ;;  %v9955_v34 = vld [vmem:[#allocation107_spill] sm:$0xff]  ;;  %v6282_v6 = vpop.eup %3332  ;;  %v6285_v41 = vld [vmem:[%s4378_s4 + $0x780] sm:$0xff]  ;;  %3344 = vpow2.f32 %v1347_v18 }
 0x1a1   : > { %9946 = vst [vmem:[#allocation103_spill] sm:$0xff] %v6249_v51  ;;  %v1349_v36 = vmul.f32 1.442695, %v9949_v26  ;;  %v6274_v26 = vld [vmem:[%s4378_s4 + $0x778] sm:$0xff]  ;;  %v9956_v51 = vsub.f32 %v9955_v34, %v4709_v52  ;;  %v9961_v38 = vld [vmem:[#allocation39_spill] sm:$0xff]  ;;  %v6293_v34 = vpop.eup %3334 }
 0x1a2   : > { %9947 = vst [vmem:[#allocation30_spill] sm:$0xff] %v6252_v37  ;;  %v1610_v37 = vadd.f32 %v9953_v43, %v1609_v42  ;;  %v9960_v43 = vsub.f32 %v5550_v19, %v4711_v54  ;;  %v9966_v42 = vld [vmem:[#allocation44_spill] sm:$0xff]  ;;  %v6304_v19 = vpop.eup %3336 }
 0x1a3   : > { %9951 = vst [vmem:[#allocation31_spill] sm:$0xff] %v6263_v32  ;;  %v1353_v62 = vmul.f32 1.442695, %v9956_v51  ;;  %v1647_v32 = vadd.f32 %v9957_v22, %v1646_v48  ;;  %v6296_v51 = vld [vmem:[%s4378_s4 + $0x788] sm:$0xff]  ;;  %3346 = vpow2.f32 %v1349_v36  ;;  %v9964_v22 = vld [vmem:[#allocation109_spill] sm:$0xff] }
 0x1a4   : > { %9954 = vst [vmem:[#allocation105_spill] sm:$0xff] %v6274_v26  ;;  %v1355_v40 = vmul.f32 1.442695, %v9960_v43  ;;  %v1684_v26 = vadd.f32 %v9961_v38, %v1683_v60  ;;  %v9965_v3 = vsub.f32 %v9964_v22, %v4715_v57  ;;  %v6307_v43 = vld [vmem:[%s4378_s4 + $0x790] sm:$0xff]  ;;  %3348 = vpow2.f32 %v1351_v16  ;;  %v9970_v36 = vld [vmem:[#allocation45_spill] sm:$0xff]  ;;  %v9975_v16 = vld [vmem:[#allocation46_spill] sm:$0xff] }
 0x1a5   : > { %9958 = vst [vmem:[#allocation36_spill] sm:$0xff] %v6282_v6  ;;  %v9969_v38 = vsub.f32 %v5565_v21, %v4719_v59  ;;  %v6318_v22 = vld [vmem:[%s4378_s4 + $0x798] sm:$0xff]  ;;  %3350 = vpow2.f32 %v1353_v62  ;;  %v6329_v21 = vld [vmem:[%s4378_s4 + $0x7a0] sm:$0xff]  ;;  %v9979_v62 = vld [vmem:[#allocation47_spill] sm:$0xff] }
 0x1a6   : > { %9959 = vst [vmem:[#allocation37_spill] sm:$0xff] %v6285_v41  ;;  %v1357_v18 = vmul.f32 1.442695, %v9965_v3  ;;  %v1574_v41 = vadd.f32 %v9966_v42, %v1573_v50  ;;  %v9973_v50 = vld [vmem:[#allocation111_spill] sm:$0xff]  ;;  %3352 = vpow2.f32 %v1355_v40  ;;  %v1685_v3 = vadd.f32 %v9979_v62, %v1684_v26 }
 0x1a7   : > { %9962 = vst [vmem:[#allocation107_spill] sm:$0xff] %v6293_v34  ;;  %v1359_v48 = vmul.f32 1.442695, %v9969_v38  ;;  %v6315_v34 = vpop.eup %3338  ;;  %v9974_v42 = vsub.f32 %v9973_v50, %v4723_v63  ;;  %v9978_v38 = vsub.f32 %v5580_v58, %v4703_v45  ;;  %v9981_v50 = vld [vmem:[#allocation113_spill] sm:$0xff]  ;;  %v6348_v6 = vld [vmem:[%s4378_s4 + $0x7a8] sm:$0xff]  ;;  %v9987_v26 = vsub.f32 %v5595_v10, %v4707_v49 }
 0x1a8   : > { %9963 = vst [vmem:[#allocation38_spill] sm:$0xff] %v6296_v51  ;;  %v1611_v51 = vadd.f32 %v9970_v36, %v1610_v37  ;;  %3354 = vpow2.f32 %v1357_v18  ;;  %v9985_v37 = vld [vmem:[#allocation24_spill] sm:$0xff]  ;;  %v6370_v10 = vld [vmem:[%s4378_s4 + $0x7b8] sm:$0xff] }
 0x1a9   : > { %9967 = vst [vmem:[#allocation39_spill] sm:$0xff] %v6304_v19  ;;  %v1361_v60 = vmul.f32 1.442695, %v9974_v42  ;;  %v6326_v19 = vpop.eup %3340  ;;  %v1363_v36 = vmul.f32 1.442695, %v9978_v38  ;;  %3356 = vpow2.f32 %v1359_v48  ;;  %v9988_v38 = vld [vmem:[#allocation53_spill] sm:$0xff] }
 0x1aa   : > { %9968 = vst [vmem:[#allocation109_spill] sm:$0xff] %v6307_v43  ;;  %v1648_v43 = vadd.f32 %v9975_v16, %v1647_v32  ;;  %v9982_v32 = vsub.f32 %v9981_v50, %v4705_v47  ;;  %v9983_v16 = vld [vmem:[#allocation52_spill] sm:$0xff]  ;;  %v1367_v18 = vmul.f32 1.442695, %v9987_v26  ;;  %v1612_v62 = vadd.f32 %v9988_v38, %v1611_v51  ;;  %v9992_v48 = vld [vmem:[#allocation54_spill] sm:$0xff] }
 0x1ab   : > { %9971 = vst [vmem:[#allocation44_spill] sm:$0xff] %v6315_v34  ;;  %v9984_v34 = vld [vmem:[#allocation16_spill] sm:$0xff]  ;;  %3358 = vpow2.f32 %v1361_v60  ;;  %v9995_v26 = vsub.f32 %v5610_v56, %v4711_v54  ;;  %v9996_v60 = vld [vmem:[#allocation55_spill] sm:$0xff]  ;;  %v10009_v56 = vld [vmem:[#allocation62_spill] sm:$0xff] }
 0x1ac   : > { %9972 = vst [vmem:[#allocation45_spill] sm:$0xff] %v6318_v22  ;;  %v6337_v22 = vpop.eup %3342  ;;  %v1365_v42 = vmul.f32 1.442695, %v9982_v32  ;;  %v1649_v58 = vadd.f32 %v9992_v48, %v1648_v43  ;;  %3360 = vpow2.f32 %v1363_v36  ;;  %v9999_v48 = vld [vmem:[#allocation60_spill] sm:$0xff]  ;;  %v6388_v36 = vld [vmem:[%s4378_s4 + $0x7c0] sm:$0xff] }
 0x1ad   : > { %9976 = vst [vmem:[#allocation111_spill] sm:$0xff] %v6326_v19  ;;  %v1575_v19 = vadd.f32 %v9983_v16, %v1574_v41  ;;  %v6345_v40 = vpop.eup %3344  ;;  %v6359_v41 = vld [vmem:[%s4378_s4 + $0x7b0] sm:$0xff]  ;;  %v1371_v38 = vmul.f32 1.442695, %v9995_v26  ;;  %v10004_v26 = vld [vmem:[#allocation61_spill] sm:$0xff] }
 0x1ae   : > { %9977 = vst [vmem:[#allocation46_spill] sm:$0xff] %v6329_v21  ;;  %v1719_v21 = vadd.f32 %v9985_v37, %v9984_v34  ;;  %v6356_v50 = vpop.eup %3346  ;;  %v9990_v37 = vld [vmem:[#allocation115_spill] sm:$0xff]  ;;  %v1686_v34 = vadd.f32 %v9996_v60, %v1685_v3  ;;  %3362 = vpow2.f32 %v1365_v42  ;;  %v10003_v3 = vsub.f32 %v5625_v20, %v4719_v59  ;;  %v6410_v20 = vld [vmem:[%s4378_s4 + $0x7d0] sm:$0xff] }
 0x1af   : > { %9980 = vst [vmem:[#allocation47_spill] sm:$0xff] %v6337_v22  ;;  %v9991_v32 = vsub.f32 %v9990_v37, %v4709_v52  ;;  %v9997_v37 = vld [vmem:[#allocation117_spill] sm:$0xff]  ;;  %v1576_v22 = vadd.f32 %v9999_v48, %v1575_v19  ;;  %3364 = vpow2.f32 %v1367_v18  ;;  %v1613_v60 = vadd.f32 %v10004_v26, %v1612_v62  ;;  %v10007_v19 = vld [vmem:[#allocation119_spill] sm:$0xff] }
 0x1b0   : > { %9986 = vst [vmem:[#allocation113_spill] sm:$0xff] %v6348_v6  ;;  %v6367_v6 = vpop.eup %3348  ;;  %v9998_v43 = vsub.f32 %v9997_v37, %v4715_v57  ;;  %v1375_v42 = vmul.f32 1.442695, %v10003_v3  ;;  %v1650_v18 = vadd.f32 %v10009_v56, %v1649_v58  ;;  %v10012_v3 = vsub.f32 %v5640_v31, %v4703_v45 }
 0x1b1   : > { %9989 = vst [vmem:[#allocation52_spill] sm:$0xff] %v6359_v41  ;;  %v1369_v16 = vmul.f32 1.442695, %v9991_v32  ;;  %v6378_v41 = vpop.eup %3350  ;;  %v10019_v31 = vsub.f32 %v5655_v28, %v4707_v49 }
 0x1b2   : > { %9993 = vst [vmem:[#allocation16_spill] sm:$0xff] %v6367_v6  ;;  %v1373_v32 = vmul.f32 1.442695, %v9998_v43  ;;  %v10000_v6 = vld [vmem:[#allocation32_spill] sm:$0xff]  ;;  %v6399_v43 = vld [vmem:[%s4378_s4 + $0x7c8] sm:$0xff] }
 0x1b3   : > { %9994 = vst [vmem:[#allocation24_spill] sm:$0xff] %v6370_v10  ;;  %v1720_v51 = vadd.f32 %v10000_v6, %v1719_v21  ;;  %v6385_v10 = vpop.eup %3352  ;;  %3366 = vpow2.f32 %v1369_v16  ;;  %v10008_v21 = vsub.f32 %v10007_v19, %v4723_v63  ;;  %v1379_v26 = vmul.f32 1.442695, %v10012_v3  ;;  %v10013_v16 = vld [vmem:[#allocation63_spill] sm:$0xff]  ;;  %v10015_v19 = vld [vmem:[#allocation121_spill] sm:$0xff] }
 0x1b4   : > { %10001 = vst [vmem:[#allocation53_spill] sm:$0xff] %v6385_v10  ;;  %v6396_v37 = vpop.eup %3354  ;;  %3368 = vpow2.f32 %v1371_v38  ;;  %v1687_v6 = vadd.f32 %v10013_v16, %v1686_v34  ;;  %v10016_v58 = vsub.f32 %v10015_v19, %v4705_v47  ;;  %v1383_v38 = vmul.f32 1.442695, %v10019_v31  ;;  %v10020_v34 = vld [vmem:[#allocation69_spill] sm:$0xff] }
 0x1b5   : > { %10002 = vst [vmem:[#allocation115_spill] sm:$0xff] %v6388_v36  ;;  %v1377_v48 = vmul.f32 1.442695, %v10008_v21  ;;  %v6407_v36 = vpop.eup %3356  ;;  %3370 = vpow2.f32 %v1373_v32  ;;  %v10017_v21 = vld [vmem:[#allocation68_spill] sm:$0xff]  ;;  %v1614_v3 = vadd.f32 %v10020_v34, %v1613_v60  ;;  %v10021_v16 = vld [vmem:[#allocation17_spill] sm:$0xff]  ;;  %v6447_v60 = vld [vmem:[%s4378_s4 + $0x7e0] sm:$0xff]  ;;  %v10030_v34 = vsub.f32 %v5670_v7, %v4711_v54 }
 0x1b6   : > { %10005 = vst [vmem:[#allocation54_spill] sm:$0xff] %v6396_v37  ;;  %v1381_v56 = vmul.f32 1.442695, %v10016_v58  ;;  %v10018_v37 = vld [vmem:[#allocation40_spill] sm:$0xff]  ;;  %3372 = vpow2.f32 %v1375_v42  ;;  %v10022_v32 = vld [vmem:[#allocation25_spill] sm:$0xff]  ;;  %v10027_v58 = vld [vmem:[#allocation70_spill] sm:$0xff]  ;;  %v10037_v7 = vsub.f32 %v5685_v25, %v4719_v59 }
 0x1b7   : > { %10006 = vst [vmem:[#allocation55_spill] sm:$0xff] %v6399_v43  ;;  %v6418_v43 = vpop.eup %3358  ;;  %v1721_v10 = vadd.f32 %v10018_v37, %v1720_v51  ;;  %v6436_v19 = vld [vmem:[%s4378_s4 + $0x7d8] sm:$0xff]  ;;  %3374 = vpow2.f32 %v1377_v48  ;;  %v10025_v51 = vld [vmem:[#allocation123_spill] sm:$0xff]  ;;  %v1651_v28 = vadd.f32 %v10027_v58, %v1650_v18  ;;  %v10034_v58 = vld [vmem:[#allocation76_spill] sm:$0xff] }
 0x1b8   : > { %10010 = vst [vmem:[#allocation117_spill] sm:$0xff] %v6407_v36  ;;  %v1577_v36 = vadd.f32 %v10017_v21, %v1576_v22  ;;  %v6425_v62 = vpop.eup %3360  ;;  %v10026_v42 = vsub.f32 %v10025_v51, %v4709_v52  ;;  %3376 = vpow2.f32 %v1379_v26  ;;  %v10031_v48 = vld [vmem:[#allocation71_spill] sm:$0xff]  ;;  %v10032_v51 = vld [vmem:[#allocation125_spill] sm:$0xff]  ;;  %v1391_v26 = vmul.f32 1.442695, %v10037_v7  ;;  %v6483_v7 = vld [vmem:[%s4378_s4 + $0x7f0] sm:$0xff] }
 0x1b9   : > { %10011 = vst [vmem:[#allocation60_spill] sm:$0xff] %v6410_v20  ;;  %v1756_v20 = vadd.f32 %v10022_v32, %v10021_v16  ;;  %v1387_v16 = vmul.f32 1.442695, %v10030_v34  ;;  %v1688_v32 = vadd.f32 %v10031_v48, %v1687_v6  ;;  %3378 = vpow2.f32 %v1381_v56  ;;  %v10038_v6 = vld [vmem:[#allocation77_spill] sm:$0xff] }
 0x1ba   : > { %10014 = vst [vmem:[#allocation32_spill] sm:$0xff] %v6418_v43  ;;  %v6433_v43 = vpop.eup %3362  ;;  %v1385_v37 = vmul.f32 1.442695, %v10026_v42  ;;  %v10033_v18 = vsub.f32 %v10032_v51, %v4715_v57  ;;  %3380 = vpow2.f32 %v1383_v38  ;;  %v1615_v34 = vadd.f32 %v10038_v6, %v1614_v3  ;;  %v10039_v48 = vld [vmem:[#allocation33_spill] sm:$0xff]  ;;  %v6472_v51 = vld [vmem:[%s4378_s4 + $0x7e8] sm:$0xff] }
 0x1bb   : > { %10023 = vst [vmem:[#allocation61_spill] sm:$0xff] %v6433_v43  ;;  %v6444_v21 = vpop.eup %3364  ;;  %v1757_v56 = vadd.f32 %v10039_v48, %v1756_v20  ;;  %v10047_v3 = vsub.f32 %v5700_v53, %v4703_v45  ;;  %v10048_v48 = vld [vmem:[#allocation79_spill] sm:$0xff]  ;;  %v10054_v53 = vsub.f32 %v5715_v44, %v4707_v49  ;;  %v10062_v44 = vld [vmem:[#allocation133_spill] sm:$0xff] }
 0x1bc   : > { %10024 = vst [vmem:[#allocation119_spill] sm:$0xff] %v6436_v19  ;;  %v6455_v22 = vpop.eup %3366  ;;  %v1389_v42 = vmul.f32 1.442695, %v10033_v18  ;;  %v1578_v19 = vadd.f32 %v10034_v58, %v1577_v36  ;;  %3382 = vpow2.f32 %v1385_v37  ;;  %v10044_v18 = vld [vmem:[#allocation78_spill] sm:$0xff]  ;;  %v1689_v37 = vadd.f32 %v10048_v48, %v1688_v32  ;;  %v10056_v48 = vld [vmem:[#allocation41_spill] sm:$0xff] }
 0x1bd   : > { %10028 = vst [vmem:[#allocation62_spill] sm:$0xff] %v6444_v21  ;;  %v10035_v21 = vld [vmem:[#allocation48_spill] sm:$0xff]  ;;  %v6462_v31 = vpop.eup %3368  ;;  %v1652_v58 = vadd.f32 %v10044_v18, %v1651_v28  ;;  %3384 = vpow2.f32 %v1387_v16  ;;  %v1395_v6 = vmul.f32 1.442695, %v10047_v3  ;;  %v1399_v16 = vmul.f32 1.442695, %v10054_v53 }
 0x1be   : > { %10029 = vst [vmem:[#allocation63_spill] sm:$0xff] %v6447_v60  ;;  %v1722_v43 = vadd.f32 %v10035_v21, %v1721_v10  ;;  %v6469_v60 = vpop.eup %3370  ;;  %v10042_v10 = vld [vmem:[#allocation127_spill] sm:$0xff]  ;;  %3386 = vpow2.f32 %v1389_v42  ;;  %v10052_v18 = vld [vmem:[#allocation84_spill] sm:$0xff]  ;;  %v10055_v3 = vld [vmem:[#allocation85_spill] sm:$0xff]  ;;  %v1758_v20 = vadd.f32 %v10056_v48, %v1757_v56 }
 0x1bf   : > { %10036 = vst [vmem:[#allocation121_spill] sm:$0xff] %v6462_v31  ;;  %v10043_v21 = vsub.f32 %v10042_v10, %v4723_v63  ;;  %v6480_v25 = vpop.eup %3372  ;;  %v10050_v10 = vld [vmem:[#allocation129_spill] sm:$0xff]  ;;  %3388 = vpow2.f32 %v1391_v26  ;;  %v1616_v32 = vadd.f32 %v10055_v3, %v1615_v34  ;;  %v10060_v26 = vld [vmem:[#allocation86_spill] sm:$0xff]  ;;  %v10063_v34 = vsub.f32 %v10062_v44, %v4715_v57  ;;  %v10065_v3 = vld [vmem:[#allocation87_spill] sm:$0xff] }
 0x1c0   : > { %10040 = vst [vmem:[#allocation68_spill] sm:$0xff] %v6469_v60  ;;  %v6491_v36 = vpop.eup %3374  ;;  %v10051_v28 = vsub.f32 %v10050_v10, %v4705_v47  ;;  %v10057_v10 = vld [vmem:[#allocation131_spill] sm:$0xff]  ;;  %v1690_v48 = vadd.f32 %v10065_v3, %v1689_v37 }
 0x1c1   : > { %10041 = vst [vmem:[#allocation40_spill] sm:$0xff] %v6472_v51  ;;  %v1393_v38 = vmul.f32 1.442695, %v10043_v21  ;;  %v1579_v51 = vadd.f32 %v10052_v18, %v1578_v19  ;;  %v6498_v31 = vpop.eup %3376  ;;  %v1653_v18 = vadd.f32 %v10060_v26, %v1652_v58  ;;  %v1405_v56 = vmul.f32 1.442695, %v10063_v34  ;;  %v10072_v34 = vld [vmem:[#allocation96_spill] sm:$0xff] }
 0x1c2   : > { %10045 = vst [vmem:[#allocation69_spill] sm:$0xff] %v6480_v25  ;;  %v1397_v21 = vmul.f32 1.442695, %v10051_v28  ;;  %v10053_v25 = vld [vmem:[#allocation56_spill] sm:$0xff]  ;;  %v6505_v42 = vpop.eup %3378  ;;  %v10058_v28 = vsub.f32 %v10057_v10, %v4709_v52  ;;  %v1617_v37 = vadd.f32 %v10072_v34, %v1616_v32 }
 0x1c3   : > { %10046 = vst [vmem:[#allocation17_spill] sm:$0xff] %v6483_v7  ;;  %v1723_v60 = vadd.f32 %v10053_v25, %v1722_v43  ;;  %3390 = vpow2.f32 %v1393_v38  ;;  %v10059_v43 = vsub.f32 %v5730_v1, %v4711_v54  ;;  %v6514_v7 = vpop.eup %3380  ;;  %v10064_v38 = vsub.f32 %v5745_v29, %v4719_v59  ;;  %v10066_v1 = vld [vmem:[#allocation135_spill] sm:$0xff]  ;;  %v10083_v34 = vld [vmem:[#allocation100_spill] sm:$0xff] }
 0x1c4   : > { %10049 = vst [vmem:[#allocation25_spill] sm:$0xff] %v6491_v36  ;;  %v1401_v19 = vmul.f32 1.442695, %v10058_v28  ;;  %3392 = vpow2.f32 %v1395_v6  ;;  %v6523_v10 = vpop.eup %3382  ;;  %v10067_v28 = vsub.f32 %v10066_v1, %v4723_v63  ;;  %v10069_v6 = vld [vmem:[#allocation64_spill] sm:$0xff]  ;;  %v10071_v29 = vsub.f32 %v5760_v8, %v4703_v45  ;;  %v10075_v1 = vld [vmem:[#allocation137_spill] sm:$0xff]  ;;  %v10080_v8 = vld [vmem:[#allocation139_spill] sm:$0xff] }
 0x1c5   : > { %v1403_v25 = vmul.f32 1.442695, %v10059_v43  ;;  %10061 = vst [vmem:[#allocation123_spill] sm:$0xff] %v6514_v7  ;;  %v1407_v53 = vmul.f32 1.442695, %v10064_v38  ;;  %3394 = vpow2.f32 %v1397_v21  ;;  %v10068_v43 = vld [vmem:[#allocation94_spill] sm:$0xff]  ;;  %v1724_v36 = vadd.f32 %v10069_v6, %v1723_v60  ;;  %v6530_v7 = vpop.eup %3384 }
 0x1c6   : > { %v1409_v58 = vmul.f32 1.442695, %v10067_v28  ;;  %v1580_v26 = vadd.f32 %v10068_v43, %v1579_v51  ;;  %10070 = vst [vmem:[#allocation70_spill] sm:$0xff] %v6530_v7  ;;  %3396 = vpow2.f32 %v1399_v16  ;;  %v1411_v44 = vmul.f32 1.442695, %v10071_v29  ;;  %v10073_v38 = vld [vmem:[#allocation49_spill] sm:$0xff]  ;;  %v6537_v21 = vpop.eup %3386 }
 0x1c7   : > { %v1759_v3 = vadd.f32 %v10073_v38, %v1758_v20  ;;  %10074 = vst [vmem:[#allocation71_spill] sm:$0xff] %v6537_v21  ;;  %3398 = vpow2.f32 %v1401_v19  ;;  %v10076_v28 = vsub.f32 %v10075_v1, %v4705_v47  ;;  %v10077_v60 = vsub.f32 %v5775_v27, %v4707_v49  ;;  %v10078_v16 = vld [vmem:[#allocation98_spill] sm:$0xff]  ;;  %v6546_v7 = vpop.eup %3388  ;;  %v10085_v27 = vld [vmem:[#allocation141_spill] sm:$0xff] }
 0x1c8   : > { %v1654_v6 = vadd.f32 %v10078_v16, %v1653_v18  ;;  %10079 = vst [vmem:[#allocation125_spill] sm:$0xff] %v6546_v7  ;;  %3400 = vpow2.f32 %v1403_v25  ;;  %v10081_v32 = vsub.f32 %v10080_v8, %v4709_v52  ;;  %v10082_v19 = vsub.f32 %v5790_v2, %v4711_v54  ;;  %v10088_v25 = vld [vmem:[#allocation72_spill] sm:$0xff] }
 0x1c9   : > { %v1413_v51 = vmul.f32 1.442695, %v10076_v28  ;;  %v1415_v43 = vmul.f32 1.442695, %v10077_v60  ;;  %v1691_v38 = vadd.f32 %v10083_v34, %v1690_v48  ;;  %v6555_v1 = vpop.eup %3390  ;;  %3402 = vpow2.f32 %v1405_v56  ;;  %v10087_v60 = vld [vmem:[#allocation110_spill] sm:$0xff] }
 0x1ca   : > { %v1417_v20 = vmul.f32 1.442695, %v10081_v32  ;;  %v1419_v29 = vmul.f32 1.442695, %v10082_v19  ;;  %10084 = vst [vmem:[#allocation76_spill] sm:$0xff] %v6555_v1  ;;  %v10086_v28 = vsub.f32 %v10085_v27, %v4715_v57  ;;  %v1581_v16 = vadd.f32 %v10087_v60, %v1580_v26  ;;  %v6562_v21 = vpop.eup %3392  ;;  %v10091_v32 = vld [vmem:[#allocation112_spill] sm:$0xff] }
 0x1cb   : > { %v1725_v7 = vadd.f32 %v10088_v25, %v1724_v36  ;;  %10089 = vst [vmem:[#allocation48_spill] sm:$0xff] %v6562_v21  ;;  %3404 = vpow2.f32 %v1407_v53  ;;  %v10090_v2 = vsub.f32 %v5805_v12, %v4719_v59  ;;  %v1618_v48 = vadd.f32 %v10091_v32, %v1617_v37  ;;  %v10092_v19 = vld [vmem:[#allocation57_spill] sm:$0xff]  ;;  %v6569_v56 = vpop.eup %3394  ;;  %v10094_v27 = vld [vmem:[#allocation143_spill] sm:$0xff]  ;;  %v10097_v53 = vld [vmem:[#allocation114_spill] sm:$0xff] }
 0x1cc   : > { %v1421_v18 = vmul.f32 1.442695, %v10086_v28  ;;  %v1760_v34 = vadd.f32 %v10092_v19, %v1759_v3  ;;  %10093 = vst [vmem:[#allocation77_spill] sm:$0xff] %v6569_v56  ;;  %3406 = vpow2.f32 %v1409_v58  ;;  %v10095_v28 = vsub.f32 %v10094_v27, %v4723_v63  ;;  %v6578_v1 = vpop.eup %3396  ;;  %v10099_v12 = vld [vmem:[#allocation145_spill] sm:$0xff]  ;;  %v10102_v32 = vld [vmem:[#allocation116_spill] sm:$0xff]  ;;  %v10111_v21 = vld [vmem:[#allocation18_spill] sm:$0xff] }
 0x1cd   : > { %v1423_v8 = vmul.f32 1.442695, %v10090_v2  ;;  %v10096_v36 = vsub.f32 %v5820_v46, %v4703_v45  ;;  %v1655_v25 = vadd.f32 %v10097_v53, %v1654_v6  ;;  %10098 = vst [vmem:[#allocation33_spill] sm:$0xff] %v6578_v1  ;;  %3408 = vpow2.f32 %v1411_v44  ;;  %v6587_v27 = vpop.eup %3398  ;;  %v10104_v46 = vld [vmem:[#allocation147_spill] sm:$0xff]  ;;  %v10107_v44 = vld [vmem:[#allocation80_spill] sm:$0xff] }
 0x1ce   : > { %v1425_v26 = vmul.f32 1.442695, %v10095_v28  ;;  %v10100_v37 = vsub.f32 %v10099_v12, %v4705_v47  ;;  %v10101_v58 = vsub.f32 %v5835_v30, %v4707_v49  ;;  %v1692_v19 = vadd.f32 %v10102_v32, %v1691_v38  ;;  %10103 = vst [vmem:[#allocation127_spill] sm:$0xff] %v6587_v27  ;;  %v6594_v56 = vpop.eup %3400  ;;  %v10109_v12 = vld [vmem:[#allocation128_spill] sm:$0xff]  ;;  %v10110_v30 = vld [vmem:[#allocation65_spill] sm:$0xff]  ;;  %v10112_v38 = vld [vmem:[#allocation26_spill] sm:$0xff] }
 0x1cf   : > { %v1427_v60 = vmul.f32 1.442695, %v10096_v36  ;;  %3410 = vpow2.f32 %v1413_v51  ;;  %v10105_v28 = vsub.f32 %v10104_v46, %v4709_v52  ;;  %v10106_v36 = vld [vmem:[#allocation126_spill] sm:$0xff]  ;;  %v1726_v1 = vadd.f32 %v10107_v44, %v1725_v7  ;;  %10108 = vst [vmem:[#allocation78_spill] sm:$0xff] %v6594_v56  ;;  %v6600_v27 = vpop.eup %3402  ;;  %v10116_v7 = vld [vmem:[#allocation88_spill] sm:$0xff] }
 0x1d0   : > { %v1429_v3 = vmul.f32 1.442695, %v10100_v37  ;;  %v1431_v2 = vmul.f32 1.442695, %v10101_v58  ;;  %v1582_v53 = vadd.f32 %v10106_v36, %v1581_v16  ;;  %3412 = vpow2.f32 %v1415_v43  ;;  %10113 = vst [vmem:[#allocation79_spill] sm:$0xff] %v6600_v27  ;;  %v10115_v16 = vld [vmem:[#allocation130_spill] sm:$0xff] }
 0x1d1   : > { %v1433_v6 = vmul.f32 1.442695, %v10105_v28  ;;  %v1619_v37 = vadd.f32 %v10109_v12, %v1618_v48  ;;  %v1761_v58 = vadd.f32 %v10110_v30, %v1760_v34  ;;  %v1793_v32 = vadd.f32 %v10112_v38, %v10111_v21  ;;  %v6607_v44 = vpop.eup %3404  ;;  %v10118_v43 = vld [vmem:[#allocation149_spill] sm:$0xff]  ;;  %v10120_v12 = vld [vmem:[#allocation132_spill] sm:$0xff] }
 0x1d2   : > { %3414 = vpow2.f32 %v1417_v20  ;;  %v10114_v51 = vsub.f32 %v5850_v17, %v4711_v54  ;;  %v1656_v28 = vadd.f32 %v10115_v16, %v1655_v25  ;;  %v1727_v36 = vadd.f32 %v10116_v7, %v1726_v1  ;;  %10117 = vst [vmem:[#allocation129_spill] sm:$0xff] %v6607_v44  ;;  %v10121_v30 = vld [vmem:[#allocation73_spill] sm:$0xff]  ;;  %v6614_v20 = vpop.eup %3406  ;;  %v10125_v16 = vld [vmem:[#allocation102_spill] sm:$0xff]  ;;  %v10127_v44 = vld [vmem:[#allocation144_spill] sm:$0xff] }
 0x1d3   : > { %3416 = vpow2.f32 %v1419_v29  ;;  %v10119_v48 = vsub.f32 %v10118_v43, %v4715_v57  ;;  %v1693_v21 = vadd.f32 %v10120_v12, %v1692_v19  ;;  %v1762_v38 = vadd.f32 %v10121_v30, %v1761_v58  ;;  %10122 = vst [vmem:[#allocation84_spill] sm:$0xff] %v6614_v20  ;;  %v6621_v29 = vpop.eup %3408  ;;  %v10129_v19 = vld [vmem:[#allocation34_spill] sm:$0xff]  ;;  %v10130_v58 = vld [vmem:[#allocation19_spill] sm:$0xff] }
 0x1d4   : > { %v1435_v46 = vmul.f32 1.442695, %v10114_v51  ;;  %3418 = vpow2.f32 %v1421_v18  ;;  %v10123_v17 = vsub.f32 %v5865_v33, %v4719_v59  ;;  %v10124_v51 = vld [vmem:[#allocation142_spill] sm:$0xff]  ;;  %v1728_v7 = vadd.f32 %v10125_v16, %v1727_v36  ;;  %10126 = vst [vmem:[#allocation56_spill] sm:$0xff] %v6621_v29  ;;  %v10131_v30 = vld [vmem:[#allocation27_spill] sm:$0xff] }
 0x1d5   : > { %v1437_v34 = vmul.f32 1.442695, %v10119_v48  ;;  %v1583_v1 = vadd.f32 %v10124_v51, %v1582_v53  ;;  %v1620_v43 = vadd.f32 %v10127_v44, %v1619_v37  ;;  %v10128_v48 = vld [vmem:[#allocation81_spill] sm:$0xff]  ;;  %v1794_v12 = vadd.f32 %v10129_v19, %v1793_v32  ;;  %v6628_v18 = vpop.eup %3410  ;;  %v10133_v33 = vld [vmem:[#allocation151_spill] sm:$0xff]  ;;  %v10135_v51 = vld [vmem:[#allocation146_spill] sm:$0xff] }
 0x1d6   : > { %v1439_v25 = vmul.f32 1.442695, %v10123_v17  ;;  %v1763_v27 = vadd.f32 %v10128_v48, %v1762_v38  ;;  %v1830_v20 = vadd.f32 %v10131_v30, %v10130_v58  ;;  %10132 = vst [vmem:[#allocation85_spill] sm:$0xff] %v6628_v18  ;;  %3420 = vpow2.f32 %v1423_v8  ;;  %v10136_v16 = vld [vmem:[#allocation118_spill] sm:$0xff]  ;;  %v6635_v29 = vpop.eup %3412  ;;  %v10137_v37 = vld [vmem:[#allocation148_spill] sm:$0xff]  ;;  %v10138_v38 = vld [vmem:[#allocation89_spill] sm:$0xff] }
 0x1d7   : > { %v10134_v17 = vsub.f32 %v10133_v33, %v4723_v63  ;;  %v1657_v36 = vadd.f32 %v10135_v51, %v1656_v28  ;;  %v1729_v56 = vadd.f32 %v10136_v16, %v1728_v7  ;;  %v1694_v44 = vadd.f32 %v10137_v37, %v1693_v21  ;;  %v10139_v48 = vld [vmem:[#allocation42_spill] sm:$0xff]  ;;  %v10140_v58 = vld [vmem:[#allocation35_spill] sm:$0xff]  ;;  %v10142_v28 = vld [vmem:[#allocation153_spill] sm:$0xff] }
 0x1d8   : > { %v1764_v32 = vadd.f32 %v10138_v38, %v1763_v27  ;;  %v1795_v19 = vadd.f32 %v10139_v48, %v1794_v12  ;;  %v1831_v30 = vadd.f32 %v10140_v58, %v1830_v20  ;;  %v6641_v18 = vpop.eup %3414  ;;  %3422 = vpow2.f32 %v1425_v26  ;;  %v10144_v12 = vld [vmem:[#allocation104_spill] sm:$0xff]  ;;  %v10145_v20 = vld [vmem:[#allocation50_spill] sm:$0xff]  ;;  %v10146_v38 = vld [vmem:[#allocation43_spill] sm:$0xff] }
 0x1d9   : > { %v1441_v53 = vmul.f32 1.442695, %v10134_v17  ;;  %v10141_v8 = vsub.f32 %v5880_v13, %v4703_v45  ;;  %v10143_v7 = vsub.f32 %v10142_v28, %v4705_v47  ;;  %v1584_v51 = vadd.f32 %v5932_v5, %v1583_v1  ;;  %v6650_v21 = vpop.eup %3416  ;;  %v10148_v5 = vld [vmem:[#allocation134_spill] sm:$0xff]  ;;  %v10149_v28 = vld [vmem:[#allocation155_spill] sm:$0xff] }
 0x1da   : > { %v1621_v27 = vadd.f32 %v5947_v35, %v1620_v43  ;;  %v1765_v16 = vadd.f32 %v10144_v12, %v1764_v32  ;;  %v1796_v37 = vadd.f32 %v10145_v20, %v1795_v19  ;;  %v1832_v26 = vadd.f32 %v10146_v38, %v1831_v30  ;;  %v6656_v48 = vpop.eup %3418  ;;  %v10151_v19 = vld [vmem:[#allocation120_spill] sm:$0xff]  ;;  %v10155_v38 = vld [vmem:[#allocation51_spill] sm:$0xff] }
 0x1db   : > { %v1443_v33 = vmul.f32 1.442695, %v10141_v8  ;;  %v1445_v17 = vmul.f32 1.442695, %v10143_v7  ;;  %3424 = vpow2.f32 %v1427_v60  ;;  %v10147_v13 = vsub.f32 %v5895_v14, %v4707_v49  ;;  %v10154_v12 = vld [vmem:[#allocation136_spill] sm:$0xff] }
 0x1dc   : > { %v1658_v8 = vadd.f32 %v5962_v15, %v1657_v36  ;;  %v1730_v1 = vadd.f32 %v10148_v5, %v1729_v56  ;;  %3426 = vpow2.f32 %v1429_v3  ;;  %v10150_v35 = vsub.f32 %v10149_v28, %v4709_v52  ;;  %v6668_v7 = vpop.eup %3420  ;;  %v10153_v36 = vld [vmem:[#allocation58_spill] sm:$0xff] }
 0x1dd   : > { %v1447_v58 = vmul.f32 1.442695, %v10147_v13  ;;  %v1695_v32 = vadd.f32 %v5977_v39, %v1694_v44  ;;  %v1766_v30 = vadd.f32 %v10151_v19, %v1765_v16  ;;  %3428 = vpow2.f32 %v1431_v2  ;;  %v10156_v16 = vld [vmem:[#allocation150_spill] sm:$0xff] }
 0x1de   : > { %v1449_v43 = vmul.f32 1.442695, %v10150_v35  ;;  %v10152_v14 = vsub.f32 %v5910_v0, %v4711_v54  ;;  %v1585_v15 = vadd.f32 %v6052_v4, %v1584_v51  ;;  %v1797_v56 = vadd.f32 %v10153_v36, %v1796_v37  ;;  %v6678_v44 = vpop.eup %3422  ;;  %v10157_v0 = vld [vmem:[#allocation66_spill] sm:$0xff]  ;;  %v10158_v4 = vld [vmem:[#allocation157_spill] sm:$0xff]  ;;  %v10166_v36 = vld [vmem:[#allocation152_spill] sm:$0xff] }
 0x1df   : > { %3430 = vpow2.f32 %v1433_v6  ;;  %v1622_v3 = vadd.f32 %v6067_v23, %v1621_v27  ;;  %v1767_v20 = vadd.f32 %v10154_v12, %v1766_v30  ;;  %v1833_v39 = vadd.f32 %v10155_v38, %v1832_v26  ;;  %v10160_v27 = vld [vmem:[#allocation59_spill] sm:$0xff]  ;;  %v10161_v26 = vld [vmem:[#allocation158_spill] sm:$0xff]  ;;  %v10165_v30 = vld [vmem:[#allocation20_spill] sm:$0xff] }
 0x1e0   : > { %v1451_v60 = vmul.f32 1.442695, %v10152_v14  ;;  %3432 = vpow2.f32 %v1435_v46  ;;  %v1659_v2 = vadd.f32 %v6082_v11, %v1658_v8  ;;  %v1731_v13 = vadd.f32 %v10156_v16, %v1730_v1  ;;  %v10163_v8 = vld [vmem:[#allocation97_spill] sm:$0xff]  ;;  %v10164_v35 = vld [vmem:[#allocation74_spill] sm:$0xff] }
 0x1e1   : > { %v1798_v5 = vadd.f32 %v10157_v0, %v1797_v56  ;;  %3434 = vpow2.f32 %v1437_v34  ;;  %v10159_v51 = vsub.f32 %v10158_v4, %v4715_v57  ;;  %v1696_v23 = vadd.f32 %v6097_v9, %v1695_v32  ;;  %v6688_v28 = vpop.eup %3424  ;;  %v10167_v32 = vld [vmem:[#allocation67_spill] sm:$0xff]  ;;  %v10170_v0 = vld [vmem:[#allocation82_spill] sm:$0xff] }
 0x1e2   : > { %v1834_v37 = vadd.f32 %v10160_v27, %v1833_v39  ;;  %3436 = vpow2.f32 %v1439_v25  ;;  %v10162_v46 = vsub.f32 %v10161_v26, %v4719_v59  ;;  %v1586_v1 = vadd.f32 %v10163_v8, %v1585_v15  ;;  %v6695_v34 = vpop.eup %3426  ;;  %v10168_v25 = vld [vmem:[#allocation21_spill] sm:$0xff]  ;;  %v10169_v39 = vld [vmem:[#allocation167_spill] sm:$0xff] }
 0x1e3   : > { %v1453_v6 = vmul.f32 1.442695, %v10159_v51  ;;  %v1799_v19 = vadd.f32 %v10164_v35, %v1798_v5  ;;  %3438 = vpow2.f32 %v1441_v53  ;;  %v1623_v14 = vadd.f32 %v10165_v30, %v1622_v3  ;;  %v6700_v12 = vpop.eup %3428  ;;  %v10171_v5 = vld [vmem:[#allocation159_spill] sm:$0xff]  ;;  %v10173_v51 = vld [vmem:[#allocation160_spill] sm:$0xff]  ;;  %v10177_v35 = vld [vmem:[#allocation161_spill] sm:$0xff] }
 0x1e4   : > { %v1455_v11 = vmul.f32 1.442695, %v10162_v46  ;;  %v1768_v9 = vadd.f32 %v10166_v36, %v1767_v20  ;;  %v1835_v56 = vadd.f32 %v10167_v32, %v1834_v37  ;;  %3440 = vpow2.f32 %v1443_v33  ;;  %v10176_v46 = vld [vmem:[#allocation75_spill] sm:$0xff]  ;;  %v10179_v32 = vld [vmem:[#allocation170_spill] sm:$0xff] }
 0x1e5   : > { %v1660_v38 = vadd.f32 %v10168_v25, %v1659_v2  ;;  %v1732_v16 = vadd.f32 %v10169_v39, %v1731_v13  ;;  %v1800_v15 = vadd.f32 %v10170_v0, %v1799_v19  ;;  %v6705_v4 = vpop.eup %3430  ;;  %3442 = vpow2.f32 %v1445_v17  ;;  %v10175_v13 = vld [vmem:[#allocation90_spill] sm:$0xff] }
 0x1e6   : > { %v10172_v53 = vsub.f32 %v10171_v5, %v4723_v63  ;;  %v10174_v20 = vsub.f32 %v10173_v51, %v4703_v45  ;;  %v1697_v37 = vadd.f32 %v6205_v55, %v1696_v23  ;;  %v6714_v33 = vpop.eup %3432  ;;  %3444 = vpow2.f32 %v1447_v58  ;;  %v10180_v58 = vld [vmem:[#allocation36_spill] sm:$0xff]  ;;  %v10182_v39 = vld [vmem:[#allocation106_spill] sm:$0xff] }
 0x1e7   : > { %v1587_v2 = vadd.f32 %v6260_v24, %v1586_v1  ;;  %v1801_v26 = vadd.f32 %v10175_v13, %v1800_v15  ;;  %v1836_v8 = vadd.f32 %v10176_v46, %v1835_v56  ;;  %v6719_v17 = vpop.eup %3434  ;;  %3446 = vpow2.f32 %v1449_v43  ;;  %v10181_v24 = vld [vmem:[#allocation93_spill] sm:$0xff]  ;;  %v10183_v56 = vld [vmem:[#allocation83_spill] sm:$0xff]  ;;  %v10184_v43 = vld [vmem:[#allocation162_spill] sm:$0xff] }
 0x1e8   : > { %v1457_v3 = vmul.f32 1.442695, %v10172_v53  ;;  %v1459_v27 = vmul.f32 1.442695, %v10174_v20  ;;  %v10178_v19 = vsub.f32 %v10177_v35, %v4705_v47  ;;  %v1624_v36 = vadd.f32 %v6271_v61, %v1623_v14  ;;  %v6726_v23 = vpop.eup %3436  ;;  %v10186_v61 = vld [vmem:[#allocation163_spill] sm:$0xff] }
 0x1e9   : > { %v1769_v55 = vadd.f32 %v10179_v32, %v1768_v9  ;;  %v1661_v25 = vadd.f32 %v10180_v58, %v1660_v38  ;;  %v1733_v1 = vadd.f32 %v10181_v24, %v1732_v16  ;;  %v1802_v0 = vadd.f32 %v10182_v39, %v1801_v26  ;;  %v6732_v5 = vpop.eup %3438  ;;  %v10188_v20 = vld [vmem:[#allocation107_spill] sm:$0xff]  ;;  %v10189_v26 = vld [vmem:[#allocation122_spill] sm:$0xff]  ;;  %v10193_v39 = vld [vmem:[#allocation188_spill] sm:$0xff] }
 0x1ea   : > { %v1461_v30 = vmul.f32 1.442695, %v10178_v19  ;;  %v1837_v15 = vadd.f32 %v10183_v56, %v1836_v8  ;;  %3448 = vpow2.f32 %v1451_v60  ;;  %v10185_v53 = vsub.f32 %v10184_v43, %v4707_v49  ;;  %v6741_v38 = vpop.eup %3440  ;;  %v10190_v8 = vld [vmem:[#allocation92_spill] sm:$0xff] }
 0x1eb   : > { %v10187_v14 = vsub.f32 %v10186_v61, %v4709_v52  ;;  %v1698_v13 = vadd.f32 %v10188_v20, %v1697_v37  ;;  %3450 = vpow2.f32 %v1453_v6  ;;  %v1588_v16 = vadd.f32 %v6345_v40, %v1587_v2  ;;  %v6746_v60 = vpop.eup %3442  ;;  %v10191_v19 = vld [vmem:[#allocation164_spill] sm:$0xff]  ;;  %v10195_v40 = vld [vmem:[#allocation22_spill] sm:$0xff] }
 0x1ec   : > { %v1463_v51 = vmul.f32 1.442695, %v10185_v53  ;;  %v1803_v46 = vadd.f32 %v10189_v26, %v1802_v0  ;;  %v1838_v35 = vadd.f32 %v10190_v8, %v1837_v15  ;;  %3452 = vpow2.f32 %v1455_v11  ;;  %v6753_v56 = vpop.eup %3444  ;;  %v10194_v6 = vld [vmem:[#allocation16_spill] sm:$0xff]  ;;  %v10196_v0 = vld [vmem:[#allocation138_spill] sm:$0xff]  ;;  %v10198_v11 = vld [vmem:[#allocation165_spill] sm:$0xff] }
 0x1ed   : > { %v1465_v9 = vmul.f32 1.442695, %v10187_v14  ;;  %v10192_v32 = vsub.f32 %v10191_v19, %v4711_v54  ;;  %v1625_v24 = vadd.f32 %v6356_v50, %v1624_v36  ;;  %v1770_v37 = vadd.f32 %v10193_v39, %v1769_v55  ;;  %v10197_v15 = vld [vmem:[#allocation108_spill] sm:$0xff]  ;;  %v6759_v14 = vpop.eup %3446  ;;  %v10200_v50 = vld [vmem:[#allocation166_spill] sm:$0xff] }
 0x1ee   : > { %v1662_v43 = vadd.f32 %v10194_v6, %v1661_v25  ;;  %v1734_v2 = vadd.f32 %v10195_v40, %v1733_v1  ;;  %v1804_v53 = vadd.f32 %v10196_v0, %v1803_v46  ;;  %v1839_v61 = vadd.f32 %v10197_v15, %v1838_v35  ;;  %v10202_v1 = vld [vmem:[#allocation154_spill] sm:$0xff]  ;;  %v10203_v19 = vld [vmem:[#allocation124_spill] sm:$0xff]  ;;  %v10206_v40 = vld [vmem:[#allocation61_spill] sm:$0xff] }
 0x1ef   : > { %v1467_v58 = vmul.f32 1.442695, %v10192_v32  ;;  %3454 = vpow2.f32 %v1457_v3  ;;  %v10199_v20 = vsub.f32 %v10198_v11, %v4715_v57  ;;  %v10201_v36 = vsub.f32 %v10200_v50, %v4719_v59  ;;  %v10204_v3 = vld [vmem:[#allocation168_spill] sm:$0xff]  ;;  %v10207_v15 = vld [vmem:[#allocation23_spill] sm:$0xff] }
 0x1f0   : > { %v1699_v8 = vadd.f32 %v6378_v41, %v1698_v13  ;;  %3456 = vpow2.f32 %v1459_v27  ;;  %v1589_v25 = vadd.f32 %v6425_v62, %v1588_v16  ;;  %v1805_v46 = vadd.f32 %v10202_v1, %v1804_v53  ;;  %v6771_v32 = vpop.eup %3448  ;;  %v10208_v41 = vld [vmem:[#allocation62_spill] sm:$0xff]  ;;  %v10209_v62 = vld [vmem:[#allocation39_spill] sm:$0xff]  ;;  %v10210_v16 = vld [vmem:[#allocation173_spill] sm:$0xff] }
 0x1f1   : > { %v1469_v26 = vmul.f32 1.442695, %v10199_v20  ;;  %v1471_v55 = vmul.f32 1.442695, %v10201_v36  ;;  %v1840_v35 = vadd.f32 %v10203_v19, %v1839_v61  ;;  %3458 = vpow2.f32 %v1461_v30  ;;  %v6778_v20 = vpop.eup %3450  ;;  %v10211_v61 = vld [vmem:[#allocation140_spill] sm:$0xff]  ;;  %v10212_v30 = vld [vmem:[#allocation169_spill] sm:$0xff] }
 0x1f2   : > { %v10205_v39 = vsub.f32 %v10204_v3, %v4723_v63  ;;  %v1626_v0 = vadd.f32 %v10206_v40, %v1625_v24  ;;  %v1771_v11 = vadd.f32 %v10207_v15, %v1770_v37  ;;  %v1663_v27 = vadd.f32 %v10208_v41, %v1662_v43  ;;  %v6784_v36 = vpop.eup %3452  ;;  %v10214_v24 = vld [vmem:[#allocation171_spill] sm:$0xff]  ;;  %v10217_v40 = vld [vmem:[#allocation156_spill] sm:$0xff] }
 0x1f3   : > { %v1735_v13 = vadd.f32 %v10209_v62, %v1734_v2  ;;  %v1806_v53 = vadd.f32 %v10210_v16, %v1805_v46  ;;  %v1841_v50 = vadd.f32 %v10211_v61, %v1840_v35  ;;  %3460 = vpow2.f32 %v1463_v51  ;;  %v10216_v2 = vld [vmem:[#allocation95_spill] sm:$0xff]  ;;  %v10218_v51 = vld [vmem:[#allocation172_spill] sm:$0xff] }
 0x1f4   : > { %v1473_v6 = vmul.f32 1.442695, %v10205_v39  ;;  %v10213_v1 = vsub.f32 %v10212_v30, %v4703_v45  ;;  %v10215_v37 = vsub.f32 %v10214_v24, %v4705_v47  ;;  %v1700_v39 = vadd.f32 %v6455_v22, %v1699_v8  ;;  %v10220_v61 = vld [vmem:[#allocation44_spill] sm:$0xff]  ;;  %v10221_v22 = vld [vmem:[#allocation123_spill] sm:$0xff] }
 0x1f5   : > { %3462 = vpow2.f32 %v1465_v9  ;;  %v1590_v43 = vadd.f32 %v6498_v31, %v1589_v25  ;;  %v1807_v46 = vadd.f32 %v10216_v2, %v1806_v53  ;;  %v1842_v35 = vadd.f32 %v10217_v40, %v1841_v50  ;;  %v6796_v15 = vpop.eup %3454  ;;  %v10222_v9 = vld [vmem:[#allocation53_spill] sm:$0xff]  ;;  %v10223_v25 = vld [vmem:[#allocation176_spill] sm:$0xff]  ;;  %v10227_v2 = vld [vmem:[#allocation175_spill] sm:$0xff] }
 0x1f6   : > { %v1475_v19 = vmul.f32 1.442695, %v10213_v1  ;;  %v1477_v3 = vmul.f32 1.442695, %v10215_v37  ;;  %3464 = vpow2.f32 %v1467_v58  ;;  %v10219_v41 = vsub.f32 %v10218_v51, %v4707_v49  ;;  %v6803_v1 = vpop.eup %3456  ;;  %v10224_v58 = vld [vmem:[#allocation174_spill] sm:$0xff]  ;;  %v10229_v40 = vld [vmem:[#allocation48_spill] sm:$0xff] }
 0x1f7   : > { %v1627_v16 = vadd.f32 %v6505_v42, %v1626_v0  ;;  %v1772_v30 = vadd.f32 %v10220_v61, %v1771_v11  ;;  %3466 = vpow2.f32 %v1469_v26  ;;  %v1664_v31 = vadd.f32 %v10221_v22, %v1663_v27  ;;  %v6808_v50 = vpop.eup %3458  ;;  %v10226_v0 = vld [vmem:[#allocation28_spill] sm:$0xff]  ;;  %v10230_v51 = vld [vmem:[#allocation193_spill] sm:$0xff] }
 0x1f8   : > { %v1479_v62 = vmul.f32 1.442695, %v10219_v41  ;;  %v1736_v8 = vadd.f32 %v10222_v9, %v1735_v13  ;;  %v1843_v53 = vadd.f32 %v10223_v25, %v1842_v35  ;;  %3468 = vpow2.f32 %v1471_v55  ;;  %v10231_v55 = vld [vmem:[#allocation177_spill] sm:$0xff] }
 0x1f9   : > { %v10225_v24 = vsub.f32 %v10224_v58, %v4709_v52  ;;  %v1701_v42 = vadd.f32 %v6523_v10, %v1700_v39  ;;  %v1808_v11 = vadd.f32 %v10226_v0, %v1807_v46  ;;  %3470 = vpow2.f32 %v1473_v6  ;;  %v6820_v41 = vpop.eup %3460  ;;  %v10233_v9 = vld [vmem:[#allocation77_spill] sm:$0xff]  ;;  %v10234_v39 = vld [vmem:[#allocation54_spill] sm:$0xff]  ;;  %v10237_v0 = vld [vmem:[#allocation103_spill] sm:$0xff] }
 0x1fa   : > { %v10228_v26 = vsub.f32 %v10227_v2, %v4711_v54  ;;  %v1591_v13 = vadd.f32 %v10229_v40, %v1590_v43  ;;  %v1844_v35 = vadd.f32 %v10230_v51, %v1843_v53  ;;  %3472 = vpow2.f32 %v1475_v19  ;;  %v10235_v25 = vld [vmem:[#allocation33_spill] sm:$0xff]  ;;  %v10238_v19 = vld [vmem:[#allocation178_spill] sm:$0xff]  ;;  %v10240_v51 = vld [vmem:[#allocation127_spill] sm:$0xff] }
 0x1fb   : > { %v1481_v37 = vmul.f32 1.442695, %v10225_v24  ;;  %v10232_v61 = vsub.f32 %v10231_v55, %v4715_v57  ;;  %v1628_v10 = vadd.f32 %v10233_v9, %v1627_v16  ;;  %v1773_v46 = vadd.f32 %v10234_v39, %v1772_v30  ;;  %v6827_v6 = vpop.eup %3462  ;;  %v10236_v24 = vld [vmem:[#allocation121_spill] sm:$0xff]  ;;  %v10241_v55 = vld [vmem:[#allocation111_spill] sm:$0xff]  ;;  %v10244_v9 = vld [vmem:[#allocation56_spill] sm:$0xff] }
 0x1fc   : > { %v1483_v27 = vmul.f32 1.442695, %v10228_v26  ;;  %3474 = vpow2.f32 %v1477_v3  ;;  %v1665_v58 = vadd.f32 %v10235_v25, %v1664_v31  ;;  %v1737_v43 = vadd.f32 %v10236_v24, %v1736_v8  ;;  %v6832_v2 = vpop.eup %3464  ;;  %v10242_v3 = vld [vmem:[#allocation179_spill] sm:$0xff]  ;;  %v10246_v24 = vld [vmem:[#allocation180_spill] sm:$0xff] }
 0x1fd   : > { %v1485_v22 = vmul.f32 1.442695, %v10232_v61  ;;  %v1845_v53 = vadd.f32 %v10237_v0, %v1844_v35  ;;  %3476 = vpow2.f32 %v1479_v62  ;;  %v10239_v26 = vsub.f32 %v10238_v19, %v4719_v59  ;;  %v6839_v61 = vpop.eup %3466  ;;  %v10245_v39 = vld [vmem:[#allocation47_spill] sm:$0xff]  ;;  %v10248_v19 = vld [vmem:[#allocation85_spill] sm:$0xff] }
 0x1fe   : > { %v1702_v16 = vadd.f32 %v10240_v51, %v1701_v42  ;;  %v1809_v30 = vadd.f32 %v10241_v55, %v1808_v11  ;;  %3478 = vpow2.f32 %v1481_v37  ;;  %v10243_v31 = vsub.f32 %v10242_v3, %v4723_v63  ;;  %v6846_v62 = vpop.eup %3468  ;;  %v10250_v55 = vld [vmem:[#allocation181_spill] sm:$0xff] }
 0x1ff   : > { %v1487_v40 = vmul.f32 1.442695, %v10239_v26  ;;  %v1592_v35 = vadd.f32 %v10244_v9, %v1591_v13  ;;  %v1846_v25 = vadd.f32 %v10245_v39, %v1845_v53  ;;  %3480 = vpow2.f32 %v1483_v27  ;;  %v10249_v26 = vld [vmem:[#allocation68_spill] sm:$0xff]  ;;  %v6853_v37 = vpop.eup %3470  ;;  %v10253_v39 = vld [vmem:[#allocation182_spill] sm:$0xff] }
 0x200   : > { %v1489_v8 = vmul.f32 1.442695, %v10243_v31  ;;  %v10247_v0 = vsub.f32 %v10246_v24, %v4703_v45  ;;  %v1629_v11 = vadd.f32 %v10248_v19, %v1628_v10  ;;  %v1774_v51 = vadd.f32 %v10249_v26, %v1773_v46  ;;  %v10252_v31 = vld [vmem:[#allocation70_spill] sm:$0xff]  ;;  %v6860_v27 = vpop.eup %3472  ;;  %v10256_v26 = vld [vmem:[#allocation91_spill] sm:$0xff] }
 0x201   : > { %3482 = vpow2.f32 %v1485_v22  ;;  %v10251_v3 = vsub.f32 %v10250_v55, %v4705_v47  ;;  %v1666_v53 = vadd.f32 %v6635_v29, %v1665_v58  ;;  %v1738_v9 = vadd.f32 %v10252_v31, %v1737_v43  ;;  %v10258_v43 = vld [vmem:[#allocation32_spill] sm:$0xff]  ;;  %v10259_v31 = vld [vmem:[#allocation183_spill] sm:$0xff] }
 0x202   : > { %v1491_v42 = vmul.f32 1.442695, %v10247_v0  ;;  %3484 = vpow2.f32 %v1487_v40  ;;  %v10254_v24 = vsub.f32 %v10253_v39, %v4707_v49  ;;  %v1703_v46 = vadd.f32 %v6641_v18, %v1702_v16  ;;  %v10255_v0 = vld [vmem:[#allocation117_spill] sm:$0xff]  ;;  %v6867_v22 = vpop.eup %3474 }
 0x203   : > { %v1493_v13 = vmul.f32 1.442695, %v10251_v3  ;;  %v1810_v19 = vadd.f32 %v10255_v0, %v1809_v30  ;;  %3486 = vpow2.f32 %v1489_v8  ;;  %v10257_v55 = vsub.f32 %v10256_v26, %v4709_v52  ;;  %v6874_v40 = vpop.eup %3476  ;;  %v10261_v30 = vld [vmem:[#allocation71_spill] sm:$0xff]  ;;  %v10262_v0 = vld [vmem:[#allocation184_spill] sm:$0xff] }
 0x204   : > { %v1495_v10 = vmul.f32 1.442695, %v10254_v24  ;;  %v1593_v58 = vadd.f32 %v6688_v28, %v1592_v35  ;;  %v1847_v3 = vadd.f32 %v10258_v43, %v1846_v25  ;;  %3488 = vpow2.f32 %v1491_v42  ;;  %v6881_v8 = vpop.eup %3478  ;;  %v10264_v25 = vld [vmem:[#allocation78_spill] sm:$0xff]  ;;  %v10265_v43 = vld [vmem:[#allocation185_spill] sm:$0xff] }
 0x205   : > { %v1497_v29 = vmul.f32 1.442695, %v10257_v55  ;;  %v10260_v39 = vsub.f32 %v10259_v31, %v4711_v54  ;;  %v1630_v16 = vadd.f32 %v6695_v34, %v1629_v11  ;;  %v1775_v24 = vadd.f32 %v10261_v30, %v1774_v51  ;;  %v6888_v42 = vpop.eup %3480  ;;  %v10267_v51 = vld [vmem:[#allocation69_spill] sm:$0xff]  ;;  %v10268_v30 = vld [vmem:[#allocation187_spill] sm:$0xff] }
 0x206   : > { %3490 = vpow2.f32 %v1493_v13  ;;  %v10263_v26 = vsub.f32 %v10262_v0, %v4715_v57  ;;  %v1667_v35 = vadd.f32 %v6700_v12, %v1666_v53  ;;  %v1739_v55 = vadd.f32 %v10264_v25, %v1738_v9  ;;  %v10270_v9 = vld [vmem:[#allocation25_spill] sm:$0xff] }
 0x207   : > { %v1499_v18 = vmul.f32 1.442695, %v10260_v39  ;;  %3492 = vpow2.f32 %v1495_v10  ;;  %v10266_v31 = vsub.f32 %v10265_v43, %v4719_v59  ;;  %v1704_v11 = vadd.f32 %v6705_v4, %v1703_v46  ;;  %v6895_v13 = vpop.eup %3482  ;;  %v10271_v25 = vld [vmem:[#allocation189_spill] sm:$0xff] }
 0x208   : > { %v1501_v28 = vmul.f32 1.442695, %v10263_v26  ;;  %v1811_v39 = vadd.f32 %v10267_v51, %v1810_v19  ;;  %3494 = vpow2.f32 %v1497_v29  ;;  %v10269_v0 = vsub.f32 %v10268_v30, %v4703_v45  ;;  %v6902_v10 = vpop.eup %3484  ;;  %v10273_v19 = vld [vmem:[#allocation79_spill] sm:$0xff]  ;;  %v10274_v51 = vld [vmem:[#allocation190_spill] sm:$0xff] }
 0x209   : > { %v1503_v34 = vmul.f32 1.442695, %v10266_v31  ;;  %v1594_v53 = vadd.f32 %v6741_v38, %v1593_v58  ;;  %v1848_v26 = vadd.f32 %v10270_v9, %v1847_v3  ;;  %3496 = vpow2.f32 %v1499_v18  ;;  %v6909_v29 = vpop.eup %3486 }
 0x20a   : > { %v1507_v12 = vmul.f32 1.442695, %v10269_v0  ;;  %v10272_v43 = vsub.f32 %v10271_v25, %v4705_v47  ;;  %v1631_v46 = vadd.f32 %v6746_v60, %v1630_v16  ;;  %v1776_v31 = vadd.f32 %v10273_v19, %v1775_v24  ;;  %v3489_v18 = vpop.eup %3488  ;;  %v10276_v0 = vld [vmem:[#allocation191_spill] sm:$0xff]  ;;  %v10278_v16 = vld [vmem:[#allocation125_spill] sm:$0xff] }
 0x20b   : > { %3498 = vpow2.f32 %v1501_v28  ;;  %v10275_v30 = vsub.f32 %v10274_v51, %v4707_v49  ;;  %v1668_v58 = vadd.f32 %v6753_v56, %v1667_v35  ;;  %v1740_v3 = vadd.f32 %v6650_v21, %v1739_v55  ;;  %v10279_v28 = vld [vmem:[#allocation192_spill] sm:$0xff] }
 0x20c   : > { %v1509_v4 = vmul.f32 1.442695, %v10272_v43  ;;  %3500 = vpow2.f32 %v1503_v34  ;;  %v10277_v9 = vsub.f32 %v10276_v0, %v4709_v52  ;;  %v1705_v60 = vadd.f32 %v6759_v14, %v1704_v11  ;;  %v3491_v43 = vpop.eup %3490  ;;  %v10281_v35 = vld [vmem:[#allocation76_spill] sm:$0xff]  ;;  %v10282_v34 = vld [vmem:[#allocation194_spill] sm:$0xff] }
 0x20d   : > { %v1511_v38 = vmul.f32 1.442695, %v10275_v30  ;;  %v1812_v24 = vadd.f32 %v10278_v16, %v1811_v39  ;;  %3502 = vpow2.f32 %v1507_v12  ;;  %v10280_v19 = vsub.f32 %v10279_v28, %v4711_v54  ;;  %v3493_v55 = vpop.eup %3492  ;;  %v10284_v12 = vld [vmem:[#allocation99_spill] sm:$0xff] }
 0x20e   : > { %v1513_v25 = vmul.f32 1.442695, %v10277_v9  ;;  %v1595_v56 = vadd.f32 %v6803_v1, %v1594_v53  ;;  %v1849_v21 = vadd.f32 %v10281_v35, %v1848_v26  ;;  %3504 = vpow2.f32 %v1509_v4  ;;  %v3495_v39 = vpop.eup %3494  ;;  %v10286_v4 = vld [vmem:[#allocation14_spill] sm:$0xff] }
 0x20f   : > { %v1515_v51 = vmul.f32 1.442695, %v10280_v19  ;;  %v10283_v30 = vsub.f32 %v10282_v34, %v4715_v57  ;;  %v1632_v14 = vadd.f32 %v6808_v50, %v1631_v46  ;;  %v1777_v11 = vadd.f32 %v6656_v48, %v1776_v31  ;;  %v6936_v26 = vpop.eup %3496  ;;  %v10288_v48 = vld [vmem:[#allocation129_spill] sm:$0xff] }
 0x210   : > { %3506 = vpow2.f32 %v1511_v38  ;;  %v10285_v9 = vsub.f32 %v10284_v12, %v4703_v45  ;;  %v1669_v1 = vadd.f32 %v6820_v41, %v1668_v58  ;;  %v1741_v53 = vadd.f32 %v6714_v33, %v1740_v3  ;;  %v10289_v38 = vld [vmem:[#allocation15_spill] sm:$0xff]  ;;  %v10291_v58 = vld [vmem:[#allocation84_spill] sm:$0xff]  ;;  %v10292_v34 = vld [vmem:[#allocation101_spill] sm:$0xff] }
 0x211   : > { %v1517_v0 = vmul.f32 1.442695, %v10283_v30  ;;  %3508 = vpow2.f32 %v1513_v25  ;;  %v10287_v28 = vsub.f32 %v10286_v4, %v4705_v47  ;;  %v1706_v50 = vadd.f32 %v6827_v6, %v1705_v60  ;;  %v6943_v31 = vpop.eup %3498  ;;  %v10294_v12 = vld [vmem:[#allocation29_spill] sm:$0xff] }
 0x212   : > { %v1523_v16 = vmul.f32 1.442695, %v10285_v9  ;;  %v1813_v46 = vadd.f32 %v10288_v48, %v1812_v24  ;;  %3510 = vpow2.f32 %v1515_v51  ;;  %v10290_v35 = vsub.f32 %v10289_v38, %v4707_v49  ;;  %v6950_v25 = vpop.eup %3500 }
 0x213   : > { %v1525_v19 = vmul.f32 1.442695, %v10287_v28  ;;  %v1596_v33 = vadd.f32 %v6860_v27, %v1595_v56  ;;  %v1850_v3 = vadd.f32 %v10291_v58, %v1849_v21  ;;  %3512 = vpow2.f32 %v1517_v0  ;;  %v3503_v51 = vpop.eup %3502  ;;  %v10296_v0 = vld [vmem:[#allocation37_spill] sm:$0xff] }
 0x214   : > { %v1527_v41 = vmul.f32 1.442695, %v10290_v35  ;;  %v10293_v30 = vsub.f32 %v10292_v34, %v4709_v52  ;;  %v1633_v60 = vadd.f32 %v6867_v22, %v1632_v14  ;;  %v1778_v24 = vadd.f32 %v6719_v17, %v1777_v11  ;;  %v3505_v21 = vpop.eup %3504  ;;  %v10298_v11 = vld [vmem:[#allocation38_spill] sm:$0xff] }
 0x215   : > { %3514 = vpow2.f32 %v1523_v16  ;;  %v10295_v9 = vsub.f32 %v10294_v12, %v4711_v54  ;;  %v1670_v27 = vadd.f32 %v6874_v40, %v1669_v1  ;;  %v1742_v56 = vadd.f32 %v6771_v32, %v1741_v53  ;;  %v10300_v1 = vld [vmem:[#allocation109_spill] sm:$0xff] }
 0x216   : > { %v1529_v6 = vmul.f32 1.442695, %v10293_v30  ;;  %3516 = vpow2.f32 %v1525_v19  ;;  %v10297_v28 = vsub.f32 %v10296_v0, %v4703_v45  ;;  %v1707_v22 = vadd.f32 %v6881_v8, %v1706_v50  ;;  %v3507_v14 = vpop.eup %3506 }
 0x217   : > { %v1531_v4 = vmul.f32 1.442695, %v10295_v9  ;;  %v1814_v17 = vadd.f32 %v6668_v7, %v1813_v46  ;;  %3518 = vpow2.f32 %v1527_v41  ;;  %v10299_v16 = vsub.f32 %v10298_v11, %v4705_v47  ;;  %v3509_v32 = vpop.eup %3508  ;;  %v10302_v7 = vld [vmem:[#allocation45_spill] sm:$0xff] }
 0x218   : > { %v1539_v48 = vmul.f32 1.442695, %v10297_v28  ;;  %v1597_v35 = vadd.f32 %v3489_v18, %v1596_v33  ;;  %v1851_v40 = vadd.f32 %v6678_v44, %v1850_v3  ;;  %3520 = vpow2.f32 %v1529_v6  ;;  %v6975_v50 = vpop.eup %3510  ;;  %v10304_v33 = vld [vmem:[#allocation115_spill] sm:$0xff] }
 0x219   : > { %v1541_v38 = vmul.f32 1.442695, %v10299_v16  ;;  %v10301_v53 = vsub.f32 %v10300_v1, %v4707_v49  ;;  %v1634_v58 = vadd.f32 %v3491_v43, %v1633_v60  ;;  %v1779_v8 = vadd.f32 %v6778_v20, %v1778_v24  ;;  %v6981_v44 = vpop.eup %3512  ;;  %v10306_v60 = vld [vmem:[#allocation55_spill] sm:$0xff] }
 0x21a   : > { %3522 = vpow2.f32 %v1531_v4  ;;  %v10303_v46 = vsub.f32 %v10302_v7, %v4709_v52  ;;  %v1671_v34 = vadd.f32 %v3493_v55, %v1670_v27  ;;  %v1743_v18 = vadd.f32 %v6832_v2, %v1742_v56  ;;  %v10308_v4 = vld [vmem:[#allocation60_spill] sm:$0xff] }
 0x21b   : > { %v1543_v19 = vmul.f32 1.442695, %v10301_v53  ;;  %3524 = vpow2.f32 %v1539_v48  ;;  %v10305_v3 = vsub.f32 %v10304_v33, %v4703_v45  ;;  %v1708_v43 = vadd.f32 %v3495_v39, %v1707_v22  ;;  %v3515_v6 = vpop.eup %3514 }
 0x21c   : > { %v1545_v41 = vmul.f32 1.442695, %v10303_v46  ;;  %v1815_v20 = vadd.f32 %v6726_v23, %v1814_v17  ;;  %3526 = vpow2.f32 %v1541_v38  ;;  %v10307_v24 = vsub.f32 %v10306_v60, %v4705_v47  ;;  %v3517_v2 = vpop.eup %3516  ;;  %v10310_v23 = vld [vmem:[#allocation119_spill] sm:$0xff] }
 0x21d   : > { %v1555_v30 = vmul.f32 1.442695, %v10305_v3  ;;  %v1598_v9 = vadd.f32 %v3503_v51, %v1597_v35  ;;  %v1852_v55 = vadd.f32 %v6732_v5, %v1851_v40  ;;  %3528 = vpow2.f32 %v1543_v19  ;;  %v3519_v28 = vpop.eup %3518  ;;  %v10312_v5 = vld [vmem:[#allocation186_spill] sm:$0xff] }
 0x21e   : > { %v1557_v12 = vmul.f32 1.442695, %v10307_v24  ;;  %v10309_v27 = vsub.f32 %v10308_v4, %v4707_v49  ;;  %v1635_v0 = vadd.f32 %v3505_v21, %v1634_v58  ;;  %v1780_v39 = vadd.f32 %v6839_v61, %v1779_v8  ;;  %v3521_v11 = vpop.eup %3520  ;;  %v10314_v61 = vld [vmem:[#allocation30_spill] sm:$0xff] }
 0x21f   : > { %3530 = vpow2.f32 %v1545_v41  ;;  %v10311_v48 = vsub.f32 %v10310_v23, %v4709_v52  ;;  %v1672_v17 = vadd.f32 %v3507_v14, %v1671_v34  ;;  %v1744_v51 = vadd.f32 %v6888_v42, %v1743_v18  ;;  %v10316_v42 = vld [vmem:[#allocation46_spill] sm:$0xff] }
 0x220   : > { %v1559_v56 = vmul.f32 1.442695, %v10309_v27  ;;  %v10313_v16 = vsub.f32 %v10312_v5, %v4723_v63  ;;  %3532 = vpow2.f32 %v1555_v30  ;;  %v1709_v35 = vadd.f32 %v3509_v32, %v1708_v43  ;;  %v3523_v40 = vpop.eup %3522 }
 0x221   : > { %v1561_v22 = vmul.f32 1.442695, %v10311_v48  ;;  %v1816_v21 = vadd.f32 %v6784_v36, %v1815_v20  ;;  %v10315_v1 = vsub.f32 %v10314_v61, %v4715_v57  ;;  %3534 = vpow2.f32 %v1557_v12  ;;  %v3525_v58 = vpop.eup %3524  ;;  %v10318_v36 = vld [vmem:[#allocation12_spill] sm:$0xff] }
 0x222   : > { %v1505_v38 = vmul.f32 1.442695, %v10313_v16  ;;  %v1599_v19 = vadd.f32 %v3515_v6, %v1598_v9  ;;  %v1853_v14 = vadd.f32 %v6796_v15, %v1852_v55  ;;  %v10317_v8 = vsub.f32 %v10316_v42, %v4711_v54  ;;  %v3527_v41 = vpop.eup %3526  ;;  %v10320_v15 = vld [vmem:[#allocation13_spill] sm:$0xff] }
 0x223   : > { %v1533_v53 = vmul.f32 1.442695, %v10315_v1  ;;  %3536 = vpow2.f32 %v1559_v56  ;;  %v1636_v46 = vadd.f32 %v3517_v2, %v1635_v0  ;;  %v1781_v32 = vadd.f32 %v6895_v13, %v1780_v39  ;;  %v3529_v30 = vpop.eup %3528  ;;  %v10322_v13 = vld [vmem:[#allocation113_spill] sm:$0xff] }
 0x224   : > { %v1547_v7 = vmul.f32 1.442695, %v10317_v8  ;;  %v10319_v34 = vsub.f32 %v10318_v36, %v4719_v59  ;;  %3538 = vpow2.f32 %v1561_v22  ;;  %v1673_v33 = vadd.f32 %v3519_v28, %v1672_v17 }
 0x225   : > { %v1745_v3 = vadd.f32 %v6936_v26, %v1744_v51  ;;  %3540 = vpow2.f32 %v1505_v38  ;;  %v10321_v43 = vsub.f32 %v10320_v15, %v4723_v63  ;;  %v1710_v6 = vadd.f32 %v3521_v11, %v1709_v35  ;;  %v3531_v24 = vpop.eup %3530  ;;  %v10324_v26 = vld [vmem:[#allocation63_spill] sm:$0xff]  ;;  %v10328_v51 = vld [vmem:[#allocation105_spill] sm:$0xff]  ;;  %v10330_v35 = vld [vmem:[#allocation40_spill] sm:$0xff] }
 0x226   : > { %v1519_v18 = vmul.f32 1.442695, %v10319_v34  ;;  %v1817_v60 = vadd.f32 %v6846_v62, %v1816_v21  ;;  %3542 = vpow2.f32 %v1533_v53  ;;  %v10323_v12 = vsub.f32 %v10322_v13, %v4715_v57  ;;  %v3533_v4 = vpop.eup %3532  ;;  %v10326_v62 = vld [vmem:[#allocation31_spill] sm:$0xff]  ;;  %v10334_v34 = vld [vmem:[#allocation24_spill] sm:$0xff] }
 0x227   : > { %v1521_v20 = vmul.f32 1.442695, %v10321_v43  ;;  %v1600_v55 = vadd.f32 %v3525_v58, %v1599_v19  ;;  %v1854_v2 = vadd.f32 %v6853_v37, %v1853_v14  ;;  %3544 = vpow2.f32 %v1547_v7  ;;  %v3535_v28 = vpop.eup %3534 }
 0x228   : > { %v1549_v9 = vmul.f32 1.442695, %v10323_v12  ;;  %v10325_v27 = vsub.f32 %v10324_v26, %v4711_v54  ;;  %v1637_v0 = vadd.f32 %v3527_v41, %v1636_v46  ;;  %v1782_v39 = vadd.f32 %v6943_v31, %v1781_v32 }
 0x229   : > { %3546 = vpow2.f32 %v1519_v18  ;;  %v10327_v23 = vsub.f32 %v10326_v62, %v4719_v59  ;;  %v1674_v22 = vadd.f32 %v3529_v30, %v1673_v33  ;;  %v1746_v17 = vadd.f32 %v6975_v50, %v1745_v3  ;;  %v3537_v37 = vpop.eup %3536  ;;  %v3823_v50 = vld [vmem:[%s4378_s4 + $0x7f8] sm:$0xff] }
 0x22a   : > { %v1563_v56 = vmul.f32 1.442695, %v10325_v27  ;;  %3548 = vpow2.f32 %v1521_v20  ;;  %v10329_v11 = vsub.f32 %v10328_v51, %v4723_v63  ;;  %v1711_v16 = vadd.f32 %v3531_v24, %v1710_v6  ;;  %v3539_v31 = vpop.eup %3538  ;;  %v10336_v24 = vld [vmem:[#allocation17_spill] sm:$0xff] }
 0x22b   : > { %v1535_v48 = vmul.f32 1.442695, %v10327_v23  ;;  %v1818_v38 = vadd.f32 %v6902_v10, %v1817_v60  ;;  %3550 = vpow2.f32 %v1549_v9  ;;  %v10331_v21 = vsub.f32 %v10330_v35, %v4715_v57  ;;  %v3541_v19 = vpop.eup %3540  ;;  %v10332_v10 = vld [vmem:[#allocation52_spill] sm:$0xff] }
 0x22c   : > { %v1537_v5 = vmul.f32 1.442695, %v10329_v11  ;;  %v1601_v1 = vadd.f32 %v3533_v4, %v1600_v55  ;;  %v1855_v53 = vadd.f32 %v6909_v29, %v1854_v2  ;;  %v1058_v14 = vsub.f32 %v3823_v50, %v4723_v63  ;;  %v3543_v8 = vpop.eup %3542 }
 0x22d   : > { %v1565_v61 = vmul.f32 1.442695, %v10331_v21  ;;  %3552 = vpow2.f32 %v1563_v56  ;;  %v1638_v58 = vadd.f32 %v3535_v28, %v1637_v0  ;;  %v1783_v42 = vadd.f32 %v6981_v44, %v1782_v39  ;;  %v3545_v36 = vpop.eup %3544 }
 0x22e   : > { %3554 = vpow2.f32 %v1535_v48  ;;  %v10333_v7 = vsub.f32 %v10332_v10, %v4719_v59  ;;  %v1675_v32 = vadd.f32 %v3537_v37, %v1674_v22  ;;  %v1747_v41 = vadd.f32 %v3523_v40, %v1746_v17 }
 0x22f   : > { %3556 = vpow2.f32 %v1537_v5  ;;  %v10335_v29 = vsub.f32 %v10334_v34, %v4723_v63  ;;  %v1712_v33 = vadd.f32 %v3539_v31, %v1711_v16  ;;  %v1819_v3 = vadd.f32 %v6950_v25, %v1818_v38  ;;  %v3547_v30 = vpop.eup %3546 }
 0x230   : > { %v1551_v46 = vmul.f32 1.442695, %v10333_v7  ;;  %3558 = vpow2.f32 %v1565_v61  ;;  %v1602_v44 = vrot.slane %v1601_v1, 4  ;;  %v1856_v15 = vadd.f32 %v3541_v19, %v1855_v53  ;;  %v3549_v43 = vpop.eup %3548 }
 0x231   : > { %v1553_v18 = vmul.f32 1.442695, %v10335_v29  ;;  %v1639_v20 = vrot.slane %v1638_v58, 4  ;;  %v1784_v6 = vadd.f32 %v3543_v8, %v1783_v42  ;;  %v3551_v60 = vpop.eup %3550  ;;  %v10337_v40 = vsub.f32 %v10336_v24, %v4719_v59 }
 0x232   : > { %3560 = vpow2.f32 %v1551_v46  ;;  %v1676_v12 = vrot.slane %v1675_v32, 4  ;;  %v1748_v9 = vadd.f32 %v3545_v36, %v1747_v41  ;;  %v1569_v2 = vmul.f32 1.442695, %v1058_v14  ;;  %v504_v46 = vld [vmem:[%s4384_s8] sm:$0xff] }
 0x233   : > { %v1567_v13 = vmul.f32 1.442695, %v10337_v40  ;;  %v3553_v55 = vpop.eup %3552  ;;  %3562 = vpow2.f32 %v1553_v18  ;;  %v1713_v4 = vrot.slane %v1712_v33, 4  ;;  %v1820_v25 = vadd.f32 %v3547_v30, %v1819_v3 }
 0x234   : > { %v3555_v26 = vpop.eup %3554  ;;  %v1603_v27 = vadd.f32 %v1602_v44, %v1601_v1  ;;  %v1857_v56 = vadd.f32 %v3549_v43, %v1856_v15  ;;  %v1640_v39 = vadd.f32 %v1639_v20, %v1638_v58  ;;  %v1785_v28 = vadd.f32 %v3551_v60, %v1784_v6 }
 0x235   : > { %v3557_v0 = vpop.eup %3556  ;;  %3564 = vpow2.f32 %v1567_v13  ;;  %v1677_v23 = vadd.f32 %v1676_v12, %v1675_v32  ;;  %v1749_v48 = vadd.f32 %v3553_v55, %v1748_v9  ;;  %v1714_v22 = vadd.f32 %v1713_v4, %v1712_v33 }
 0x236   : > { %v3559_v62 = vpop.eup %3558  ;;  %3566 = vpow2.f32 %v1569_v2  ;;  %v1821_v17 = vadd.f32 %v3555_v26, %v1820_v25  ;;  %v1604_v51 = vrot.slane %v1603_v27, 2  ;;  %v1858_v11 = vadd.f32 %v3557_v0, %v1857_v56 }
 0x237   : > { %v1641_v16 = vrot.slane %v1640_v39, 2  ;;  %v1786_v38 = vadd.f32 %v3559_v62, %v1785_v28  ;;  %v1678_v31 = vrot.slane %v1677_v23, 2  ;;  %v1750_v35 = vrot.slane %v1749_v48, 4 }
 0x238   : > { %v3561_v37 = vpop.eup %3560  ;;  %v1715_v21 = vrot.slane %v1714_v22, 2  ;;  %v1605_v53 = vadd.f32 %v1604_v51, %v1603_v27  ;;  %v505_v33 = vmul.f32 255.0, %v504_v46  ;;  %v9638_v55 = vlaneseq }
 0x239   : > { %v3563_v5 = vpop.eup %3562  ;;  %v1822_v61 = vadd.f32 %v3561_v37, %v1821_v17  ;;  %v1642_v14 = vadd.f32 %v1641_v16, %v1640_v39  ;;  %v1787_v58 = vrot.slane %v1786_v38, 4  ;;  %v1679_v42 = vadd.f32 %v1678_v31, %v1677_v23 }
 0x23a   : > { %v1859_v19 = vadd.f32 %v3563_v5, %v1858_v11  ;;  %v1751_v8 = vadd.f32 %v1750_v35, %v1749_v48  ;;  %v1716_v10 = vadd.f32 %v1715_v21, %v1714_v22  ;;  %v1606_v32 = vrot.slane %v1605_v53, 1 }
 0x23b   : > { %v3565_v1 = vpop.eup %3564  ;;  %v1643_v36 = vrot.slane %v1642_v14, 1  ;;  %v1788_v34 = vadd.f32 %v1787_v58, %v1786_v38  ;;  %v1680_v29 = vrot.slane %v1679_v42, 1  ;;  %v2983_v24 = vceil.f32 %v505_v33 }
 0x23c   : > { %v3567_v50 = vpop.eup %3566  ;;  %v1823_v7 = vadd.f32 %v3565_v1, %v1822_v61  ;;  %v1752_v18 = vrot.slane %v1751_v8, 2  ;;  %v1717_v3 = vrot.slane %v1716_v10, 1  ;;  %v1607_v44 = vadd.f32 %v1606_v32, %v1605_v53 }
 0x23d   : > { %v1860_v41 = vadd.f32 %v3567_v50, %v1859_v19  ;;  %v1644_v43 = vadd.f32 %v1643_v36, %v1642_v14  ;;  %v1789_v20 = vrot.slane %v1788_v34, 2  ;;  %v1681_v6 = vadd.f32 %v1680_v29, %v1679_v42 }
 0x23e   : > { %v1824_v30 = vrot.slane %v1823_v7, 4  ;;  %v1753_v60 = vadd.f32 %v1752_v18, %v1751_v8  ;;  %v2984_v40 = vfloor.f32 %v505_v33  ;;  %v1718_v13 = vadd.f32 %v1717_v3, %v1716_v10 }
 0x23f   : > { %v1861_v15 = vrot.slane %v1860_v41, 4  ;;  %vm2982_vm0 = vcmp.lt.s32.totalorder %v505_v33, 0  ;;  %3568 = vlog2.f32 %v1607_v44  ;;  %v1790_v2 = vadd.f32 %v1789_v20, %v1788_v34 }
 0x240   : > { %v1825_v12 = vadd.f32 %v1824_v30, %v1823_v7  ;;  %3570 = vlog2.f32 %v1644_v43  ;;  %v1754_v4 = vrot.slane %v1753_v60, 1  ;;  %v2985_v25 = vsel %vm2982_vm0, %v2983_v24, %v2984_v40 }
 0x241   : > { %v1862_v9 = vadd.f32 %v1861_v15, %v1860_v41  ;;  %3572 = vlog2.f32 %v1681_v6  ;;  %v7054_v56 = vshrl.u32 %v9638_v55, 7  ;;  %v1791_v0 = vrot.slane %v1790_v2, 1 }
 0x242   : > { %v1826_v26 = vrot.slane %v1825_v12, 2  ;;  %3574 = vlog2.f32 %v1718_v13  ;;  %v2986_v28 = vcvt.f32.s32 %v2985_v25  ;;  %v1755_v62 = vadd.f32 %v1754_v4, %v1753_v60 }
 0x243   : > { %v1863_v27 = vrot.slane %v1862_v9, 2  ;;  %v7057_v37 = vadd.s32 8, %v7054_v56  ;;  %v7060_v51 = vadd.s32 16, %v7054_v56  ;;  %v1792_v16 = vadd.f32 %v1791_v0, %v1790_v2 }
 0x244   : > { %v1827_v48 = vadd.f32 %v1826_v26, %v1825_v12  ;;  %v7062_v11 = vperm.slane %v2986_v28, 0  ;;  %v7065_v38 = vadd.s32 24, %v7054_v56  ;;  %v7068_v31 = vadd.s32 32, %v7054_v56 }
 0x245   : > { %v3569_v39 = vpop.eup %3568  ;;  %v1864_v17 = vadd.f32 %v1863_v27, %v1862_v9  ;;  %v7071_v35 = vadd.s32 40, %v7054_v56  ;;  %3576 = vlog2.f32 %v1755_v62  ;;  %v7074_v61 = vadd.s32 48, %v7054_v56 }
 0x246   : > { %v3571_v23 = vpop.eup %3570  ;;  %v1868_v21 = vmul.f32 0.6931472, %v3569_v39  ;;  %v7077_v1 = vadd.s32 56, %v7054_v56  ;;  %v1828_v53 = vrot.slane %v1827_v48, 1  ;;  %v7080_v14 = vadd.s32 64, %v7054_v56 }
 0x247   : > { %v3573_v22 = vpop.eup %3572  ;;  %v1870_v19 = vmul.f32 0.6931472, %v3571_v23  ;;  %v1865_v58 = vrot.slane %v1864_v17, 1  ;;  %v7083_v8 = vadd.s32 72, %v7054_v56  ;;  %v7086_v10 = vadd.s32 80, %v7054_v56 }
 0x248   : > { %v3575_v5 = vpop.eup %3574  ;;  %v1872_v50 = vmul.f32 0.6931472, %v3573_v22  ;;  %3578 = vlog2.f32 %v1792_v16  ;;  %v7089_v7 = vadd.s32 88, %v7054_v56  ;;  %v7092_v46 = vadd.s32 96, %v7054_v56 }
 0x249   : > { %v1874_v42 = vmul.f32 0.6931472, %v3575_v5  ;;  %v7095_v32 = vadd.s32 104, %v7054_v56  ;;  %v7098_v41 = vadd.s32 112, %v7054_v56  ;;  %v7101_v36 = vadd.s32 120, %v7054_v56 }
 0x24a   : > { %v7104_v34 = vadd.s32 128, %v7054_v56  ;;  %v7107_v29 = vadd.s32 136, %v7054_v56  ;;  %v1829_v18 = vadd.f32 %v1828_v53, %v1827_v48  ;;  %v7110_v33 = vadd.f32 %v1868_v21, %v4703_v45 }
 0x24b   : > { %v7113_v3 = vadd.f32 %v1870_v19, %v4705_v47  ;;  %v7116_v30 = vadd.f32 %v1872_v50, %v4707_v49  ;;  %v3577_v44 = vpop.eup %3576  ;;  %v1866_v15 = vadd.f32 %v1865_v58, %v1864_v17  ;;  %v7119_v43 = vadd.f32 %v1874_v42, %v4709_v52  ;;  %v3824_v50 = vld [vmem:[%s4378_s4] sm:$0xff]  ;;  %v3826_v42 = vld [vmem:[%s4378_s4 + $0x10] sm:$0xff] }
 0x24c   : > { %10338 = vst [vmem:[#allocation41_spill] sm:$0xff] %v7110_v33  ;;  %v7122_v20 = vadd.s32 144, %v7054_v56  ;;  %v7125_v6 = vadd.s32 152, %v7054_v56  ;;  %v7128_v45 = vadd.s32 160, %v7054_v56  ;;  %v7131_v47 = vadd.s32 168, %v7054_v56  ;;  %v3847_v33 = vld [vmem:[%s4378_s4 + $0xb8] sm:$0xff] }
 0x24d   : > { %10339 = vst [vmem:[#allocation131_spill] sm:$0xff] %v7113_v3  ;;  %v7134_v49 = vadd.s32 176, %v7054_v56  ;;  %v7137_v60 = vadd.s32 184, %v7054_v56  ;;  %v7140_v52 = vadd.s32 192, %v7054_v56  ;;  %v7143_v24 = vadd.s32 200, %v7054_v56 }
 0x24e   : > { %10340 = vst [vmem:[#allocation86_spill] sm:$0xff] %v7116_v30  ;;  %v7145_v40 = vperm.slane %v2986_v28, 1  ;;  %v7147_v13 = vperm.slane %v2986_v28, 2  ;;  %v3579_v12 = vpop.eup %3578  ;;  %v1876_v9 = vmul.f32 0.6931472, %v3577_v44  ;;  %3580 = vlog2.f32 %v1829_v18  ;;  %v3827_v44 = vld [vmem:[%s4378_s4 + $0x18] sm:$0xff] }
 0x24f   : > { %10341 = vst [vmem:[#allocation133_spill] sm:$0xff] %v7119_v43  ;;  %v7149_v2 = vperm.slane %v2986_v28, 3  ;;  %v7151_v4 = vperm.slane %v2986_v28, 4  ;;  %3582 = vlog2.f32 %v1866_v15  ;;  %v7153_v25 = vperm.slane %v2986_v28, 5  ;;  %v3844_v30 = vld [vmem:[%s4378_s4 + $0xa0] sm:$0xff] }
 0x250   : > { %v7155_v26 = vperm.slane %v2986_v28, 6  ;;  %v7157_v27 = vperm.slane %v2986_v28, 7  ;;  %v7160_v0 = vadd.s32 208, %v7054_v56  ;;  %v7163_v39 = vadd.s32 216, %v7054_v56 }
 0x251   : > { %v7166_v62 = vadd.s32 224, %v7054_v56  ;;  %v7169_v23 = vadd.s32 232, %v7054_v56  ;;  %v1878_v48 = vmul.f32 0.6931472, %v3579_v12  ;;  %v7172_v22 = vadd.s32 240, %v7054_v56  ;;  %v3828_v12 = vld [vmem:[%s4378_s4 + $0x20] sm:$0xff] }
 0x252   : > { %v7175_v17 = vadd.s32 248, %v7054_v56  ;;  %vm1932_vm1 = vcmp.eq.s32.totalorder %v7054_v56, %v7062_v11  ;;  %v7180_v28 = vadd.f32 %v1876_v9, %v4711_v54  ;;  %vm1933_vm2 = vcmp.eq.s32.totalorder %v7054_v56, %v7145_v40 }
 0x253   : > { %vm1934_vm3 = vcmp.eq.s32.totalorder %v7054_v56, %v7147_v13  ;;  %vm1935_vm4 = vcmp.eq.s32.totalorder %v7054_v56, %v7149_v2  ;;  %vm1936_vm5 = vcmp.eq.s32.totalorder %v7054_v56, %v7151_v4  ;;  %vm1937_vm6 = vcmp.eq.s32.totalorder %v7054_v56, %v7153_v25 }
 0x254   : > { %10342 = vst [vmem:[#allocation87_spill] sm:$0xff] %v7180_v28  ;;  %vm1938_vm7 = vcmp.eq.s32.totalorder %v7054_v56, %v7155_v26  ;;  %vm1939_vm8 = vcmp.eq.s32.totalorder %v7054_v56, %v7157_v27  ;;  %vm1940_vm9 = vcmp.eq.s32.totalorder %v7057_v37, %v7062_v11  ;;  %v3581_v54 = vpop.eup %3580  ;;  %v7207_v16 = vadd.f32 %v1878_v48, %v4715_v57  ;;  %v3829_v48 = vld [vmem:[%s4378_s4 + $0x28] sm:$0xff] }
 0x255   : > { %v3583_v5 = vpop.eup %3582  ;;  %v1880_v57 = vmul.f32 0.6931472, %v3581_v54  ;;  %vm1965_vm14 = vcmp.eq.s32.totalorder %v7068_v31, %v7145_v40  ;;  %vm1967_vm0 = vcmp.eq.s32.totalorder %v7068_v31, %v7149_v2  ;;  %vm1975_vm10 = vcmp.eq.s32.totalorder %v7071_v35, %v7149_v2  ;;  %v3833_v56 = vld [vmem:[%s4378_s4 + $0x48] sm:$0xff] }
 0x256   : > { %10343 = vst [vmem:[#allocation135_spill] sm:$0xff] %v7207_v16  ;;  %v1882_v21 = vmul.f32 0.6931472, %v3583_v5  ;;  %vm1977_vm11 = vcmp.eq.s32.totalorder %v7071_v35, %v7153_v25  ;;  %vm1978_vm12 = vcmp.eq.s32.totalorder %v7071_v35, %v7155_v26  ;;  %vm1979_vm13 = vcmp.eq.s32.totalorder %v7071_v35, %v7157_v27  ;;  %v3830_v5 = vld [vmem:[%s4378_s4 + $0x30] sm:$0xff]  ;;  %v3840_v16 = vld [vmem:[%s4378_s4 + $0x80] sm:$0xff] }
 0x257   : > { %v7266_v53 = vadd.f32 %v1880_v57, %v4719_v59  ;;  %v7283_v59 = vsel %vm1932_vm1, %v3824_v50, 0.0  ;;  %vm1980_vm15 = vcmp.eq.s32.totalorder %v7074_v61, %v7062_v11  ;;  %v7303_v18 = vsel %vm1934_vm3, %v3826_v42, 0.0 }
 0x258   : > { %v7269_v19 = vadd.f32 %v1882_v21, %v4723_v63  ;;  %v3825_v63 = vld [vmem:[%s4378_s4 + $0x8] sm:$0xff]  ;;  %v7309_v15 = vsel %vm1935_vm4, %v3827_v44, 0.0  ;;  %v7315_v9 = vsel %vm1936_vm5, %v3828_v12, 0.0  ;;  %vm1981_vm1 = vcmp.eq.s32.totalorder %v7074_v61, %v7145_v40  ;;  %v3831_v21 = vld [vmem:[%s4378_s4 + $0x38] sm:$0xff]  ;;  %v3834_v12 = vld [vmem:[%s4378_s4 + $0x50] sm:$0xff] }
 0x259   : > { %10344 = vst [vmem:[#allocation94_spill] sm:$0xff] %v7266_v53  ;;  %v7297_v58 = vsel %vm1933_vm2, %v3825_v63, 0.0  ;;  %vm1982_vm2 = vcmp.eq.s32.totalorder %v7074_v61, %v7147_v13  ;;  %vm1983_vm3 = vcmp.eq.s32.totalorder %v7074_v61, %v7149_v2  ;;  %v7329_v54 = vsel %vm1937_vm6, %v3829_v48, 0.0  ;;  %v3832_v63 = vld [vmem:[%s4378_s4 + $0x40] sm:$0xff] }
 0x25a   : > { %10345 = vst [vmem:[#allocation64_spill] sm:$0xff] %v7269_v19  ;;  %v7335_v57 = vsel %vm1938_vm7, %v3830_v5, 0.0  ;;  %v7341_v50 = vsel %vm1939_vm8, %v3831_v21, 0.0  ;;  %v7347_v42 = vsel %vm1940_vm9, %v3832_v63, 0.0  ;;  %vm10346_vm4 = vcmp.eq.s32.totalorder %v7057_v37, %v7145_v40  ;;  %v3835_v5 = vld [vmem:[%s4378_s4 + $0x58] sm:$0xff]  ;;  %v3836_v63 = vld [vmem:[%s4378_s4 + $0x60] sm:$0xff] }
 0x25b   : > { %v7361_v44 = vsel %vm10346_vm4, %v3833_v56, 0.0  ;;  %vm10347_vm9 = vcmp.eq.s32.totalorder %v7057_v37, %v7147_v13  ;;  %vm10348_vm7 = vcmp.eq.s32.totalorder %v7057_v37, %v7149_v2  ;;  %vm10349_vm8 = vcmp.eq.s32.totalorder %v7057_v37, %v7151_v4  ;;  %v3837_v56 = vld [vmem:[%s4378_s4 + $0x68] sm:$0xff]  ;;  %v3839_v19 = vld [vmem:[%s4378_s4 + $0x78] sm:$0xff] }
 0x25c   : > { %v7367_v48 = vsel %vm10347_vm9, %v3834_v12, 0.0  ;;  %v7373_v21 = vsel %vm10348_vm7, %v3835_v5, 0.0  ;;  %v7379_v55 = vsel %vm10349_vm8, %v3836_v63, 0.0  ;;  %vm10350_vm5 = vcmp.eq.s32.totalorder %v7057_v37, %v7153_v25  ;;  %v3838_v5 = vld [vmem:[%s4378_s4 + $0x70] sm:$0xff] }
 0x25d   : > { %v7393_v12 = vsel %vm10350_vm5, %v3837_v56, 0.0  ;;  %vm10351_vm8 = vcmp.eq.s32.totalorder %v7057_v37, %v7155_v26  ;;  %vm10352_vm6 = vcmp.eq.s32.totalorder %v7057_v37, %v7157_v27  ;;  %vm10353_vm7 = vcmp.eq.s32.totalorder %v7060_v51, %v7062_v11  ;;  %v3841_v37 = vld [vmem:[%s4378_s4 + $0x88] sm:$0xff] }
 0x25e   : > { %v7399_v63 = vsel %vm10351_vm8, %v3838_v5, 0.0  ;;  %v7405_v53 = vsel %vm10352_vm6, %v3839_v19, 0.0  ;;  %v7411_v28 = vsel %vm10353_vm7, %v3840_v16, 0.0  ;;  %vm10354_vm4 = vcmp.eq.s32.totalorder %v7060_v51, %v7145_v40  ;;  %v3842_v19 = vld [vmem:[%s4378_s4 + $0x90] sm:$0xff]  ;;  %v3843_v5 = vld [vmem:[%s4378_s4 + $0x98] sm:$0xff] }
 0x25f   : > { %v7425_v16 = vsel %vm10354_vm4, %v3841_v37, 0.0  ;;  %vm10355_vm7 = vcmp.eq.s32.totalorder %v7060_v51, %v7147_v13  ;;  %vm10357_vm9 = vcmp.eq.s32.totalorder %v7060_v51, %v7149_v2  ;;  %vm10359_vm6 = vcmp.eq.s32.totalorder %v7060_v51, %v7151_v4  ;;  %v3845_v37 = vld [vmem:[%s4378_s4 + $0xa8] sm:$0xff] }
 0x260   : > { %v7431_v56 = vsel %vm10355_vm7, %v3842_v19, 0.0  ;;  %v7437_v43 = vsel %vm10357_vm9, %v3843_v5, 0.0  ;;  %v7443_v3 = vsel %vm10359_vm6, %v3844_v30, 0.0  ;;  %vm10361_vm5 = vcmp.eq.s32.totalorder %v7060_v51, %v7153_v25  ;;  %v3846_v19 = vld [vmem:[%s4378_s4 + $0xb0] sm:$0xff] }
 0x261   : > { %10356 = vst [vmem:[#allocation96_spill] sm:$0xff] %v7431_v56  ;;  %v7457_v30 = vsel %vm10361_vm5, %v3845_v37, 0.0  ;;  %vm10363_vm6 = vcmp.eq.s32.totalorder %v7060_v51, %v7155_v26  ;;  %vm10365_vm8 = vcmp.eq.s32.totalorder %v7060_v51, %v7157_v27  ;;  %vm10367_vm9 = vcmp.eq.s32.totalorder %v7065_v38, %v7062_v11  ;;  %v3849_v51 = vld [vmem:[%s4378_s4 + $0xc8] sm:$0xff] }
 0x262   : > { %10358 = vst [vmem:[#allocation49_spill] sm:$0xff] %v7437_v43  ;;  %v7463_v5 = vsel %vm10363_vm6, %v3846_v19, 0.0  ;;  %v3848_v43 = vld [vmem:[%s4378_s4 + $0xc0] sm:$0xff]  ;;  %vm10368_vm4 = vcmp.eq.s32.totalorder %v7065_v38, %v7145_v40  ;;  %v3851_v19 = vld [vmem:[%s4378_s4 + $0xd8] sm:$0xff]  ;;  %vm10372_vm7 = vcmp.eq.s32.totalorder %v7065_v38, %v7149_v2  ;;  %vm10376_vm5 = vcmp.eq.s32.totalorder %v7065_v38, %v7153_v25 }
 0x263   : > { %10360 = vst [vmem:[#allocation137_spill] sm:$0xff] %v7443_v3  ;;  %v7469_v3 = vsel %vm10365_vm8, %v3847_v33, 0.0  ;;  %v7475_v56 = vsel %vm10367_vm9, %v3848_v43, 0.0  ;;  %v7489_v33 = vsel %vm10368_vm4, %v3849_v51, 0.0  ;;  %v3850_v43 = vld [vmem:[%s4378_s4 + $0xd0] sm:$0xff]  ;;  %vm10370_vm9 = vcmp.eq.s32.totalorder %v7065_v38, %v7147_v13  ;;  %v3853_v51 = vld [vmem:[%s4378_s4 + $0xe8] sm:$0xff] }
 0x264   : > { %10362 = vst [vmem:[#allocation98_spill] sm:$0xff] %v7457_v30  ;;  %v7495_v37 = vsel %vm10370_vm9, %v3850_v43, 0.0  ;;  %vm10374_vm8 = vcmp.eq.s32.totalorder %v7065_v38, %v7151_v4  ;;  %vm2005_vm4 = vcmp.eq.s32.totalorder %v7083_v8, %v7145_v40  ;;  %v3854_v43 = vld [vmem:[%s4378_s4 + $0xf0] sm:$0xff]  ;;  %vm10380_vm6 = vcmp.eq.s32.totalorder %v7065_v38, %v7157_v27 }
 0x265   : > { %10364 = vst [vmem:[#allocation139_spill] sm:$0xff] %v7463_v5  ;;  %v3852_v5 = vld [vmem:[%s4378_s4 + $0xe0] sm:$0xff]  ;;  %vm10393_vm9 = vcmp.eq.s32.totalorder %v7068_v31, %v7157_v27 }
 0x266   : > { %10366 = vst [vmem:[#allocation100_spill] sm:$0xff] %v7469_v3  ;;  %v7501_v3 = vsel %vm10372_vm7, %v3851_v19, 0.0  ;;  %v7507_v30 = vsel %vm10374_vm8, %v3852_v5, 0.0  ;;  %v7521_v5 = vsel %vm10376_vm5, %v3853_v51, 0.0  ;;  %vm10378_vm8 = vcmp.eq.s32.totalorder %v7065_v38, %v7155_v26  ;;  %v3857_v38 = vld [vmem:[%s4378_s4 + $0x108] sm:$0xff] }
 0x267   : > { %10369 = vst [vmem:[#allocation141_spill] sm:$0xff] %v7489_v33  ;;  %v7527_v19 = vsel %vm10378_vm8, %v3854_v43, 0.0  ;;  %vm10382_vm7 = vcmp.eq.s32.totalorder %v7068_v31, %v7062_v11  ;;  %vm2009_vm5 = vcmp.eq.s32.totalorder %v7083_v8, %v7153_v25  ;;  %v3859_v43 = vld [vmem:[%s4378_s4 + $0x118] sm:$0xff]  ;;  %vm10389_vm8 = vcmp.eq.s32.totalorder %v7068_v31, %v7153_v25 }
 0x268   : > { %10371 = vst [vmem:[#allocation110_spill] sm:$0xff] %v7495_v37  ;;  %v3856_v37 = vld [vmem:[%s4378_s4 + $0x100] sm:$0xff] }
 0x269   : > { %10373 = vst [vmem:[#allocation72_spill] sm:$0xff] %v7501_v3  ;;  %v7539_v33 = vsel %vm10382_vm7, %v3856_v37, 0.0  ;;  %v3858_v37 = vld [vmem:[%s4378_s4 + $0x110] sm:$0xff]  ;;  %vm10384_vm7 = vcmp.eq.s32.totalorder %v7068_v31, %v7147_v13 }
 0x26a   : > { %10375 = vst [vmem:[#allocation112_spill] sm:$0xff] %v7507_v30  ;;  %v3855_v30 = vld [vmem:[%s4378_s4 + $0xf8] sm:$0xff]  ;;  %v7559_v51 = vsel %vm10384_vm7, %v3858_v37, 0.0  ;;  %v3862_v37 = vld [vmem:[%s4378_s4 + $0x130] sm:$0xff]  ;;  %vm2023_vm7 = vcmp.eq.s32.totalorder %v7089_v7, %v7149_v2 }
 0x26b   : > { %10377 = vst [vmem:[#allocation57_spill] sm:$0xff] %v7521_v5  ;;  %v7533_v3 = vsel %vm10380_vm6, %v3855_v30, 0.0  ;;  %v7553_v30 = vsel %vm1965_vm14, %v3857_v38, 0.0  ;;  %vm10387_vm6 = vcmp.eq.s32.totalorder %v7068_v31, %v7151_v4  ;;  %v3861_v38 = vld [vmem:[%s4378_s4 + $0x128] sm:$0xff]  ;;  %vm10396_vm14 = vcmp.eq.s32.totalorder %v7071_v35, %v7145_v40 }
 0x26c   : > { %10379 = vst [vmem:[#allocation143_spill] sm:$0xff] %v7527_v19  ;;  %v3860_v19 = vld [vmem:[%s4378_s4 + $0x120] sm:$0xff] }
 0x26d   : > { %10381 = vst [vmem:[#allocation114_spill] sm:$0xff] %v7533_v3  ;;  %v7565_v3 = vsel %vm1967_vm0, %v3859_v43, 0.0  ;;  %v7571_v5 = vsel %vm10387_vm6, %v3860_v19, 0.0  ;;  %v7585_v19 = vsel %vm10389_vm8, %v3861_v38, 0.0  ;;  %vm10391_vm6 = vcmp.eq.s32.totalorder %v7068_v31, %v7155_v26  ;;  %v3865_v31 = vld [vmem:[%s4378_s4 + $0x148] sm:$0xff] }
 0x26e   : > { %10383 = vst [vmem:[#allocation145_spill] sm:$0xff] %v7553_v30  ;;  %v7591_v43 = vsel %vm10391_vm6, %v3862_v37, 0.0  ;;  %vm10395_vm0 = vcmp.eq.s32.totalorder %v7071_v35, %v7062_v11  ;;  %vm2017_vm8 = vcmp.eq.s32.totalorder %v7086_v10, %v7153_v25  ;;  %vm2018_vm6 = vcmp.eq.s32.totalorder %v7086_v10, %v7155_v26  ;;  %v3867_v37 = vld [vmem:[%s4378_s4 + $0x158] sm:$0xff] }
 0x26f   : > { %10385 = vst [vmem:[#allocation116_spill] sm:$0xff] %v7559_v51  ;;  %v3864_v51 = vld [vmem:[%s4378_s4 + $0x140] sm:$0xff] }
 0x270   : > { %10386 = vst [vmem:[#allocation147_spill] sm:$0xff] %v7565_v3  ;;  %v7603_v30 = vsel %vm10395_vm0, %v3864_v51, 0.0  ;;  %v3866_v51 = vld [vmem:[%s4378_s4 + $0x150] sm:$0xff]  ;;  %vm10398_vm0 = vcmp.eq.s32.totalorder %v7071_v35, %v7147_v13 }
 0x271   : > { %10388 = vst [vmem:[#allocation126_spill] sm:$0xff] %v7571_v5  ;;  %v3863_v5 = vld [vmem:[%s4378_s4 + $0x138] sm:$0xff]  ;;  %v7623_v38 = vsel %vm10398_vm0, %v3866_v51, 0.0  ;;  %vm2022_vm0 = vcmp.eq.s32.totalorder %v7089_v7, %v7147_v13  ;;  %v3870_v51 = vld [vmem:[%s4378_s4 + $0x170] sm:$0xff] }
 0x272   : > { %10390 = vst [vmem:[#allocation80_spill] sm:$0xff] %v7585_v19  ;;  %v7597_v3 = vsel %vm10393_vm9, %v3863_v5, 0.0  ;;  %v7617_v5 = vsel %vm10396_vm14, %v3865_v31, 0.0  ;;  %vm10401_vm9 = vcmp.eq.s32.totalorder %v7071_v35, %v7151_v4  ;;  %vm2021_vm14 = vcmp.eq.s32.totalorder %v7089_v7, %v7145_v40  ;;  %v3869_v31 = vld [vmem:[%s4378_s4 + $0x168] sm:$0xff] }
 0x273   : > { %10392 = vst [vmem:[#allocation128_spill] sm:$0xff] %v7591_v43  ;;  %v3868_v43 = vld [vmem:[%s4378_s4 + $0x160] sm:$0xff]  ;;  %v3873_v35 = vld [vmem:[%s4378_s4 + $0x188] sm:$0xff] }
 0x274   : > { %10394 = vst [vmem:[#allocation65_spill] sm:$0xff] %v7597_v3  ;;  %v7629_v3 = vsel %vm1975_vm10, %v3867_v37, 0.0  ;;  %v7635_v19 = vsel %vm10401_vm9, %v3868_v43, 0.0  ;;  %vm2024_vm10 = vcmp.eq.s32.totalorder %v7089_v7, %v7151_v4  ;;  %v7649_v43 = vsel %vm1977_vm11, %v3869_v31, 0.0 }
 0x275   : > { %10397 = vst [vmem:[#allocation18_spill] sm:$0xff] %v7617_v5  ;;  %v7655_v37 = vsel %vm1978_vm12, %v3870_v51, 0.0  ;;  %vm2025_vm11 = vcmp.eq.s32.totalorder %v7089_v7, %v7153_v25  ;;  %vm2026_vm12 = vcmp.eq.s32.totalorder %v7089_v7, %v7155_v26  ;;  %v3875_v51 = vld [vmem:[%s4378_s4 + $0x198] sm:$0xff]  ;;  %vm10411_vm9 = vcmp.eq.s32.totalorder %v7074_v61, %v7153_v25 }
 0x276   : > { %10399 = vst [vmem:[#allocation26_spill] sm:$0xff] %v7623_v38  ;;  %v3872_v38 = vld [vmem:[%s4378_s4 + $0x180] sm:$0xff] }
 0x277   : > { %10400 = vst [vmem:[#allocation130_spill] sm:$0xff] %v7629_v3  ;;  %v7667_v5 = vsel %vm1980_vm15, %v3872_v38, 0.0  ;;  %v3874_v38 = vld [vmem:[%s4378_s4 + $0x190] sm:$0xff]  ;;  %vm10409_vm15 = vcmp.eq.s32.totalorder %v7074_v61, %v7151_v4 }
 0x278   : > { %10402 = vst [vmem:[#allocation88_spill] sm:$0xff] %v7635_v19  ;;  %v3871_v19 = vld [vmem:[%s4378_s4 + $0x178] sm:$0xff]  ;;  %v7687_v31 = vsel %vm1982_vm2, %v3874_v38, 0.0  ;;  %v3878_v38 = vld [vmem:[%s4378_s4 + $0x1b0] sm:$0xff]  ;;  %vm10422_vm2 = vcmp.eq.s32.totalorder %v7077_v1, %v7149_v2 }
 0x279   : > { %10403 = vst [vmem:[#allocation149_spill] sm:$0xff] %v7649_v43  ;;  %v7661_v3 = vsel %vm1979_vm13, %v3871_v19, 0.0  ;;  %v7681_v19 = vsel %vm1981_vm1, %v3873_v35, 0.0  ;;  %v3877_v35 = vld [vmem:[%s4378_s4 + $0x1a8] sm:$0xff]  ;;  %vm10415_vm13 = vcmp.eq.s32.totalorder %v7074_v61, %v7157_v27  ;;  %vm10418_vm1 = vcmp.eq.s32.totalorder %v7077_v1, %v7145_v40 }
 0x27a   : > { %10404 = vst [vmem:[#allocation132_spill] sm:$0xff] %v7655_v37  ;;  %v3876_v37 = vld [vmem:[%s4378_s4 + $0x1a0] sm:$0xff] }
 0x27b   : > { %10405 = vst [vmem:[#allocation73_spill] sm:$0xff] %v7661_v3  ;;  %v7693_v3 = vsel %vm1983_vm3, %v3875_v51, 0.0  ;;  %v7699_v43 = vsel %vm10409_vm15, %v3876_v37, 0.0  ;;  %v7713_v37 = vsel %vm10411_vm9, %v3877_v35, 0.0  ;;  %vm10413_vm15 = vcmp.eq.s32.totalorder %v7074_v61, %v7155_v26  ;;  %v3881_v61 = vld [vmem:[%s4378_s4 + $0x1c8] sm:$0xff] }
 0x27c   : > { %10406 = vst [vmem:[#allocation142_spill] sm:$0xff] %v7681_v19  ;;  %v7719_v51 = vsel %vm10413_vm15, %v3878_v38, 0.0  ;;  %vm10417_vm3 = vcmp.eq.s32.totalorder %v7077_v1, %v7062_v11  ;;  %v3883_v38 = vld [vmem:[%s4378_s4 + $0x1d8] sm:$0xff]  ;;  %vm10426_vm9 = vcmp.eq.s32.totalorder %v7077_v1, %v7153_v25  ;;  %vm10430_vm15 = vcmp.eq.s32.totalorder %v7077_v1, %v7157_v27 }
 0x27d   : > { %10407 = vst [vmem:[#allocation102_spill] sm:$0xff] %v7687_v31  ;;  %v3880_v31 = vld [vmem:[%s4378_s4 + $0x1c0] sm:$0xff] }
 0x27e   : > { %10408 = vst [vmem:[#allocation144_spill] sm:$0xff] %v7693_v3  ;;  %v7731_v19 = vsel %vm10417_vm3, %v3880_v31, 0.0  ;;  %v3882_v31 = vld [vmem:[%s4378_s4 + $0x1d0] sm:$0xff]  ;;  %vm10420_vm3 = vcmp.eq.s32.totalorder %v7077_v1, %v7147_v13 }
 0x27f   : > { %10410 = vst [vmem:[#allocation81_spill] sm:$0xff] %v7699_v43  ;;  %v3879_v43 = vld [vmem:[%s4378_s4 + $0x1b8] sm:$0xff]  ;;  %v7751_v35 = vsel %vm10420_vm3, %v3882_v31, 0.0  ;;  %v3886_v31 = vld [vmem:[%s4378_s4 + $0x1f0] sm:$0xff]  ;;  %vm10437_vm3 = vcmp.eq.s32.totalorder %v7080_v14, %v7149_v2 }
 0x280   : > { %10412 = vst [vmem:[#allocation34_spill] sm:$0xff] %v7713_v37  ;;  %v7725_v3 = vsel %vm10415_vm13, %v3879_v43, 0.0  ;;  %v7745_v43 = vsel %vm10418_vm1, %v3881_v61, 0.0  ;;  %vm10424_vm13 = vcmp.eq.s32.totalorder %v7077_v1, %v7151_v4  ;;  %v3885_v61 = vld [vmem:[%s4378_s4 + $0x1e8] sm:$0xff]  ;;  %vm10433_vm1 = vcmp.eq.s32.totalorder %v7080_v14, %v7145_v40 }
 0x281   : > { %10414 = vst [vmem:[#allocation19_spill] sm:$0xff] %v7719_v51  ;;  %v3884_v51 = vld [vmem:[%s4378_s4 + $0x1e0] sm:$0xff] }
 0x282   : > { %10416 = vst [vmem:[#allocation27_spill] sm:$0xff] %v7725_v3  ;;  %v7757_v3 = vsel %vm10422_vm2, %v3883_v38, 0.0  ;;  %v7763_v37 = vsel %vm10424_vm13, %v3884_v51, 0.0  ;;  %v7777_v51 = vsel %vm10426_vm9, %v3885_v61, 0.0  ;;  %vm10428_vm13 = vcmp.eq.s32.totalorder %v7077_v1, %v7155_v26  ;;  %v3889_v1 = vld [vmem:[%s4378_s4 + $0x208] sm:$0xff] }
 0x283   : > { %10419 = vst [vmem:[#allocation151_spill] sm:$0xff] %v7745_v43  ;;  %v7783_v38 = vsel %vm10428_vm13, %v3886_v31, 0.0  ;;  %vm10432_vm2 = vcmp.eq.s32.totalorder %v7080_v14, %v7062_v11  ;;  %v3891_v31 = vld [vmem:[%s4378_s4 + $0x218] sm:$0xff]  ;;  %vm10441_vm9 = vcmp.eq.s32.totalorder %v7080_v14, %v7153_v25  ;;  %vm10445_vm13 = vcmp.eq.s32.totalorder %v7080_v14, %v7157_v27 }
 0x284   : > { %10421 = vst [vmem:[#allocation146_spill] sm:$0xff] %v7751_v35  ;;  %v3888_v35 = vld [vmem:[%s4378_s4 + $0x200] sm:$0xff] }
 0x285   : > { %10423 = vst [vmem:[#allocation118_spill] sm:$0xff] %v7757_v3  ;;  %v7795_v43 = vsel %vm10432_vm2, %v3888_v35, 0.0  ;;  %v3890_v35 = vld [vmem:[%s4378_s4 + $0x210] sm:$0xff]  ;;  %vm10435_vm2 = vcmp.eq.s32.totalorder %v7080_v14, %v7147_v13 }
 0x286   : > { %10425 = vst [vmem:[#allocation148_spill] sm:$0xff] %v7763_v37  ;;  %v3887_v37 = vld [vmem:[%s4378_s4 + $0x1f8] sm:$0xff]  ;;  %v7815_v61 = vsel %vm10435_vm2, %v3890_v35, 0.0  ;;  %v3894_v35 = vld [vmem:[%s4378_s4 + $0x230] sm:$0xff]  ;;  %vm10451_vm2 = vcmp.eq.s32.totalorder %v7083_v8, %v7149_v2 }
 0x287   : > { %10427 = vst [vmem:[#allocation89_spill] sm:$0xff] %v7777_v51  ;;  %v7789_v3 = vsel %vm10430_vm15, %v3887_v37, 0.0  ;;  %v7809_v37 = vsel %vm10433_vm1, %v3889_v1, 0.0  ;;  %vm10439_vm15 = vcmp.eq.s32.totalorder %v7080_v14, %v7151_v4  ;;  %vm2045_vm1 = vcmp.eq.s32.totalorder %v7098_v41, %v7145_v40  ;;  %v3893_v1 = vld [vmem:[%s4378_s4 + $0x228] sm:$0xff] }
 0x288   : > { %10429 = vst [vmem:[#allocation42_spill] sm:$0xff] %v7783_v38  ;;  %v3892_v38 = vld [vmem:[%s4378_s4 + $0x220] sm:$0xff] }
 0x289   : > { %10431 = vst [vmem:[#allocation35_spill] sm:$0xff] %v7789_v3  ;;  %v7821_v3 = vsel %vm10437_vm3, %v3891_v31, 0.0  ;;  %v7827_v51 = vsel %vm10439_vm15, %v3892_v38, 0.0  ;;  %v7841_v38 = vsel %vm10441_vm9, %v3893_v1, 0.0  ;;  %vm10443_vm15 = vcmp.eq.s32.totalorder %v7080_v14, %v7155_v26  ;;  %v3897_v14 = vld [vmem:[%s4378_s4 + $0x248] sm:$0xff] }
 0x28a   : > { %10434 = vst [vmem:[#allocation153_spill] sm:$0xff] %v7809_v37  ;;  %v7847_v31 = vsel %vm10443_vm15, %v3894_v35, 0.0  ;;  %vm10447_vm3 = vcmp.eq.s32.totalorder %v7083_v8, %v7062_v11  ;;  %vm2049_vm9 = vcmp.eq.s32.totalorder %v7098_v41, %v7153_v25  ;;  %v3899_v35 = vld [vmem:[%s4378_s4 + $0x258] sm:$0xff]  ;;  %vm10458_vm15 = vcmp.eq.s32.totalorder %v7083_v8, %v7157_v27 }
 0x28b   : > { %10436 = vst [vmem:[#allocation104_spill] sm:$0xff] %v7815_v61  ;;  %v3896_v61 = vld [vmem:[%s4378_s4 + $0x240] sm:$0xff] }
 0x28c   : > { %10438 = vst [vmem:[#allocation50_spill] sm:$0xff] %v7821_v3  ;;  %v7859_v37 = vsel %vm10447_vm3, %v3896_v61, 0.0  ;;  %v3898_v61 = vld [vmem:[%s4378_s4 + $0x250] sm:$0xff]  ;;  %vm10449_vm3 = vcmp.eq.s32.totalorder %v7083_v8, %v7147_v13 }
 0x28d   : > { %10440 = vst [vmem:[#allocation43_spill] sm:$0xff] %v7827_v51  ;;  %v3895_v51 = vld [vmem:[%s4378_s4 + $0x238] sm:$0xff]  ;;  %v7879_v1 = vsel %vm10449_vm3, %v3898_v61, 0.0  ;;  %v3902_v61 = vld [vmem:[%s4378_s4 + $0x270] sm:$0xff]  ;;  %vm10465_vm3 = vcmp.eq.s32.totalorder %v7086_v10, %v7149_v2 }
 0x28e   : > { %10442 = vst [vmem:[#allocation134_spill] sm:$0xff] %v7841_v38  ;;  %v7853_v3 = vsel %vm10445_vm13, %v3895_v51, 0.0  ;;  %v7873_v51 = vsel %vm2005_vm4, %v3897_v14, 0.0  ;;  %vm10453_vm13 = vcmp.eq.s32.totalorder %v7083_v8, %v7151_v4  ;;  %v3901_v14 = vld [vmem:[%s4378_s4 + $0x268] sm:$0xff]  ;;  %vm10461_vm4 = vcmp.eq.s32.totalorder %v7086_v10, %v7145_v40 }
 0x28f   : > { %10444 = vst [vmem:[#allocation155_spill] sm:$0xff] %v7847_v31  ;;  %v3900_v31 = vld [vmem:[%s4378_s4 + $0x260] sm:$0xff] }
 0x290   : > { %10446 = vst [vmem:[#allocation120_spill] sm:$0xff] %v7853_v3  ;;  %v7885_v3 = vsel %vm10451_vm2, %v3899_v35, 0.0  ;;  %v7891_v38 = vsel %vm10453_vm13, %v3900_v31, 0.0  ;;  %v7905_v31 = vsel %vm2009_vm5, %v3901_v14, 0.0  ;;  %vm10456_vm13 = vcmp.eq.s32.totalorder %v7083_v8, %v7155_v26  ;;  %v3905_v8 = vld [vmem:[%s4378_s4 + $0x288] sm:$0xff] }
 0x291   : > { %10448 = vst [vmem:[#allocation58_spill] sm:$0xff] %v7873_v51  ;;  %v7911_v35 = vsel %vm10456_vm13, %v3902_v61, 0.0  ;;  %vm10460_vm2 = vcmp.eq.s32.totalorder %v7086_v10, %v7062_v11  ;;  %vm2057_vm5 = vcmp.eq.s32.totalorder %v7101_v36, %v7153_v25  ;;  %v3907_v61 = vld [vmem:[%s4378_s4 + $0x298] sm:$0xff]  ;;  %vm2067_vm13 = vcmp.eq.s32.totalorder %v7104_v34, %v7157_v27 }
 0x292   : > { %10450 = vst [vmem:[#allocation136_spill] sm:$0xff] %v7879_v1  ;;  %v3904_v1 = vld [vmem:[%s4378_s4 + $0x280] sm:$0xff] }
 0x293   : > { %10452 = vst [vmem:[#allocation51_spill] sm:$0xff] %v7885_v3  ;;  %v7923_v51 = vsel %vm10460_vm2, %v3904_v1, 0.0  ;;  %v3906_v1 = vld [vmem:[%s4378_s4 + $0x290] sm:$0xff]  ;;  %vm10463_vm2 = vcmp.eq.s32.totalorder %v7086_v10, %v7147_v13 }
 0x294   : > { %10454 = vst [vmem:[#allocation150_spill] sm:$0xff] %v7891_v38  ;;  %v3903_v38 = vld [vmem:[%s4378_s4 + $0x278] sm:$0xff]  ;;  %v7943_v14 = vsel %vm10463_vm2, %v3906_v1, 0.0  ;;  %vm2062_vm2 = vcmp.eq.s32.totalorder %v7104_v34, %v7147_v13  ;;  %v3910_v1 = vld [vmem:[%s4378_s4 + $0x2b0] sm:$0xff] }
 0x295   : > { %10455 = vst [vmem:[#allocation66_spill] sm:$0xff] %v7905_v31  ;;  %v7917_v3 = vsel %vm10458_vm15, %v3903_v38, 0.0  ;;  %v7937_v38 = vsel %vm10461_vm4, %v3905_v8, 0.0  ;;  %vm10467_vm15 = vcmp.eq.s32.totalorder %v7086_v10, %v7151_v4  ;;  %vm2061_vm4 = vcmp.eq.s32.totalorder %v7104_v34, %v7145_v40  ;;  %v3909_v8 = vld [vmem:[%s4378_s4 + $0x2a8] sm:$0xff] }
 0x296   : > { %10457 = vst [vmem:[#allocation157_spill] sm:$0xff] %v7911_v35  ;;  %v3908_v35 = vld [vmem:[%s4378_s4 + $0x2a0] sm:$0xff] }
 0x297   : > { %10459 = vst [vmem:[#allocation59_spill] sm:$0xff] %v7917_v3  ;;  %v7949_v3 = vsel %vm10465_vm3, %v3907_v61, 0.0  ;;  %v7955_v31 = vsel %vm10467_vm15, %v3908_v35, 0.0  ;;  %v7969_v35 = vsel %vm2017_vm8, %v3909_v8, 0.0  ;;  %v7975_v61 = vsel %vm2018_vm6, %v3910_v1, 0.0  ;;  %v3915_v1 = vld [vmem:[%s4378_s4 + $0x2d8] sm:$0xff] }
 0x298   : > { %10462 = vst [vmem:[#allocation158_spill] sm:$0xff] %v7937_v38  ;;  %vm10471_vm15 = vcmp.eq.s32.totalorder %v7086_v10, %v7157_v27  ;;  %vm10473_vm3 = vcmp.eq.s32.totalorder %v7089_v7, %v7062_v11  ;;  %vm2065_vm8 = vcmp.eq.s32.totalorder %v7104_v34, %v7153_v25  ;;  %vm2066_vm6 = vcmp.eq.s32.totalorder %v7104_v34, %v7155_v26  ;;  %v3913_v10 = vld [vmem:[%s4378_s4 + $0x2c8] sm:$0xff] }
 0x299   : > { %10464 = vst [vmem:[#allocation97_spill] sm:$0xff] %v7943_v14  ;;  %v3912_v14 = vld [vmem:[%s4378_s4 + $0x2c0] sm:$0xff] }
 0x29a   : > { %10466 = vst [vmem:[#allocation74_spill] sm:$0xff] %v7949_v3  ;;  %v7987_v38 = vsel %vm10473_vm3, %v3912_v14, 0.0  ;;  %v3914_v14 = vld [vmem:[%s4378_s4 + $0x2d0] sm:$0xff]  ;;  %vm10487_vm3 = vcmp.eq.s32.totalorder %v7092_v46, %v7149_v2 }
 0x29b   : > { %10468 = vst [vmem:[#allocation20_spill] sm:$0xff] %v7955_v31  ;;  %v3911_v31 = vld [vmem:[%s4378_s4 + $0x2b8] sm:$0xff]  ;;  %v8007_v8 = vsel %vm2022_vm0, %v3914_v14, 0.0  ;;  %v3918_v14 = vld [vmem:[%s4378_s4 + $0x2f0] sm:$0xff]  ;;  %vm10483_vm0 = vcmp.eq.s32.totalorder %v7092_v46, %v7145_v40 }
 0x29c   : > { %10469 = vst [vmem:[#allocation152_spill] sm:$0xff] %v7969_v35  ;;  %v7981_v3 = vsel %vm10471_vm15, %v3911_v31, 0.0  ;;  %vm2068_vm15 = vcmp.eq.s32.totalorder %v7107_v29, %v7062_v11  ;;  %v8001_v31 = vsel %vm2021_vm14, %v3913_v10, 0.0  ;;  %vm2069_vm14 = vcmp.eq.s32.totalorder %v7107_v29, %v7145_v40  ;;  %v3917_v10 = vld [vmem:[%s4378_s4 + $0x2e8] sm:$0xff] }
 0x29d   : > { %10470 = vst [vmem:[#allocation67_spill] sm:$0xff] %v7975_v61  ;;  %v3916_v61 = vld [vmem:[%s4378_s4 + $0x2e0] sm:$0xff] }
 0x29e   : > { %10472 = vst [vmem:[#allocation21_spill] sm:$0xff] %v7981_v3  ;;  %v8013_v3 = vsel %vm2023_vm7, %v3915_v1, 0.0  ;;  %v8019_v35 = vsel %vm2024_vm10, %v3916_v61, 0.0  ;;  %v8033_v61 = vsel %vm2025_vm11, %v3917_v10, 0.0  ;;  %v8039_v1 = vsel %vm2026_vm12, %v3918_v14, 0.0  ;;  %v3923_v14 = vld [vmem:[%s4378_s4 + $0x318] sm:$0xff] }
 0x29f   : > { %10474 = vst [vmem:[#allocation167_spill] sm:$0xff] %v8001_v31  ;;  %vm10480_vm10 = vcmp.eq.s32.totalorder %v7089_v7, %v7157_v27  ;;  %vm10482_vm7 = vcmp.eq.s32.totalorder %v7092_v46, %v7062_v11  ;;  %v3921_v7 = vld [vmem:[%s4378_s4 + $0x308] sm:$0xff]  ;;  %vm10491_vm11 = vcmp.eq.s32.totalorder %v7092_v46, %v7153_v25  ;;  %vm10495_vm12 = vcmp.eq.s32.totalorder %v7092_v46, %v7157_v27 }
 0x2a0   : > { %10475 = vst [vmem:[#allocation82_spill] sm:$0xff] %v8007_v8  ;;  %v3920_v8 = vld [vmem:[%s4378_s4 + $0x300] sm:$0xff] }
 0x2a1   : > { %10476 = vst [vmem:[#allocation159_spill] sm:$0xff] %v8013_v3  ;;  %v8051_v31 = vsel %vm10482_vm7, %v3920_v8, 0.0  ;;  %v3922_v8 = vld [vmem:[%s4378_s4 + $0x310] sm:$0xff]  ;;  %vm10485_vm7 = vcmp.eq.s32.totalorder %v7092_v46, %v7147_v13 }
 0x2a2   : > { %10477 = vst [vmem:[#allocation160_spill] sm:$0xff] %v8019_v35  ;;  %v3919_v35 = vld [vmem:[%s4378_s4 + $0x2f8] sm:$0xff]  ;;  %v8071_v10 = vsel %vm10485_vm7, %v3922_v8, 0.0  ;;  %v3926_v8 = vld [vmem:[%s4378_s4 + $0x330] sm:$0xff]  ;;  %vm10502_vm7 = vcmp.eq.s32.totalorder %v7095_v32, %v7149_v2 }
 0x2a3   : > { %10478 = vst [vmem:[#allocation90_spill] sm:$0xff] %v8033_v61  ;;  %v8045_v3 = vsel %vm10480_vm10, %v3919_v35, 0.0  ;;  %v8065_v35 = vsel %vm10483_vm0, %v3921_v7, 0.0  ;;  %vm10489_vm10 = vcmp.eq.s32.totalorder %v7092_v46, %v7151_v4  ;;  %v3925_v7 = vld [vmem:[%s4378_s4 + $0x328] sm:$0xff]  ;;  %vm10498_vm0 = vcmp.eq.s32.totalorder %v7095_v32, %v7145_v40 }
 0x2a4   : > { %10479 = vst [vmem:[#allocation75_spill] sm:$0xff] %v8039_v1  ;;  %v3924_v1 = vld [vmem:[%s4378_s4 + $0x320] sm:$0xff] }
 0x2a5   : > { %10481 = vst [vmem:[#allocation161_spill] sm:$0xff] %v8045_v3  ;;  %v8077_v3 = vsel %vm10487_vm3, %v3923_v14, 0.0  ;;  %v8083_v61 = vsel %vm10489_vm10, %v3924_v1, 0.0  ;;  %v8097_v1 = vsel %vm10491_vm11, %v3925_v7, 0.0  ;;  %vm10493_vm10 = vcmp.eq.s32.totalorder %v7092_v46, %v7155_v26  ;;  %v3929_v46 = vld [vmem:[%s4378_s4 + $0x348] sm:$0xff] }
 0x2a6   : > { %10484 = vst [vmem:[#allocation170_spill] sm:$0xff] %v8065_v35  ;;  %v8103_v14 = vsel %vm10493_vm10, %v3926_v8, 0.0  ;;  %vm10497_vm3 = vcmp.eq.s32.totalorder %v7095_v32, %v7062_v11  ;;  %v3931_v8 = vld [vmem:[%s4378_s4 + $0x358] sm:$0xff]  ;;  %vm10506_vm11 = vcmp.eq.s32.totalorder %v7095_v32, %v7153_v25  ;;  %vm10510_vm10 = vcmp.eq.s32.totalorder %v7095_v32, %v7157_v27 }
 0x2a7   : > { %10486 = vst [vmem:[#allocation36_spill] sm:$0xff] %v8071_v10  ;;  %v3928_v10 = vld [vmem:[%s4378_s4 + $0x340] sm:$0xff] }
 0x2a8   : > { %10488 = vst [vmem:[#allocation93_spill] sm:$0xff] %v8077_v3  ;;  %v8115_v35 = vsel %vm10497_vm3, %v3928_v10, 0.0  ;;  %v3930_v10 = vld [vmem:[%s4378_s4 + $0x350] sm:$0xff]  ;;  %vm10500_vm3 = vcmp.eq.s32.totalorder %v7095_v32, %v7147_v13 }
 0x2a9   : > { %10490 = vst [vmem:[#allocation106_spill] sm:$0xff] %v8083_v61  ;;  %v3927_v61 = vld [vmem:[%s4378_s4 + $0x338] sm:$0xff]  ;;  %v8135_v7 = vsel %vm10500_vm3, %v3930_v10, 0.0  ;;  %v3934_v10 = vld [vmem:[%s4378_s4 + $0x370] sm:$0xff]  ;;  %vm10516_vm3 = vcmp.eq.s32.totalorder %v7098_v41, %v7149_v2 }
 0x2aa   : > { %10492 = vst [vmem:[#allocation83_spill] sm:$0xff] %v8097_v1  ;;  %v8109_v3 = vsel %vm10495_vm12, %v3927_v61, 0.0  ;;  %v8129_v61 = vsel %vm10498_vm0, %v3929_v46, 0.0  ;;  %vm10504_vm12 = vcmp.eq.s32.totalorder %v7095_v32, %v7151_v4  ;;  %vm2085_vm0 = vcmp.eq.s32.totalorder %v7125_v6, %v7145_v40  ;;  %v3933_v46 = vld [vmem:[%s4378_s4 + $0x368] sm:$0xff] }
 0x2ab   : > { %10494 = vst [vmem:[#allocation162_spill] sm:$0xff] %v8103_v14  ;;  %v3932_v14 = vld [vmem:[%s4378_s4 + $0x360] sm:$0xff] }
 0x2ac   : > { %10496 = vst [vmem:[#allocation163_spill] sm:$0xff] %v8109_v3  ;;  %v8141_v3 = vsel %vm10502_vm7, %v3931_v8, 0.0  ;;  %v8147_v1 = vsel %vm10504_vm12, %v3932_v14, 0.0  ;;  %v8161_v14 = vsel %vm10506_vm11, %v3933_v46, 0.0  ;;  %vm10508_vm12 = vcmp.eq.s32.totalorder %v7095_v32, %v7155_v26  ;;  %v3937_v32 = vld [vmem:[%s4378_s4 + $0x388] sm:$0xff] }
 0x2ad   : > { %10499 = vst [vmem:[#allocation107_spill] sm:$0xff] %v8129_v61  ;;  %v8167_v8 = vsel %vm10508_vm12, %v3934_v10, 0.0  ;;  %vm10512_vm7 = vcmp.eq.s32.totalorder %v7098_v41, %v7062_v11  ;;  %vm2089_vm11 = vcmp.eq.s32.totalorder %v7125_v6, %v7153_v25  ;;  %v3939_v10 = vld [vmem:[%s4378_s4 + $0x398] sm:$0xff]  ;;  %vm10523_vm12 = vcmp.eq.s32.totalorder %v7098_v41, %v7157_v27 }
 0x2ae   : > { %10501 = vst [vmem:[#allocation122_spill] sm:$0xff] %v8135_v7  ;;  %v3936_v7 = vld [vmem:[%s4378_s4 + $0x380] sm:$0xff] }
 0x2af   : > { %10503 = vst [vmem:[#allocation92_spill] sm:$0xff] %v8141_v3  ;;  %v8179_v61 = vsel %vm10512_vm7, %v3936_v7, 0.0  ;;  %v3938_v7 = vld [vmem:[%s4378_s4 + $0x390] sm:$0xff]  ;;  %vm10514_vm7 = vcmp.eq.s32.totalorder %v7098_v41, %v7147_v13 }
 0x2b0   : > { %10505 = vst [vmem:[#allocation164_spill] sm:$0xff] %v8147_v1  ;;  %v3935_v1 = vld [vmem:[%s4378_s4 + $0x378] sm:$0xff]  ;;  %v8199_v46 = vsel %vm10514_vm7, %v3938_v7, 0.0  ;;  %v3942_v7 = vld [vmem:[%s4378_s4 + $0x3b0] sm:$0xff]  ;;  %vm10530_vm7 = vcmp.eq.s32.totalorder %v7101_v36, %v7149_v2 }
 0x2b1   : > { %10507 = vst [vmem:[#allocation188_spill] sm:$0xff] %v8161_v14  ;;  %v8173_v3 = vsel %vm10510_vm10, %v3935_v1, 0.0  ;;  %v8193_v1 = vsel %vm2045_vm1, %v3937_v32, 0.0  ;;  %vm10518_vm10 = vcmp.eq.s32.totalorder %v7098_v41, %v7151_v4  ;;  %v3941_v32 = vld [vmem:[%s4378_s4 + $0x3a8] sm:$0xff]  ;;  %vm10526_vm1 = vcmp.eq.s32.totalorder %v7101_v36, %v7145_v40 }
 0x2b2   : > { %10509 = vst [vmem:[#allocation16_spill] sm:$0xff] %v8167_v8  ;;  %v3940_v8 = vld [vmem:[%s4378_s4 + $0x3a0] sm:$0xff] }
 0x2b3   : > { %10511 = vst [vmem:[#allocation22_spill] sm:$0xff] %v8173_v3  ;;  %v8205_v3 = vsel %vm10516_vm3, %v3939_v10, 0.0  ;;  %v8211_v14 = vsel %vm10518_vm10, %v3940_v8, 0.0  ;;  %v8225_v8 = vsel %vm2049_vm9, %v3941_v32, 0.0  ;;  %vm10521_vm10 = vcmp.eq.s32.totalorder %v7098_v41, %v7155_v26  ;;  %v3945_v41 = vld [vmem:[%s4378_s4 + $0x3c8] sm:$0xff] }
 0x2b4   : > { %10513 = vst [vmem:[#allocation138_spill] sm:$0xff] %v8193_v1  ;;  %v8231_v10 = vsel %vm10521_vm10, %v3942_v7, 0.0  ;;  %vm10525_vm3 = vcmp.eq.s32.totalorder %v7101_v36, %v7062_v11  ;;  %vm2097_vm9 = vcmp.eq.s32.totalorder %v7128_v45, %v7153_v25  ;;  %v3947_v7 = vld [vmem:[%s4378_s4 + $0x3d8] sm:$0xff]  ;;  %vm10537_vm10 = vcmp.eq.s32.totalorder %v7101_v36, %v7157_v27 }
 0x2b5   : > { %10515 = vst [vmem:[#allocation108_spill] sm:$0xff] %v8199_v46  ;;  %v3944_v46 = vld [vmem:[%s4378_s4 + $0x3c0] sm:$0xff] }
 0x2b6   : > { %10517 = vst [vmem:[#allocation165_spill] sm:$0xff] %v8205_v3  ;;  %v8243_v1 = vsel %vm10525_vm3, %v3944_v46, 0.0  ;;  %v3946_v46 = vld [vmem:[%s4378_s4 + $0x3d0] sm:$0xff]  ;;  %vm10528_vm3 = vcmp.eq.s32.totalorder %v7101_v36, %v7147_v13 }
 0x2b7   : > { %10519 = vst [vmem:[#allocation166_spill] sm:$0xff] %v8211_v14  ;;  %v3943_v14 = vld [vmem:[%s4378_s4 + $0x3b8] sm:$0xff]  ;;  %v8263_v32 = vsel %vm10528_vm3, %v3946_v46, 0.0  ;;  %v3950_v46 = vld [vmem:[%s4378_s4 + $0x3f0] sm:$0xff]  ;;  %vm2111_vm3 = vcmp.eq.s32.totalorder %v7134_v49, %v7149_v2 }
 0x2b8   : > { %10520 = vst [vmem:[#allocation154_spill] sm:$0xff] %v8225_v8  ;;  %v8237_v3 = vsel %vm10523_vm12, %v3943_v14, 0.0  ;;  %v8257_v14 = vsel %vm10526_vm1, %v3945_v41, 0.0  ;;  %vm10532_vm12 = vcmp.eq.s32.totalorder %v7101_v36, %v7151_v4  ;;  %vm2101_vm1 = vcmp.eq.s32.totalorder %v7131_v47, %v7145_v40  ;;  %v3949_v41 = vld [vmem:[%s4378_s4 + $0x3e8] sm:$0xff] }
 0x2b9   : > { %10522 = vst [vmem:[#allocation124_spill] sm:$0xff] %v8231_v10  ;;  %v3948_v10 = vld [vmem:[%s4378_s4 + $0x3e0] sm:$0xff] }
 0x2ba   : > { %10524 = vst [vmem:[#allocation168_spill] sm:$0xff] %v8237_v3  ;;  %v8269_v3 = vsel %vm10530_vm7, %v3947_v7, 0.0  ;;  %v8275_v8 = vsel %vm10532_vm12, %v3948_v10, 0.0  ;;  %v8289_v10 = vsel %vm2057_vm5, %v3949_v41, 0.0  ;;  %vm10535_vm12 = vcmp.eq.s32.totalorder %v7101_v36, %v7155_v26  ;;  %v3953_v36 = vld [vmem:[%s4378_s4 + $0x408] sm:$0xff] }
 0x2bb   : > { %10527 = vst [vmem:[#allocation61_spill] sm:$0xff] %v8257_v14  ;;  %v8295_v7 = vsel %vm10535_vm12, %v3950_v46, 0.0  ;;  %vm10539_vm7 = vcmp.eq.s32.totalorder %v7104_v34, %v7062_v11  ;;  %vm2105_vm5 = vcmp.eq.s32.totalorder %v7131_v47, %v7153_v25  ;;  %vm2106_vm12 = vcmp.eq.s32.totalorder %v7131_v47, %v7155_v26  ;;  %v3955_v46 = vld [vmem:[%s4378_s4 + $0x418] sm:$0xff] }
 0x2bc   : > { %10529 = vst [vmem:[#allocation23_spill] sm:$0xff] %v8263_v32  ;;  %v3952_v32 = vld [vmem:[%s4378_s4 + $0x400] sm:$0xff] }
 0x2bd   : > { %10531 = vst [vmem:[#allocation62_spill] sm:$0xff] %v8269_v3  ;;  %v8307_v14 = vsel %vm10539_vm7, %v3952_v32, 0.0  ;;  %v3954_v32 = vld [vmem:[%s4378_s4 + $0x410] sm:$0xff]  ;;  %vm10542_vm7 = vcmp.eq.s32.totalorder %v7104_v34, %v7149_v2 }
 0x2be   : > { %10533 = vst [vmem:[#allocation39_spill] sm:$0xff] %v8275_v8  ;;  %v3951_v8 = vld [vmem:[%s4378_s4 + $0x3f8] sm:$0xff]  ;;  %v8327_v41 = vsel %vm2062_vm2, %v3954_v32, 0.0  ;;  %vm2110_vm2 = vcmp.eq.s32.totalorder %v7134_v49, %v7147_v13  ;;  %v3958_v32 = vld [vmem:[%s4378_s4 + $0x430] sm:$0xff] }
 0x2bf   : > { %10534 = vst [vmem:[#allocation173_spill] sm:$0xff] %v8289_v10  ;;  %v8301_v3 = vsel %vm10537_vm10, %v3951_v8, 0.0  ;;  %v8321_v8 = vsel %vm2061_vm4, %v3953_v36, 0.0  ;;  %vm10544_vm10 = vcmp.eq.s32.totalorder %v7104_v34, %v7151_v4  ;;  %vm2109_vm4 = vcmp.eq.s32.totalorder %v7134_v49, %v7145_v40  ;;  %v3957_v36 = vld [vmem:[%s4378_s4 + $0x428] sm:$0xff] }
 0x2c0   : > { %10536 = vst [vmem:[#allocation140_spill] sm:$0xff] %v8295_v7  ;;  %v3956_v7 = vld [vmem:[%s4378_s4 + $0x420] sm:$0xff]  ;;  %v3961_v34 = vld [vmem:[%s4378_s4 + $0x448] sm:$0xff] }
 0x2c1   : > { %10538 = vst [vmem:[#allocation169_spill] sm:$0xff] %v8301_v3  ;;  %v8333_v3 = vsel %vm10542_vm7, %v3955_v46, 0.0  ;;  %v8339_v10 = vsel %vm10544_vm10, %v3956_v7, 0.0  ;;  %vm2112_vm7 = vcmp.eq.s32.totalorder %v7134_v49, %v7151_v4  ;;  %v8353_v7 = vsel %vm2065_vm8, %v3957_v36, 0.0 }
 0x2c2   : > { %10540 = vst [vmem:[#allocation171_spill] sm:$0xff] %v8321_v8  ;;  %v8359_v46 = vsel %vm2066_vm6, %v3958_v32, 0.0  ;;  %v3963_v32 = vld [vmem:[%s4378_s4 + $0x458] sm:$0xff]  ;;  %vm10552_vm10 = vcmp.eq.s32.totalorder %v7107_v29, %v7149_v2  ;;  %vm10556_vm8 = vcmp.eq.s32.totalorder %v7107_v29, %v7153_v25  ;;  %vm10560_vm6 = vcmp.eq.s32.totalorder %v7107_v29, %v7157_v27 }
 0x2c3   : > { %10541 = vst [vmem:[#allocation95_spill] sm:$0xff] %v8327_v41  ;;  %v3960_v41 = vld [vmem:[%s4378_s4 + $0x440] sm:$0xff] }
 0x2c4   : > { %10543 = vst [vmem:[#allocation156_spill] sm:$0xff] %v8333_v3  ;;  %v8371_v8 = vsel %vm2068_vm15, %v3960_v41, 0.0  ;;  %v3962_v41 = vld [vmem:[%s4378_s4 + $0x450] sm:$0xff]  ;;  %vm10550_vm15 = vcmp.eq.s32.totalorder %v7107_v29, %v7147_v13 }
 0x2c5   : > { %10545 = vst [vmem:[#allocation172_spill] sm:$0xff] %v8339_v10  ;;  %v3959_v10 = vld [vmem:[%s4378_s4 + $0x438] sm:$0xff]  ;;  %v8391_v36 = vsel %vm10550_vm15, %v3962_v41, 0.0  ;;  %v3966_v41 = vld [vmem:[%s4378_s4 + $0x470] sm:$0xff]  ;;  %vm10567_vm15 = vcmp.eq.s32.totalorder %v7122_v20, %v7149_v2 }
 0x2c6   : > { %10546 = vst [vmem:[#allocation44_spill] sm:$0xff] %v8353_v7  ;;  %v8365_v3 = vsel %vm2067_vm13, %v3959_v10, 0.0  ;;  %v8385_v10 = vsel %vm2069_vm14, %v3961_v34, 0.0  ;;  %vm10554_vm13 = vcmp.eq.s32.totalorder %v7107_v29, %v7151_v4  ;;  %v3965_v34 = vld [vmem:[%s4378_s4 + $0x468] sm:$0xff]  ;;  %vm10563_vm14 = vcmp.eq.s32.totalorder %v7122_v20, %v7145_v40 }
 0x2c7   : > { %10547 = vst [vmem:[#allocation123_spill] sm:$0xff] %v8359_v46  ;;  %v3964_v46 = vld [vmem:[%s4378_s4 + $0x460] sm:$0xff] }
 0x2c8   : > { %10548 = vst [vmem:[#allocation53_spill] sm:$0xff] %v8365_v3  ;;  %v8397_v3 = vsel %vm10552_vm10, %v3963_v32, 0.0  ;;  %v8403_v7 = vsel %vm10554_vm13, %v3964_v46, 0.0  ;;  %v8417_v46 = vsel %vm10556_vm8, %v3965_v34, 0.0  ;;  %vm10558_vm13 = vcmp.eq.s32.totalorder %v7107_v29, %v7155_v26  ;;  %v3969_v29 = vld [vmem:[%s4378_s4 + $0x488] sm:$0xff] }
 0x2c9   : > { %10549 = vst [vmem:[#allocation176_spill] sm:$0xff] %v8385_v10  ;;  %v8423_v32 = vsel %vm10558_vm13, %v3966_v41, 0.0  ;;  %vm10562_vm10 = vcmp.eq.s32.totalorder %v7122_v20, %v7062_v11  ;;  %v3971_v41 = vld [vmem:[%s4378_s4 + $0x498] sm:$0xff]  ;;  %vm10571_vm8 = vcmp.eq.s32.totalorder %v7122_v20, %v7153_v25  ;;  %vm10575_vm13 = vcmp.eq.s32.totalorder %v7122_v20, %v7157_v27 }
 0x2ca   : > { %10551 = vst [vmem:[#allocation174_spill] sm:$0xff] %v8391_v36  ;;  %v3968_v36 = vld [vmem:[%s4378_s4 + $0x480] sm:$0xff] }
 0x2cb   : > { %10553 = vst [vmem:[#allocation28_spill] sm:$0xff] %v8397_v3  ;;  %v8435_v10 = vsel %vm10562_vm10, %v3968_v36, 0.0  ;;  %v3970_v36 = vld [vmem:[%s4378_s4 + $0x490] sm:$0xff]  ;;  %vm10565_vm10 = vcmp.eq.s32.totalorder %v7122_v20, %v7147_v13 }
 0x2cc   : > { %10555 = vst [vmem:[#allocation175_spill] sm:$0xff] %v8403_v7  ;;  %v3967_v7 = vld [vmem:[%s4378_s4 + $0x478] sm:$0xff]  ;;  %v8455_v34 = vsel %vm10565_vm10, %v3970_v36, 0.0  ;;  %v3974_v36 = vld [vmem:[%s4378_s4 + $0x4b0] sm:$0xff]  ;;  %vm10581_vm10 = vcmp.eq.s32.totalorder %v7125_v6, %v7149_v2 }
 0x2cd   : > { %10557 = vst [vmem:[#allocation48_spill] sm:$0xff] %v8417_v46  ;;  %v8429_v3 = vsel %vm10560_vm6, %v3967_v7, 0.0  ;;  %v8449_v7 = vsel %vm10563_vm14, %v3969_v29, 0.0  ;;  %vm10569_vm6 = vcmp.eq.s32.totalorder %v7122_v20, %v7151_v4  ;;  %vm2125_vm14 = vcmp.eq.s32.totalorder %v7140_v52, %v7145_v40  ;;  %v3973_v29 = vld [vmem:[%s4378_s4 + $0x4a8] sm:$0xff] }
 0x2ce   : > { %10559 = vst [vmem:[#allocation193_spill] sm:$0xff] %v8423_v32  ;;  %v3972_v32 = vld [vmem:[%s4378_s4 + $0x4a0] sm:$0xff] }
 0x2cf   : > { %10561 = vst [vmem:[#allocation177_spill] sm:$0xff] %v8429_v3  ;;  %v8461_v3 = vsel %vm10567_vm15, %v3971_v41, 0.0  ;;  %v8467_v46 = vsel %vm10569_vm6, %v3972_v32, 0.0  ;;  %v8481_v32 = vsel %vm10571_vm8, %v3973_v29, 0.0  ;;  %vm10573_vm6 = vcmp.eq.s32.totalorder %v7122_v20, %v7155_v26  ;;  %v3977_v20 = vld [vmem:[%s4378_s4 + $0x4c8] sm:$0xff] }
 0x2d0   : > { %10564 = vst [vmem:[#allocation77_spill] sm:$0xff] %v8449_v7  ;;  %v8487_v41 = vsel %vm10573_vm6, %v3974_v36, 0.0  ;;  %vm10577_vm15 = vcmp.eq.s32.totalorder %v7125_v6, %v7062_v11  ;;  %vm2129_vm8 = vcmp.eq.s32.totalorder %v7140_v52, %v7153_v25  ;;  %v3979_v36 = vld [vmem:[%s4378_s4 + $0x4d8] sm:$0xff]  ;;  %vm10588_vm6 = vcmp.eq.s32.totalorder %v7125_v6, %v7157_v27 }
 0x2d1   : > { %10566 = vst [vmem:[#allocation54_spill] sm:$0xff] %v8455_v34  ;;  %v3976_v34 = vld [vmem:[%s4378_s4 + $0x4c0] sm:$0xff] }
 0x2d2   : > { %10568 = vst [vmem:[#allocation33_spill] sm:$0xff] %v8461_v3  ;;  %v8499_v7 = vsel %vm10577_vm15, %v3976_v34, 0.0  ;;  %v3978_v34 = vld [vmem:[%s4378_s4 + $0x4d0] sm:$0xff]  ;;  %vm10579_vm15 = vcmp.eq.s32.totalorder %v7125_v6, %v7147_v13 }
 0x2d3   : > { %10570 = vst [vmem:[#allocation121_spill] sm:$0xff] %v8467_v46  ;;  %v3975_v46 = vld [vmem:[%s4378_s4 + $0x4b8] sm:$0xff]  ;;  %v8519_v29 = vsel %vm10579_vm15, %v3978_v34, 0.0  ;;  %v3982_v34 = vld [vmem:[%s4378_s4 + $0x4f0] sm:$0xff]  ;;  %vm10595_vm15 = vcmp.eq.s32.totalorder %v7128_v45, %v7149_v2 }
 0x2d4   : > { %10572 = vst [vmem:[#allocation103_spill] sm:$0xff] %v8481_v32  ;;  %v8493_v3 = vsel %vm10575_vm13, %v3975_v46, 0.0  ;;  %v8513_v46 = vsel %vm2085_vm0, %v3977_v20, 0.0  ;;  %vm10583_vm13 = vcmp.eq.s32.totalorder %v7125_v6, %v7151_v4  ;;  %v3981_v20 = vld [vmem:[%s4378_s4 + $0x4e8] sm:$0xff]  ;;  %vm10591_vm0 = vcmp.eq.s32.totalorder %v7128_v45, %v7145_v40 }
 0x2d5   : > { %10574 = vst [vmem:[#allocation178_spill] sm:$0xff] %v8487_v41  ;;  %v3980_v41 = vld [vmem:[%s4378_s4 + $0x4e0] sm:$0xff] }
 0x2d6   : > { %10576 = vst [vmem:[#allocation127_spill] sm:$0xff] %v8493_v3  ;;  %v8525_v3 = vsel %vm10581_vm10, %v3979_v36, 0.0  ;;  %v8531_v32 = vsel %vm10583_vm13, %v3980_v41, 0.0  ;;  %v8545_v41 = vsel %vm2089_vm11, %v3981_v20, 0.0  ;;  %vm10586_vm13 = vcmp.eq.s32.totalorder %v7125_v6, %v7155_v26  ;;  %v3985_v6 = vld [vmem:[%s4378_s4 + $0x508] sm:$0xff] }
 0x2d7   : > { %10578 = vst [vmem:[#allocation111_spill] sm:$0xff] %v8513_v46  ;;  %v8551_v36 = vsel %vm10586_vm13, %v3982_v34, 0.0  ;;  %vm10590_vm10 = vcmp.eq.s32.totalorder %v7128_v45, %v7062_v11  ;;  %vm2137_vm11 = vcmp.eq.s32.totalorder %v7143_v24, %v7153_v25  ;;  %v3987_v34 = vld [vmem:[%s4378_s4 + $0x518] sm:$0xff]  ;;  %vm10602_vm13 = vcmp.eq.s32.totalorder %v7128_v45, %v7157_v27 }
 0x2d8   : > { %10580 = vst [vmem:[#allocation179_spill] sm:$0xff] %v8519_v29  ;;  %v3984_v29 = vld [vmem:[%s4378_s4 + $0x500] sm:$0xff] }
 0x2d9   : > { %10582 = vst [vmem:[#allocation56_spill] sm:$0xff] %v8525_v3  ;;  %v8563_v46 = vsel %vm10590_vm10, %v3984_v29, 0.0  ;;  %v3986_v29 = vld [vmem:[%s4378_s4 + $0x510] sm:$0xff]  ;;  %vm10593_vm10 = vcmp.eq.s32.totalorder %v7128_v45, %v7147_v13 }
 0x2da   : > { %10584 = vst [vmem:[#allocation47_spill] sm:$0xff] %v8531_v32  ;;  %v3983_v32 = vld [vmem:[%s4378_s4 + $0x4f8] sm:$0xff]  ;;  %v8583_v20 = vsel %vm10593_vm10, %v3986_v29, 0.0  ;;  %v3990_v29 = vld [vmem:[%s4378_s4 + $0x530] sm:$0xff]  ;;  %vm10608_vm10 = vcmp.eq.s32.totalorder %v7131_v47, %v7149_v2 }
 0x2db   : > { %10585 = vst [vmem:[#allocation180_spill] sm:$0xff] %v8545_v41  ;;  %v8557_v3 = vsel %vm10588_vm6, %v3983_v32, 0.0  ;;  %v8577_v32 = vsel %vm10591_vm0, %v3985_v6, 0.0  ;;  %vm10597_vm6 = vcmp.eq.s32.totalorder %v7128_v45, %v7151_v4  ;;  %vm2141_vm0 = vcmp.eq.s32.totalorder %v7160_v0, %v7145_v40  ;;  %v3989_v6 = vld [vmem:[%s4378_s4 + $0x528] sm:$0xff] }
 0x2dc   : > { %10587 = vst [vmem:[#allocation85_spill] sm:$0xff] %v8551_v36  ;;  %v3988_v36 = vld [vmem:[%s4378_s4 + $0x520] sm:$0xff] }
 0x2dd   : > { %10589 = vst [vmem:[#allocation68_spill] sm:$0xff] %v8557_v3  ;;  %v8589_v3 = vsel %vm10595_vm15, %v3987_v34, 0.0  ;;  %v8595_v41 = vsel %vm10597_vm6, %v3988_v36, 0.0  ;;  %v8609_v36 = vsel %vm2097_vm9, %v3989_v6, 0.0  ;;  %vm10600_vm6 = vcmp.eq.s32.totalorder %v7128_v45, %v7155_v26  ;;  %v3993_v45 = vld [vmem:[%s4378_s4 + $0x548] sm:$0xff] }
 0x2de   : > { %10592 = vst [vmem:[#allocation181_spill] sm:$0xff] %v8577_v32  ;;  %v8615_v34 = vsel %vm10600_vm6, %v3990_v29, 0.0  ;;  %vm10604_vm15 = vcmp.eq.s32.totalorder %v7131_v47, %v7062_v11  ;;  %vm2145_vm9 = vcmp.eq.s32.totalorder %v7160_v0, %v7153_v25  ;;  %v3995_v29 = vld [vmem:[%s4378_s4 + $0x558] sm:$0xff]  ;;  %vm2155_vm6 = vcmp.eq.s32.totalorder %v7163_v39, %v7157_v27 }
 0x2df   : > { %10594 = vst [vmem:[#allocation70_spill] sm:$0xff] %v8583_v20  ;;  %v3992_v20 = vld [vmem:[%s4378_s4 + $0x540] sm:$0xff] }
 0x2e0   : > { %10596 = vst [vmem:[#allocation182_spill] sm:$0xff] %v8589_v3  ;;  %v8627_v32 = vsel %vm10604_vm15, %v3992_v20, 0.0  ;;  %v3994_v20 = vld [vmem:[%s4378_s4 + $0x550] sm:$0xff]  ;;  %vm10606_vm15 = vcmp.eq.s32.totalorder %v7131_v47, %v7147_v13 }
 0x2e1   : > { %10598 = vst [vmem:[#allocation117_spill] sm:$0xff] %v8595_v41  ;;  %v3991_v41 = vld [vmem:[%s4378_s4 + $0x538] sm:$0xff]  ;;  %v8647_v6 = vsel %vm10606_vm15, %v3994_v20, 0.0  ;;  %vm2150_vm15 = vcmp.eq.s32.totalorder %v7163_v39, %v7147_v13  ;;  %v3998_v20 = vld [vmem:[%s4378_s4 + $0x570] sm:$0xff] }
 0x2e2   : > { %10599 = vst [vmem:[#allocation91_spill] sm:$0xff] %v8609_v36  ;;  %v8621_v3 = vsel %vm10602_vm13, %v3991_v41, 0.0  ;;  %v8641_v41 = vsel %vm2101_vm1, %v3993_v45, 0.0  ;;  %vm10610_vm13 = vcmp.eq.s32.totalorder %v7131_v47, %v7151_v4  ;;  %vm2149_vm1 = vcmp.eq.s32.totalorder %v7163_v39, %v7145_v40  ;;  %v3997_v45 = vld [vmem:[%s4378_s4 + $0x568] sm:$0xff] }
 0x2e3   : > { %10601 = vst [vmem:[#allocation32_spill] sm:$0xff] %v8615_v34  ;;  %v3996_v34 = vld [vmem:[%s4378_s4 + $0x560] sm:$0xff] }
 0x2e4   : > { %10603 = vst [vmem:[#allocation183_spill] sm:$0xff] %v8621_v3  ;;  %v8653_v3 = vsel %vm10608_vm10, %v3995_v29, 0.0  ;;  %v8659_v36 = vsel %vm10610_vm13, %v3996_v34, 0.0  ;;  %v8673_v34 = vsel %vm2105_vm5, %v3997_v45, 0.0  ;;  %v8679_v29 = vsel %vm2106_vm12, %v3998_v20, 0.0  ;;  %v4003_v20 = vld [vmem:[%s4378_s4 + $0x598] sm:$0xff] }
 0x2e5   : > { %10605 = vst [vmem:[#allocation71_spill] sm:$0xff] %v8641_v41  ;;  %vm10614_vm13 = vcmp.eq.s32.totalorder %v7131_v47, %v7157_v27  ;;  %vm10616_vm10 = vcmp.eq.s32.totalorder %v7134_v49, %v7062_v11  ;;  %vm2153_vm5 = vcmp.eq.s32.totalorder %v7163_v39, %v7153_v25  ;;  %vm2154_vm12 = vcmp.eq.s32.totalorder %v7163_v39, %v7155_v26  ;;  %v4001_v47 = vld [vmem:[%s4378_s4 + $0x588] sm:$0xff] }
 0x2e6   : > { %10607 = vst [vmem:[#allocation184_spill] sm:$0xff] %v8647_v6  ;;  %v4000_v6 = vld [vmem:[%s4378_s4 + $0x580] sm:$0xff] }
 0x2e7   : > { %10609 = vst [vmem:[#allocation78_spill] sm:$0xff] %v8653_v3  ;;  %v8691_v41 = vsel %vm10616_vm10, %v4000_v6, 0.0  ;;  %v4002_v6 = vld [vmem:[%s4378_s4 + $0x590] sm:$0xff]  ;;  %vm10625_vm10 = vcmp.eq.s32.totalorder %v7134_v49, %v7157_v27 }
 0x2e8   : > { %10611 = vst [vmem:[#allocation185_spill] sm:$0xff] %v8659_v36  ;;  %v3999_v36 = vld [vmem:[%s4378_s4 + $0x578] sm:$0xff]  ;;  %v8711_v45 = vsel %vm2110_vm2, %v4002_v6, 0.0  ;;  %v4006_v6 = vld [vmem:[%s4378_s4 + $0x5b0] sm:$0xff]  ;;  %vm10632_vm2 = vcmp.eq.s32.totalorder %v7137_v60, %v7149_v2 }
 0x2e9   : > { %10612 = vst [vmem:[#allocation69_spill] sm:$0xff] %v8673_v34  ;;  %v8685_v3 = vsel %vm10614_vm13, %v3999_v36, 0.0  ;;  %v8705_v36 = vsel %vm2109_vm4, %v4001_v47, 0.0  ;;  %v4005_v47 = vld [vmem:[%s4378_s4 + $0x5a8] sm:$0xff]  ;;  %vm10621_vm13 = vcmp.eq.s32.totalorder %v7134_v49, %v7153_v25  ;;  %vm10628_vm4 = vcmp.eq.s32.totalorder %v7137_v60, %v7145_v40 }
 0x2ea   : > { %10613 = vst [vmem:[#allocation187_spill] sm:$0xff] %v8679_v29  ;;  %v4004_v29 = vld [vmem:[%s4378_s4 + $0x5a0] sm:$0xff] }
 0x2eb   : > { %10615 = vst [vmem:[#allocation25_spill] sm:$0xff] %v8685_v3  ;;  %v8717_v3 = vsel %vm2111_vm3, %v4003_v20, 0.0  ;;  %v8723_v34 = vsel %vm2112_vm7, %v4004_v29, 0.0  ;;  %v8737_v29 = vsel %vm10621_vm13, %v4005_v47, 0.0  ;;  %vm10623_vm7 = vcmp.eq.s32.totalorder %v7134_v49, %v7155_v26  ;;  %v4009_v49 = vld [vmem:[%s4378_s4 + $0x5c8] sm:$0xff] }
 0x2ec   : > { %10617 = vst [vmem:[#allocation189_spill] sm:$0xff] %v8705_v36  ;;  %v8743_v20 = vsel %vm10623_vm7, %v4006_v6, 0.0  ;;  %vm10627_vm3 = vcmp.eq.s32.totalorder %v7137_v60, %v7062_v11  ;;  %v4011_v6 = vld [vmem:[%s4378_s4 + $0x5d8] sm:$0xff]  ;;  %vm10636_vm13 = vcmp.eq.s32.totalorder %v7137_v60, %v7153_v25  ;;  %vm10640_vm7 = vcmp.eq.s32.totalorder %v7137_v60, %v7157_v27 }
 0x2ed   : > { %10618 = vst [vmem:[#allocation79_spill] sm:$0xff] %v8711_v45  ;;  %v4008_v45 = vld [vmem:[%s4378_s4 + $0x5c0] sm:$0xff] }
 0x2ee   : > { %10619 = vst [vmem:[#allocation190_spill] sm:$0xff] %v8717_v3  ;;  %v8755_v36 = vsel %vm10627_vm3, %v4008_v45, 0.0  ;;  %v4010_v45 = vld [vmem:[%s4378_s4 + $0x5d0] sm:$0xff]  ;;  %vm10630_vm3 = vcmp.eq.s32.totalorder %v7137_v60, %v7147_v13 }
 0x2ef   : > { %10620 = vst [vmem:[#allocation191_spill] sm:$0xff] %v8723_v34  ;;  %v4007_v34 = vld [vmem:[%s4378_s4 + $0x5b8] sm:$0xff]  ;;  %v8775_v47 = vsel %vm10630_vm3, %v4010_v45, 0.0  ;;  %v4014_v45 = vld [vmem:[%s4378_s4 + $0x5f0] sm:$0xff]  ;;  %vm10646_vm3 = vcmp.eq.s32.totalorder %v7140_v52, %v7149_v2 }
 0x2f0   : > { %10622 = vst [vmem:[#allocation125_spill] sm:$0xff] %v8737_v29  ;;  %v8749_v3 = vsel %vm10625_vm10, %v4007_v34, 0.0  ;;  %v8769_v34 = vsel %vm10628_vm4, %v4009_v49, 0.0  ;;  %vm10634_vm10 = vcmp.eq.s32.totalorder %v7137_v60, %v7151_v4  ;;  %vm2165_vm4 = vcmp.eq.s32.totalorder %v7169_v23, %v7145_v40  ;;  %v4013_v49 = vld [vmem:[%s4378_s4 + $0x5e8] sm:$0xff] }
 0x2f1   : > { %10624 = vst [vmem:[#allocation192_spill] sm:$0xff] %v8743_v20  ;;  %v4012_v20 = vld [vmem:[%s4378_s4 + $0x5e0] sm:$0xff] }
 0x2f2   : > { %10626 = vst [vmem:[#allocation76_spill] sm:$0xff] %v8749_v3  ;;  %v8781_v3 = vsel %vm10632_vm2, %v4011_v6, 0.0  ;;  %v8787_v29 = vsel %vm10634_vm10, %v4012_v20, 0.0  ;;  %v8801_v20 = vsel %vm10636_vm13, %v4013_v49, 0.0  ;;  %vm10638_vm10 = vcmp.eq.s32.totalorder %v7137_v60, %v7155_v26  ;;  %v4017_v60 = vld [vmem:[%s4378_s4 + $0x608] sm:$0xff] }
 0x2f3   : > { %10629 = vst [vmem:[#allocation194_spill] sm:$0xff] %v8769_v34  ;;  %v8807_v6 = vsel %vm10638_vm10, %v4014_v45, 0.0  ;;  %vm10642_vm2 = vcmp.eq.s32.totalorder %v7140_v52, %v7062_v11  ;;  %vm2169_vm13 = vcmp.eq.s32.totalorder %v7169_v23, %v7153_v25  ;;  %v4019_v45 = vld [vmem:[%s4378_s4 + $0x618] sm:$0xff]  ;;  %vm10653_vm10 = vcmp.eq.s32.totalorder %v7140_v52, %v7157_v27 }
 0x2f4   : > { %10631 = vst [vmem:[#allocation99_spill] sm:$0xff] %v8775_v47  ;;  %v4016_v47 = vld [vmem:[%s4378_s4 + $0x600] sm:$0xff] }
 0x2f5   : > { %10633 = vst [vmem:[#allocation14_spill] sm:$0xff] %v8781_v3  ;;  %v8819_v34 = vsel %vm10642_vm2, %v4016_v47, 0.0  ;;  %v4018_v47 = vld [vmem:[%s4378_s4 + $0x610] sm:$0xff]  ;;  %vm10644_vm2 = vcmp.eq.s32.totalorder %v7140_v52, %v7147_v13 }
 0x2f6   : > { %10635 = vst [vmem:[#allocation129_spill] sm:$0xff] %v8787_v29  ;;  %v4015_v29 = vld [vmem:[%s4378_s4 + $0x5f8] sm:$0xff]  ;;  %v8839_v49 = vsel %vm10644_vm2, %v4018_v47, 0.0  ;;  %v4022_v47 = vld [vmem:[%s4378_s4 + $0x630] sm:$0xff]  ;;  %vm10659_vm2 = vcmp.eq.s32.totalorder %v7143_v24, %v7149_v2 }
 0x2f7   : > { %10637 = vst [vmem:[#allocation15_spill] sm:$0xff] %v8801_v20  ;;  %v8813_v3 = vsel %vm10640_vm7, %v4015_v29, 0.0  ;;  %v8833_v29 = vsel %vm2125_vm14, %v4017_v60, 0.0  ;;  %vm10648_vm7 = vcmp.eq.s32.totalorder %v7140_v52, %v7151_v4  ;;  %v4021_v60 = vld [vmem:[%s4378_s4 + $0x628] sm:$0xff]  ;;  %vm10656_vm14 = vcmp.eq.s32.totalorder %v7143_v24, %v7145_v40 }
 0x2f8   : > { %10639 = vst [vmem:[#allocation84_spill] sm:$0xff] %v8807_v6  ;;  %v4020_v6 = vld [vmem:[%s4378_s4 + $0x620] sm:$0xff] }
 0x2f9   : > { %10641 = vst [vmem:[#allocation101_spill] sm:$0xff] %v8813_v3  ;;  %v8845_v3 = vsel %vm10646_vm3, %v4019_v45, 0.0  ;;  %v8851_v20 = vsel %vm10648_vm7, %v4020_v6, 0.0  ;;  %v8865_v6 = vsel %vm2129_vm8, %v4021_v60, 0.0  ;;  %vm10651_vm7 = vcmp.eq.s32.totalorder %v7140_v52, %v7155_v26  ;;  %v4025_v52 = vld [vmem:[%s4378_s4 + $0x648] sm:$0xff] }
 0x2fa   : > { %10643 = vst [vmem:[#allocation29_spill] sm:$0xff] %v8833_v29  ;;  %v8871_v45 = vsel %vm10651_vm7, %v4022_v47, 0.0  ;;  %vm10655_vm3 = vcmp.eq.s32.totalorder %v7143_v24, %v7062_v11  ;;  %vm2177_vm8 = vcmp.eq.s32.totalorder %v7172_v22, %v7153_v25  ;;  %v4027_v47 = vld [vmem:[%s4378_s4 + $0x658] sm:$0xff]  ;;  %vm10666_vm7 = vcmp.eq.s32.totalorder %v7143_v24, %v7157_v27 }
 0x2fb   : > { %10645 = vst [vmem:[#allocation37_spill] sm:$0xff] %v8839_v49  ;;  %v4024_v49 = vld [vmem:[%s4378_s4 + $0x640] sm:$0xff] }
 0x2fc   : > { %10647 = vst [vmem:[#allocation38_spill] sm:$0xff] %v8845_v3  ;;  %v8883_v29 = vsel %vm10655_vm3, %v4024_v49, 0.0  ;;  %v4026_v49 = vld [vmem:[%s4378_s4 + $0x650] sm:$0xff]  ;;  %vm10657_vm3 = vcmp.eq.s32.totalorder %v7143_v24, %v7147_v13 }
 0x2fd   : > { %10649 = vst [vmem:[#allocation109_spill] sm:$0xff] %v8851_v20  ;;  %v4023_v20 = vld [vmem:[%s4378_s4 + $0x638] sm:$0xff]  ;;  %v8903_v60 = vsel %vm10657_vm3, %v4026_v49, 0.0  ;;  %v4030_v49 = vld [vmem:[%s4378_s4 + $0x670] sm:$0xff]  ;;  %vm10674_vm3 = vcmp.eq.s32.totalorder %v7160_v0, %v7151_v4 }
 0x2fe   : > { %10650 = vst [vmem:[#allocation45_spill] sm:$0xff] %v8865_v6  ;;  %v8877_v3 = vsel %vm10653_vm10, %v4023_v20, 0.0  ;;  %v8897_v20 = vsel %vm10656_vm14, %v4025_v52, 0.0  ;;  %vm10661_vm10 = vcmp.eq.s32.totalorder %v7143_v24, %v7151_v4  ;;  %vm2181_vm14 = vcmp.eq.s32.totalorder %v7175_v17, %v7145_v40  ;;  %v4029_v52 = vld [vmem:[%s4378_s4 + $0x668] sm:$0xff] }
 0x2ff   : > { %10652 = vst [vmem:[#allocation115_spill] sm:$0xff] %v8871_v45  ;;  %v4028_v45 = vld [vmem:[%s4378_s4 + $0x660] sm:$0xff] }
 0x300   : > { %10654 = vst [vmem:[#allocation55_spill] sm:$0xff] %v8877_v3  ;;  %v8909_v3 = vsel %vm10659_vm2, %v4027_v47, 0.0  ;;  %v8915_v6 = vsel %vm10661_vm10, %v4028_v45, 0.0  ;;  %v8929_v45 = vsel %vm2137_vm11, %v4029_v52, 0.0  ;;  %vm10664_vm10 = vcmp.eq.s32.totalorder %v7143_v24, %v7155_v26  ;;  %v4033_v24 = vld [vmem:[%s4378_s4 + $0x688] sm:$0xff] }
 0x301   : > { %10658 = vst [vmem:[#allocation60_spill] sm:$0xff] %v8903_v60  ;;  %v8935_v47 = vsel %vm10664_vm10, %v4030_v49, 0.0  ;;  %v4032_v60 = vld [vmem:[%s4378_s4 + $0x680] sm:$0xff]  ;;  %vm10668_vm11 = vcmp.eq.s32.totalorder %v7160_v0, %v7062_v11  ;;  %vm2185_vm2 = vcmp.eq.s32.totalorder %v7175_v17, %v7153_v25  ;;  %vm2186_vm10 = vcmp.eq.s32.totalorder %v7175_v17, %v7155_v26 }
 0x302   : > { %10660 = vst [vmem:[#allocation119_spill] sm:$0xff] %v8909_v3  ;;  %v8947_v52 = vsel %vm10668_vm11, %v4032_v60, 0.0  ;;  %v4034_v60 = vld [vmem:[%s4378_s4 + $0x690] sm:$0xff]  ;;  %vm10672_vm11 = vcmp.eq.s32.totalorder %v7160_v0, %v7149_v2 }
 0x303   : > { %10662 = vst [vmem:[#allocation186_spill] sm:$0xff] %v8915_v6  ;;  %v4031_v6 = vld [vmem:[%s4378_s4 + $0x678] sm:$0xff] }
 0x304   : > { %10663 = vst [vmem:[#allocation30_spill] sm:$0xff] %v8929_v45  ;;  %v8941_v3 = vsel %vm10666_vm7, %v4031_v6, 0.0  ;;  %v8959_v6 = vsel %vm2141_vm0, %v4033_v24, 0.0  ;;  %vm10670_vm7 = vcmp.eq.s32.totalorder %v7160_v0, %v7147_v13  ;;  %v4036_v45 = vld [vmem:[%s4378_s4 + $0x6a0] sm:$0xff]  ;;  %vm10677_vm0 = vcmp.eq.s32.totalorder %v7160_v0, %v7155_v26 }
 0x305   : > { %10665 = vst [vmem:[#allocation46_spill] sm:$0xff] %v8935_v47  ;;  %v8965_v49 = vsel %vm10670_vm7, %v4034_v60, 0.0  ;;  %v8977_v24 = vsel %vm10674_vm3, %v4036_v45, 0.0  ;;  %vm10679_vm7 = vcmp.eq.s32.totalorder %v7160_v0, %v7157_v27  ;;  %vm10681_vm3 = vcmp.eq.s32.totalorder %v7163_v39, %v7062_v11 }
 0x306   : > { %10667 = vst [vmem:[#allocation12_spill] sm:$0xff] %v8941_v3  ;;  %v4035_v3 = vld [vmem:[%s4378_s4 + $0x698] sm:$0xff] }
 0x307   : > { %10669 = vst [vmem:[#allocation13_spill] sm:$0xff] %v8959_v6  ;;  %v8971_v47 = vsel %vm10672_vm11, %v4035_v3, 0.0  ;;  %v4037_v6 = vld [vmem:[%s4378_s4 + $0x6a8] sm:$0xff]  ;;  %vm10686_vm11 = vcmp.eq.s32.totalorder %v7163_v39, %v7151_v4 }
 0x308   : > { %10671 = vst [vmem:[#allocation113_spill] sm:$0xff] %v8965_v49  ;;  %v8983_v60 = vsel %vm2145_vm9, %v4037_v6, 0.0  ;;  %v4038_v49 = vld [vmem:[%s4378_s4 + $0x6b0] sm:$0xff]  ;;  %vm10684_vm9 = vcmp.eq.s32.totalorder %v7163_v39, %v7149_v2 }
 0x309   : > { %10673 = vst [vmem:[#allocation63_spill] sm:$0xff] %v8971_v47  ;;  %v8989_v3 = vsel %vm10677_vm0, %v4038_v49, 0.0  ;;  %v4039_v47 = vld [vmem:[%s4378_s4 + $0x6b8] sm:$0xff]  ;;  %vm10700_vm0 = vcmp.eq.s32.totalorder %v7166_v62, %v7153_v25  ;;  %v2481_v25 = vadd.f32 %v7361_v44, %v7297_v58 }
 0x30a   : > { %10675 = vst [vmem:[#allocation31_spill] sm:$0xff] %v8977_v24  ;;  %v8995_v45 = vsel %vm10679_vm7, %v4039_v47, 0.0  ;;  %v4040_v24 = vld [vmem:[%s4378_s4 + $0x6c0] sm:$0xff]  ;;  %v4043_v47 = vld [vmem:[%s4378_s4 + $0x6d8] sm:$0xff]  ;;  %vm10702_vm7 = vcmp.eq.s32.totalorder %v7166_v62, %v7155_v26 }
 0x30b   : > { %10676 = vst [vmem:[#allocation105_spill] sm:$0xff] %v8983_v60  ;;  %v9001_v6 = vsel %vm10681_vm3, %v4040_v24, 0.0  ;;  %v4041_v60 = vld [vmem:[%s4378_s4 + $0x6c8] sm:$0xff]  ;;  %v9019_v24 = vsel %vm10684_vm9, %v4043_v47, 0.0  ;;  %vm10704_vm3 = vcmp.eq.s32.totalorder %v7166_v62, %v7157_v27  ;;  %vm10706_vm9 = vcmp.eq.s32.totalorder %v7169_v23, %v7062_v11  ;;  %v10740_v44 = vld [vmem:[#allocation49_spill] sm:$0xff] }
 0x30c   : > { %10678 = vst [vmem:[#allocation40_spill] sm:$0xff] %v8989_v3  ;;  %v9007_v49 = vsel %vm2149_vm1, %v4041_v60, 0.0  ;;  %v4042_v3 = vld [vmem:[%s4378_s4 + $0x6d0] sm:$0xff]  ;;  %vm10691_vm1 = vcmp.eq.s32.totalorder %v7166_v62, %v7062_v11  ;;  %v2482_v58 = vadd.f32 %v2481_v25, %v7425_v16 }
 0x30d   : > { %10680 = vst [vmem:[#allocation52_spill] sm:$0xff] %v8995_v45  ;;  %v9013_v0 = vsel %vm2150_vm15, %v4042_v3, 0.0  ;;  %v4044_v45 = vld [vmem:[%s4378_s4 + $0x6e0] sm:$0xff]  ;;  %vm10692_vm15 = vcmp.eq.s32.totalorder %v7166_v62, %v7145_v40  ;;  %v10748_v25 = vld [vmem:[#allocation112_spill] sm:$0xff] }
 0x30e   : > { %10682 = vst [vmem:[#allocation24_spill] sm:$0xff] %v9007_v49  ;;  %v9025_v60 = vsel %vm10686_vm11, %v4044_v45, 0.0  ;;  %v4045_v49 = vld [vmem:[%s4378_s4 + $0x6e8] sm:$0xff]  ;;  %vm10708_vm11 = vcmp.eq.s32.totalorder %v7169_v23, %v7147_v13 }
 0x30f   : > { %10683 = vst [vmem:[#allocation17_spill] sm:$0xff] %v9013_v0  ;;  %v9031_v3 = vsel %vm2153_vm5, %v4045_v49, 0.0  ;;  %v4046_v0 = vld [vmem:[%s4378_s4 + $0x6f0] sm:$0xff]  ;;  %vm10694_vm5 = vcmp.eq.s32.totalorder %v7166_v62, %v7147_v13 }
 0x310   : > { %10685 = vst [vmem:[#allocation195_spill] sm:$0xff] %v9019_v24  ;;  %v9037_v47 = vsel %vm2154_vm12, %v4046_v0, 0.0  ;;  %v4047_v24 = vld [vmem:[%s4378_s4 + $0x6f8] sm:$0xff]  ;;  %vm10698_vm12 = vcmp.eq.s32.totalorder %v7166_v62, %v7151_v4 }
 0x311   : > { %10687 = vst [vmem:[#allocation196_spill] sm:$0xff] %v9025_v60  ;;  %v9043_v45 = vsel %vm2155_vm6, %v4047_v24, 0.0  ;;  %v4048_v60 = vld [vmem:[%s4378_s4 + $0x700] sm:$0xff]  ;;  %v4051_v24 = vld [vmem:[%s4378_s4 + $0x718] sm:$0xff]  ;;  %vm10696_vm6 = vcmp.eq.s32.totalorder %v7166_v62, %v7149_v2 }
 0x312   : > { %10688 = vst [vmem:[#allocation197_spill] sm:$0xff] %v9031_v3  ;;  %v9049_v49 = vsel %vm10691_vm1, %v4048_v60, 0.0  ;;  %v4049_v3 = vld [vmem:[%s4378_s4 + $0x708] sm:$0xff]  ;;  %v9067_v60 = vsel %vm10696_vm6, %v4051_v24, 0.0  ;;  %vm10710_vm1 = vcmp.eq.s32.totalorder %v7169_v23, %v7149_v2  ;;  %vm10719_vm6 = vcmp.eq.s32.totalorder %v7172_v22, %v7062_v11 }
 0x313   : > { %10689 = vst [vmem:[#allocation198_spill] sm:$0xff] %v9037_v47  ;;  %v9055_v0 = vsel %vm10692_vm15, %v4049_v3, 0.0  ;;  %v4050_v47 = vld [vmem:[%s4378_s4 + $0x710] sm:$0xff]  ;;  %vm10712_vm15 = vcmp.eq.s32.totalorder %v7169_v23, %v7151_v4 }
 0x314   : > { %10690 = vst [vmem:[#allocation199_spill] sm:$0xff] %v9043_v45  ;;  %v9061_v39 = vsel %vm10694_vm5, %v4050_v47, 0.0  ;;  %v4052_v45 = vld [vmem:[%s4378_s4 + $0x720] sm:$0xff]  ;;  %vm10717_vm5 = vcmp.eq.s32.totalorder %v7169_v23, %v7157_v27 }
 0x315   : > { %10693 = vst [vmem:[#allocation200_spill] sm:$0xff] %v9055_v0  ;;  %v9073_v3 = vsel %vm10698_vm12, %v4052_v45, 0.0  ;;  %v4053_v0 = vld [vmem:[%s4378_s4 + $0x728] sm:$0xff]  ;;  %vm10723_vm12 = vcmp.eq.s32.totalorder %v7172_v22, %v7147_v13 }
 0x316   : > { %10695 = vst [vmem:[#allocation201_spill] sm:$0xff] %v9061_v39  ;;  %v9079_v47 = vsel %vm10700_vm0, %v4053_v0, 0.0  ;;  %v4054_v39 = vld [vmem:[%s4378_s4 + $0x730] sm:$0xff]  ;;  %vm10725_vm0 = vcmp.eq.s32.totalorder %v7172_v22, %v7149_v2 }
 0x317   : > { %10697 = vst [vmem:[#allocation202_spill] sm:$0xff] %v9067_v60  ;;  %v9085_v24 = vsel %vm10702_vm7, %v4054_v39, 0.0  ;;  %v4055_v60 = vld [vmem:[%s4378_s4 + $0x738] sm:$0xff]  ;;  %vm10727_vm7 = vcmp.eq.s32.totalorder %v7172_v22, %v7151_v4 }
 0x318   : > { %10699 = vst [vmem:[#allocation203_spill] sm:$0xff] %v9073_v3  ;;  %v9091_v45 = vsel %vm10704_vm3, %v4055_v60, 0.0  ;;  %v4056_v3 = vld [vmem:[%s4378_s4 + $0x740] sm:$0xff]  ;;  %v4059_v60 = vld [vmem:[%s4378_s4 + $0x758] sm:$0xff]  ;;  %vm10730_vm3 = vcmp.eq.s32.totalorder %v7172_v22, %v7155_v26 }
 0x319   : > { %10701 = vst [vmem:[#allocation204_spill] sm:$0xff] %v9079_v47  ;;  %v9097_v0 = vsel %vm10706_vm9, %v4056_v3, 0.0  ;;  %v4057_v47 = vld [vmem:[%s4378_s4 + $0x748] sm:$0xff]  ;;  %v9115_v3 = vsel %vm10710_vm1, %v4059_v60, 0.0  ;;  %vm10731_vm9 = vcmp.eq.s32.totalorder %v7172_v22, %v7157_v27  ;;  %vm10735_vm1 = vcmp.eq.s32.totalorder %v7175_v17, %v7149_v2  ;;  %v4079_v2 = vld [vmem:[%s4378_s4 + $0x7f8] sm:$0xff] }
 0x31a   : > { %10703 = vst [vmem:[#allocation205_spill] sm:$0xff] %v9085_v24  ;;  %v9103_v39 = vsel %vm2165_vm4, %v4057_v47, 0.0  ;;  %v4058_v24 = vld [vmem:[%s4378_s4 + $0x750] sm:$0xff]  ;;  %vm10715_vm4 = vcmp.eq.s32.totalorder %v7169_v23, %v7155_v26  ;;  %v2555_v26 = vadd.f32 %v7373_v21, %v7309_v15 }
 0x31b   : > { %10705 = vst [vmem:[#allocation206_spill] sm:$0xff] %v9091_v45  ;;  %v9109_v62 = vsel %vm10708_vm11, %v4058_v24, 0.0  ;;  %v4060_v45 = vld [vmem:[%s4378_s4 + $0x760] sm:$0xff]  ;;  %vm10733_vm11 = vcmp.eq.s32.totalorder %v7175_v17, %v7062_v11 }
 0x31c   : > { %10707 = vst [vmem:[#allocation207_spill] sm:$0xff] %v9103_v39  ;;  %v9121_v47 = vsel %vm10712_vm15, %v4060_v45, 0.0  ;;  %v4061_v39 = vld [vmem:[%s4378_s4 + $0x768] sm:$0xff]  ;;  %v4076_v11 = vld [vmem:[%s4378_s4 + $0x7e0] sm:$0xff]  ;;  %vm10736_vm15 = vcmp.eq.s32.totalorder %v7175_v17, %v7151_v4  ;;  %v2444_v4 = vadd.f32 %v7347_v42, %v7283_v59  ;;  %v2703_v59 = vadd.f32 %v7405_v53, %v7341_v50  ;;  %v10747_v50 = vld [vmem:[#allocation72_spill] sm:$0xff] }
 0x31d   : > { %10709 = vst [vmem:[#allocation208_spill] sm:$0xff] %v9109_v62  ;;  %v9127_v24 = vsel %vm2169_vm13, %v4061_v39, 0.0  ;;  %v4062_v62 = vld [vmem:[%s4378_s4 + $0x770] sm:$0xff]  ;;  %vm10721_vm13 = vcmp.eq.s32.totalorder %v7172_v22, %v7145_v40  ;;  %v4077_v40 = vld [vmem:[%s4378_s4 + $0x7e8] sm:$0xff]  ;;  %v2556_v15 = vadd.f32 %v2555_v26, %v10740_v44 }
 0x31e   : > { %10711 = vst [vmem:[#allocation209_spill] sm:$0xff] %v9115_v3  ;;  %v9133_v60 = vsel %vm10715_vm4, %v4062_v62, 0.0  ;;  %v4063_v3 = vld [vmem:[%s4378_s4 + $0x778] sm:$0xff]  ;;  %v10750_v44 = vld [vmem:[#allocation143_spill] sm:$0xff] }
 0x31f   : > { %10713 = vst [vmem:[#allocation210_spill] sm:$0xff] %v9121_v47  ;;  %v9139_v45 = vsel %vm10717_vm5, %v4063_v3, 0.0  ;;  %v4064_v47 = vld [vmem:[%s4378_s4 + $0x780] sm:$0xff]  ;;  %v4067_v3 = vld [vmem:[%s4378_s4 + $0x798] sm:$0xff]  ;;  %v2557_v16 = vadd.f32 %v2556_v15, %v10747_v50  ;;  %v10756_v15 = vld [vmem:[#allocation80_spill] sm:$0xff] }
 0x320   : > { %10714 = vst [vmem:[#allocation211_spill] sm:$0xff] %v9127_v24  ;;  %v9145_v39 = vsel %vm10719_vm6, %v4064_v47, 0.0  ;;  %v4065_v24 = vld [vmem:[%s4378_s4 + $0x788] sm:$0xff]  ;;  %v9163_v47 = vsel %vm10725_vm0, %v4067_v3, 0.0  ;;  %v10759_v50 = vld [vmem:[#allocation18_spill] sm:$0xff] }
 0x321   : > { %10716 = vst [vmem:[#allocation212_spill] sm:$0xff] %v9133_v60  ;;  %v9151_v62 = vsel %vm10721_vm13, %v4065_v24, 0.0  ;;  %v4066_v60 = vld [vmem:[%s4378_s4 + $0x790] sm:$0xff] }
 0x322   : > { %10718 = vst [vmem:[#allocation213_spill] sm:$0xff] %v9139_v45  ;;  %v9157_v23 = vsel %vm10723_vm12, %v4066_v60, 0.0  ;;  %v4068_v45 = vld [vmem:[%s4378_s4 + $0x7a0] sm:$0xff] }
 0x323   : > { %10720 = vst [vmem:[#allocation214_spill] sm:$0xff] %v9145_v39  ;;  %v9169_v24 = vsel %vm10727_vm7, %v4068_v45, 0.0  ;;  %vm2799_vm7 = vcmask 1040384  }
 0x324   : > { %10722 = vst [vmem:[#allocation215_spill] sm:$0xff] %v9151_v62  ;;  %v4069_v62 = vld [vmem:[%s4378_s4 + $0x7a8] sm:$0xff] }
 0x325   : > { %10724 = vst [vmem:[#allocation216_spill] sm:$0xff] %v9157_v23  ;;  %v9175_v60 = vsel %vm2177_vm8, %v4069_v62, 0.0  ;;  %v4070_v23 = vld [vmem:[%s4378_s4 + $0x7b0] sm:$0xff]  ;;  %vm10734_vm8 = vcmp.eq.s32.totalorder %v7175_v17, %v7147_v13 }
 0x326   : > { %10726 = vst [vmem:[#allocation217_spill] sm:$0xff] %v9163_v47  ;;  %v9181_v3 = vsel %vm10730_vm3, %v4070_v23, 0.0  ;;  %v4071_v47 = vld [vmem:[%s4378_s4 + $0x7b8] sm:$0xff]  ;;  %v4074_v23 = vld [vmem:[%s4378_s4 + $0x7d0] sm:$0xff]  ;;  %vm2801_vm3 = vcmask 1042434  }
 0x327   : > { %10728 = vst [vmem:[#allocation218_spill] sm:$0xff] %v9169_v24  ;;  %v9187_v45 = vsel %vm10731_vm9, %v4071_v47, 0.0  ;;  %v4072_v24 = vld [vmem:[%s4378_s4 + $0x7c0] sm:$0xff]  ;;  %v9205_v22 = vsel %vm10734_vm8, %v4074_v23, 0.0  ;;  %v4075_v47 = vld [vmem:[%s4378_s4 + $0x7d8] sm:$0xff]  ;;  %v4078_v13 = vld [vmem:[%s4378_s4 + $0x7f0] sm:$0xff] }
 0x328   : > { %10729 = vst [vmem:[#allocation219_spill] sm:$0xff] %v9175_v60  ;;  %v9193_v62 = vsel %vm10733_vm11, %v4072_v24, 0.0  ;;  %v4073_v60 = vld [vmem:[%s4378_s4 + $0x7c8] sm:$0xff]  ;;  %v9217_v24 = vsel %vm10736_vm15, %v4076_v11, 0.0  ;;  %v9229_v23 = vsel %vm2186_vm10, %v4078_v13, 0.0  ;;  %v2518_v11 = vadd.f32 %v7367_v48, %v7303_v18  ;;  %v10739_v18 = vld [vmem:[#allocation96_spill] sm:$0xff] }
 0x329   : > { %10732 = vst [vmem:[#allocation220_spill] sm:$0xff] %v9187_v45  ;;  %v9199_v39 = vsel %vm2181_vm14, %v4073_v60, 0.0  ;;  %v9211_v45 = vsel %vm10735_vm1, %v4075_v47, 0.0  ;;  %v9223_v60 = vsel %vm2185_vm2, %v4077_v40, 0.0  ;;  %vm10737_vm14 = vcmp.eq.s32.totalorder %v7175_v17, %v7157_v27  ;;  %v10741_v48 = vld [vmem:[#allocation137_spill] sm:$0xff] }
 0x32a   : > { %v9235_v47 = vsel %vm10737_vm14, %v4079_v2, 0.0  ;;  %v2592_v40 = vadd.f32 %v7379_v55, %v7315_v9  ;;  %v2445_v13 = vadd.f32 %v2444_v4, %v7411_v28  ;;  %v2629_v27 = vadd.f32 %v7393_v12, %v7329_v54  ;;  %v10742_v28 = vld [vmem:[#allocation98_spill] sm:$0xff]  ;;  %v10743_v2 = vld [vmem:[#allocation139_spill] sm:$0xff]  ;;  %v10744_v12 = vld [vmem:[#allocation100_spill] sm:$0xff] }
 0x32b   : > { %10738 = vst [vmem:[#allocation221_spill] sm:$0xff] %v9235_v47  ;;  %v2666_v17 = vadd.f32 %v7399_v63, %v7335_v57  ;;  %v2519_v42 = vadd.f32 %v2518_v11, %v10739_v18  ;;  %v2704_v4 = vadd.f32 %v2703_v59, %v10744_v12  ;;  %v10745_v57 = vld [vmem:[#allocation141_spill] sm:$0xff]  ;;  %v10746_v47 = vld [vmem:[#allocation110_spill] sm:$0xff]  ;;  %vm2803_vm9 = vcmask 1041408  }
 0x32c   : > { %v2593_v21 = vadd.f32 %v2592_v40, %v10741_v48  ;;  %v2446_v55 = vadd.f32 %v2445_v13, %v7475_v56  ;;  %v2630_v9 = vadd.f32 %v2629_v27, %v10742_v28  ;;  %v2483_v63 = vadd.f32 %v2482_v58, %v10745_v57  ;;  %v10749_v18 = vld [vmem:[#allocation57_spill] sm:$0xff]  ;;  %v10751_v13 = vld [vmem:[#allocation114_spill] sm:$0xff]  ;;  %v10753_v28 = vld [vmem:[#allocation116_spill] sm:$0xff] }
 0x32d   : > { %v2667_v54 = vadd.f32 %v2666_v17, %v10743_v2  ;;  %v2520_v53 = vadd.f32 %v2519_v42, %v10746_v47  ;;  %v2705_v27 = vadd.f32 %v2704_v4, %v10751_v13  ;;  %v10752_v48 = vld [vmem:[#allocation145_spill] sm:$0xff]  ;;  %v10754_v2 = vld [vmem:[#allocation147_spill] sm:$0xff]  ;;  %v10755_v12 = vld [vmem:[#allocation126_spill] sm:$0xff]  ;;  %vm2805_vm11 = vcmask 1044484  }
 0x32e   : > { %v2594_v11 = vadd.f32 %v2593_v21, %v10748_v25  ;;  %v2447_v26 = vadd.f32 %v2446_v55, %v7539_v33  ;;  %v2631_v40 = vadd.f32 %v2630_v9, %v10749_v18  ;;  %v2484_v17 = vadd.f32 %v2483_v63, %v10752_v48  ;;  %v10757_v57 = vld [vmem:[#allocation128_spill] sm:$0xff]  ;;  %v10758_v55 = vld [vmem:[#allocation65_spill] sm:$0xff]  ;;  %v10760_v25 = vld [vmem:[#allocation26_spill] sm:$0xff] }
 0x32f   : > { %v2668_v56 = vadd.f32 %v2667_v54, %v10750_v44  ;;  %v2521_v59 = vadd.f32 %v2520_v53, %v10753_v28  ;;  %v2558_v58 = vadd.f32 %v2557_v16, %v10754_v2  ;;  %v2706_v9 = vadd.f32 %v2705_v27, %v10758_v55  ;;  %v10761_v18 = vld [vmem:[#allocation130_spill] sm:$0xff]  ;;  %v10762_v44 = vld [vmem:[#allocation88_spill] sm:$0xff]  ;;  %v10763_v13 = vld [vmem:[#allocation149_spill] sm:$0xff] }
 0x330   : > { %v2595_v47 = vadd.f32 %v2594_v11, %v10755_v12  ;;  %v2448_v42 = vadd.f32 %v2447_v26, %v7603_v30  ;;  %v2632_v21 = vadd.f32 %v2631_v40, %v10756_v15  ;;  %v2485_v54 = vadd.f32 %v2484_v17, %v10759_v50  ;;  %v10764_v48 = vld [vmem:[#allocation132_spill] sm:$0xff]  ;;  %v10765_v26 = vld [vmem:[#allocation73_spill] sm:$0xff]  ;;  %v10766_v28 = vld [vmem:[#allocation142_spill] sm:$0xff] }
 0x331   : > { %v2669_v33 = vadd.f32 %v2668_v56, %v10757_v57  ;;  %v2522_v4 = vadd.f32 %v2521_v59, %v10760_v25  ;;  %v2559_v63 = vadd.f32 %v2558_v58, %v10761_v18  ;;  %v2707_v40 = vadd.f32 %v2706_v9, %v10765_v26  ;;  %v10767_v2 = vld [vmem:[#allocation102_spill] sm:$0xff]  ;;  %v10768_v12 = vld [vmem:[#allocation144_spill] sm:$0xff]  ;;  %v10769_v15 = vld [vmem:[#allocation81_spill] sm:$0xff] }
 0x332   : > { %v2596_v53 = vadd.f32 %v2595_v47, %v10762_v44  ;;  %v2449_v16 = vadd.f32 %v2448_v42, %v7667_v5  ;;  %v2633_v11 = vadd.f32 %v2632_v21, %v10763_v13  ;;  %v2486_v56 = vadd.f32 %v2485_v54, %v10766_v28  ;;  %v10770_v57 = vld [vmem:[#allocation34_spill] sm:$0xff]  ;;  %v10771_v55 = vld [vmem:[#allocation19_spill] sm:$0xff]  ;;  %v10776_v44 = vld [vmem:[#allocation148_spill] sm:$0xff] }
 0x333   : > { %v2670_v30 = vadd.f32 %v2669_v33, %v10764_v48  ;;  %v2523_v27 = vadd.f32 %v2522_v4, %v10767_v2  ;;  %v2560_v17 = vadd.f32 %v2559_v63, %v10768_v12  ;;  %v10772_v42 = vld [vmem:[#allocation27_spill] sm:$0xff]  ;;  %v10774_v25 = vld [vmem:[#allocation146_spill] sm:$0xff]  ;;  %v10777_v13 = vld [vmem:[#allocation89_spill] sm:$0xff]  ;;  %vm2807_vm8 = vcmask 1046534  }
 0x334   : > { %v2597_v59 = vadd.f32 %v2596_v53, %v10769_v15  ;;  %v2450_v58 = vadd.f32 %v2449_v16, %v7731_v19  ;;  %v2634_v47 = vadd.f32 %v2633_v11, %v10770_v57  ;;  %v2708_v21 = vadd.f32 %v2707_v40, %v10772_v42  ;;  %v10773_v50 = vld [vmem:[#allocation151_spill] sm:$0xff]  ;;  %v10775_v18 = vld [vmem:[#allocation118_spill] sm:$0xff]  ;;  %v10780_v26 = vld [vmem:[#allocation153_spill] sm:$0xff] }
 0x335   : > { %v2671_v5 = vadd.f32 %v2670_v30, %v10771_v55  ;;  %v2487_v33 = vadd.f32 %v2486_v56, %v10773_v50  ;;  %v2524_v9 = vadd.f32 %v2523_v27, %v10774_v25  ;;  %v2561_v54 = vadd.f32 %v2560_v17, %v10775_v18  ;;  %v10778_v48 = vld [vmem:[#allocation42_spill] sm:$0xff]  ;;  %v10779_v16 = vld [vmem:[#allocation35_spill] sm:$0xff]  ;;  %v10781_v28 = vld [vmem:[#allocation104_spill] sm:$0xff] }
 0x336   : > { %v2598_v4 = vadd.f32 %v2597_v59, %v10776_v44  ;;  %v2451_v63 = vadd.f32 %v2450_v58, %v7795_v43  ;;  %v2635_v53 = vadd.f32 %v2634_v47, %v10777_v13  ;;  %v2709_v11 = vadd.f32 %v2708_v21, %v10779_v16  ;;  %v10782_v2 = vld [vmem:[#allocation50_spill] sm:$0xff]  ;;  %v10783_v12 = vld [vmem:[#allocation43_spill] sm:$0xff]  ;;  %v10786_v58 = vld [vmem:[#allocation120_spill] sm:$0xff] }
 0x337   : > { %v2672_v19 = vadd.f32 %v2671_v5, %v10778_v48  ;;  %v2488_v30 = vadd.f32 %v2487_v33, %v10780_v26  ;;  %v2525_v40 = vadd.f32 %v2524_v9, %v10781_v28  ;;  %v2562_v56 = vadd.f32 %v2561_v54, %v10782_v2  ;;  %v10784_v15 = vld [vmem:[#allocation134_spill] sm:$0xff]  ;;  %v10785_v57 = vld [vmem:[#allocation155_spill] sm:$0xff]  ;;  %v10788_v42 = vld [vmem:[#allocation136_spill] sm:$0xff] }
 0x338   : > { %v2599_v27 = vadd.f32 %v2598_v4, %v10783_v12  ;;  %v2452_v17 = vadd.f32 %v2451_v63, %v7859_v37  ;;  %v2636_v59 = vadd.f32 %v2635_v53, %v10784_v15  ;;  %v2710_v47 = vadd.f32 %v2709_v11, %v10786_v58  ;;  %v10787_v55 = vld [vmem:[#allocation58_spill] sm:$0xff]  ;;  %v10789_v50 = vld [vmem:[#allocation51_spill] sm:$0xff]  ;;  %v10792_v4 = vld [vmem:[#allocation157_spill] sm:$0xff] }
 0x339   : > { %v2673_v43 = vadd.f32 %v2672_v19, %v10785_v57  ;;  %v2489_v5 = vadd.f32 %v2488_v30, %v10787_v55  ;;  %v2526_v21 = vadd.f32 %v2525_v40, %v10788_v42  ;;  %v2563_v33 = vadd.f32 %v2562_v56, %v10789_v50  ;;  %v10790_v25 = vld [vmem:[#allocation150_spill] sm:$0xff]  ;;  %v10793_v63 = vld [vmem:[#allocation59_spill] sm:$0xff]  ;;  %v10795_v19 = vld [vmem:[#allocation97_spill] sm:$0xff] }
 0x33a   : > { %v2600_v9 = vadd.f32 %v2599_v27, %v10790_v25  ;;  %v2453_v18 = vadd.f32 %v2452_v17, %v7923_v51  ;;  %v10791_v54 = vld [vmem:[#allocation66_spill] sm:$0xff]  ;;  %v2711_v13 = vadd.f32 %v2710_v47, %v10793_v63  ;;  %v10797_v30 = vld [vmem:[#allocation20_spill] sm:$0xff]  ;;  %v10799_v12 = vld [vmem:[#allocation67_spill] sm:$0xff]  ;;  %vm2809_vm1 = vcmask 1045508  }
 0x33b   : > { %v2637_v44 = vadd.f32 %v2636_v59, %v10791_v54  ;;  %v2674_v37 = vadd.f32 %v2673_v43, %v10792_v4  ;;  %v10794_v53 = vld [vmem:[#allocation158_spill] sm:$0xff]  ;;  %v2527_v16 = vadd.f32 %v2526_v21, %v10795_v19  ;;  %v10798_v2 = vld [vmem:[#allocation152_spill] sm:$0xff]  ;;  %v10800_v27 = vld [vmem:[#allocation21_spill] sm:$0xff]  ;;  %vm2811_vm15 = vcmask 1043456  }
 0x33c   : > { %v2490_v48 = vadd.f32 %v2489_v5, %v10794_v53  ;;  %v10796_v11 = vld [vmem:[#allocation74_spill] sm:$0xff]  ;;  %v2601_v28 = vadd.f32 %v2600_v9, %v10797_v30  ;;  %v2454_v40 = vadd.f32 %v2453_v18, %v7987_v38  ;;  %v2712_v17 = vadd.f32 %v2711_v13, %v10800_v27  ;;  %v10801_v15 = vld [vmem:[#allocation167_spill] sm:$0xff]  ;;  %v10804_v55 = vld [vmem:[#allocation160_spill] sm:$0xff] }
 0x33d   : > { %v2564_v26 = vadd.f32 %v2563_v33, %v10796_v11  ;;  %v2638_v56 = vadd.f32 %v2637_v44, %v10798_v2  ;;  %v2675_v51 = vadd.f32 %v2674_v37, %v10799_v12  ;;  %v10802_v57 = vld [vmem:[#allocation82_spill] sm:$0xff]  ;;  %v10803_v58 = vld [vmem:[#allocation159_spill] sm:$0xff]  ;;  %v10807_v25 = vld [vmem:[#allocation161_spill] sm:$0xff] }
 0x33e   : > { %v2491_v59 = vadd.f32 %v2490_v48, %v10801_v15  ;;  %v2528_v43 = vadd.f32 %v2527_v16, %v10802_v57  ;;  %v2602_v5 = vadd.f32 %v2601_v28, %v10804_v55  ;;  %v2455_v42 = vadd.f32 %v2454_v40, %v8051_v31  ;;  %v10805_v21 = vld [vmem:[#allocation90_spill] sm:$0xff]  ;;  %v10806_v33 = vld [vmem:[#allocation75_spill] sm:$0xff]  ;;  %v10809_v44 = vld [vmem:[#allocation36_spill] sm:$0xff] }
 0x33f   : > { %v2565_v47 = vadd.f32 %v2564_v26, %v10803_v58  ;;  %v2639_v50 = vadd.f32 %v2638_v56, %v10805_v21  ;;  %v2676_v38 = vadd.f32 %v2675_v51, %v10806_v33  ;;  %v2713_v9 = vadd.f32 %v2712_v17, %v10807_v25  ;;  %v10808_v18 = vld [vmem:[#allocation170_spill] sm:$0xff]  ;;  %v10810_v37 = vld [vmem:[#allocation93_spill] sm:$0xff]  ;;  %v10812_v19 = vld [vmem:[#allocation83_spill] sm:$0xff] }
 0x340   : > { %v2492_v54 = vadd.f32 %v2491_v59, %v10808_v18  ;;  %v2529_v4 = vadd.f32 %v2528_v43, %v10809_v44  ;;  %v10811_v13 = vld [vmem:[#allocation106_spill] sm:$0xff]  ;;  %v2456_v48 = vadd.f32 %v2455_v42, %v8115_v35  ;;  %v10814_v26 = vld [vmem:[#allocation163_spill] sm:$0xff]  ;;  %v10817_v12 = vld [vmem:[#allocation92_spill] sm:$0xff] }
 0x341   : > { %v2566_v63 = vadd.f32 %v2565_v47, %v10810_v37  ;;  %v2603_v53 = vadd.f32 %v2602_v5, %v10811_v13  ;;  %v2640_v16 = vadd.f32 %v2639_v50, %v10812_v19  ;;  %v10813_v11 = vld [vmem:[#allocation162_spill] sm:$0xff]  ;;  %v2714_v30 = vadd.f32 %v2713_v9, %v10814_v26  ;;  %v10815_v28 = vld [vmem:[#allocation107_spill] sm:$0xff]  ;;  %v10818_v27 = vld [vmem:[#allocation164_spill] sm:$0xff] }
 0x342   : > { %v2677_v31 = vadd.f32 %v2676_v38, %v10813_v11  ;;  %v2493_v40 = vadd.f32 %v2492_v54, %v10815_v28  ;;  %v10816_v2 = vld [vmem:[#allocation122_spill] sm:$0xff]  ;;  %v2457_v15 = vadd.f32 %v2456_v48, %v8179_v61  ;;  %v10819_v59 = vld [vmem:[#allocation188_spill] sm:$0xff]  ;;  %v10824_v50 = vld [vmem:[#allocation165_spill] sm:$0xff] }
 0x343   : > { %v2530_v56 = vadd.f32 %v2529_v4, %v10816_v2  ;;  %v2567_v51 = vadd.f32 %v2566_v63, %v10817_v12  ;;  %v2604_v17 = vadd.f32 %v2603_v53, %v10818_v27  ;;  %v2641_v57 = vadd.f32 %v2640_v16, %v10819_v59  ;;  %v10820_v43 = vld [vmem:[#allocation16_spill] sm:$0xff]  ;;  %v10821_v58 = vld [vmem:[#allocation22_spill] sm:$0xff]  ;;  %v10829_v63 = vld [vmem:[#allocation61_spill] sm:$0xff] }
 0x344   : > { %v2678_v35 = vadd.f32 %v2677_v31, %v10820_v43  ;;  %v2715_v47 = vadd.f32 %v2714_v30, %v10821_v58  ;;  %v10822_v55 = vld [vmem:[#allocation138_spill] sm:$0xff]  ;;  %v10823_v42 = vld [vmem:[#allocation108_spill] sm:$0xff]  ;;  %v2458_v9 = vadd.f32 %v2457_v15, %v8243_v1  ;;  %v10830_v53 = vld [vmem:[#allocation23_spill] sm:$0xff] }
 0x345   : > { %v2494_v5 = vadd.f32 %v2493_v40, %v10822_v55  ;;  %v2531_v21 = vadd.f32 %v2530_v56, %v10823_v42  ;;  %v2568_v33 = vadd.f32 %v2567_v51, %v10824_v50  ;;  %v10825_v38 = vld [vmem:[#allocation166_spill] sm:$0xff]  ;;  %v10827_v44 = vld [vmem:[#allocation124_spill] sm:$0xff]  ;;  %v10832_v11 = vld [vmem:[#allocation39_spill] sm:$0xff] }
 0x346   : > { %v2605_v25 = vadd.f32 %v2604_v17, %v10825_v38  ;;  %v10826_v18 = vld [vmem:[#allocation154_spill] sm:$0xff]  ;;  %v2679_v61 = vadd.f32 %v2678_v35, %v10827_v44  ;;  %v10828_v4 = vld [vmem:[#allocation168_spill] sm:$0xff]  ;;  %v2459_v26 = vadd.f32 %v2458_v9, %v8307_v14  ;;  %v10833_v30 = vld [vmem:[#allocation173_spill] sm:$0xff] }
 0x347   : > { %v2642_v54 = vadd.f32 %v2641_v57, %v10826_v18  ;;  %v2716_v37 = vadd.f32 %v2715_v47, %v10828_v4  ;;  %v2495_v13 = vadd.f32 %v2494_v5, %v10829_v63  ;;  %v2532_v48 = vadd.f32 %v2531_v21, %v10830_v53  ;;  %v10831_v19 = vld [vmem:[#allocation62_spill] sm:$0xff]  ;;  %v10834_v40 = vld [vmem:[#allocation140_spill] sm:$0xff]  ;;  %v10835_v2 = vld [vmem:[#allocation169_spill] sm:$0xff] }
 0x348   : > { %v2569_v16 = vadd.f32 %v2568_v33, %v10831_v19  ;;  %v2606_v31 = vadd.f32 %v2605_v25, %v10832_v11  ;;  %v2680_v1 = vadd.f32 %v2679_v61, %v10834_v40  ;;  %v10836_v12 = vld [vmem:[#allocation171_spill] sm:$0xff]  ;;  %v10838_v15 = vld [vmem:[#allocation156_spill] sm:$0xff]  ;;  %v2460_v35 = vadd.f32 %v2459_v26, %v8371_v8  ;;  %v10842_v5 = vld [vmem:[#allocation53_spill] sm:$0xff] }
 0x349   : > { %v2643_v28 = vadd.f32 %v2642_v54, %v10833_v30  ;;  %v2717_v56 = vadd.f32 %v2716_v37, %v10835_v2  ;;  %v2496_v51 = vadd.f32 %v2495_v13, %v10836_v12  ;;  %v10837_v27 = vld [vmem:[#allocation95_spill] sm:$0xff]  ;;  %v10839_v57 = vld [vmem:[#allocation172_spill] sm:$0xff]  ;;  %v10844_v33 = vld [vmem:[#allocation174_spill] sm:$0xff] }
 0x34a   : > { %v2533_v17 = vadd.f32 %v2532_v48, %v10837_v27  ;;  %v2570_v59 = vadd.f32 %v2569_v16, %v10838_v15  ;;  %v2607_v43 = vadd.f32 %v2606_v31, %v10839_v57  ;;  %v10840_v58 = vld [vmem:[#allocation44_spill] sm:$0xff]  ;;  %v10841_v55 = vld [vmem:[#allocation123_spill] sm:$0xff]  ;;  %v2461_v44 = vadd.f32 %v2460_v35, %v8435_v10  ;;  %v10848_v37 = vld [vmem:[#allocation193_spill] sm:$0xff] }
 0x34b   : > { %v2644_v47 = vadd.f32 %v2643_v28, %v10840_v58  ;;  %v2681_v14 = vadd.f32 %v2680_v1, %v10841_v55  ;;  %v2718_v42 = vadd.f32 %v2717_v56, %v10842_v5  ;;  %v10843_v21 = vld [vmem:[#allocation176_spill] sm:$0xff]  ;;  %v10846_v18 = vld [vmem:[#allocation175_spill] sm:$0xff]  ;;  %v10849_v63 = vld [vmem:[#allocation177_spill] sm:$0xff] }
 0x34c   : > { %v2497_v50 = vadd.f32 %v2496_v51, %v10843_v21  ;;  %v2534_v38 = vadd.f32 %v2533_v17, %v10844_v33  ;;  %v10845_v25 = vld [vmem:[#allocation28_spill] sm:$0xff]  ;;  %v2608_v54 = vadd.f32 %v2607_v43, %v10846_v18  ;;  %v10850_v53 = vld [vmem:[#allocation77_spill] sm:$0xff]  ;;  %v10851_v19 = vld [vmem:[#allocation54_spill] sm:$0xff]  ;;  %v2462_v28 = vadd.f32 %v2461_v44, %v8499_v7 }
 0x34d   : > { %v2571_v9 = vadd.f32 %v2570_v59, %v10845_v25  ;;  %v10847_v61 = vld [vmem:[#allocation48_spill] sm:$0xff]  ;;  %v2682_v8 = vadd.f32 %v2681_v14, %v10848_v37  ;;  %v2719_v13 = vadd.f32 %v2718_v42, %v10849_v63  ;;  %v10852_v11 = vld [vmem:[#allocation33_spill] sm:$0xff]  ;;  %v10854_v40 = vld [vmem:[#allocation103_spill] sm:$0xff] }
 0x34e   : > { %v2645_v4 = vadd.f32 %v2644_v47, %v10847_v61  ;;  %v2498_v48 = vadd.f32 %v2497_v50, %v10850_v53  ;;  %v2535_v16 = vadd.f32 %v2534_v38, %v10851_v19  ;;  %v10853_v26 = vld [vmem:[#allocation121_spill] sm:$0xff]  ;;  %v10855_v2 = vld [vmem:[#allocation178_spill] sm:$0xff]  ;;  %v10856_v56 = vld [vmem:[#allocation127_spill] sm:$0xff]  ;;  %v2463_v58 = vadd.f32 %v2462_v28, %v8563_v46 }
 0x34f   : > { %v2572_v31 = vadd.f32 %v2571_v9, %v10852_v11  ;;  %v2609_v30 = vadd.f32 %v2608_v54, %v10853_v26  ;;  %v2683_v10 = vadd.f32 %v2682_v8, %v10855_v2  ;;  %v2720_v12 = vadd.f32 %v2719_v13, %v10856_v56  ;;  %v10857_v51 = vld [vmem:[#allocation111_spill] sm:$0xff]  ;;  %v10859_v59 = vld [vmem:[#allocation56_spill] sm:$0xff]  ;;  %v10862_v14 = vld [vmem:[#allocation85_spill] sm:$0xff] }
 0x350   : > { %v2646_v1 = vadd.f32 %v2645_v4, %v10854_v40  ;;  %v2499_v27 = vadd.f32 %v2498_v48, %v10857_v51  ;;  %v10858_v17 = vld [vmem:[#allocation179_spill] sm:$0xff]  ;;  %v10861_v47 = vld [vmem:[#allocation180_spill] sm:$0xff]  ;;  %v10864_v21 = vld [vmem:[#allocation181_spill] sm:$0xff]  ;;  %v2464_v44 = vadd.f32 %v2463_v58, %v8627_v32 }
 0x351   : > { %v2536_v15 = vadd.f32 %v2535_v16, %v10858_v17  ;;  %v2573_v57 = vadd.f32 %v2572_v31, %v10859_v59  ;;  %v10860_v43 = vld [vmem:[#allocation47_spill] sm:$0xff]  ;;  %v2684_v7 = vadd.f32 %v2683_v10, %v10862_v14  ;;  %v10863_v5 = vld [vmem:[#allocation68_spill] sm:$0xff]  ;;  %v10865_v33 = vld [vmem:[#allocation70_spill] sm:$0xff] }
 0x352   : > { %v2610_v35 = vadd.f32 %v2609_v30, %v10860_v43  ;;  %v2647_v55 = vadd.f32 %v2646_v1, %v10861_v47  ;;  %v2721_v42 = vadd.f32 %v2720_v12, %v10863_v5  ;;  %v2500_v50 = vadd.f32 %v2499_v27, %v10864_v21  ;;  %v10866_v25 = vld [vmem:[#allocation182_spill] sm:$0xff]  ;;  %v10867_v18 = vld [vmem:[#allocation117_spill] sm:$0xff]  ;;  %v10868_v61 = vld [vmem:[#allocation91_spill] sm:$0xff] }
 0x353   : > { %v2537_v38 = vadd.f32 %v2536_v15, %v10865_v33  ;;  %v2574_v9 = vadd.f32 %v2573_v57, %v10866_v25  ;;  %v10869_v37 = vld [vmem:[#allocation32_spill] sm:$0xff]  ;;  %v10870_v8 = vld [vmem:[#allocation183_spill] sm:$0xff]  ;;  %v10873_v16 = vld [vmem:[#allocation78_spill] sm:$0xff]  ;;  %v2465_v30 = vadd.f32 %v2464_v44, %v8691_v41 }
 0x354   : > { %v2611_v54 = vadd.f32 %v2610_v35, %v10867_v18  ;;  %v2648_v4 = vadd.f32 %v2647_v55, %v10868_v61  ;;  %v2685_v46 = vadd.f32 %v2684_v7, %v10869_v37  ;;  %v2722_v63 = vadd.f32 %v2721_v42, %v10870_v8  ;;  %v10871_v13 = vld [vmem:[#allocation71_spill] sm:$0xff]  ;;  %v10872_v48 = vld [vmem:[#allocation184_spill] sm:$0xff]  ;;  %v10874_v31 = vld [vmem:[#allocation185_spill] sm:$0xff] }
 0x355   : > { %v2501_v53 = vadd.f32 %v2500_v50, %v10871_v13  ;;  %v2538_v19 = vadd.f32 %v2537_v38, %v10872_v48  ;;  %v2575_v11 = vadd.f32 %v2574_v9, %v10873_v16  ;;  %v10875_v28 = vld [vmem:[#allocation69_spill] sm:$0xff]  ;;  %v10876_v1 = vld [vmem:[#allocation187_spill] sm:$0xff]  ;;  %v10880_v17 = vld [vmem:[#allocation190_spill] sm:$0xff]  ;;  %v2466_v43 = vadd.f32 %v2465_v30, %v8755_v36 }
 0x356   : > { %v2612_v26 = vadd.f32 %v2611_v54, %v10874_v31  ;;  %v2649_v40 = vadd.f32 %v2648_v4, %v10875_v28  ;;  %v2686_v32 = vadd.f32 %v2685_v46, %v10876_v1  ;;  %v10877_v2 = vld [vmem:[#allocation25_spill] sm:$0xff]  ;;  %v10879_v51 = vld [vmem:[#allocation79_spill] sm:$0xff]  ;;  %v10883_v47 = vld [vmem:[#allocation192_spill] sm:$0xff] }
 0x357   : > { %v2723_v10 = vadd.f32 %v2722_v63, %v10877_v2  ;;  %v10878_v56 = vld [vmem:[#allocation189_spill] sm:$0xff]  ;;  %v2539_v27 = vadd.f32 %v2538_v19, %v10879_v51  ;;  %v2576_v15 = vadd.f32 %v2575_v11, %v10880_v17  ;;  %v10881_v59 = vld [vmem:[#allocation191_spill] sm:$0xff]  ;;  %v10884_v55 = vld [vmem:[#allocation76_spill] sm:$0xff]  ;;  %v2467_v9 = vadd.f32 %v2466_v43, %v8819_v34 }
 0x358   : > { %v2502_v12 = vadd.f32 %v2501_v53, %v10878_v56  ;;  %v2613_v57 = vadd.f32 %v2612_v26, %v10881_v59  ;;  %v10882_v35 = vld [vmem:[#allocation125_spill] sm:$0xff]  ;;  %v2687_v41 = vadd.f32 %v2686_v32, %v10883_v47  ;;  %v10885_v7 = vld [vmem:[#allocation194_spill] sm:$0xff]  ;;  %v10886_v42 = vld [vmem:[#allocation99_spill] sm:$0xff] }
 0x359   : > { %v2650_v58 = vadd.f32 %v2649_v40, %v10882_v35  ;;  %v2724_v14 = vadd.f32 %v2723_v10, %v10884_v55  ;;  %v2540_v21 = vadd.f32 %v2539_v27, %v10886_v42  ;;  %v10887_v50 = vld [vmem:[#allocation14_spill] sm:$0xff]  ;;  %v10888_v38 = vld [vmem:[#allocation129_spill] sm:$0xff]  ;;  %v10889_v18 = vld [vmem:[#allocation15_spill] sm:$0xff]  ;;  %v2468_v16 = vadd.f32 %v2467_v9, %v8883_v29 }
 0x35a   : > { %v2503_v5 = vadd.f32 %v2502_v12, %v10885_v7  ;;  %v2577_v33 = vadd.f32 %v2576_v15, %v10887_v50  ;;  %v2614_v25 = vadd.f32 %v2613_v57, %v10888_v38  ;;  %v10890_v44 = vld [vmem:[#allocation84_spill] sm:$0xff]  ;;  %v10891_v61 = vld [vmem:[#allocation101_spill] sm:$0xff]  ;;  %v10894_v13 = vld [vmem:[#allocation38_spill] sm:$0xff] }
 0x35b   : > { %v2651_v54 = vadd.f32 %v2650_v58, %v10889_v18  ;;  %v2688_v36 = vadd.f32 %v2687_v41, %v10890_v44  ;;  %v2725_v4 = vadd.f32 %v2724_v14, %v10891_v61  ;;  %v10892_v37 = vld [vmem:[#allocation29_spill] sm:$0xff]  ;;  %v10897_v26 = vld [vmem:[#allocation115_spill] sm:$0xff]  ;;  %v10899_v1 = vld [vmem:[#allocation60_spill] sm:$0xff]  ;;  %v2469_v51 = vadd.f32 %v2468_v16, %v8947_v52 }
 0x35c   : > { %v2504_v46 = vadd.f32 %v2503_v5, %v10892_v37  ;;  %v10893_v8 = vld [vmem:[#allocation37_spill] sm:$0xff]  ;;  %v2578_v53 = vadd.f32 %v2577_v33, %v10894_v13  ;;  %v10898_v30 = vld [vmem:[#allocation55_spill] sm:$0xff]  ;;  %v10901_v56 = vld [vmem:[#allocation186_spill] sm:$0xff] }
 0x35d   : > { %v2541_v63 = vadd.f32 %v2540_v21, %v10893_v8  ;;  %v10895_v48 = vld [vmem:[#allocation109_spill] sm:$0xff]  ;;  %v2689_v34 = vadd.f32 %v2688_v36, %v10897_v26  ;;  %v2726_v28 = vadd.f32 %v2725_v4, %v10898_v30  ;;  %v10900_v2 = vld [vmem:[#allocation119_spill] sm:$0xff]  ;;  %v10902_v27 = vld [vmem:[#allocation30_spill] sm:$0xff]  ;;  %v2470_v7 = vadd.f32 %v2469_v51, %v9001_v6 }
 0x35e   : > { %v2615_v19 = vadd.f32 %v2614_v25, %v10895_v48  ;;  %v10896_v11 = vld [vmem:[#allocation45_spill] sm:$0xff]  ;;  %v2505_v40 = vadd.f32 %v2504_v46, %v8897_v20  ;;  %v2579_v10 = vadd.f32 %v2578_v53, %v10900_v2  ;;  %v10903_v15 = vld [vmem:[#allocation46_spill] sm:$0xff]  ;;  %v10904_v59 = vld [vmem:[#allocation12_spill] sm:$0xff] }
 0x35f   : > { %v2652_v31 = vadd.f32 %v2651_v54, %v10896_v11  ;;  %v2542_v32 = vadd.f32 %v2541_v63, %v10899_v1  ;;  %v2690_v29 = vadd.f32 %v2689_v34, %v10903_v15  ;;  %v2727_v57 = vadd.f32 %v2726_v28, %v10904_v59  ;;  %v10905_v43 = vld [vmem:[#allocation13_spill] sm:$0xff]  ;;  %v10907_v41 = vld [vmem:[#allocation63_spill] sm:$0xff]  ;;  %v10910_v21 = vld [vmem:[#allocation40_spill] sm:$0xff] }
 0x360   : > { %v2616_v12 = vadd.f32 %v2615_v19, %v10901_v56  ;;  %v2506_v35 = vadd.f32 %v2505_v40, %v10905_v43  ;;  %v10906_v58 = vld [vmem:[#allocation113_spill] sm:$0xff]  ;;  %v2580_v20 = vadd.f32 %v2579_v10, %v10907_v41  ;;  %v10908_v55 = vld [vmem:[#allocation31_spill] sm:$0xff]  ;;  %v10911_v50 = vld [vmem:[#allocation52_spill] sm:$0xff]  ;;  %v2471_v4 = vadd.f32 %v2470_v7, %v9049_v49 }
 0x361   : > { %v2653_v17 = vadd.f32 %v2652_v31, %v10902_v27  ;;  %v2543_v47 = vadd.f32 %v2542_v32, %v10906_v58  ;;  %v10909_v5 = vld [vmem:[#allocation105_spill] sm:$0xff]  ;;  %v2691_v52 = vadd.f32 %v2690_v29, %v10910_v21  ;;  %v2728_v33 = vadd.f32 %v2727_v57, %v10911_v50  ;;  %v10912_v38 = vld [vmem:[#allocation24_spill] sm:$0xff]  ;;  %v10914_v54 = vld [vmem:[#allocation195_spill] sm:$0xff] }
 0x362   : > { %v2617_v14 = vadd.f32 %v2616_v12, %v10908_v55  ;;  %v2507_v25 = vadd.f32 %v2506_v35, %v10912_v38  ;;  %v10913_v9 = vld [vmem:[#allocation17_spill] sm:$0xff]  ;;  %v2581_v44 = vadd.f32 %v2580_v20, %v10914_v54  ;;  %v10915_v36 = vld [vmem:[#allocation196_spill] sm:$0xff]  ;;  %v10917_v8 = vld [vmem:[#allocation198_spill] sm:$0xff]  ;;  %v2472_v30 = vadd.f32 %v2471_v4, %v9097_v0 }
 0x363   : > { %v2654_v42 = vadd.f32 %v2653_v17, %v10909_v5  ;;  %v2544_v18 = vadd.f32 %v2543_v47, %v10913_v9  ;;  %v10916_v37 = vld [vmem:[#allocation197_spill] sm:$0xff]  ;;  %v2692_v6 = vadd.f32 %v2691_v52, %v10917_v8  ;;  %v10918_v63 = vld [vmem:[#allocation199_spill] sm:$0xff]  ;;  %v10919_v53 = vld [vmem:[#allocation200_spill] sm:$0xff] }
 0x364   : > { %v2618_v61 = vadd.f32 %v2617_v14, %v10915_v36  ;;  %v2729_v13 = vadd.f32 %v2728_v33, %v10918_v63  ;;  %v2508_v48 = vadd.f32 %v2507_v25, %v10919_v53  ;;  %v10920_v19 = vld [vmem:[#allocation201_spill] sm:$0xff]  ;;  %v10921_v11 = vld [vmem:[#allocation202_spill] sm:$0xff]  ;;  %v10922_v26 = vld [vmem:[#allocation203_spill] sm:$0xff] }
 0x365   : > { %v2655_v46 = vadd.f32 %v2654_v42, %v10916_v37  ;;  %v2545_v16 = vadd.f32 %v2544_v18, %v10920_v19  ;;  %v2582_v31 = vadd.f32 %v2581_v44, %v10921_v11  ;;  %v10923_v28 = vld [vmem:[#allocation204_spill] sm:$0xff]  ;;  %v10924_v1 = vld [vmem:[#allocation205_spill] sm:$0xff]  ;;  %v10925_v32 = vld [vmem:[#allocation206_spill] sm:$0xff] }
 0x366   : > { %v2619_v34 = vadd.f32 %v2618_v61, %v10922_v26  ;;  %v2693_v49 = vadd.f32 %v2692_v6, %v10924_v1  ;;  %v2730_v2 = vadd.f32 %v2729_v13, %v10925_v32  ;;  %v10926_v10 = vld [vmem:[#allocation207_spill] sm:$0xff]  ;;  %v10927_v12 = vld [vmem:[#allocation208_spill] sm:$0xff]  ;;  %v10928_v27 = vld [vmem:[#allocation209_spill] sm:$0xff] }
 0x367   : > { %v2656_v40 = vadd.f32 %v2655_v46, %v10923_v28  ;;  %v2509_v56 = vadd.f32 %v2508_v48, %v10926_v10  ;;  %v2546_v51 = vadd.f32 %v2545_v16, %v10927_v12  ;;  %v2583_v17 = vadd.f32 %v2582_v31, %v10928_v27  ;;  %v10929_v15 = vld [vmem:[#allocation210_spill] sm:$0xff]  ;;  %v10931_v43 = vld [vmem:[#allocation211_spill] sm:$0xff]  ;;  %v10932_v58 = vld [vmem:[#allocation212_spill] sm:$0xff] }
 0x368   : > { %v2620_v29 = vadd.f32 %v2619_v34, %v10929_v15  ;;  %v10930_v59 = vld [vmem:[#allocation214_spill] sm:$0xff]  ;;  %v2694_v0 = vadd.f32 %v2693_v49, %v10932_v58  ;;  %v10933_v47 = vld [vmem:[#allocation213_spill] sm:$0xff]  ;;  %v10934_v20 = vld [vmem:[#allocation215_spill] sm:$0xff] }
 0x369   : > { %v2473_v57 = vadd.f32 %v2472_v30, %v10930_v59  ;;  %v2657_v35 = vadd.f32 %v2656_v40, %v10931_v43  ;;  %v2731_v41 = vadd.f32 %v2730_v2, %v10933_v47  ;;  %v2510_v55 = vadd.f32 %v2509_v56, %v10934_v20  ;;  %v10935_v14 = vld [vmem:[#allocation216_spill] sm:$0xff]  ;;  %v10936_v5 = vld [vmem:[#allocation217_spill] sm:$0xff]  ;;  %v10937_v21 = vld [vmem:[#allocation218_spill] sm:$0xff] }
 0x36a   : > { %v2547_v7 = vadd.f32 %v2546_v51, %v10935_v14  ;;  %v2584_v42 = vadd.f32 %v2583_v17, %v10936_v5  ;;  %v2621_v52 = vadd.f32 %v2620_v29, %v10937_v21  ;;  %v10938_v33 = vld [vmem:[#allocation219_spill] sm:$0xff]  ;;  %v2695_v25 = vadd.f32 %v2694_v0, %v9181_v3  ;;  %v10939_v9 = vld [vmem:[#allocation220_spill] sm:$0xff] }
 0x36b   : > { %v2474_v50 = vadd.f32 %v2473_v57, %v9193_v62  ;;  %v2658_v38 = vadd.f32 %v2657_v35, %v10938_v33  ;;  %v2732_v18 = vadd.f32 %v2731_v41, %v10939_v9  ;;  %v2511_v54 = vadd.f32 %v2510_v55, %v9199_v39  ;;  %v10940_v62 = vld [vmem:[#allocation221_spill] sm:$0xff] }
 0x36c   : > { %v2548_v44 = vadd.f32 %v2547_v7, %v9205_v22  ;;  %v2585_v36 = vadd.f32 %v2584_v42, %v9211_v45  ;;  %v2622_v61 = vadd.f32 %v2621_v52, %v9217_v24  ;;  %v2696_v46 = vadd.f32 %v2695_v25, %v9229_v23  ;;  %v10942_v33 = vld [vmem:[#allocation41_spill] sm:$0xff]  ;;  %v10943_v25 = vld [vmem:[#allocation131_spill] sm:$0xff] }
 0x36d   : > { %v2475_v4 = vrot.slane %v2474_v50, 4  ;;  %v2659_v37 = vadd.f32 %v2658_v38, %v9223_v60  ;;  %v2733_v8 = vadd.f32 %v2732_v18, %v10940_v62  ;;  %v2512_v6 = vrot.slane %v2511_v54, 4  ;;  %v10944_v18 = vld [vmem:[#allocation86_spill] sm:$0xff] }
 0x36e   : > { %v2549_v63 = vrot.slane %v2548_v44, 4  ;;  %v2586_v3 = vrot.slane %v2585_v36, 4  ;;  %v2623_v13 = vrot.slane %v2622_v61, 4  ;;  %v2697_v39 = vrot.slane %v2696_v46, 4 }
 0x36f   : > { %v2476_v53 = vadd.f32 %v2475_v4, %v2474_v50  ;;  %v2660_v48 = vrot.slane %v2659_v37, 4  ;;  %v2734_v19 = vrot.slane %v2733_v8, 4  ;;  %v2513_v22 = vadd.f32 %v2512_v6, %v2511_v54 }
 0x370   : > { %v2550_v16 = vadd.f32 %v2549_v63, %v2548_v44  ;;  %v2587_v45 = vadd.f32 %v2586_v3, %v2585_v36  ;;  %v2624_v11 = vadd.f32 %v2623_v13, %v2622_v61  ;;  %v2698_v26 = vadd.f32 %v2697_v39, %v2696_v46 }
 0x371   : > { %v2477_v24 = vrot.slane %v2476_v53, 2  ;;  %v2661_v31 = vadd.f32 %v2660_v48, %v2659_v37  ;;  %v2735_v60 = vadd.f32 %v2734_v19, %v2733_v8  ;;  %v2514_v34 = vrot.slane %v2513_v22, 2  ;;  %v10945_v19 = vld [vmem:[#allocation133_spill] sm:$0xff] }
 0x372   : > { %v2551_v23 = vrot.slane %v2550_v16, 2  ;;  %v2588_v30 = vrot.slane %v2587_v45, 2  ;;  %v2625_v28 = vrot.slane %v2624_v11, 2  ;;  %v2699_v49 = vrot.slane %v2698_v26, 2 }
 0x373   : > { %v2478_v40 = vadd.f32 %v2477_v24, %v2476_v53  ;;  %v2662_v1 = vrot.slane %v2661_v31, 2  ;;  %v2736_v32 = vrot.slane %v2735_v60, 2  ;;  %v2515_v2 = vadd.f32 %v2514_v34, %v2513_v22 }
 0x374   : > { %v2552_v10 = vadd.f32 %v2551_v23, %v2550_v16  ;;  %v2589_v56 = vadd.f32 %v2588_v30, %v2587_v45  ;;  %v2626_v12 = vadd.f32 %v2625_v28, %v2624_v11  ;;  %v2700_v17 = vadd.f32 %v2699_v49, %v2698_v26  ;;  %v10946_v16 = vld [vmem:[#allocation87_spill] sm:$0xff] }
 0x375   : > { %v2479_v51 = vrot.slane %v2478_v40, 1  ;;  %v2663_v27 = vadd.f32 %v2662_v1, %v2661_v31  ;;  %v2737_v15 = vadd.f32 %v2736_v32, %v2735_v60  ;;  %v2516_v29 = vrot.slane %v2515_v2, 1  ;;  %v10947_v11 = vld [vmem:[#allocation135_spill] sm:$0xff]  ;;  %v10948_v31 = vld [vmem:[#allocation94_spill] sm:$0xff]  ;;  %v10949_v60 = vld [vmem:[#allocation64_spill] sm:$0xff] }
 0x376   : > { %v2553_v59 = vrot.slane %v2552_v10, 1  ;;  %v2590_v57 = vrot.slane %v2589_v56, 1  ;;  %v2627_v43 = vrot.slane %v2626_v12, 1  ;;  %v2701_v0 = vrot.slane %v2700_v17, 1 }
 0x377   : > { %v2480_v35 = vadd.f32 %v2479_v51, %v2478_v40  ;;  %v2664_v58 = vrot.slane %v2663_v27, 1  ;;  %v2738_v47 = vrot.slane %v2737_v15, 1  ;;  %v2517_v41 = vadd.f32 %v2516_v29, %v2515_v2 }
 0x378   : > { %v2554_v20 = vadd.f32 %v2553_v59, %v2552_v10  ;;  %v2591_v55 = vadd.f32 %v2590_v57, %v2589_v56  ;;  %v2628_v14 = vadd.f32 %v2627_v43, %v2626_v12  ;;  %v2702_v5 = vadd.f32 %v2701_v0, %v2700_v17  ;;  %v2783_v43 = vld [vmem:[#allocation2] sm:$0xff] }
 0x379   : > { %v2665_v7 = vadd.f32 %v2664_v58, %v2663_v27  ;;  %v2739_v42 = vadd.f32 %v2738_v47, %v2737_v15  ;;  %v10941_v21 = vlaneseq  ;;  %v2750_v50 = vstv %s2974_s22 }
 0x37a   : > { %v2767_v38 = vsub.f32 %v10942_v33, %v2480_v35  ;;  %v2768_v9 = vsub.f32 %v10943_v25, %v2517_v41  ;;  %v2769_v54 = vsub.f32 %v10944_v18, %v2554_v20  ;;  %v2770_v22 = vsub.f32 %v10945_v19, %v2591_v55 }
 0x37b   : > { %v2742_v52 = vand.u32 127, %v10941_v21  ;;  %v2771_v45 = vsub.f32 %v10946_v16, %v2628_v14  ;;  %v2772_v24 = vsub.f32 %v10947_v11, %v2665_v7  ;;  %v2773_v26 = vsub.f32 %v10948_v31, %v2702_v5 }
 0x37c   : > { %v2774_v34 = vsub.f32 %v10949_v60, %v2739_v42 }
 0x37d   : > { %v2743_v44 = vadd.s32 128, %v2742_v52  ;;  %v2744_v36 = vadd.s32 256, %v2742_v52  ;;  %v2745_v61 = vadd.s32 384, %v2742_v52  ;;  %v2746_v4 = vadd.s32 512, %v2742_v52 }
 0x37e   : > { %v2747_v37 = vadd.s32 640, %v2742_v52  ;;  %v2748_v46 = vadd.s32 768, %v2742_v52  ;;  %v2749_v62 = vadd.s32 896, %v2742_v52  ;;  %v2751_v8 = vadd.s32 %v2750_v50, %v2742_v52 }
 0x37f   : > { %v2752_v6 = vadd.s32 %v2750_v50, %v2743_v44  ;;  %v2753_v63 = vadd.s32 %v2750_v50, %v2744_v36  ;;  %v2754_v3 = vadd.s32 %v2750_v50, %v2745_v61  ;;  %v2755_v13 = vadd.s32 %v2750_v50, %v2746_v4 }
 0x380   : > { %v2756_v53 = vadd.s32 %v2750_v50, %v2747_v37  ;;  %v2757_v48 = vadd.s32 %v2750_v50, %v2748_v46  ;;  %v2758_v39 = vadd.s32 %v2750_v50, %v2749_v62  ;;  %vm2759_vm2 = vcmp.lt.s32.totalorder %v2751_v8, 1280 }
 0x381   : > { %vm2760_vm10 = vcmp.lt.s32.totalorder %v2752_v6, 1280  ;;  %vm2761_vm4 = vcmp.lt.s32.totalorder %v2753_v63, 1280  ;;  %vm2762_vm5 = vcmp.lt.s32.totalorder %v2754_v3, 1280  ;;  %vm2763_vm6 = vcmp.lt.s32.totalorder %v2755_v13, 1280 }
 0x382   : > { %vm2764_vm13 = vcmp.lt.s32.totalorder %v2756_v53, 1280  ;;  %vm2765_vm12 = vcmp.lt.s32.totalorder %v2757_v48, 1280  ;;  %vm2766_vm0 = vcmp.lt.s32.totalorder %v2758_v39, 1280  ;;  %v2775_v23 = vsel %vm2759_vm2, %v2767_v38, 0.0 }
 0x383   : > { %v2776_v30 = vsel %vm2760_vm10, %v2768_v9, 0.0  ;;  %v2777_v28 = vsel %vm2761_vm4, %v2769_v54, 0.0  ;;  %v2778_v40 = vsel %vm2762_vm5, %v2770_v22, 0.0  ;;  %v2779_v1 = vsel %vm2763_vm6, %v2771_v45, 0.0 }
 0x384   : > { %v2780_v49 = vsel %vm2764_vm13, %v2772_v24, 0.0  ;;  %v2781_v32 = vsel %vm2765_vm12, %v2773_v26, 0.0  ;;  %v2782_v2 = vsel %vm2766_vm0, %v2774_v34, 0.0  ;;  %v2792_v10 = vrot.slane %v2776_v30, 7 }
 0x385   : > { %v2793_v56 = vrot.slane %v2777_v28, 6  ;;  %v2794_v12 = vrot.slane %v2778_v40, 5  ;;  %v2795_v51 = vrot.slane %v2779_v1, 4  ;;  %v2796_v27 = vrot.slane %v2780_v49, 3 }
 0x386   : > { %v2797_v17 = vrot.slane %v2781_v32, 2  ;;  %v2798_v15 = vrot.slane %v2782_v2, 1  ;;  %v2800_v29 = vsel %vm2799_vm7, %v2775_v23, %v2792_v10 }
 0x387   : > { %v2802_v59 = vsel %vm2801_vm3, %v2793_v56, %v2794_v12  ;;  %v2806_v57 = vsel %vm2805_vm11, %v2795_v51, %v2796_v27 }
 0x388   : > { %v2804_v35 = vsel %vm2803_vm9, %v2800_v29, %v2802_v59  ;;  %v2808_v58 = vsel %vm2807_vm8, %v2797_v17, %v2798_v15 }
 0x389   : > { %v2810_v0 = vsel %vm2809_vm1, %v2806_v57, %v2808_v58  ;;  %2819 = sbr.rel (%p2975_p7) target bundleno = 1051 (0x41b), region = 44 }
 0x38a   : > { %v2812_v47 = vsel %vm2811_vm15, %v2804_v35, %v2810_v0 }
 0x38b   : > { %v2814_v41 = vadd.f32 %v2812_v47, %v2783_v43 }
 0x38d   : > { %2815 = vst [vmem:[#allocation2] sm:$0xff] %v2814_v41 }
 0x38e   : > { %vm2855_vm14 = vcmask 0  }
 0x394   : > { %v2820_v20 = vld [vmem:[#allocation2] sm:$0xff] }
 0x395   : > { %v2822_v55 = vperm.slane %v2820_v20, 0  ;;  %v2823_v14 = vperm.slane %v2820_v20, 1  ;;  %v2824_v7 = vperm.slane %v2820_v20, 2  ;;  %v2825_v5 = vperm.slane %v2820_v20, 3 }
 0x396   : > { %v2826_v42 = vperm.slane %v2820_v20, 4  ;;  %v2827_v38 = vperm.slane %v2820_v20, 5  ;;  %v2828_v18 = vperm.slane %v2820_v20, 6  ;;  %v2829_v36 = vperm.slane %v2820_v20, 7 }
 0x397   : > { %v2838_v21 = vsel %vm2799_vm7, %v2822_v55, 0.0  ;;  %v2839_v52 = vsel %vm2799_vm7, %v2823_v14, 0.0  ;;  %v2841_v50 = vsel %vm2799_vm7, %v2824_v7, 0.0  ;;  %v2843_v25 = vsel %vm2799_vm7, %v2825_v5, 0.0 }
 0x398   : > { %v2840_v33 = vadd.f32 %v2839_v52, %v2838_v21  ;;  %v2845_v54 = vsel %vm2799_vm7, %v2826_v42, 0.0  ;;  %v2847_v61 = vsel %vm2799_vm7, %v2827_v38, 0.0  ;;  %v2849_v37 = vsel %vm2799_vm7, %v2828_v18, 0.0 }
 0x399   : > { %v2851_v62 = vsel %vm2799_vm7, %v2829_v36, 0.0 }
 0x39a   : > { %v2842_v9 = vadd.f32 %v2841_v50, %v2840_v33 }
 0x39c   : > { %v2844_v44 = vadd.f32 %v2843_v25, %v2842_v9 }
 0x39e   : > { %v2846_v4 = vadd.f32 %v2845_v54, %v2844_v44 }
 0x3a0   : > { %v2848_v46 = vadd.f32 %v2847_v61, %v2846_v4 }
 0x3a2   : > { %v2850_v8 = vadd.f32 %v2849_v37, %v2848_v46 }
 0x3a4   : > { %v2852_v6 = vadd.f32 %v2851_v62, %v2850_v8 }
 0x3a6   : > { %2853 = vadd.xlane.f32.xlu0 %v2852_v6 }
 0x419   : > { %v2854_v63 = vpop.xlane.xlu0 %2853 }
 0x41a   : > { %2856 = vst.msk [vmem:[%s242_s5] sm:$0x1] %vm2855_vm14, %v2854_v63 }
 0x41b PF: > { %s18_s16 = sadd.s32 1, %s4228_s16   ;;  %s10950_s7 = sld [smem:[#allocation11_spill]] }
 0x41c   : > { %p15_p8 = scmp.ge.s32.totalorder %s18_s16, 6   ;;  %s10951_s28 = sld [smem:[#allocation9_spill]] }
 0x41d   : > { %s10952_s30 = sld [smem:[#allocation10_spill]]  ;;  %s10953_s9 = smov %s4204_s10 }
 0x41e   : > { %s10954_s10 = smov %s4208_s11  ;;  %s10956_s12 = smov %s4220_s14 }
 0x41f   : > { %s10957_s13 = smov %s4224_s15  ;;  %17 = sbr.rel (!%p15_p8) target bundleno = 7 (0x7), region = 89 }
 0x421   : > { %s10955_s11 = smov %s10950_s7 }
 0x422   : > { %s10958_s14 = smov %s10951_s28 }
 0x423   : > { %s10959_s15 = smov %s10952_s30 }
 0x424   :  { %2874 = vsyncpa [#allocation4], 1 }
 0x425   :  { %2876 = vsyncpa [#allocation4 + $0x1], 1 }
 0x426   :  { %2877 = vsyncpa [#allocation6], 1 }
 0x427   :  { %2879 = vsyncpa [#allocation6 + $0x1], 1 }

</bundles_post_ra>
